<compile_context>
chip_gen: v7x
topology: tpu7x:2x2x1
jax: 0.10.0
libtpu: 0.0.40
codegen_flags: <defaults>
</compile_context>

<pallas_src>
import numpy as np

import jax
import jax.numpy as jnp
from jax.experimental import pallas as pl
from jax.experimental.pallas import tpu as pltpu


# ----------------------- The single fused kernel -----------------------

def _autoencoder_kernel(
    x_ref,
    g1_ref, w1_ref, gam1_ref, bet1_ref,
    g2_ref, w2_ref, gam2_ref, bet2_ref,
    g3_ref, w3_ref, gam3_ref, bet3_ref,
    g4_ref, w4_ref, gam4_ref, bet4_ref, u4_ref,
    g5_ref, w5_ref, gam5_ref, bet5_ref, u5_ref,
    g6_ref, w6_ref, b6_ref,
    o_ref,
):
    f32 = jnp.float32
    bf16 = jnp.bfloat16

    def conv(gsel_ref, wtap_ref, act_bf):
        """In-kernel im2col (gather-as-GEMM) + per-tap accumulated conv GEMM.

        gsel: [ntaps*M_out, M_in] 0/1 bf16, act: [M_in, C_in] bf16,
        wtap: [ntaps, C_in, N] bf16.  Returns f32 [M_out, N].
        """
        ntaps = wtap_ref.shape[0]
        gath = jnp.dot(gsel_ref[...], act_bf, preferred_element_type=f32)
        m_out = gath.shape[0] // ntaps
        acc = None
        for t in range(ntaps):
            patch_t = gath[t * m_out:(t + 1) * m_out, :].astype(bf16)
            term = jnp.dot(patch_t, wtap_ref[t], preferred_element_type=f32)
            acc = term if acc is None else acc + term
        return acc

    def bn_leaky(y, gam_ref, bet_ref):
        """Train-mode BatchNorm2d (batch stats over rows) + leaky_relu(0.01)."""
        inv = 1.0 / y.shape[0]
        mean = jnp.sum(y, axis=0, keepdims=True) * inv
        d = y - mean                                    # reused for var AND output
        var = jnp.sum(d * d, axis=0, keepdims=True) * inv
        scale = gam_ref[...] * jax.lax.rsqrt(var + 1e-5)
        z = d * scale + bet_ref[...]
        return jnp.maximum(z, 0.01 * z)

    def deconv_bn_leaky(gsel_ref, wtap_ref, gam_ref, bet_ref, u_ref, act_bf):
        """Sub-pixel ConvTranspose2d(3,s=2,p=1,op=1) + BN (stats pooled over the
        4 parity groups == full upsampled map) + leaky, then parity un-interleave
        back to the next layer's row-major [B*2H*2W, C] layout via 4 dots."""
        acc = conv(gsel_ref, wtap_ref, act_bf)          # [M, 4*C], parity groups
        m = acc.shape[0]
        c = gam_ref.shape[1]
        inv = 1.0 / (4 * m)
        cs = jnp.sum(acc, axis=0, keepdims=True)        # [1, 4C]
        mean = (cs[:, 0:c] + cs[:, c:2 * c]
                + cs[:, 2 * c:3 * c] + cs[:, 3 * c:4 * c]) * inv
        d = [acc[:, p * c:(p + 1) * c] - mean for p in range(4)]
        var = jnp.sum(d[0] * d[0] + d[1] * d[1] + d[2] * d[2] + d[3] * d[3],
                      axis=0, keepdims=True) * inv
        scale = gam_ref[...] * jax.lax.rsqrt(var + 1e-5)
        beta = bet_ref[...]
        nxt = None
        for p in range(4):
            z = d[p] * scale + beta
            h = jnp.maximum(z, 0.01 * z).astype(bf16)
            term = jnp.dot(u_ref[p], h, preferred_element_type=f32)
            nxt = term if nxt is None else nxt + term
        return nxt                                      # [4M, C] f32

    # ---------------- encoder ----------------
    a0 = x_ref[...]                                     # [512, 8] bf16 (Cin padded)
    a1 = bn_leaky(conv(g1_ref, w1_ref, a0), gam1_ref, bet1_ref)            # [128, 32]
    a2 = bn_leaky(conv(g2_ref, w2_ref, a1.astype(bf16)), gam2_ref, bet2_ref)  # [32, 64]
    a3 = bn_leaky(conv(g3_ref, w3_ref, a2.astype(bf16)), gam3_ref, bet3_ref)  # [8, 128]

    # ---------------- decoder ----------------
    a4 = deconv_bn_leaky(g4_ref, w4_ref, gam4_ref, bet4_ref, u4_ref,
                         a3.astype(bf16))               # [32, 64]
    a5 = deconv_bn_leaky(g5_ref, w5_ref, gam5_ref, bet5_ref, u5_ref,
                         a4.astype(bf16))               # [128, 32]

    # dec3: sub-pixel deconv (parity columns padded to 128) + bias + exact sigmoid.
    y = conv(g6_ref, w6_ref, a5.astype(bf16)) + b6_ref[...]                 # [128, 128]
    o_ref[...] = 1.0 / (1.0 + jnp.exp(-y))              # lane-dense full-width store


# ----------------------- Host-side one-time preparation -----------------------

def _enc_gather(B, H, W, k=3, stride=2, pad=1):
    """0/1 selection: [k*k*B*Ho*Wo, B*H*W]; tap t row m gathers the padded,
    strided conv input row for output position m (zero row if out of bounds)."""
    Ho = (H + 2 * pad - k) // stride + 1
    Wo = (W + 2 * pad - k) // stride + 1
    Mo, _ = B * Ho * Wo, B * H * W
    G = np.zeros((k * k * Mo, B * H * W), np.float32)
    for di in range(k):
        for dj in range(k):
            t = di * k + dj
            for b in range(B):
                for ho in range(Ho):
                    for wo in range(Wo):
                        ih = stride * ho - pad + di
                        iw = stride * wo - pad + dj
                        if 0 <= ih < H and 0 <= iw < W:
                            G[t * Mo + (b * Ho + ho) * Wo + wo,
                              (b * H + ih) * W + iw] = 1.0
    return G


def _dec_gather(B, H, W):
    """0/1 selection for the 2x2 sub-pixel deconv taps (high-side zero pad)."""
    M = B * H * W
    G = np.zeros((4 * M, M), np.float32)
    for a in range(2):
        for c in range(2):
            t = 2 * a + c
            for b in range(B):
                for h in range(H):
                    for w in range(W):
                        ih, iw = h + a, w + c
                        if ih < H and iw < W:
                            G[t * M + (b * H + h) * W + w,
                              (b * H + ih) * W + iw] = 1.0
    return G


def _uninterleave(B, H, W):
    """U[p]: [B*2H*2W, B*H*W] placing parity-group p of the grouped deconv
    output into the row-major upsampled activation."""
    Mi = B * H * W
    Mo = B * 2 * H * 2 * W
    U = np.zeros((4, Mo, Mi), np.float32)
    for b in range(B):
        for oh in range(2 * H):
            for ow in range(2 * W):
                p = 2 * (oh % 2) + (ow % 2)
                U[p, (b * 2 * H + oh) * 2 * W + ow,
                  (b * H + oh // 2) * W + ow // 2] = 1.0
    return U


def _conv_taps(w_oihw, cin_pad=None):
    """Conv2d weight [Cout, Cin, 3, 3] -> per-tap GEMM blocks [9, Cin(_pad), Cout]."""
    w = np.asarray(w_oihw, np.float32)
    cout, cin, k, _ = w.shape
    taps = np.transpose(w, (2, 3, 1, 0)).reshape(k * k, cin, cout)
    if cin_pad is not None and cin_pad > cin:
        taps = np.concatenate(
            [taps, np.zeros((k * k, cin_pad - cin, cout), np.float32)], axis=1)
    return taps


def _deconv_taps(w_iohw, ncols=None):
    """ConvTranspose2d weight [Cin, Cout, 3, 3] -> sub-pixel per-tap GEMM blocks
    [4, Cin, 4*Cout] (parity-major column groups).  Y[2h+r, 2w+s] gets
    X[h+a, w+b] * W[:, :, r+1-2a, s+1-2b] when that kernel index is valid."""
    w = np.asarray(w_iohw, np.float32)
    cin, cout = w.shape[0], w.shape[1]
    ncols = 4 * cout if ncols is None else ncols
    taps = np.zeros((4, cin, ncols), np.float32)
    for a in range(2):
        for c in range(2):
            t = 2 * a + c
            for r in range(2):
                for s in range(2):
                    kh, kw = r + 1 - 2 * a, s + 1 - 2 * c
                    if 0 <= kh < 3 and 0 <= kw < 3:
                        p = 2 * r + s
                        taps[t, :, p * cout:(p + 1) * cout] = w[:, :, kh, kw]
    return taps


def prepare_params(params, batch=2, height=16, width=16):
    """One-time packing of all weights / selection matrices into bf16 VMEM
    operands for the fused kernel (hoisted out of the per-step forward)."""
    B, H, W = batch, height, width
    bf = jnp.bfloat16
    f32 = jnp.float32

    def bn(name):
        g = params[name + "_g"].astype(f32).reshape(1, -1)
        b = params[name + "_b"].astype(f32).reshape(1, -1)
        return g, b

    gam1, bet1 = bn("bn1")
    gam2, bet2 = bn("bn2")
    gam3, bet3 = bn("bn3")
    gam4, bet4 = bn("bn4")
    gam5, bet5 = bn("bn5")

    # Conv/deconv biases feeding a train-mode BatchNorm cancel exactly in the
    # mean subtraction -> dropped.  Only dec3's bias survives; replicate it over
    # the 4 real parity columns of the padded [*, 128] output block.
    b6 = np.zeros((1, 128), np.float32)
    b6[0, :4] = float(np.asarray(params["dec3_b"])[0])

    prep = (
        jnp.asarray(_enc_gather(B, H, W), bf),                       # g1 [1152, 512]
        jnp.asarray(_conv_taps(params["enc1_w"], cin_pad=8), bf),    # w1 [9, 8, 32]
        gam1, bet1,
        jnp.asarray(_enc_gather(B, H // 2, W // 2), bf),             # g2 [288, 128]
        jnp.asarray(_conv_taps(params["enc2_w"]), bf),               # w2 [9, 32, 64]
        gam2, bet2,
        jnp.asarray(_enc_gather(B, H // 4, W // 4), bf),             # g3 [72, 32]
        jnp.asarray(_conv_taps(params["enc3_w"]), bf),               # w3 [9, 64, 128]
        gam3, bet3,
        jnp.asarray(_dec_gather(B, H // 8, W // 8), bf),             # g4 [32, 8]
        jnp.asarray(_deconv_taps(params["dec1_w"]), bf),             # w4 [4, 128, 256]
        gam4, bet4,
        jnp.asarray(_uninterleave(B, H // 8, W // 8), bf),           # u4 [4, 32, 8]
        jnp.asarray(_dec_gather(B, H // 4, W // 4), bf),             # g5 [128, 32]
        jnp.asarray(_deconv_taps(params["dec2_w"]), bf),             # w5 [4, 64, 128]
        gam5, bet5,
        jnp.asarray(_uninterleave(B, H // 4, W // 4), bf),           # u5 [4, 128, 32]
        jnp.asarray(_dec_gather(B, H // 2, W // 2), bf),             # g6 [512, 128]
        jnp.asarray(_deconv_taps(params["dec3_w"], ncols=128), bf),  # w6 [4, 32, 128]
        jnp.asarray(b6, f32),                                        # b6 [1, 128]
    )
    return prep


# ----------------------- Forward pass -----------------------

def forward(prep, x_nchw):
    B, _, H, W = x_nchw.shape
    assert B * H * W == prep[0].shape[1], "prep was built for a different shape"

    # NCHW -> flattened (b, h, w) rows; pad the single channel to 8 lanes (bf16).
    rows = jnp.transpose(x_nchw, (0, 2, 3, 1)).reshape(B * H * W, 1)
    rows = jnp.pad(rows, ((0, 0), (0, 7))).astype(jnp.bfloat16)

    m_out = B * (H // 2) * (W // 2)          # rows of the final grouped output
    out = pl.pallas_call(
        _autoencoder_kernel,
        out_shape=jax.ShapeDtypeStruct((m_out, 128), jnp.float32),
        in_specs=[pl.BlockSpec(memory_space=pltpu.MemorySpace.VMEM)] * (1 + len(prep)),
        out_specs=pl.BlockSpec(memory_space=pltpu.MemorySpace.VMEM),
    )(rows, *prep)

    # Grouped parity columns (p = 2r + s in cols 0..3) -> [B, 1, H, W] NCHW.
    g = out[:, :4].reshape(B, H // 2, W // 2, 2, 2)
    y = jnp.transpose(g, (0, 1, 3, 2, 4)).reshape(B, H, W)
    return y[:, None, :, :]


# ----------------------- Parameters -----------------------

def init_params(key):
    ks = jax.random.split(key, 12)

    def conv_w(k, shape, scale=0.1):
        return scale * jax.random.normal(k, shape, jnp.float32)

    def conv_b(k, n, scale=0.01):
        return scale * jax.random.normal(k, (n,), jnp.float32)

    params = {
        # Conv2d weights: [Cout, Cin, 3, 3]
        "enc1_w": conv_w(ks[0], (32, 1, 3, 3)),   "enc1_b": conv_b(ks[1], 32),
        "enc2_w": conv_w(ks[2], (64, 32, 3, 3)),  "enc2_b": conv_b(ks[3], 64),
        "enc3_w": conv_w(ks[4], (128, 64, 3, 3)), "enc3_b": conv_b(ks[5], 128),
        # ConvTranspose2d weights: [Cin, Cout, 3, 3]
        "dec1_w": conv_w(ks[6], (128, 64, 3, 3)), "dec1_b": conv_b(ks[7], 64),
        "dec2_w": conv_w(ks[8], (64, 32, 3, 3)),  "dec2_b": conv_b(ks[9], 32),
        "dec3_w": conv_w(ks[10], (32, 1, 3, 3)),  "dec3_b": conv_b(ks[11], 1),
        # BatchNorm affine params (PyTorch default init: gamma=1, beta=0)
        "bn1_g": jnp.ones((32,), jnp.float32),  "bn1_b": jnp.zeros((32,), jnp.float32),
        "bn2_g": jnp.ones((64,), jnp.float32),  "bn2_b": jnp.zeros((64,), jnp.float32),
        "bn3_g": jnp.ones((128,), jnp.float32), "bn3_b": jnp.zeros((128,), jnp.float32),
        "bn4_g": jnp.ones((64,), jnp.float32),  "bn4_b": jnp.zeros((64,), jnp.float32),
        "bn5_g": jnp.ones((32,), jnp.float32),  "bn5_b": jnp.zeros((32,), jnp.float32),
    }
    return params


# ----------------------- Main -----------------------

if __name__ == "__main__":
    key = jax.random.PRNGKey(0)
    kx, kp = jax.random.split(key)
    x = jax.random.normal(kx, (2, 1, 16, 16), jnp.float32)        # NCHW, Cin=1
    params = init_params(kp)
    prep = prepare_params(params)                                 # one-time host prep

    fwd = jax.jit(forward)
    y = jax.block_until_ready(fwd(prep, x))

    assert y.shape == (2, 1, 16, 16), y.shape
    assert y.dtype == jnp.float32
    assert bool(jnp.all(jnp.isfinite(y)))
    assert bool(jnp.all((y >= 0.0) & (y <= 1.0)))                 # sigmoid output range
    print("KERNEL_OK")
</pallas_src>

<mosaic_0001>
module attributes {stable_mosaic.version = 11 : i64} {
  func.func @_autoencoder_kernel(%arg0: memref<512x8xbf16, #tpu.memory_space<vmem>>, %arg1: memref<1152x512xbf16, #tpu.memory_space<vmem>>, %arg2: memref<9x8x32xbf16, #tpu.memory_space<vmem>>, %arg3: memref<1x32xf32, #tpu.memory_space<vmem>>, %arg4: memref<1x32xf32, #tpu.memory_space<vmem>>, %arg5: memref<288x128xbf16, #tpu.memory_space<vmem>>, %arg6: memref<9x32x64xbf16, #tpu.memory_space<vmem>>, %arg7: memref<1x64xf32, #tpu.memory_space<vmem>>, %arg8: memref<1x64xf32, #tpu.memory_space<vmem>>, %arg9: memref<72x32xbf16, #tpu.memory_space<vmem>>, %arg10: memref<9x64x128xbf16, #tpu.memory_space<vmem>>, %arg11: memref<1x128xf32, #tpu.memory_space<vmem>>, %arg12: memref<1x128xf32, #tpu.memory_space<vmem>>, %arg13: memref<32x8xbf16, #tpu.memory_space<vmem>>, %arg14: memref<4x128x256xbf16, #tpu.memory_space<vmem>>, %arg15: memref<1x64xf32, #tpu.memory_space<vmem>>, %arg16: memref<1x64xf32, #tpu.memory_space<vmem>>, %arg17: memref<4x32x8xbf16, #tpu.memory_space<vmem>>, %arg18: memref<128x32xbf16, #tpu.memory_space<vmem>>, %arg19: memref<4x64x128xbf16, #tpu.memory_space<vmem>>, %arg20: memref<1x32xf32, #tpu.memory_space<vmem>>, %arg21: memref<1x32xf32, #tpu.memory_space<vmem>>, %arg22: memref<4x128x32xbf16, #tpu.memory_space<vmem>>, %arg23: memref<512x128xbf16, #tpu.memory_space<vmem>>, %arg24: memref<4x32x128xbf16, #tpu.memory_space<vmem>>, %arg25: memref<1x128xf32, #tpu.memory_space<vmem>>, %arg26: memref<128x128xf32, #tpu.memory_space<vmem>>) attributes {dimension_semantics = [], scalar_prefetch = 0 : i64, scratch_operands = 0 : i64, tpu.core_type = #tpu.core_type<tc>} {
    %c0 = arith.constant 0 : index
    %c0_0 = arith.constant 0 : index
    %0 = vector.load %arg0[%c0, %c0_0] : memref<512x8xbf16, #tpu.memory_space<vmem>>, vector<512x8xbf16>
    %c0_1 = arith.constant 0 : index
    %c0_2 = arith.constant 0 : index
    %1 = vector.load %arg1[%c0_1, %c0_2] : memref<1152x512xbf16, #tpu.memory_space<vmem>>, vector<1152x512xbf16>
    %cst = arith.constant dense<0.000000e+00> : vector<1152x8xf32>
    %2 = tpu.matmul %1, %0, %cst {dimension_numbers = #tpu.dot_dimension_numbers<[1], [0], [0], [1], [0, 0, 1, 1], [], []>} : vector<1152x512xbf16>, vector<512x8xbf16>, vector<1152x8xf32> -> vector<1152x8xf32>
    %3 = vector.extract_strided_slice %2 {offsets = [0, 0], sizes = [128, 8], strides = [1, 1]} : vector<1152x8xf32> to vector<128x8xf32>
    %4 = arith.truncf %3 : vector<128x8xf32> to vector<128x8xbf16>
    %c0_3 = arith.constant 0 : index
    %c0_4 = arith.constant 0 : index
    %c0_5 = arith.constant 0 : index
    %5 = vector.load %arg2[%c0_3, %c0_4, %c0_5] : memref<9x8x32xbf16, #tpu.memory_space<vmem>>, vector<1x8x32xbf16>
    %6 = vector.shape_cast %5 : vector<1x8x32xbf16> to vector<8x32xbf16>
    %cst_6 = arith.constant dense<0.000000e+00> : vector<128x32xf32>
    %7 = tpu.matmul %4, %6, %cst_6 {dimension_numbers = #tpu.dot_dimension_numbers<[1], [0], [0], [1], [0, 0, 1, 1], [], []>} : vector<128x8xbf16>, vector<8x32xbf16>, vector<128x32xf32> -> vector<128x32xf32>
    %8 = vector.extract_strided_slice %2 {offsets = [128, 0], sizes = [128, 8], strides = [1, 1]} : vector<1152x8xf32> to vector<128x8xf32>
    %9 = arith.truncf %8 : vector<128x8xf32> to vector<128x8xbf16>
    %c1 = arith.constant 1 : index
    %c0_7 = arith.constant 0 : index
    %c0_8 = arith.constant 0 : index
    %10 = vector.load %arg2[%c1, %c0_7, %c0_8] : memref<9x8x32xbf16, #tpu.memory_space<vmem>>, vector<1x8x32xbf16>
    %11 = vector.shape_cast %10 : vector<1x8x32xbf16> to vector<8x32xbf16>
    %cst_9 = arith.constant dense<0.000000e+00> : vector<128x32xf32>
    %12 = tpu.matmul %9, %11, %cst_9 {dimension_numbers = #tpu.dot_dimension_numbers<[1], [0], [0], [1], [0, 0, 1, 1], [], []>} : vector<128x8xbf16>, vector<8x32xbf16>, vector<128x32xf32> -> vector<128x32xf32>
    %13 = arith.addf %7, %12 : vector<128x32xf32>
    %14 = vector.extract_strided_slice %2 {offsets = [256, 0], sizes = [128, 8], strides = [1, 1]} : vector<1152x8xf32> to vector<128x8xf32>
    %15 = arith.truncf %14 : vector<128x8xf32> to vector<128x8xbf16>
    %c2 = arith.constant 2 : index
    %c0_10 = arith.constant 0 : index
    %c0_11 = arith.constant 0 : index
    %16 = vector.load %arg2[%c2, %c0_10, %c0_11] : memref<9x8x32xbf16, #tpu.memory_space<vmem>>, vector<1x8x32xbf16>
    %17 = vector.shape_cast %16 : vector<1x8x32xbf16> to vector<8x32xbf16>
    %cst_12 = arith.constant dense<0.000000e+00> : vector<128x32xf32>
    %18 = tpu.matmul %15, %17, %cst_12 {dimension_numbers = #tpu.dot_dimension_numbers<[1], [0], [0], [1], [0, 0, 1, 1], [], []>} : vector<128x8xbf16>, vector<8x32xbf16>, vector<128x32xf32> -> vector<128x32xf32>
    %19 = arith.addf %13, %18 : vector<128x32xf32>
    %20 = vector.extract_strided_slice %2 {offsets = [384, 0], sizes = [128, 8], strides = [1, 1]} : vector<1152x8xf32> to vector<128x8xf32>
    %21 = arith.truncf %20 : vector<128x8xf32> to vector<128x8xbf16>
    %c3 = arith.constant 3 : index
    %c0_13 = arith.constant 0 : index
    %c0_14 = arith.constant 0 : index
    %22 = vector.load %arg2[%c3, %c0_13, %c0_14] : memref<9x8x32xbf16, #tpu.memory_space<vmem>>, vector<1x8x32xbf16>
    %23 = vector.shape_cast %22 : vector<1x8x32xbf16> to vector<8x32xbf16>
    %cst_15 = arith.constant dense<0.000000e+00> : vector<128x32xf32>
    %24 = tpu.matmul %21, %23, %cst_15 {dimension_numbers = #tpu.dot_dimension_numbers<[1], [0], [0], [1], [0, 0, 1, 1], [], []>} : vector<128x8xbf16>, vector<8x32xbf16>, vector<128x32xf32> -> vector<128x32xf32>
    %25 = arith.addf %19, %24 : vector<128x32xf32>
    %26 = vector.extract_strided_slice %2 {offsets = [512, 0], sizes = [128, 8], strides = [1, 1]} : vector<1152x8xf32> to vector<128x8xf32>
    %27 = arith.truncf %26 : vector<128x8xf32> to vector<128x8xbf16>
    %c4 = arith.constant 4 : index
    %c0_16 = arith.constant 0 : index
    %c0_17 = arith.constant 0 : index
    %28 = vector.load %arg2[%c4, %c0_16, %c0_17] : memref<9x8x32xbf16, #tpu.memory_space<vmem>>, vector<1x8x32xbf16>
    %29 = vector.shape_cast %28 : vector<1x8x32xbf16> to vector<8x32xbf16>
    %cst_18 = arith.constant dense<0.000000e+00> : vector<128x32xf32>
    %30 = tpu.matmul %27, %29, %cst_18 {dimension_numbers = #tpu.dot_dimension_numbers<[1], [0], [0], [1], [0, 0, 1, 1], [], []>} : vector<128x8xbf16>, vector<8x32xbf16>, vector<128x32xf32> -> vector<128x32xf32>
    %31 = arith.addf %25, %30 : vector<128x32xf32>
    %32 = vector.extract_strided_slice %2 {offsets = [640, 0], sizes = [128, 8], strides = [1, 1]} : vector<1152x8xf32> to vector<128x8xf32>
    %33 = arith.truncf %32 : vector<128x8xf32> to vector<128x8xbf16>
    %c5 = arith.constant 5 : index
    %c0_19 = arith.constant 0 : index
    %c0_20 = arith.constant 0 : index
    %34 = vector.load %arg2[%c5, %c0_19, %c0_20] : memref<9x8x32xbf16, #tpu.memory_space<vmem>>, vector<1x8x32xbf16>
    %35 = vector.shape_cast %34 : vector<1x8x32xbf16> to vector<8x32xbf16>
    %cst_21 = arith.constant dense<0.000000e+00> : vector<128x32xf32>
    %36 = tpu.matmul %33, %35, %cst_21 {dimension_numbers = #tpu.dot_dimension_numbers<[1], [0], [0], [1], [0, 0, 1, 1], [], []>} : vector<128x8xbf16>, vector<8x32xbf16>, vector<128x32xf32> -> vector<128x32xf32>
    %37 = arith.addf %31, %36 : vector<128x32xf32>
    %38 = vector.extract_strided_slice %2 {offsets = [768, 0], sizes = [128, 8], strides = [1, 1]} : vector<1152x8xf32> to vector<128x8xf32>
    %39 = arith.truncf %38 : vector<128x8xf32> to vector<128x8xbf16>
    %c6 = arith.constant 6 : index
    %c0_22 = arith.constant 0 : index
    %c0_23 = arith.constant 0 : index
    %40 = vector.load %arg2[%c6, %c0_22, %c0_23] : memref<9x8x32xbf16, #tpu.memory_space<vmem>>, vector<1x8x32xbf16>
    %41 = vector.shape_cast %40 : vector<1x8x32xbf16> to vector<8x32xbf16>
    %cst_24 = arith.constant dense<0.000000e+00> : vector<128x32xf32>
    %42 = tpu.matmul %39, %41, %cst_24 {dimension_numbers = #tpu.dot_dimension_numbers<[1], [0], [0], [1], [0, 0, 1, 1], [], []>} : vector<128x8xbf16>, vector<8x32xbf16>, vector<128x32xf32> -> vector<128x32xf32>
    %43 = arith.addf %37, %42 : vector<128x32xf32>
    %44 = vector.extract_strided_slice %2 {offsets = [896, 0], sizes = [128, 8], strides = [1, 1]} : vector<1152x8xf32> to vector<128x8xf32>
    %45 = arith.truncf %44 : vector<128x8xf32> to vector<128x8xbf16>
    %c7 = arith.constant 7 : index
    %c0_25 = arith.constant 0 : index
    %c0_26 = arith.constant 0 : index
    %46 = vector.load %arg2[%c7, %c0_25, %c0_26] : memref<9x8x32xbf16, #tpu.memory_space<vmem>>, vector<1x8x32xbf16>
    %47 = vector.shape_cast %46 : vector<1x8x32xbf16> to vector<8x32xbf16>
    %cst_27 = arith.constant dense<0.000000e+00> : vector<128x32xf32>
    %48 = tpu.matmul %45, %47, %cst_27 {dimension_numbers = #tpu.dot_dimension_numbers<[1], [0], [0], [1], [0, 0, 1, 1], [], []>} : vector<128x8xbf16>, vector<8x32xbf16>, vector<128x32xf32> -> vector<128x32xf32>
    %49 = arith.addf %43, %48 : vector<128x32xf32>
    %50 = vector.extract_strided_slice %2 {offsets = [1024, 0], sizes = [128, 8], strides = [1, 1]} : vector<1152x8xf32> to vector<128x8xf32>
    %51 = arith.truncf %50 : vector<128x8xf32> to vector<128x8xbf16>
    %c8 = arith.constant 8 : index
    %c0_28 = arith.constant 0 : index
    %c0_29 = arith.constant 0 : index
    %52 = vector.load %arg2[%c8, %c0_28, %c0_29] : memref<9x8x32xbf16, #tpu.memory_space<vmem>>, vector<1x8x32xbf16>
    %53 = vector.shape_cast %52 : vector<1x8x32xbf16> to vector<8x32xbf16>
    %cst_30 = arith.constant dense<0.000000e+00> : vector<128x32xf32>
    %54 = tpu.matmul %51, %53, %cst_30 {dimension_numbers = #tpu.dot_dimension_numbers<[1], [0], [0], [1], [0, 0, 1, 1], [], []>} : vector<128x8xbf16>, vector<8x32xbf16>, vector<128x32xf32> -> vector<128x32xf32>
    %55 = arith.addf %49, %54 : vector<128x32xf32>
    %cst_31 = arith.constant dense<0.000000e+00> : vector<32xf32>
    %56 = vector.multi_reduction <add>, %55, %cst_31 [0] : vector<128x32xf32> to vector<32xf32>
    %57 = vector.shape_cast %56 : vector<32xf32> to vector<1x32xf32>
    %cst_32 = arith.constant 7.812500e-03 : f32
    %58 = vector.broadcast %cst_32 : f32 to vector<1x32xf32>
    %59 = arith.mulf %57, %58 : vector<1x32xf32>
    %60 = vector.broadcast %59 : vector<1x32xf32> to vector<128x32xf32>
    %61 = arith.subf %55, %60 : vector<128x32xf32>
    %62 = arith.mulf %61, %61 : vector<128x32xf32>
    %cst_33 = arith.constant dense<0.000000e+00> : vector<32xf32>
    %63 = vector.multi_reduction <add>, %62, %cst_33 [0] : vector<128x32xf32> to vector<32xf32>
    %64 = vector.shape_cast %63 : vector<32xf32> to vector<1x32xf32>
    %cst_34 = arith.constant 7.812500e-03 : f32
    %65 = vector.broadcast %cst_34 : f32 to vector<1x32xf32>
    %66 = arith.mulf %64, %65 : vector<1x32xf32>
    %c0_35 = arith.constant 0 : index
    %c0_36 = arith.constant 0 : index
    %67 = vector.load %arg3[%c0_35, %c0_36] : memref<1x32xf32, #tpu.memory_space<vmem>>, vector<1x32xf32>
    %cst_37 = arith.constant 9.99999974E-6 : f32
    %68 = vector.broadcast %cst_37 : f32 to vector<1x32xf32>
    %69 = arith.addf %66, %68 : vector<1x32xf32>
    %70 = math.rsqrt %69 : vector<1x32xf32>
    %71 = arith.mulf %67, %70 : vector<1x32xf32>
    %72 = vector.broadcast %71 : vector<1x32xf32> to vector<128x32xf32>
    %73 = arith.mulf %61, %72 : vector<128x32xf32>
    %c0_38 = arith.constant 0 : index
    %c0_39 = arith.constant 0 : index
    %74 = vector.load %arg4[%c0_38, %c0_39] : memref<1x32xf32, #tpu.memory_space<vmem>>, vector<1x32xf32>
    %75 = vector.broadcast %74 : vector<1x32xf32> to vector<128x32xf32>
    %76 = arith.addf %73, %75 : vector<128x32xf32>
    %cst_40 = arith.constant 0.00999999977 : f32
    %77 = vector.broadcast %cst_40 : f32 to vector<128x32xf32>
    %78 = arith.mulf %77, %76 : vector<128x32xf32>
    %79 = arith.maximumf %76, %78 : vector<128x32xf32>
    %80 = arith.truncf %79 : vector<128x32xf32> to vector<128x32xbf16>
    %c0_41 = arith.constant 0 : index
    %c0_42 = arith.constant 0 : index
    %81 = vector.load %arg5[%c0_41, %c0_42] : memref<288x128xbf16, #tpu.memory_space<vmem>>, vector<288x128xbf16>
    %cst_43 = arith.constant dense<0.000000e+00> : vector<288x32xf32>
    %82 = tpu.matmul %81, %80, %cst_43 {dimension_numbers = #tpu.dot_dimension_numbers<[1], [0], [0], [1], [0, 0, 1, 1], [], []>} : vector<288x128xbf16>, vector<128x32xbf16>, vector<288x32xf32> -> vector<288x32xf32>
    %83 = vector.extract_strided_slice %82 {offsets = [0, 0], sizes = [32, 32], strides = [1, 1]} : vector<288x32xf32> to vector<32x32xf32>
    %84 = arith.truncf %83 : vector<32x32xf32> to vector<32x32xbf16>
    %c0_44 = arith.constant 0 : index
    %c0_45 = arith.constant 0 : index
    %c0_46 = arith.constant 0 : index
    %85 = vector.load %arg6[%c0_44, %c0_45, %c0_46] : memref<9x32x64xbf16, #tpu.memory_space<vmem>>, vector<1x32x64xbf16>
    %86 = vector.shape_cast %85 : vector<1x32x64xbf16> to vector<32x64xbf16>
    %cst_47 = arith.constant dense<0.000000e+00> : vector<32x64xf32>
    %87 = tpu.matmul %84, %86, %cst_47 {dimension_numbers = #tpu.dot_dimension_numbers<[1], [0], [0], [1], [0, 0, 1, 1], [], []>} : vector<32x32xbf16>, vector<32x64xbf16>, vector<32x64xf32> -> vector<32x64xf32>
    %88 = vector.extract_strided_slice %82 {offsets = [32, 0], sizes = [32, 32], strides = [1, 1]} : vector<288x32xf32> to vector<32x32xf32>
    %89 = arith.truncf %88 : vector<32x32xf32> to vector<32x32xbf16>
    %c1_48 = arith.constant 1 : index
    %c0_49 = arith.constant 0 : index
    %c0_50 = arith.constant 0 : index
    %90 = vector.load %arg6[%c1_48, %c0_49, %c0_50] : memref<9x32x64xbf16, #tpu.memory_space<vmem>>, vector<1x32x64xbf16>
    %91 = vector.shape_cast %90 : vector<1x32x64xbf16> to vector<32x64xbf16>
    %cst_51 = arith.constant dense<0.000000e+00> : vector<32x64xf32>
    %92 = tpu.matmul %89, %91, %cst_51 {dimension_numbers = #tpu.dot_dimension_numbers<[1], [0], [0], [1], [0, 0, 1, 1], [], []>} : vector<32x32xbf16>, vector<32x64xbf16>, vector<32x64xf32> -> vector<32x64xf32>
    %93 = arith.addf %87, %92 : vector<32x64xf32>
    %94 = vector.extract_strided_slice %82 {offsets = [64, 0], sizes = [32, 32], strides = [1, 1]} : vector<288x32xf32> to vector<32x32xf32>
    %95 = arith.truncf %94 : vector<32x32xf32> to vector<32x32xbf16>
    %c2_52 = arith.constant 2 : index
    %c0_53 = arith.constant 0 : index
    %c0_54 = arith.constant 0 : index
    %96 = vector.load %arg6[%c2_52, %c0_53, %c0_54] : memref<9x32x64xbf16, #tpu.memory_space<vmem>>, vector<1x32x64xbf16>
    %97 = vector.shape_cast %96 : vector<1x32x64xbf16> to vector<32x64xbf16>
    %cst_55 = arith.constant dense<0.000000e+00> : vector<32x64xf32>
    %98 = tpu.matmul %95, %97, %cst_55 {dimension_numbers = #tpu.dot_dimension_numbers<[1], [0], [0], [1], [0, 0, 1, 1], [], []>} : vector<32x32xbf16>, vector<32x64xbf16>, vector<32x64xf32> -> vector<32x64xf32>
    %99 = arith.addf %93, %98 : vector<32x64xf32>
    %100 = vector.extract_strided_slice %82 {offsets = [96, 0], sizes = [32, 32], strides = [1, 1]} : vector<288x32xf32> to vector<32x32xf32>
    %101 = arith.truncf %100 : vector<32x32xf32> to vector<32x32xbf16>
    %c3_56 = arith.constant 3 : index
    %c0_57 = arith.constant 0 : index
    %c0_58 = arith.constant 0 : index
    %102 = vector.load %arg6[%c3_56, %c0_57, %c0_58] : memref<9x32x64xbf16, #tpu.memory_space<vmem>>, vector<1x32x64xbf16>
    %103 = vector.shape_cast %102 : vector<1x32x64xbf16> to vector<32x64xbf16>
    %cst_59 = arith.constant dense<0.000000e+00> : vector<32x64xf32>
    %104 = tpu.matmul %101, %103, %cst_59 {dimension_numbers = #tpu.dot_dimension_numbers<[1], [0], [0], [1], [0, 0, 1, 1], [], []>} : vector<32x32xbf16>, vector<32x64xbf16>, vector<32x64xf32> -> vector<32x64xf32>
    %105 = arith.addf %99, %104 : vector<32x64xf32>
    %106 = vector.extract_strided_slice %82 {offsets = [128, 0], sizes = [32, 32], strides = [1, 1]} : vector<288x32xf32> to vector<32x32xf32>
    %107 = arith.truncf %106 : vector<32x32xf32> to vector<32x32xbf16>
    %c4_60 = arith.constant 4 : index
    %c0_61 = arith.constant 0 : index
    %c0_62 = arith.constant 0 : index
    %108 = vector.load %arg6[%c4_60, %c0_61, %c0_62] : memref<9x32x64xbf16, #tpu.memory_space<vmem>>, vector<1x32x64xbf16>
    %109 = vector.shape_cast %108 : vector<1x32x64xbf16> to vector<32x64xbf16>
    %cst_63 = arith.constant dense<0.000000e+00> : vector<32x64xf32>
    %110 = tpu.matmul %107, %109, %cst_63 {dimension_numbers = #tpu.dot_dimension_numbers<[1], [0], [0], [1], [0, 0, 1, 1], [], []>} : vector<32x32xbf16>, vector<32x64xbf16>, vector<32x64xf32> -> vector<32x64xf32>
    %111 = arith.addf %105, %110 : vector<32x64xf32>
    %112 = vector.extract_strided_slice %82 {offsets = [160, 0], sizes = [32, 32], strides = [1, 1]} : vector<288x32xf32> to vector<32x32xf32>
    %113 = arith.truncf %112 : vector<32x32xf32> to vector<32x32xbf16>
    %c5_64 = arith.constant 5 : index
    %c0_65 = arith.constant 0 : index
    %c0_66 = arith.constant 0 : index
    %114 = vector.load %arg6[%c5_64, %c0_65, %c0_66] : memref<9x32x64xbf16, #tpu.memory_space<vmem>>, vector<1x32x64xbf16>
    %115 = vector.shape_cast %114 : vector<1x32x64xbf16> to vector<32x64xbf16>
    %cst_67 = arith.constant dense<0.000000e+00> : vector<32x64xf32>
    %116 = tpu.matmul %113, %115, %cst_67 {dimension_numbers = #tpu.dot_dimension_numbers<[1], [0], [0], [1], [0, 0, 1, 1], [], []>} : vector<32x32xbf16>, vector<32x64xbf16>, vector<32x64xf32> -> vector<32x64xf32>
    %117 = arith.addf %111, %116 : vector<32x64xf32>
    %118 = vector.extract_strided_slice %82 {offsets = [192, 0], sizes = [32, 32], strides = [1, 1]} : vector<288x32xf32> to vector<32x32xf32>
    %119 = arith.truncf %118 : vector<32x32xf32> to vector<32x32xbf16>
    %c6_68 = arith.constant 6 : index
    %c0_69 = arith.constant 0 : index
    %c0_70 = arith.constant 0 : index
    %120 = vector.load %arg6[%c6_68, %c0_69, %c0_70] : memref<9x32x64xbf16, #tpu.memory_space<vmem>>, vector<1x32x64xbf16>
    %121 = vector.shape_cast %120 : vector<1x32x64xbf16> to vector<32x64xbf16>
    %cst_71 = arith.constant dense<0.000000e+00> : vector<32x64xf32>
    %122 = tpu.matmul %119, %121, %cst_71 {dimension_numbers = #tpu.dot_dimension_numbers<[1], [0], [0], [1], [0, 0, 1, 1], [], []>} : vector<32x32xbf16>, vector<32x64xbf16>, vector<32x64xf32> -> vector<32x64xf32>
    %123 = arith.addf %117, %122 : vector<32x64xf32>
    %124 = vector.extract_strided_slice %82 {offsets = [224, 0], sizes = [32, 32], strides = [1, 1]} : vector<288x32xf32> to vector<32x32xf32>
    %125 = arith.truncf %124 : vector<32x32xf32> to vector<32x32xbf16>
    %c7_72 = arith.constant 7 : index
    %c0_73 = arith.constant 0 : index
    %c0_74 = arith.constant 0 : index
    %126 = vector.load %arg6[%c7_72, %c0_73, %c0_74] : memref<9x32x64xbf16, #tpu.memory_space<vmem>>, vector<1x32x64xbf16>
    %127 = vector.shape_cast %126 : vector<1x32x64xbf16> to vector<32x64xbf16>
    %cst_75 = arith.constant dense<0.000000e+00> : vector<32x64xf32>
    %128 = tpu.matmul %125, %127, %cst_75 {dimension_numbers = #tpu.dot_dimension_numbers<[1], [0], [0], [1], [0, 0, 1, 1], [], []>} : vector<32x32xbf16>, vector<32x64xbf16>, vector<32x64xf32> -> vector<32x64xf32>
    %129 = arith.addf %123, %128 : vector<32x64xf32>
    %130 = vector.extract_strided_slice %82 {offsets = [256, 0], sizes = [32, 32], strides = [1, 1]} : vector<288x32xf32> to vector<32x32xf32>
    %131 = arith.truncf %130 : vector<32x32xf32> to vector<32x32xbf16>
    %c8_76 = arith.constant 8 : index
    %c0_77 = arith.constant 0 : index
    %c0_78 = arith.constant 0 : index
    %132 = vector.load %arg6[%c8_76, %c0_77, %c0_78] : memref<9x32x64xbf16, #tpu.memory_space<vmem>>, vector<1x32x64xbf16>
    %133 = vector.shape_cast %132 : vector<1x32x64xbf16> to vector<32x64xbf16>
    %cst_79 = arith.constant dense<0.000000e+00> : vector<32x64xf32>
    %134 = tpu.matmul %131, %133, %cst_79 {dimension_numbers = #tpu.dot_dimension_numbers<[1], [0], [0], [1], [0, 0, 1, 1], [], []>} : vector<32x32xbf16>, vector<32x64xbf16>, vector<32x64xf32> -> vector<32x64xf32>
    %135 = arith.addf %129, %134 : vector<32x64xf32>
    %cst_80 = arith.constant dense<0.000000e+00> : vector<64xf32>
    %136 = vector.multi_reduction <add>, %135, %cst_80 [0] : vector<32x64xf32> to vector<64xf32>
    %137 = vector.shape_cast %136 : vector<64xf32> to vector<1x64xf32>
    %cst_81 = arith.constant 3.125000e-02 : f32
    %138 = vector.broadcast %cst_81 : f32 to vector<1x64xf32>
    %139 = arith.mulf %137, %138 : vector<1x64xf32>
    %140 = vector.broadcast %139 : vector<1x64xf32> to vector<32x64xf32>
    %141 = arith.subf %135, %140 : vector<32x64xf32>
    %142 = arith.mulf %141, %141 : vector<32x64xf32>
    %cst_82 = arith.constant dense<0.000000e+00> : vector<64xf32>
    %143 = vector.multi_reduction <add>, %142, %cst_82 [0] : vector<32x64xf32> to vector<64xf32>
    %144 = vector.shape_cast %143 : vector<64xf32> to vector<1x64xf32>
    %cst_83 = arith.constant 3.125000e-02 : f32
    %145 = vector.broadcast %cst_83 : f32 to vector<1x64xf32>
    %146 = arith.mulf %144, %145 : vector<1x64xf32>
    %c0_84 = arith.constant 0 : index
    %c0_85 = arith.constant 0 : index
    %147 = vector.load %arg7[%c0_84, %c0_85] : memref<1x64xf32, #tpu.memory_space<vmem>>, vector<1x64xf32>
    %cst_86 = arith.constant 9.99999974E-6 : f32
    %148 = vector.broadcast %cst_86 : f32 to vector<1x64xf32>
    %149 = arith.addf %146, %148 : vector<1x64xf32>
    %150 = math.rsqrt %149 : vector<1x64xf32>
    %151 = arith.mulf %147, %150 : vector<1x64xf32>
    %152 = vector.broadcast %151 : vector<1x64xf32> to vector<32x64xf32>
    %153 = arith.mulf %141, %152 : vector<32x64xf32>
    %c0_87 = arith.constant 0 : index
    %c0_88 = arith.constant 0 : index
    %154 = vector.load %arg8[%c0_87, %c0_88] : memref<1x64xf32, #tpu.memory_space<vmem>>, vector<1x64xf32>
    %155 = vector.broadcast %154 : vector<1x64xf32> to vector<32x64xf32>
    %156 = arith.addf %153, %155 : vector<32x64xf32>
    %cst_89 = arith.constant 0.00999999977 : f32
    %157 = vector.broadcast %cst_89 : f32 to vector<32x64xf32>
    %158 = arith.mulf %157, %156 : vector<32x64xf32>
    %159 = arith.maximumf %156, %158 : vector<32x64xf32>
    %160 = arith.truncf %159 : vector<32x64xf32> to vector<32x64xbf16>
    %c0_90 = arith.constant 0 : index
    %c0_91 = arith.constant 0 : index
    %161 = vector.load %arg9[%c0_90, %c0_91] : memref<72x32xbf16, #tpu.memory_space<vmem>>, vector<72x32xbf16>
    %cst_92 = arith.constant dense<0.000000e+00> : vector<72x64xf32>
    %162 = tpu.matmul %161, %160, %cst_92 {dimension_numbers = #tpu.dot_dimension_numbers<[1], [0], [0], [1], [0, 0, 1, 1], [], []>} : vector<72x32xbf16>, vector<32x64xbf16>, vector<72x64xf32> -> vector<72x64xf32>
    %163 = vector.extract_strided_slice %162 {offsets = [0, 0], sizes = [8, 64], strides = [1, 1]} : vector<72x64xf32> to vector<8x64xf32>
    %164 = arith.truncf %163 : vector<8x64xf32> to vector<8x64xbf16>
    %c0_93 = arith.constant 0 : index
    %c0_94 = arith.constant 0 : index
    %c0_95 = arith.constant 0 : index
    %165 = vector.load %arg10[%c0_93, %c0_94, %c0_95] : memref<9x64x128xbf16, #tpu.memory_space<vmem>>, vector<1x64x128xbf16>
    %166 = vector.shape_cast %165 : vector<1x64x128xbf16> to vector<64x128xbf16>
    %cst_96 = arith.constant dense<0.000000e+00> : vector<8x128xf32>
    %167 = tpu.matmul %164, %166, %cst_96 {dimension_numbers = #tpu.dot_dimension_numbers<[1], [0], [0], [1], [0, 0, 1, 1], [], []>} : vector<8x64xbf16>, vector<64x128xbf16>, vector<8x128xf32> -> vector<8x128xf32>
    %168 = vector.extract_strided_slice %162 {offsets = [8, 0], sizes = [8, 64], strides = [1, 1]} : vector<72x64xf32> to vector<8x64xf32>
    %169 = arith.truncf %168 : vector<8x64xf32> to vector<8x64xbf16>
    %c1_97 = arith.constant 1 : index
    %c0_98 = arith.constant 0 : index
    %c0_99 = arith.constant 0 : index
    %170 = vector.load %arg10[%c1_97, %c0_98, %c0_99] : memref<9x64x128xbf16, #tpu.memory_space<vmem>>, vector<1x64x128xbf16>
    %171 = vector.shape_cast %170 : vector<1x64x128xbf16> to vector<64x128xbf16>
    %cst_100 = arith.constant dense<0.000000e+00> : vector<8x128xf32>
    %172 = tpu.matmul %169, %171, %cst_100 {dimension_numbers = #tpu.dot_dimension_numbers<[1], [0], [0], [1], [0, 0, 1, 1], [], []>} : vector<8x64xbf16>, vector<64x128xbf16>, vector<8x128xf32> -> vector<8x128xf32>
    %173 = arith.addf %167, %172 : vector<8x128xf32>
    %174 = vector.extract_strided_slice %162 {offsets = [16, 0], sizes = [8, 64], strides = [1, 1]} : vector<72x64xf32> to vector<8x64xf32>
    %175 = arith.truncf %174 : vector<8x64xf32> to vector<8x64xbf16>
    %c2_101 = arith.constant 2 : index
    %c0_102 = arith.constant 0 : index
    %c0_103 = arith.constant 0 : index
    %176 = vector.load %arg10[%c2_101, %c0_102, %c0_103] : memref<9x64x128xbf16, #tpu.memory_space<vmem>>, vector<1x64x128xbf16>
    %177 = vector.shape_cast %176 : vector<1x64x128xbf16> to vector<64x128xbf16>
    %cst_104 = arith.constant dense<0.000000e+00> : vector<8x128xf32>
    %178 = tpu.matmul %175, %177, %cst_104 {dimension_numbers = #tpu.dot_dimension_numbers<[1], [0], [0], [1], [0, 0, 1, 1], [], []>} : vector<8x64xbf16>, vector<64x128xbf16>, vector<8x128xf32> -> vector<8x128xf32>
    %179 = arith.addf %173, %178 : vector<8x128xf32>
    %180 = vector.extract_strided_slice %162 {offsets = [24, 0], sizes = [8, 64], strides = [1, 1]} : vector<72x64xf32> to vector<8x64xf32>
    %181 = arith.truncf %180 : vector<8x64xf32> to vector<8x64xbf16>
    %c3_105 = arith.constant 3 : index
    %c0_106 = arith.constant 0 : index
    %c0_107 = arith.constant 0 : index
    %182 = vector.load %arg10[%c3_105, %c0_106, %c0_107] : memref<9x64x128xbf16, #tpu.memory_space<vmem>>, vector<1x64x128xbf16>
    %183 = vector.shape_cast %182 : vector<1x64x128xbf16> to vector<64x128xbf16>
    %cst_108 = arith.constant dense<0.000000e+00> : vector<8x128xf32>
    %184 = tpu.matmul %181, %183, %cst_108 {dimension_numbers = #tpu.dot_dimension_numbers<[1], [0], [0], [1], [0, 0, 1, 1], [], []>} : vector<8x64xbf16>, vector<64x128xbf16>, vector<8x128xf32> -> vector<8x128xf32>
    %185 = arith.addf %179, %184 : vector<8x128xf32>
    %186 = vector.extract_strided_slice %162 {offsets = [32, 0], sizes = [8, 64], strides = [1, 1]} : vector<72x64xf32> to vector<8x64xf32>
    %187 = arith.truncf %186 : vector<8x64xf32> to vector<8x64xbf16>
    %c4_109 = arith.constant 4 : index
    %c0_110 = arith.constant 0 : index
    %c0_111 = arith.constant 0 : index
    %188 = vector.load %arg10[%c4_109, %c0_110, %c0_111] : memref<9x64x128xbf16, #tpu.memory_space<vmem>>, vector<1x64x128xbf16>
    %189 = vector.shape_cast %188 : vector<1x64x128xbf16> to vector<64x128xbf16>
    %cst_112 = arith.constant dense<0.000000e+00> : vector<8x128xf32>
    %190 = tpu.matmul %187, %189, %cst_112 {dimension_numbers = #tpu.dot_dimension_numbers<[1], [0], [0], [1], [0, 0, 1, 1], [], []>} : vector<8x64xbf16>, vector<64x128xbf16>, vector<8x128xf32> -> vector<8x128xf32>
    %191 = arith.addf %185, %190 : vector<8x128xf32>
    %192 = vector.extract_strided_slice %162 {offsets = [40, 0], sizes = [8, 64], strides = [1, 1]} : vector<72x64xf32> to vector<8x64xf32>
    %193 = arith.truncf %192 : vector<8x64xf32> to vector<8x64xbf16>
    %c5_113 = arith.constant 5 : index
    %c0_114 = arith.constant 0 : index
    %c0_115 = arith.constant 0 : index
    %194 = vector.load %arg10[%c5_113, %c0_114, %c0_115] : memref<9x64x128xbf16, #tpu.memory_space<vmem>>, vector<1x64x128xbf16>
    %195 = vector.shape_cast %194 : vector<1x64x128xbf16> to vector<64x128xbf16>
    %cst_116 = arith.constant dense<0.000000e+00> : vector<8x128xf32>
    %196 = tpu.matmul %193, %195, %cst_116 {dimension_numbers = #tpu.dot_dimension_numbers<[1], [0], [0], [1], [0, 0, 1, 1], [], []>} : vector<8x64xbf16>, vector<64x128xbf16>, vector<8x128xf32> -> vector<8x128xf32>
    %197 = arith.addf %191, %196 : vector<8x128xf32>
    %198 = vector.extract_strided_slice %162 {offsets = [48, 0], sizes = [8, 64], strides = [1, 1]} : vector<72x64xf32> to vector<8x64xf32>
    %199 = arith.truncf %198 : vector<8x64xf32> to vector<8x64xbf16>
    %c6_117 = arith.constant 6 : index
    %c0_118 = arith.constant 0 : index
    %c0_119 = arith.constant 0 : index
    %200 = vector.load %arg10[%c6_117, %c0_118, %c0_119] : memref<9x64x128xbf16, #tpu.memory_space<vmem>>, vector<1x64x128xbf16>
    %201 = vector.shape_cast %200 : vector<1x64x128xbf16> to vector<64x128xbf16>
    %cst_120 = arith.constant dense<0.000000e+00> : vector<8x128xf32>
    %202 = tpu.matmul %199, %201, %cst_120 {dimension_numbers = #tpu.dot_dimension_numbers<[1], [0], [0], [1], [0, 0, 1, 1], [], []>} : vector<8x64xbf16>, vector<64x128xbf16>, vector<8x128xf32> -> vector<8x128xf32>
    %203 = arith.addf %197, %202 : vector<8x128xf32>
    %204 = vector.extract_strided_slice %162 {offsets = [56, 0], sizes = [8, 64], strides = [1, 1]} : vector<72x64xf32> to vector<8x64xf32>
    %205 = arith.truncf %204 : vector<8x64xf32> to vector<8x64xbf16>
    %c7_121 = arith.constant 7 : index
    %c0_122 = arith.constant 0 : index
    %c0_123 = arith.constant 0 : index
    %206 = vector.load %arg10[%c7_121, %c0_122, %c0_123] : memref<9x64x128xbf16, #tpu.memory_space<vmem>>, vector<1x64x128xbf16>
    %207 = vector.shape_cast %206 : vector<1x64x128xbf16> to vector<64x128xbf16>
    %cst_124 = arith.constant dense<0.000000e+00> : vector<8x128xf32>
    %208 = tpu.matmul %205, %207, %cst_124 {dimension_numbers = #tpu.dot_dimension_numbers<[1], [0], [0], [1], [0, 0, 1, 1], [], []>} : vector<8x64xbf16>, vector<64x128xbf16>, vector<8x128xf32> -> vector<8x128xf32>
    %209 = arith.addf %203, %208 : vector<8x128xf32>
    %210 = vector.extract_strided_slice %162 {offsets = [64, 0], sizes = [8, 64], strides = [1, 1]} : vector<72x64xf32> to vector<8x64xf32>
    %211 = arith.truncf %210 : vector<8x64xf32> to vector<8x64xbf16>
    %c8_125 = arith.constant 8 : index
    %c0_126 = arith.constant 0 : index
    %c0_127 = arith.constant 0 : index
    %212 = vector.load %arg10[%c8_125, %c0_126, %c0_127] : memref<9x64x128xbf16, #tpu.memory_space<vmem>>, vector<1x64x128xbf16>
    %213 = vector.shape_cast %212 : vector<1x64x128xbf16> to vector<64x128xbf16>
    %cst_128 = arith.constant dense<0.000000e+00> : vector<8x128xf32>
    %214 = tpu.matmul %211, %213, %cst_128 {dimension_numbers = #tpu.dot_dimension_numbers<[1], [0], [0], [1], [0, 0, 1, 1], [], []>} : vector<8x64xbf16>, vector<64x128xbf16>, vector<8x128xf32> -> vector<8x128xf32>
    %215 = arith.addf %209, %214 : vector<8x128xf32>
    %cst_129 = arith.constant dense<0.000000e+00> : vector<128xf32>
    %216 = vector.multi_reduction <add>, %215, %cst_129 [0] : vector<8x128xf32> to vector<128xf32>
    %217 = vector.shape_cast %216 : vector<128xf32> to vector<1x128xf32>
    %cst_130 = arith.constant 1.250000e-01 : f32
    %218 = vector.broadcast %cst_130 : f32 to vector<1x128xf32>
    %219 = arith.mulf %217, %218 : vector<1x128xf32>
    %220 = vector.broadcast %219 : vector<1x128xf32> to vector<8x128xf32>
    %221 = arith.subf %215, %220 : vector<8x128xf32>
    %222 = arith.mulf %221, %221 : vector<8x128xf32>
    %cst_131 = arith.constant dense<0.000000e+00> : vector<128xf32>
    %223 = vector.multi_reduction <add>, %222, %cst_131 [0] : vector<8x128xf32> to vector<128xf32>
    %224 = vector.shape_cast %223 : vector<128xf32> to vector<1x128xf32>
    %cst_132 = arith.constant 1.250000e-01 : f32
    %225 = vector.broadcast %cst_132 : f32 to vector<1x128xf32>
    %226 = arith.mulf %224, %225 : vector<1x128xf32>
    %c0_133 = arith.constant 0 : index
    %c0_134 = arith.constant 0 : index
    %227 = vector.load %arg11[%c0_133, %c0_134] : memref<1x128xf32, #tpu.memory_space<vmem>>, vector<1x128xf32>
    %cst_135 = arith.constant 9.99999974E-6 : f32
    %228 = vector.broadcast %cst_135 : f32 to vector<1x128xf32>
    %229 = arith.addf %226, %228 : vector<1x128xf32>
    %230 = math.rsqrt %229 : vector<1x128xf32>
    %231 = arith.mulf %227, %230 : vector<1x128xf32>
    %232 = vector.broadcast %231 : vector<1x128xf32> to vector<8x128xf32>
    %233 = arith.mulf %221, %232 : vector<8x128xf32>
    %c0_136 = arith.constant 0 : index
    %c0_137 = arith.constant 0 : index
    %234 = vector.load %arg12[%c0_136, %c0_137] : memref<1x128xf32, #tpu.memory_space<vmem>>, vector<1x128xf32>
    %235 = vector.broadcast %234 : vector<1x128xf32> to vector<8x128xf32>
    %236 = arith.addf %233, %235 : vector<8x128xf32>
    %cst_138 = arith.constant 0.00999999977 : f32
    %237 = vector.broadcast %cst_138 : f32 to vector<8x128xf32>
    %238 = arith.mulf %237, %236 : vector<8x128xf32>
    %239 = arith.maximumf %236, %238 : vector<8x128xf32>
    %240 = arith.truncf %239 : vector<8x128xf32> to vector<8x128xbf16>
    %c0_139 = arith.constant 0 : index
    %c0_140 = arith.constant 0 : index
    %241 = vector.load %arg13[%c0_139, %c0_140] : memref<32x8xbf16, #tpu.memory_space<vmem>>, vector<32x8xbf16>
    %cst_141 = arith.constant dense<0.000000e+00> : vector<32x128xf32>
    %242 = tpu.matmul %241, %240, %cst_141 {dimension_numbers = #tpu.dot_dimension_numbers<[1], [0], [0], [1], [0, 0, 1, 1], [], []>} : vector<32x8xbf16>, vector<8x128xbf16>, vector<32x128xf32> -> vector<32x128xf32>
    %243 = vector.extract_strided_slice %242 {offsets = [0, 0], sizes = [8, 128], strides = [1, 1]} : vector<32x128xf32> to vector<8x128xf32>
    %244 = arith.truncf %243 : vector<8x128xf32> to vector<8x128xbf16>
    %c0_142 = arith.constant 0 : index
    %c0_143 = arith.constant 0 : index
    %c0_144 = arith.constant 0 : index
    %245 = vector.load %arg14[%c0_142, %c0_143, %c0_144] : memref<4x128x256xbf16, #tpu.memory_space<vmem>>, vector<1x128x256xbf16>
    %246 = vector.shape_cast %245 : vector<1x128x256xbf16> to vector<128x256xbf16>
    %cst_145 = arith.constant dense<0.000000e+00> : vector<8x256xf32>
    %247 = tpu.matmul %244, %246, %cst_145 {dimension_numbers = #tpu.dot_dimension_numbers<[1], [0], [0], [1], [0, 0, 1, 1], [], []>} : vector<8x128xbf16>, vector<128x256xbf16>, vector<8x256xf32> -> vector<8x256xf32>
    %248 = vector.extract_strided_slice %242 {offsets = [8, 0], sizes = [8, 128], strides = [1, 1]} : vector<32x128xf32> to vector<8x128xf32>
    %249 = arith.truncf %248 : vector<8x128xf32> to vector<8x128xbf16>
    %c1_146 = arith.constant 1 : index
    %c0_147 = arith.constant 0 : index
    %c0_148 = arith.constant 0 : index
    %250 = vector.load %arg14[%c1_146, %c0_147, %c0_148] : memref<4x128x256xbf16, #tpu.memory_space<vmem>>, vector<1x128x256xbf16>
    %251 = vector.shape_cast %250 : vector<1x128x256xbf16> to vector<128x256xbf16>
    %cst_149 = arith.constant dense<0.000000e+00> : vector<8x256xf32>
    %252 = tpu.matmul %249, %251, %cst_149 {dimension_numbers = #tpu.dot_dimension_numbers<[1], [0], [0], [1], [0, 0, 1, 1], [], []>} : vector<8x128xbf16>, vector<128x256xbf16>, vector<8x256xf32> -> vector<8x256xf32>
    %253 = arith.addf %247, %252 : vector<8x256xf32>
    %254 = vector.extract_strided_slice %242 {offsets = [16, 0], sizes = [8, 128], strides = [1, 1]} : vector<32x128xf32> to vector<8x128xf32>
    %255 = arith.truncf %254 : vector<8x128xf32> to vector<8x128xbf16>
    %c2_150 = arith.constant 2 : index
    %c0_151 = arith.constant 0 : index
    %c0_152 = arith.constant 0 : index
    %256 = vector.load %arg14[%c2_150, %c0_151, %c0_152] : memref<4x128x256xbf16, #tpu.memory_space<vmem>>, vector<1x128x256xbf16>
    %257 = vector.shape_cast %256 : vector<1x128x256xbf16> to vector<128x256xbf16>
    %cst_153 = arith.constant dense<0.000000e+00> : vector<8x256xf32>
    %258 = tpu.matmul %255, %257, %cst_153 {dimension_numbers = #tpu.dot_dimension_numbers<[1], [0], [0], [1], [0, 0, 1, 1], [], []>} : vector<8x128xbf16>, vector<128x256xbf16>, vector<8x256xf32> -> vector<8x256xf32>
    %259 = arith.addf %253, %258 : vector<8x256xf32>
    %260 = vector.extract_strided_slice %242 {offsets = [24, 0], sizes = [8, 128], strides = [1, 1]} : vector<32x128xf32> to vector<8x128xf32>
    %261 = arith.truncf %260 : vector<8x128xf32> to vector<8x128xbf16>
    %c3_154 = arith.constant 3 : index
    %c0_155 = arith.constant 0 : index
    %c0_156 = arith.constant 0 : index
    %262 = vector.load %arg14[%c3_154, %c0_155, %c0_156] : memref<4x128x256xbf16, #tpu.memory_space<vmem>>, vector<1x128x256xbf16>
    %263 = vector.shape_cast %262 : vector<1x128x256xbf16> to vector<128x256xbf16>
    %cst_157 = arith.constant dense<0.000000e+00> : vector<8x256xf32>
    %264 = tpu.matmul %261, %263, %cst_157 {dimension_numbers = #tpu.dot_dimension_numbers<[1], [0], [0], [1], [0, 0, 1, 1], [], []>} : vector<8x128xbf16>, vector<128x256xbf16>, vector<8x256xf32> -> vector<8x256xf32>
    %265 = arith.addf %259, %264 : vector<8x256xf32>
    %cst_158 = arith.constant dense<0.000000e+00> : vector<256xf32>
    %266 = vector.multi_reduction <add>, %265, %cst_158 [0] : vector<8x256xf32> to vector<256xf32>
    %267 = vector.shape_cast %266 : vector<256xf32> to vector<1x256xf32>
    %268 = vector.extract_strided_slice %267 {offsets = [0, 0], sizes = [1, 64], strides = [1, 1]} : vector<1x256xf32> to vector<1x64xf32>
    %269 = vector.extract_strided_slice %267 {offsets = [0, 64], sizes = [1, 64], strides = [1, 1]} : vector<1x256xf32> to vector<1x64xf32>
    %270 = arith.addf %268, %269 : vector<1x64xf32>
    %271 = vector.extract_strided_slice %267 {offsets = [0, 128], sizes = [1, 64], strides = [1, 1]} : vector<1x256xf32> to vector<1x64xf32>
    %272 = arith.addf %270, %271 : vector<1x64xf32>
    %273 = vector.extract_strided_slice %267 {offsets = [0, 192], sizes = [1, 64], strides = [1, 1]} : vector<1x256xf32> to vector<1x64xf32>
    %274 = arith.addf %272, %273 : vector<1x64xf32>
    %cst_159 = arith.constant 3.125000e-02 : f32
    %275 = vector.broadcast %cst_159 : f32 to vector<1x64xf32>
    %276 = arith.mulf %274, %275 : vector<1x64xf32>
    %277 = vector.extract_strided_slice %265 {offsets = [0, 0], sizes = [8, 64], strides = [1, 1]} : vector<8x256xf32> to vector<8x64xf32>
    %278 = vector.broadcast %276 : vector<1x64xf32> to vector<8x64xf32>
    %279 = arith.subf %277, %278 : vector<8x64xf32>
    %280 = vector.extract_strided_slice %265 {offsets = [0, 64], sizes = [8, 64], strides = [1, 1]} : vector<8x256xf32> to vector<8x64xf32>
    %281 = vector.broadcast %276 : vector<1x64xf32> to vector<8x64xf32>
    %282 = arith.subf %280, %281 : vector<8x64xf32>
    %283 = vector.extract_strided_slice %265 {offsets = [0, 128], sizes = [8, 64], strides = [1, 1]} : vector<8x256xf32> to vector<8x64xf32>
    %284 = vector.broadcast %276 : vector<1x64xf32> to vector<8x64xf32>
    %285 = arith.subf %283, %284 : vector<8x64xf32>
    %286 = vector.extract_strided_slice %265 {offsets = [0, 192], sizes = [8, 64], strides = [1, 1]} : vector<8x256xf32> to vector<8x64xf32>
    %287 = vector.broadcast %276 : vector<1x64xf32> to vector<8x64xf32>
    %288 = arith.subf %286, %287 : vector<8x64xf32>
    %289 = arith.mulf %279, %279 : vector<8x64xf32>
    %290 = arith.mulf %282, %282 : vector<8x64xf32>
    %291 = arith.addf %289, %290 : vector<8x64xf32>
    %292 = arith.mulf %285, %285 : vector<8x64xf32>
    %293 = arith.addf %291, %292 : vector<8x64xf32>
    %294 = arith.mulf %288, %288 : vector<8x64xf32>
    %295 = arith.addf %293, %294 : vector<8x64xf32>
    %cst_160 = arith.constant dense<0.000000e+00> : vector<64xf32>
    %296 = vector.multi_reduction <add>, %295, %cst_160 [0] : vector<8x64xf32> to vector<64xf32>
    %297 = vector.shape_cast %296 : vector<64xf32> to vector<1x64xf32>
    %cst_161 = arith.constant 3.125000e-02 : f32
    %298 = vector.broadcast %cst_161 : f32 to vector<1x64xf32>
    %299 = arith.mulf %297, %298 : vector<1x64xf32>
    %c0_162 = arith.constant 0 : index
    %c0_163 = arith.constant 0 : index
    %300 = vector.load %arg15[%c0_162, %c0_163] : memref<1x64xf32, #tpu.memory_space<vmem>>, vector<1x64xf32>
    %cst_164 = arith.constant 9.99999974E-6 : f32
    %301 = vector.broadcast %cst_164 : f32 to vector<1x64xf32>
    %302 = arith.addf %299, %301 : vector<1x64xf32>
    %303 = math.rsqrt %302 : vector<1x64xf32>
    %304 = arith.mulf %300, %303 : vector<1x64xf32>
    %c0_165 = arith.constant 0 : index
    %c0_166 = arith.constant 0 : index
    %305 = vector.load %arg16[%c0_165, %c0_166] : memref<1x64xf32, #tpu.memory_space<vmem>>, vector<1x64xf32>
    %306 = vector.broadcast %304 : vector<1x64xf32> to vector<8x64xf32>
    %307 = arith.mulf %279, %306 : vector<8x64xf32>
    %308 = vector.broadcast %305 : vector<1x64xf32> to vector<8x64xf32>
    %309 = arith.addf %307, %308 : vector<8x64xf32>
    %cst_167 = arith.constant 0.00999999977 : f32
    %310 = vector.broadcast %cst_167 : f32 to vector<8x64xf32>
    %311 = arith.mulf %310, %309 : vector<8x64xf32>
    %312 = arith.maximumf %309, %311 : vector<8x64xf32>
    %313 = arith.truncf %312 : vector<8x64xf32> to vector<8x64xbf16>
    %c0_168 = arith.constant 0 : index
    %c0_169 = arith.constant 0 : index
    %c0_170 = arith.constant 0 : index
    %314 = vector.load %arg17[%c0_168, %c0_169, %c0_170] : memref<4x32x8xbf16, #tpu.memory_space<vmem>>, vector<1x32x8xbf16>
    %315 = vector.shape_cast %314 : vector<1x32x8xbf16> to vector<32x8xbf16>
    %cst_171 = arith.constant dense<0.000000e+00> : vector<32x64xf32>
    %316 = tpu.matmul %315, %313, %cst_171 {dimension_numbers = #tpu.dot_dimension_numbers<[1], [0], [0], [1], [0, 0, 1, 1], [], []>} : vector<32x8xbf16>, vector<8x64xbf16>, vector<32x64xf32> -> vector<32x64xf32>
    %317 = vector.broadcast %304 : vector<1x64xf32> to vector<8x64xf32>
    %318 = arith.mulf %282, %317 : vector<8x64xf32>
    %319 = vector.broadcast %305 : vector<1x64xf32> to vector<8x64xf32>
    %320 = arith.addf %318, %319 : vector<8x64xf32>
    %cst_172 = arith.constant 0.00999999977 : f32
    %321 = vector.broadcast %cst_172 : f32 to vector<8x64xf32>
    %322 = arith.mulf %321, %320 : vector<8x64xf32>
    %323 = arith.maximumf %320, %322 : vector<8x64xf32>
    %324 = arith.truncf %323 : vector<8x64xf32> to vector<8x64xbf16>
    %c1_173 = arith.constant 1 : index
    %c0_174 = arith.constant 0 : index
    %c0_175 = arith.constant 0 : index
    %325 = vector.load %arg17[%c1_173, %c0_174, %c0_175] : memref<4x32x8xbf16, #tpu.memory_space<vmem>>, vector<1x32x8xbf16>
    %326 = vector.shape_cast %325 : vector<1x32x8xbf16> to vector<32x8xbf16>
    %cst_176 = arith.constant dense<0.000000e+00> : vector<32x64xf32>
    %327 = tpu.matmul %326, %324, %cst_176 {dimension_numbers = #tpu.dot_dimension_numbers<[1], [0], [0], [1], [0, 0, 1, 1], [], []>} : vector<32x8xbf16>, vector<8x64xbf16>, vector<32x64xf32> -> vector<32x64xf32>
    %328 = arith.addf %316, %327 : vector<32x64xf32>
    %329 = vector.broadcast %304 : vector<1x64xf32> to vector<8x64xf32>
    %330 = arith.mulf %285, %329 : vector<8x64xf32>
    %331 = vector.broadcast %305 : vector<1x64xf32> to vector<8x64xf32>
    %332 = arith.addf %330, %331 : vector<8x64xf32>
    %cst_177 = arith.constant 0.00999999977 : f32
    %333 = vector.broadcast %cst_177 : f32 to vector<8x64xf32>
    %334 = arith.mulf %333, %332 : vector<8x64xf32>
    %335 = arith.maximumf %332, %334 : vector<8x64xf32>
    %336 = arith.truncf %335 : vector<8x64xf32> to vector<8x64xbf16>
    %c2_178 = arith.constant 2 : index
    %c0_179 = arith.constant 0 : index
    %c0_180 = arith.constant 0 : index
    %337 = vector.load %arg17[%c2_178, %c0_179, %c0_180] : memref<4x32x8xbf16, #tpu.memory_space<vmem>>, vector<1x32x8xbf16>
    %338 = vector.shape_cast %337 : vector<1x32x8xbf16> to vector<32x8xbf16>
    %cst_181 = arith.constant dense<0.000000e+00> : vector<32x64xf32>
    %339 = tpu.matmul %338, %336, %cst_181 {dimension_numbers = #tpu.dot_dimension_numbers<[1], [0], [0], [1], [0, 0, 1, 1], [], []>} : vector<32x8xbf16>, vector<8x64xbf16>, vector<32x64xf32> -> vector<32x64xf32>
    %340 = arith.addf %328, %339 : vector<32x64xf32>
    %341 = vector.broadcast %304 : vector<1x64xf32> to vector<8x64xf32>
    %342 = arith.mulf %288, %341 : vector<8x64xf32>
    %343 = vector.broadcast %305 : vector<1x64xf32> to vector<8x64xf32>
    %344 = arith.addf %342, %343 : vector<8x64xf32>
    %cst_182 = arith.constant 0.00999999977 : f32
    %345 = vector.broadcast %cst_182 : f32 to vector<8x64xf32>
    %346 = arith.mulf %345, %344 : vector<8x64xf32>
    %347 = arith.maximumf %344, %346 : vector<8x64xf32>
    %348 = arith.truncf %347 : vector<8x64xf32> to vector<8x64xbf16>
    %c3_183 = arith.constant 3 : index
    %c0_184 = arith.constant 0 : index
    %c0_185 = arith.constant 0 : index
    %349 = vector.load %arg17[%c3_183, %c0_184, %c0_185] : memref<4x32x8xbf16, #tpu.memory_space<vmem>>, vector<1x32x8xbf16>
    %350 = vector.shape_cast %349 : vector<1x32x8xbf16> to vector<32x8xbf16>
    %cst_186 = arith.constant dense<0.000000e+00> : vector<32x64xf32>
    %351 = tpu.matmul %350, %348, %cst_186 {dimension_numbers = #tpu.dot_dimension_numbers<[1], [0], [0], [1], [0, 0, 1, 1], [], []>} : vector<32x8xbf16>, vector<8x64xbf16>, vector<32x64xf32> -> vector<32x64xf32>
    %352 = arith.addf %340, %351 : vector<32x64xf32>
    %353 = arith.truncf %352 : vector<32x64xf32> to vector<32x64xbf16>
    %c0_187 = arith.constant 0 : index
    %c0_188 = arith.constant 0 : index
    %354 = vector.load %arg18[%c0_187, %c0_188] : memref<128x32xbf16, #tpu.memory_space<vmem>>, vector<128x32xbf16>
    %cst_189 = arith.constant dense<0.000000e+00> : vector<128x64xf32>
    %355 = tpu.matmul %354, %353, %cst_189 {dimension_numbers = #tpu.dot_dimension_numbers<[1], [0], [0], [1], [0, 0, 1, 1], [], []>} : vector<128x32xbf16>, vector<32x64xbf16>, vector<128x64xf32> -> vector<128x64xf32>
    %356 = vector.extract_strided_slice %355 {offsets = [0, 0], sizes = [32, 64], strides = [1, 1]} : vector<128x64xf32> to vector<32x64xf32>
    %357 = arith.truncf %356 : vector<32x64xf32> to vector<32x64xbf16>
    %c0_190 = arith.constant 0 : index
    %c0_191 = arith.constant 0 : index
    %c0_192 = arith.constant 0 : index
    %358 = vector.load %arg19[%c0_190, %c0_191, %c0_192] : memref<4x64x128xbf16, #tpu.memory_space<vmem>>, vector<1x64x128xbf16>
    %359 = vector.shape_cast %358 : vector<1x64x128xbf16> to vector<64x128xbf16>
    %cst_193 = arith.constant dense<0.000000e+00> : vector<32x128xf32>
    %360 = tpu.matmul %357, %359, %cst_193 {dimension_numbers = #tpu.dot_dimension_numbers<[1], [0], [0], [1], [0, 0, 1, 1], [], []>} : vector<32x64xbf16>, vector<64x128xbf16>, vector<32x128xf32> -> vector<32x128xf32>
    %361 = vector.extract_strided_slice %355 {offsets = [32, 0], sizes = [32, 64], strides = [1, 1]} : vector<128x64xf32> to vector<32x64xf32>
    %362 = arith.truncf %361 : vector<32x64xf32> to vector<32x64xbf16>
    %c1_194 = arith.constant 1 : index
    %c0_195 = arith.constant 0 : index
    %c0_196 = arith.constant 0 : index
    %363 = vector.load %arg19[%c1_194, %c0_195, %c0_196] : memref<4x64x128xbf16, #tpu.memory_space<vmem>>, vector<1x64x128xbf16>
    %364 = vector.shape_cast %363 : vector<1x64x128xbf16> to vector<64x128xbf16>
    %cst_197 = arith.constant dense<0.000000e+00> : vector<32x128xf32>
    %365 = tpu.matmul %362, %364, %cst_197 {dimension_numbers = #tpu.dot_dimension_numbers<[1], [0], [0], [1], [0, 0, 1, 1], [], []>} : vector<32x64xbf16>, vector<64x128xbf16>, vector<32x128xf32> -> vector<32x128xf32>
    %366 = arith.addf %360, %365 : vector<32x128xf32>
    %367 = vector.extract_strided_slice %355 {offsets = [64, 0], sizes = [32, 64], strides = [1, 1]} : vector<128x64xf32> to vector<32x64xf32>
    %368 = arith.truncf %367 : vector<32x64xf32> to vector<32x64xbf16>
    %c2_198 = arith.constant 2 : index
    %c0_199 = arith.constant 0 : index
    %c0_200 = arith.constant 0 : index
    %369 = vector.load %arg19[%c2_198, %c0_199, %c0_200] : memref<4x64x128xbf16, #tpu.memory_space<vmem>>, vector<1x64x128xbf16>
    %370 = vector.shape_cast %369 : vector<1x64x128xbf16> to vector<64x128xbf16>
    %cst_201 = arith.constant dense<0.000000e+00> : vector<32x128xf32>
    %371 = tpu.matmul %368, %370, %cst_201 {dimension_numbers = #tpu.dot_dimension_numbers<[1], [0], [0], [1], [0, 0, 1, 1], [], []>} : vector<32x64xbf16>, vector<64x128xbf16>, vector<32x128xf32> -> vector<32x128xf32>
    %372 = arith.addf %366, %371 : vector<32x128xf32>
    %373 = vector.extract_strided_slice %355 {offsets = [96, 0], sizes = [32, 64], strides = [1, 1]} : vector<128x64xf32> to vector<32x64xf32>
    %374 = arith.truncf %373 : vector<32x64xf32> to vector<32x64xbf16>
    %c3_202 = arith.constant 3 : index
    %c0_203 = arith.constant 0 : index
    %c0_204 = arith.constant 0 : index
    %375 = vector.load %arg19[%c3_202, %c0_203, %c0_204] : memref<4x64x128xbf16, #tpu.memory_space<vmem>>, vector<1x64x128xbf16>
    %376 = vector.shape_cast %375 : vector<1x64x128xbf16> to vector<64x128xbf16>
    %cst_205 = arith.constant dense<0.000000e+00> : vector<32x128xf32>
    %377 = tpu.matmul %374, %376, %cst_205 {dimension_numbers = #tpu.dot_dimension_numbers<[1], [0], [0], [1], [0, 0, 1, 1], [], []>} : vector<32x64xbf16>, vector<64x128xbf16>, vector<32x128xf32> -> vector<32x128xf32>
    %378 = arith.addf %372, %377 : vector<32x128xf32>
    %cst_206 = arith.constant dense<0.000000e+00> : vector<128xf32>
    %379 = vector.multi_reduction <add>, %378, %cst_206 [0] : vector<32x128xf32> to vector<128xf32>
    %380 = vector.shape_cast %379 : vector<128xf32> to vector<1x128xf32>
    %381 = vector.extract_strided_slice %380 {offsets = [0, 0], sizes = [1, 32], strides = [1, 1]} : vector<1x128xf32> to vector<1x32xf32>
    %382 = vector.extract_strided_slice %380 {offsets = [0, 32], sizes = [1, 32], strides = [1, 1]} : vector<1x128xf32> to vector<1x32xf32>
    %383 = arith.addf %381, %382 : vector<1x32xf32>
    %384 = vector.extract_strided_slice %380 {offsets = [0, 64], sizes = [1, 32], strides = [1, 1]} : vector<1x128xf32> to vector<1x32xf32>
    %385 = arith.addf %383, %384 : vector<1x32xf32>
    %386 = vector.extract_strided_slice %380 {offsets = [0, 96], sizes = [1, 32], strides = [1, 1]} : vector<1x128xf32> to vector<1x32xf32>
    %387 = arith.addf %385, %386 : vector<1x32xf32>
    %cst_207 = arith.constant 7.812500e-03 : f32
    %388 = vector.broadcast %cst_207 : f32 to vector<1x32xf32>
    %389 = arith.mulf %387, %388 : vector<1x32xf32>
    %390 = vector.extract_strided_slice %378 {offsets = [0, 0], sizes = [32, 32], strides = [1, 1]} : vector<32x128xf32> to vector<32x32xf32>
    %391 = vector.broadcast %389 : vector<1x32xf32> to vector<32x32xf32>
    %392 = arith.subf %390, %391 : vector<32x32xf32>
    %393 = vector.extract_strided_slice %378 {offsets = [0, 32], sizes = [32, 32], strides = [1, 1]} : vector<32x128xf32> to vector<32x32xf32>
    %394 = vector.broadcast %389 : vector<1x32xf32> to vector<32x32xf32>
    %395 = arith.subf %393, %394 : vector<32x32xf32>
    %396 = vector.extract_strided_slice %378 {offsets = [0, 64], sizes = [32, 32], strides = [1, 1]} : vector<32x128xf32> to vector<32x32xf32>
    %397 = vector.broadcast %389 : vector<1x32xf32> to vector<32x32xf32>
    %398 = arith.subf %396, %397 : vector<32x32xf32>
    %399 = vector.extract_strided_slice %378 {offsets = [0, 96], sizes = [32, 32], strides = [1, 1]} : vector<32x128xf32> to vector<32x32xf32>
    %400 = vector.broadcast %389 : vector<1x32xf32> to vector<32x32xf32>
    %401 = arith.subf %399, %400 : vector<32x32xf32>
    %402 = arith.mulf %392, %392 : vector<32x32xf32>
    %403 = arith.mulf %395, %395 : vector<32x32xf32>
    %404 = arith.addf %402, %403 : vector<32x32xf32>
    %405 = arith.mulf %398, %398 : vector<32x32xf32>
    %406 = arith.addf %404, %405 : vector<32x32xf32>
    %407 = arith.mulf %401, %401 : vector<32x32xf32>
    %408 = arith.addf %406, %407 : vector<32x32xf32>
    %cst_208 = arith.constant dense<0.000000e+00> : vector<32xf32>
    %409 = vector.multi_reduction <add>, %408, %cst_208 [0] : vector<32x32xf32> to vector<32xf32>
    %410 = vector.shape_cast %409 : vector<32xf32> to vector<1x32xf32>
    %cst_209 = arith.constant 7.812500e-03 : f32
    %411 = vector.broadcast %cst_209 : f32 to vector<1x32xf32>
    %412 = arith.mulf %410, %411 : vector<1x32xf32>
    %c0_210 = arith.constant 0 : index
    %c0_211 = arith.constant 0 : index
    %413 = vector.load %arg20[%c0_210, %c0_211] : memref<1x32xf32, #tpu.memory_space<vmem>>, vector<1x32xf32>
    %cst_212 = arith.constant 9.99999974E-6 : f32
    %414 = vector.broadcast %cst_212 : f32 to vector<1x32xf32>
    %415 = arith.addf %412, %414 : vector<1x32xf32>
    %416 = math.rsqrt %415 : vector<1x32xf32>
    %417 = arith.mulf %413, %416 : vector<1x32xf32>
    %c0_213 = arith.constant 0 : index
    %c0_214 = arith.constant 0 : index
    %418 = vector.load %arg21[%c0_213, %c0_214] : memref<1x32xf32, #tpu.memory_space<vmem>>, vector<1x32xf32>
    %419 = vector.broadcast %417 : vector<1x32xf32> to vector<32x32xf32>
    %420 = arith.mulf %392, %419 : vector<32x32xf32>
    %421 = vector.broadcast %418 : vector<1x32xf32> to vector<32x32xf32>
    %422 = arith.addf %420, %421 : vector<32x32xf32>
    %cst_215 = arith.constant 0.00999999977 : f32
    %423 = vector.broadcast %cst_215 : f32 to vector<32x32xf32>
    %424 = arith.mulf %423, %422 : vector<32x32xf32>
    %425 = arith.maximumf %422, %424 : vector<32x32xf32>
    %426 = arith.truncf %425 : vector<32x32xf32> to vector<32x32xbf16>
    %c0_216 = arith.constant 0 : index
    %c0_217 = arith.constant 0 : index
    %c0_218 = arith.constant 0 : index
    %427 = vector.load %arg22[%c0_216, %c0_217, %c0_218] : memref<4x128x32xbf16, #tpu.memory_space<vmem>>, vector<1x128x32xbf16>
    %428 = vector.shape_cast %427 : vector<1x128x32xbf16> to vector<128x32xbf16>
    %cst_219 = arith.constant dense<0.000000e+00> : vector<128x32xf32>
    %429 = tpu.matmul %428, %426, %cst_219 {dimension_numbers = #tpu.dot_dimension_numbers<[1], [0], [0], [1], [0, 0, 1, 1], [], []>} : vector<128x32xbf16>, vector<32x32xbf16>, vector<128x32xf32> -> vector<128x32xf32>
    %430 = vector.broadcast %417 : vector<1x32xf32> to vector<32x32xf32>
    %431 = arith.mulf %395, %430 : vector<32x32xf32>
    %432 = vector.broadcast %418 : vector<1x32xf32> to vector<32x32xf32>
    %433 = arith.addf %431, %432 : vector<32x32xf32>
    %cst_220 = arith.constant 0.00999999977 : f32
    %434 = vector.broadcast %cst_220 : f32 to vector<32x32xf32>
    %435 = arith.mulf %434, %433 : vector<32x32xf32>
    %436 = arith.maximumf %433, %435 : vector<32x32xf32>
    %437 = arith.truncf %436 : vector<32x32xf32> to vector<32x32xbf16>
    %c1_221 = arith.constant 1 : index
    %c0_222 = arith.constant 0 : index
    %c0_223 = arith.constant 0 : index
    %438 = vector.load %arg22[%c1_221, %c0_222, %c0_223] : memref<4x128x32xbf16, #tpu.memory_space<vmem>>, vector<1x128x32xbf16>
    %439 = vector.shape_cast %438 : vector<1x128x32xbf16> to vector<128x32xbf16>
    %cst_224 = arith.constant dense<0.000000e+00> : vector<128x32xf32>
    %440 = tpu.matmul %439, %437, %cst_224 {dimension_numbers = #tpu.dot_dimension_numbers<[1], [0], [0], [1], [0, 0, 1, 1], [], []>} : vector<128x32xbf16>, vector<32x32xbf16>, vector<128x32xf32> -> vector<128x32xf32>
    %441 = arith.addf %429, %440 : vector<128x32xf32>
    %442 = vector.broadcast %417 : vector<1x32xf32> to vector<32x32xf32>
    %443 = arith.mulf %398, %442 : vector<32x32xf32>
    %444 = vector.broadcast %418 : vector<1x32xf32> to vector<32x32xf32>
    %445 = arith.addf %443, %444 : vector<32x32xf32>
    %cst_225 = arith.constant 0.00999999977 : f32
    %446 = vector.broadcast %cst_225 : f32 to vector<32x32xf32>
    %447 = arith.mulf %446, %445 : vector<32x32xf32>
    %448 = arith.maximumf %445, %447 : vector<32x32xf32>
    %449 = arith.truncf %448 : vector<32x32xf32> to vector<32x32xbf16>
    %c2_226 = arith.constant 2 : index
    %c0_227 = arith.constant 0 : index
    %c0_228 = arith.constant 0 : index
    %450 = vector.load %arg22[%c2_226, %c0_227, %c0_228] : memref<4x128x32xbf16, #tpu.memory_space<vmem>>, vector<1x128x32xbf16>
    %451 = vector.shape_cast %450 : vector<1x128x32xbf16> to vector<128x32xbf16>
    %cst_229 = arith.constant dense<0.000000e+00> : vector<128x32xf32>
    %452 = tpu.matmul %451, %449, %cst_229 {dimension_numbers = #tpu.dot_dimension_numbers<[1], [0], [0], [1], [0, 0, 1, 1], [], []>} : vector<128x32xbf16>, vector<32x32xbf16>, vector<128x32xf32> -> vector<128x32xf32>
    %453 = arith.addf %441, %452 : vector<128x32xf32>
    %454 = vector.broadcast %417 : vector<1x32xf32> to vector<32x32xf32>
    %455 = arith.mulf %401, %454 : vector<32x32xf32>
    %456 = vector.broadcast %418 : vector<1x32xf32> to vector<32x32xf32>
    %457 = arith.addf %455, %456 : vector<32x32xf32>
    %cst_230 = arith.constant 0.00999999977 : f32
    %458 = vector.broadcast %cst_230 : f32 to vector<32x32xf32>
    %459 = arith.mulf %458, %457 : vector<32x32xf32>
    %460 = arith.maximumf %457, %459 : vector<32x32xf32>
    %461 = arith.truncf %460 : vector<32x32xf32> to vector<32x32xbf16>
    %c3_231 = arith.constant 3 : index
    %c0_232 = arith.constant 0 : index
    %c0_233 = arith.constant 0 : index
    %462 = vector.load %arg22[%c3_231, %c0_232, %c0_233] : memref<4x128x32xbf16, #tpu.memory_space<vmem>>, vector<1x128x32xbf16>
    %463 = vector.shape_cast %462 : vector<1x128x32xbf16> to vector<128x32xbf16>
    %cst_234 = arith.constant dense<0.000000e+00> : vector<128x32xf32>
    %464 = tpu.matmul %463, %461, %cst_234 {dimension_numbers = #tpu.dot_dimension_numbers<[1], [0], [0], [1], [0, 0, 1, 1], [], []>} : vector<128x32xbf16>, vector<32x32xbf16>, vector<128x32xf32> -> vector<128x32xf32>
    %465 = arith.addf %453, %464 : vector<128x32xf32>
    %466 = arith.truncf %465 : vector<128x32xf32> to vector<128x32xbf16>
    %c0_235 = arith.constant 0 : index
    %c0_236 = arith.constant 0 : index
    %467 = vector.load %arg23[%c0_235, %c0_236] : memref<512x128xbf16, #tpu.memory_space<vmem>>, vector<512x128xbf16>
    %cst_237 = arith.constant dense<0.000000e+00> : vector<512x32xf32>
    %468 = tpu.matmul %467, %466, %cst_237 {dimension_numbers = #tpu.dot_dimension_numbers<[1], [0], [0], [1], [0, 0, 1, 1], [], []>} : vector<512x128xbf16>, vector<128x32xbf16>, vector<512x32xf32> -> vector<512x32xf32>
    %469 = vector.extract_strided_slice %468 {offsets = [0, 0], sizes = [128, 32], strides = [1, 1]} : vector<512x32xf32> to vector<128x32xf32>
    %470 = arith.truncf %469 : vector<128x32xf32> to vector<128x32xbf16>
    %c0_238 = arith.constant 0 : index
    %c0_239 = arith.constant 0 : index
    %c0_240 = arith.constant 0 : index
    %471 = vector.load %arg24[%c0_238, %c0_239, %c0_240] : memref<4x32x128xbf16, #tpu.memory_space<vmem>>, vector<1x32x128xbf16>
    %472 = vector.shape_cast %471 : vector<1x32x128xbf16> to vector<32x128xbf16>
    %cst_241 = arith.constant dense<0.000000e+00> : vector<128x128xf32>
    %473 = tpu.matmul %470, %472, %cst_241 {dimension_numbers = #tpu.dot_dimension_numbers<[1], [0], [0], [1], [0, 0, 1, 1], [], []>} : vector<128x32xbf16>, vector<32x128xbf16>, vector<128x128xf32> -> vector<128x128xf32>
    %474 = vector.extract_strided_slice %468 {offsets = [128, 0], sizes = [128, 32], strides = [1, 1]} : vector<512x32xf32> to vector<128x32xf32>
    %475 = arith.truncf %474 : vector<128x32xf32> to vector<128x32xbf16>
    %c1_242 = arith.constant 1 : index
    %c0_243 = arith.constant 0 : index
    %c0_244 = arith.constant 0 : index
    %476 = vector.load %arg24[%c1_242, %c0_243, %c0_244] : memref<4x32x128xbf16, #tpu.memory_space<vmem>>, vector<1x32x128xbf16>
    %477 = vector.shape_cast %476 : vector<1x32x128xbf16> to vector<32x128xbf16>
    %cst_245 = arith.constant dense<0.000000e+00> : vector<128x128xf32>
    %478 = tpu.matmul %475, %477, %cst_245 {dimension_numbers = #tpu.dot_dimension_numbers<[1], [0], [0], [1], [0, 0, 1, 1], [], []>} : vector<128x32xbf16>, vector<32x128xbf16>, vector<128x128xf32> -> vector<128x128xf32>
    %479 = arith.addf %473, %478 : vector<128x128xf32>
    %480 = vector.extract_strided_slice %468 {offsets = [256, 0], sizes = [128, 32], strides = [1, 1]} : vector<512x32xf32> to vector<128x32xf32>
    %481 = arith.truncf %480 : vector<128x32xf32> to vector<128x32xbf16>
    %c2_246 = arith.constant 2 : index
    %c0_247 = arith.constant 0 : index
    %c0_248 = arith.constant 0 : index
    %482 = vector.load %arg24[%c2_246, %c0_247, %c0_248] : memref<4x32x128xbf16, #tpu.memory_space<vmem>>, vector<1x32x128xbf16>
    %483 = vector.shape_cast %482 : vector<1x32x128xbf16> to vector<32x128xbf16>
    %cst_249 = arith.constant dense<0.000000e+00> : vector<128x128xf32>
    %484 = tpu.matmul %481, %483, %cst_249 {dimension_numbers = #tpu.dot_dimension_numbers<[1], [0], [0], [1], [0, 0, 1, 1], [], []>} : vector<128x32xbf16>, vector<32x128xbf16>, vector<128x128xf32> -> vector<128x128xf32>
    %485 = arith.addf %479, %484 : vector<128x128xf32>
    %486 = vector.extract_strided_slice %468 {offsets = [384, 0], sizes = [128, 32], strides = [1, 1]} : vector<512x32xf32> to vector<128x32xf32>
    %487 = arith.truncf %486 : vector<128x32xf32> to vector<128x32xbf16>
    %c3_250 = arith.constant 3 : index
    %c0_251 = arith.constant 0 : index
    %c0_252 = arith.constant 0 : index
    %488 = vector.load %arg24[%c3_250, %c0_251, %c0_252] : memref<4x32x128xbf16, #tpu.memory_space<vmem>>, vector<1x32x128xbf16>
    %489 = vector.shape_cast %488 : vector<1x32x128xbf16> to vector<32x128xbf16>
    %cst_253 = arith.constant dense<0.000000e+00> : vector<128x128xf32>
    %490 = tpu.matmul %487, %489, %cst_253 {dimension_numbers = #tpu.dot_dimension_numbers<[1], [0], [0], [1], [0, 0, 1, 1], [], []>} : vector<128x32xbf16>, vector<32x128xbf16>, vector<128x128xf32> -> vector<128x128xf32>
    %491 = arith.addf %485, %490 : vector<128x128xf32>
    %c0_254 = arith.constant 0 : index
    %c0_255 = arith.constant 0 : index
    %492 = vector.load %arg25[%c0_254, %c0_255] : memref<1x128xf32, #tpu.memory_space<vmem>>, vector<1x128xf32>
    %493 = vector.broadcast %492 : vector<1x128xf32> to vector<128x128xf32>
    %494 = arith.addf %491, %493 : vector<128x128xf32>
    %cst_256 = arith.constant 0.000000e+00 : f32
    %495 = vector.broadcast %cst_256 : f32 to vector<128x128xf32>
    %496 = arith.subf %495, %494 : vector<128x128xf32>
    %497 = math.exp %496 : vector<128x128xf32>
    %cst_257 = arith.constant 1.000000e+00 : f32
    %498 = vector.broadcast %cst_257 : f32 to vector<128x128xf32>
    %499 = arith.addf %498, %497 : vector<128x128xf32>
    %cst_258 = arith.constant 1.000000e+00 : f32
    %500 = vector.broadcast %cst_258 : f32 to vector<128x128xf32>
    %501 = arith.divf %500, %499 : vector<128x128xf32>
    %c0_259 = arith.constant 0 : index
    %c0_260 = arith.constant 0 : index
    %502 = vector.load %arg26[%c0_259, %c0_260] : memref<128x128xf32, #tpu.memory_space<vmem>>, vector<128x128xf32>
    tpu.vector_store %arg26[%c0_259, %c0_260], %501 {strides = array<i32>} : memref<128x128xf32, #tpu.memory_space<vmem>>, vector<128x128xf32>,
    return
  }
}

</mosaic_0001>

<bundles_post_ra>
// kernel: forward.1
= control target key start
LH: loop header
LB: loop body
LE: loop exit
PB: predicated region body
PF: predicated region fallthrough
CT: control target
= control target key end

     0   :  { %s16389_s0 = inlined_call_operand.vmem [shape: bf16[512,8], index: 0, kind: input, shape index: {}]   ;;  %s16390_s1 = inlined_call_operand.hbm [shape: bf16[1152,512], index: 1, kind: input, shape index: {}]   ;;  %s16391_s2 = inlined_call_operand.hbm [shape: bf16[9,8,32], index: 2, kind: input, shape index: {}]   ;;  %s16392_s3 = inlined_call_operand.hbm [shape: f32[1,32], index: 3, kind: input, shape index: {}]   ;;  %s16393_s4 = inlined_call_operand.hbm [shape: f32[1,32], index: 4, kind: input, shape index: {}]   ;;  %s16394_s5 = inlined_call_operand.hbm [shape: bf16[288,128], index: 5, kind: input, shape index: {}]   ;;  %s16395_s6 = inlined_call_operand.hbm [shape: bf16[9,32,64], index: 6, kind: input, shape index: {}]   ;;  %s16396_s7 = inlined_call_operand.hbm [shape: f32[1,64], index: 7, kind: input, shape index: {}]   ;;  %s16397_s8 = inlined_call_operand.hbm [shape: f32[1,64], index: 8, kind: input, shape index: {}]   ;;  %s16398_s9 = inlined_call_operand.vmem [shape: bf16[72,32], index: 9, kind: input, shape index: {}]   ;;  %s16399_s10 = inlined_call_operand.hbm [shape: bf16[9,64,128], index: 10, kind: input, shape index: {}]   ;;  %s16400_s11 = inlined_call_operand.hbm [shape: f32[1,128], index: 11, kind: input, shape index: {}]   ;;  %s16401_s12 = inlined_call_operand.hbm [shape: f32[1,128], index: 12, kind: input, shape index: {}]   ;;  %s16402_s13 = inlined_call_operand.vmem [shape: bf16[32,8], index: 13, kind: input, shape index: {}]   ;;  %s16403_s14 = inlined_call_operand.hbm [shape: bf16[4,128,256], index: 14, kind: input, shape index: {}]   ;;  %s16404_s15 = inlined_call_operand.hbm [shape: f32[1,64], index: 15, kind: input, shape index: {}]   ;;  %s16405_s16 = inlined_call_operand.hbm [shape: f32[1,64], index: 16, kind: input, shape index: {}]   ;;  %s16406_s17 = inlined_call_operand.vmem [shape: bf16[4,32,8], index: 17, kind: input, shape index: {}]   ;;  %s16407_s18 = inlined_call_operand.vmem [shape: bf16[128,32], index: 18, kind: input, shape index: {}]   ;;  %s16408_s19 = inlined_call_operand.hbm [shape: bf16[4,64,128], index: 19, kind: input, shape index: {}]   ;;  %s16409_s20 = inlined_call_operand.hbm [shape: f32[1,32], index: 20, kind: input, shape index: {}]   ;;  %s16410_s21 = inlined_call_operand.hbm [shape: f32[1,32], index: 21, kind: input, shape index: {}]   ;;  %s16411_s22 = inlined_call_operand.vmem [shape: bf16[4,128,32], index: 22, kind: input, shape index: {}]   ;;  %s16412_s23 = inlined_call_operand.hbm [shape: bf16[512,128], index: 23, kind: input, shape index: {}]   ;;  %s16413_s24 = inlined_call_operand.hbm [shape: bf16[4,32,128], index: 24, kind: input, shape index: {}]   ;;  %s16414_s25 = inlined_call_operand.hbm [shape: f32[1,128], index: 25, kind: input, shape index: {}]   ;;  %s16415_s26 = inlined_call_operand.vmem [shape: f32[128,128], index: 26, kind: output, shape index: {}]  }
   0x1   :  { %16430 = sst [smem:[#allocation44_spill]] %s16389_s0 }
   0x2   :  { %16431 = sst [smem:[#allocation45_spill]] %s16390_s1 }
   0x3   :  { %16432 = sst [smem:[#allocation46_spill]] %s16391_s2 }
   0x4   :  { %16433 = sst [smem:[#allocation47_spill]] %s16392_s3 }
   0x5   :  { %16434 = sst [smem:[#allocation48_spill]] %s16393_s4 }
   0x6   :  { %16435 = sst [smem:[#allocation49_spill]] %s16394_s5 }
   0x7   :  { %16436 = sst [smem:[#allocation50_spill]] %s16395_s6 }
   0x8   :  { %16437 = sst [smem:[#allocation51_spill]] %s16396_s7 }
   0x9   :  { %16438 = sst [smem:[#allocation52_spill]] %s16397_s8 }
   0xa   :  { %16439 = sst [smem:[#allocation53_spill]] %s16398_s9 }
   0xb   :  { %16440 = sst [smem:[#allocation54_spill]] %s16399_s10 }
   0xc   :  { %16441 = sst [smem:[#allocation55_spill]] %s16407_s18 }
   0xd   :  { %16442 = sst [smem:[#allocation56_spill]] %s16411_s22 }
   0xe   :  { %16443 = sst [smem:[#allocation57_spill]] %s16415_s26 }
   0xf   :  { %31 = vsyncpa [#allocation3], 0 }
  0x10   :  { %32 = vsyncpa [#allocation5], 0 }
  0x11   :  { %33 = vsyncpa [#allocation8], 0 }
  0x12   :  { %34 = vsyncpa [#allocation11], 0 }
  0x13   :  { %35 = vsyncpa [#allocation14], 0 }
  0x14   :  { %36 = vsyncpa [#allocation17], 0 }
  0x15   :  { %37 = vsyncpa [#allocation20], 0 }
  0x16   :  { %38 = vsyncpa [#allocation23], 0 }
  0x17   :  { %39 = vsyncpa [#allocation26], 0 }
  0x18   :  { %40 = vsyncpa [#allocation29], 0 }
  0x19   :  { %41 = vsyncpa [#allocation32], 0  ;;  %s14778_s27 = smov [#allocation4]   ;;  %s16444_s8 = sld [smem:[#allocation46_spill]] }
  0x1a   :  { %s61_s3 = sshll.u32 %s14778_s27, 4  ;;  %s62_s3 = int_to_ptr.vmem [resolvable:$true] %s61_s3 }
  0x1f   :  { %s14316_s4 = scalar_lea.hbm %s16444_s8, 576 }
  0x20   :  { %p14317_p0 = scmp.ne.s32.totalorder %s16444_s8, %s14316_s4  ;;  %p14320_p1 = scmp.lt.u32.totalorder %s14316_s4, %s16444_s8 }
  0x22   :  { %p14322_p2 = pnand %p14320_p1, %p14317_p0 }
  0x24   :  { %14325 = shalt.err (!%p14322_p2)
}
  0x25   :  { %s14326_s2 = scalar_lea.vmem %s62_s3, 576  ;;  %p14331_p4 = scmp.lt.s32.totalorder %s62_s3, %s62_s3 }
  0x26   :  { %p14327_p3 = scmp.ne.s32.totalorder %s62_s3, %s14326_s2  ;;  %p14332_p5 = scmp.lt.s32.totalorder %s14326_s2, %s14326_s2 }
  0x28   :  { %p14333_p6 = por %p14332_p5, %p14331_p4 }
  0x2a   :  { %p14334_p7 = pnand %p14333_p6, %p14327_p3 }
  0x2c   :  { %14337 = shalt.err (!%p14334_p7)
}
  0x2d   :  { %s14779_s5 = smov 64   ;;  %s14780_s10 = smov 4  }
  0x2e   :  { %67 = dma.hbm_to_vmem [thread:$0]  %s16444_s8, 576, %s62_s3, [#allocation5], %s14779_s5, %s14779_s5, %s14780_s10  }
  0x2f   :  { %s14781_s27 = smov [#allocation7]   ;;  %s14782_s28 = smov [#allocation10]  }
  0x30   :  { %s84_s7 = sshll.u32 %s14781_s27, 4  ;;  %s105_s4 = sshll.u32 %s14782_s28, 4  ;;  %s85_s7 = int_to_ptr.vmem [resolvable:$true] %s84_s7  ;;  %s106_s4 = int_to_ptr.vmem [resolvable:$true] %s105_s4 }
  0x31   :  { %s16445_s9 = sld [smem:[#allocation48_spill]] }
  0x37   :  { %s14338_s30 = scalar_lea.hbm %s16445_s9, 16 }
  0x38   :  { %p14339_p8 = scmp.ne.s32.totalorder %s16445_s9, %s14338_s30  ;;  %p14342_p9 = scmp.lt.u32.totalorder %s14338_s30, %s16445_s9 }
  0x3a   :  { %p14344_p10 = pnand %p14342_p9, %p14339_p8 }
  0x3c   :  { %14347 = shalt.err (!%p14344_p10)
}
  0x3d   :  { %s14348_s3 = scalar_lea.vmem %s85_s7, 16  ;;  %s14352_s8 = scalar_lea.vmem %s85_s7, 32 }
  0x3e   :  { %p14349_p11 = scmp.ne.s32.totalorder %s85_s7, %s14348_s3  ;;  %p14353_p12 = scmp.lt.s32.totalorder %s85_s7, %s85_s7 }
  0x3f   :  { %p14354_p13 = scmp.lt.s32.totalorder %s14352_s8, %s14348_s3 }
  0x41   :  { %p14355_p0 = por %p14354_p13, %p14353_p12 }
  0x43   :  { %p14356_p1 = pnand %p14355_p0, %p14349_p11 }
  0x45   :  { %14359 = shalt.err (!%p14356_p1)
}
  0x46   :  { %87 = dma.hbm_to_vmem [thread:$0]  %s16445_s9, 16, %s85_s7, [#allocation8]  }
  0x47   :  { %s16446_s28 = sld [smem:[#allocation50_spill]] }
  0x4d   :  { %s14360_s18 = scalar_lea.hbm %s16446_s28, 2304 }
  0x4e   :  { %p14361_p2 = scmp.ne.s32.totalorder %s16446_s28, %s14360_s18  ;;  %p14364_p3 = scmp.lt.u32.totalorder %s14360_s18, %s16446_s28 }
  0x50   :  { %p14366_p4 = pnand %p14364_p3, %p14361_p2 }
  0x52   :  { %14369 = shalt.err (!%p14366_p4)
}
  0x53   :  { %s14370_s2 = scalar_lea.vmem %s106_s4, 2304  ;;  %p14375_p6 = scmp.lt.s32.totalorder %s106_s4, %s106_s4 }
  0x54   :  { %p14371_p5 = scmp.ne.s32.totalorder %s106_s4, %s14370_s2  ;;  %p14376_p7 = scmp.lt.s32.totalorder %s14370_s2, %s14370_s2 }
  0x56   :  { %p14377_p8 = por %p14376_p7, %p14375_p6 }
  0x58   :  { %p14378_p9 = pnand %p14377_p8, %p14371_p5 }
  0x5a   :  { %14381 = shalt.err (!%p14378_p9)
}
  0x5b   :  { %111 = dma.hbm_to_vmem [thread:$0]  %s16446_s28, 2304, %s106_s4, [#allocation11], %s14779_s5, %s14779_s5, %s14780_s10  }
  0x5c   :  { %s14783_s3 = smov [#allocation13]   ;;  %s14784_s6 = smov [#allocation16]  }
  0x5d   :  { %s128_s8 = sshll.u32 %s14783_s3, 4  ;;  %s152_s1 = sshll.u32 %s14784_s6, 4  ;;  %s129_s8 = int_to_ptr.vmem [resolvable:$true] %s128_s8  ;;  %s153_s1 = int_to_ptr.vmem [resolvable:$true] %s152_s1 }
  0x5e   :  { %s16447_s18 = sld [smem:[#allocation52_spill]] }
  0x64   :  { %s14382_s22 = scalar_lea.hbm %s16447_s18, 16 }
  0x65   :  { %p14383_p10 = scmp.ne.s32.totalorder %s16447_s18, %s14382_s22  ;;  %p14386_p11 = scmp.lt.u32.totalorder %s14382_s22, %s16447_s18 }
  0x67   :  { %p14388_p12 = pnand %p14386_p11, %p14383_p10 }
  0x69   :  { %14391 = shalt.err (!%p14388_p12)
}
  0x6a   :  { %s14392_s4 = scalar_lea.vmem %s129_s8, 16  ;;  %s14396_s28 = scalar_lea.vmem %s129_s8, 32 }
  0x6b   :  { %p14393_p13 = scmp.ne.s32.totalorder %s129_s8, %s14392_s4  ;;  %p14397_p0 = scmp.lt.s32.totalorder %s129_s8, %s129_s8 }
  0x6c   :  { %p14398_p1 = scmp.lt.s32.totalorder %s14396_s28, %s14392_s4 }
  0x6e   :  { %p14399_p2 = por %p14398_p1, %p14397_p0 }
  0x70   :  { %p14400_p3 = pnand %p14399_p2, %p14393_p13 }
  0x72   :  { %14403 = shalt.err (!%p14400_p3)
}
  0x73   :  { %131 = dma.hbm_to_vmem [thread:$0]  %s16447_s18, 16, %s129_s8, [#allocation14]  }
  0x74   :  { %s14404_s26 = scalar_lea.hbm %s16400_s11, 16 }
  0x75   :  { %p14405_p4 = scmp.ne.s32.totalorder %s16400_s11, %s14404_s26  ;;  %p14408_p5 = scmp.lt.u32.totalorder %s14404_s26, %s16400_s11 }
  0x77   :  { %p14410_p6 = pnand %p14408_p5, %p14405_p4 }
  0x79   :  { %14413 = shalt.err (!%p14410_p6)
}
  0x7a   :  { %s14414_s30 = scalar_lea.vmem %s153_s1, 16  ;;  %s14418_s2 = scalar_lea.vmem %s153_s1, 32 }
  0x7b   :  { %p14415_p7 = scmp.ne.s32.totalorder %s153_s1, %s14414_s30  ;;  %p14419_p8 = scmp.lt.s32.totalorder %s153_s1, %s153_s1 }
  0x7c   :  { %p14420_p9 = scmp.lt.s32.totalorder %s14418_s2, %s14414_s30 }
  0x7e   :  { %p14421_p10 = por %p14420_p9, %p14419_p8 }
  0x80   :  { %p14422_p11 = pnand %p14421_p10, %p14415_p7 }
  0x82   :  { %14425 = shalt.err (!%p14422_p11)
}
  0x83   :  { %155 = dma.hbm_to_vmem [thread:$0]  %s16400_s11, 16, %s153_s1, [#allocation17]  }
  0x84   :  { %s14785_s4 = smov [#allocation19]   ;;  %s14426_s3 = scalar_lea.hbm %s16403_s14, 8192 }
  0x85   :  { %s173_s28 = sshll.u32 %s14785_s4, 4  ;;  %p14427_p12 = scmp.ne.s32.totalorder %s16403_s14, %s14426_s3  ;;  %s174_s28 = int_to_ptr.vmem [resolvable:$true] %s173_s28 }
  0x86   :  { %p14430_p13 = scmp.lt.u32.totalorder %s14426_s3, %s16403_s14 }
  0x88   :  { %p14432_p0 = pnand %p14430_p13, %p14427_p12 }
  0x8a   :  { %14435 = shalt.err (!%p14432_p0)
}
  0x8b   :  { %s14436_s29 = scalar_lea.vmem %s174_s28, 8192  ;;  %p14441_p2 = scmp.lt.s32.totalorder %s174_s28, %s174_s28 }
  0x8c   :  { %p14437_p1 = scmp.ne.s32.totalorder %s174_s28, %s14436_s29  ;;  %p14442_p3 = scmp.lt.s32.totalorder %s14436_s29, %s14436_s29 }
  0x8e   :  { %p14443_p4 = por %p14442_p3, %p14441_p2 }
  0x90   :  { %p14444_p5 = pnand %p14443_p4, %p14437_p1 }
  0x92   :  { %14447 = shalt.err (!%p14444_p5)
}
  0x93   :  { %s14786_s11 = smov 128   ;;  %s14787_s1 = smov 8  }
  0x94   :  { %179 = dma.hbm_to_vmem [thread:$0]  %s16403_s14, 8192, %s174_s28, [#allocation20], %s14786_s11, %s14786_s11, %s14787_s1  }
  0x95   :  { %s14788_s2 = smov [#allocation22]   ;;  %s14789_s18 = smov [#allocation25]  }
  0x96   :  { %s196_s8 = sshll.u32 %s14788_s2, 4  ;;  %s222_s4 = sshll.u32 %s14789_s18, 4  ;;  %s197_s8 = int_to_ptr.vmem [resolvable:$true] %s196_s8  ;;  %s223_s4 = int_to_ptr.vmem [resolvable:$true] %s222_s4 }
  0x97   :  { %s14448_s3 = scalar_lea.hbm %s16405_s16, 16 }
  0x98   :  { %p14449_p6 = scmp.ne.s32.totalorder %s16405_s16, %s14448_s3  ;;  %p14452_p7 = scmp.lt.u32.totalorder %s14448_s3, %s16405_s16 }
  0x9a   :  { %p14454_p8 = pnand %p14452_p7, %p14449_p6 }
  0x9c   :  { %14457 = shalt.err (!%p14454_p8)
}
  0x9d   :  { %s14458_s14 = scalar_lea.vmem %s197_s8, 16  ;;  %s14462_s28 = scalar_lea.vmem %s197_s8, 32 }
  0x9e   :  { %p14459_p9 = scmp.ne.s32.totalorder %s197_s8, %s14458_s14  ;;  %p14463_p10 = scmp.lt.s32.totalorder %s197_s8, %s197_s8 }
  0x9f   :  { %p14464_p11 = scmp.lt.s32.totalorder %s14462_s28, %s14458_s14 }
  0xa1   :  { %p14465_p12 = por %p14464_p11, %p14463_p10 }
  0xa3   :  { %p14466_p13 = pnand %p14465_p12, %p14459_p9 }
  0xa5   :  { %14469 = shalt.err (!%p14466_p13)
}
  0xa6   :  { %199 = dma.hbm_to_vmem [thread:$0]  %s16405_s16, 16, %s197_s8, [#allocation23]  }
  0xa7   :  { %s14470_s30 = scalar_lea.hbm %s16409_s20, 16 }
  0xa8   :  { %p14471_p0 = scmp.ne.s32.totalorder %s16409_s20, %s14470_s30  ;;  %p14474_p1 = scmp.lt.u32.totalorder %s14470_s30, %s16409_s20 }
  0xaa   :  { %p14476_p2 = pnand %p14474_p1, %p14471_p0 }
  0xac   :  { %14479 = shalt.err (!%p14476_p2)
}
  0xad   :  { %s14480_s3 = scalar_lea.vmem %s223_s4, 16  ;;  %s14484_s6 = scalar_lea.vmem %s223_s4, 32 }
  0xae   :  { %p14481_p3 = scmp.ne.s32.totalorder %s223_s4, %s14480_s3  ;;  %p14485_p4 = scmp.lt.s32.totalorder %s223_s4, %s223_s4 }
  0xaf   :  { %p14486_p5 = scmp.lt.s32.totalorder %s14484_s6, %s14480_s3 }
  0xb1   :  { %p14487_p6 = por %p14486_p5, %p14485_p4 }
  0xb3   :  { %p14488_p7 = pnand %p14487_p6, %p14481_p3 }
  0xb5   :  { %14491 = shalt.err (!%p14488_p7)
}
  0xb6   :  { %225 = dma.hbm_to_vmem [thread:$0]  %s16409_s20, 16, %s223_s4, [#allocation26]  }
  0xb7   :  { %s14790_s26 = smov [#allocation28]   ;;  %s14791_s22 = smov [#allocation2]  }
  0xb8   :  { %s243_s27 = sshll.u32 %s14790_s26, 4  ;;  %s49_s14 = sshll.u32 %s14791_s22, 4  ;;  %s244_s27 = int_to_ptr.vmem [resolvable:$true] %s243_s27  ;;  %s15046_s14 = int_to_ptr.vmem [resolvable:$true] %s49_s14 }
  0xb9   :  { %s14492_s11 = scalar_lea.hbm %s16412_s23, 4096 }
  0xba   :  { %p14493_p8 = scmp.ne.s32.totalorder %s16412_s23, %s14492_s11  ;;  %p14496_p9 = scmp.lt.u32.totalorder %s14492_s11, %s16412_s23 }
  0xbc   :  { %p14498_p10 = pnand %p14496_p9, %p14493_p8 }
  0xbe   :  { %14501 = shalt.err (!%p14498_p10)
}
  0xbf   :  { %s14502_s20 = scalar_lea.vmem %s244_s27, 4096  ;;  %p14507_p12 = scmp.lt.s32.totalorder %s244_s27, %s244_s27 }
  0xc0   :  { %p14503_p11 = scmp.ne.s32.totalorder %s244_s27, %s14502_s20  ;;  %p14508_p13 = scmp.lt.s32.totalorder %s14502_s20, %s14502_s20 }
  0xc2   :  { %p14509_p0 = por %p14508_p13, %p14507_p12 }
  0xc4   :  { %p14510_p1 = pnand %p14509_p0, %p14503_p11 }
  0xc6   :  { %14513 = shalt.err (!%p14510_p1)
}
  0xc7   :  { %249 = dma.hbm_to_vmem [thread:$0]  %s16412_s23, 4096, %s244_s27, [#allocation29], %s14779_s5, %s14779_s5, %s14780_s10  }
  0xc8   :  { %s16448_s3 = sld [smem:[#allocation45_spill]] }
  0xce   :  { %s14514_s6 = scalar_lea.hbm %s16448_s3, 36864 }
  0xcf   :  { %p14515_p2 = scmp.ne.s32.totalorder %s16448_s3, %s14514_s6  ;;  %p14518_p3 = scmp.lt.u32.totalorder %s14514_s6, %s16448_s3 }
  0xd1   :  { %p14520_p4 = pnand %p14518_p3, %p14515_p2 }
  0xd3   :  { %14523 = shalt.err (!%p14520_p4)
}
  0xd4   :  { %s14524_s28 = scalar_lea.vmem %s15046_s14, 36864  ;;  %p14529_p6 = scmp.lt.s32.totalorder %s15046_s14, %s15046_s14 }
  0xd5   :  { %p14525_p5 = scmp.ne.s32.totalorder %s15046_s14, %s14524_s28  ;;  %p14530_p7 = scmp.lt.s32.totalorder %s14524_s28, %s14524_s28 }
  0xd7   :  { %p14531_p8 = por %p14530_p7, %p14529_p6 }
  0xd9   :  { %p14532_p9 = pnand %p14531_p8, %p14525_p5 }
  0xdb   :  { %14535 = shalt.err (!%p14532_p9)
}
  0xdc   :  { %s14792_s23 = smov 256   ;;  %s14793_s27 = smov 16  }
  0xdd   :  { %55 = dma.hbm_to_vmem [thread:$0]  %s16448_s3, 36864, %s15046_s14, [#allocation3], %s14792_s23, %s14792_s23, %s14793_s27  }
  0xde   :  { %s14794_s1 = smov [#allocation6]   ;;  %s14795_s30 = smov [#allocation9]  }
  0xdf   :  { %s74_s0 = sshll.u32 %s14794_s1, 4  ;;  %s93_s2 = sshll.u32 %s14795_s30, 4  ;;  %s75_s0 = int_to_ptr.vmem [resolvable:$true] %s74_s0  ;;  %s15080_s2 = int_to_ptr.vmem [resolvable:$true] %s93_s2 }
  0xe0   :  { %s16449_s18 = sld [smem:[#allocation47_spill]] }
  0xe6   :  { %s14536_s7 = scalar_lea.hbm %s16449_s18, 16 }
  0xe7   :  { %p14537_p10 = scmp.ne.s32.totalorder %s16449_s18, %s14536_s7  ;;  %p14540_p11 = scmp.lt.u32.totalorder %s14536_s7, %s16449_s18 }
  0xe9   :  { %p14542_p12 = pnand %p14540_p11, %p14537_p10 }
  0xeb   :  { %14545 = shalt.err (!%p14542_p12)
}
  0xec   :  { %s14546_s14 = scalar_lea.vmem %s75_s0, 16  ;;  %s14550_s3 = scalar_lea.vmem %s75_s0, 32 }
  0xed   :  { %p14547_p13 = scmp.ne.s32.totalorder %s75_s0, %s14546_s14  ;;  %p14551_p0 = scmp.lt.s32.totalorder %s75_s0, %s75_s0 }
  0xee   :  { %p14552_p1 = scmp.lt.s32.totalorder %s14550_s3, %s14546_s14 }
  0xf0   :  { %p14553_p2 = por %p14552_p1, %p14551_p0 }
  0xf2   :  { %p14554_p3 = pnand %p14553_p2, %p14547_p13 }
  0xf4   :  { %14557 = shalt.err (!%p14554_p3)
}
  0xf5   :  { %77 = dma.hbm_to_vmem [thread:$0]  %s16449_s18, 16, %s75_s0, [#allocation5]  }
  0xf6   :  { %s16450_s27 = sld [smem:[#allocation49_spill]] }
  0xfc   :  { %s14558_s29 = scalar_lea.hbm %s16450_s27, 2304 }
  0xfd   :  { %p14559_p4 = scmp.ne.s32.totalorder %s16450_s27, %s14558_s29  ;;  %p14562_p5 = scmp.lt.u32.totalorder %s14558_s29, %s16450_s27 }
  0xff   :  { %p14564_p6 = pnand %p14562_p5, %p14559_p4 }
 0x101   :  { %14567 = shalt.err (!%p14564_p6)
}
 0x102   :  { %s14568_s4 = scalar_lea.vmem %s15080_s2, 2304  ;;  %p14573_p8 = scmp.lt.s32.totalorder %s15080_s2, %s15080_s2 }
 0x103   :  { %p14569_p7 = scmp.ne.s32.totalorder %s15080_s2, %s14568_s4  ;;  %p14574_p9 = scmp.lt.s32.totalorder %s14568_s4, %s14568_s4 }
 0x105   :  { %p14575_p10 = por %p14574_p9, %p14573_p8 }
 0x107   :  { %p14576_p11 = pnand %p14575_p10, %p14569_p7 }
 0x109   :  { %14579 = shalt.err (!%p14576_p11)
}
 0x10a   :  { %99 = dma.hbm_to_vmem [thread:$0]  %s16450_s27, 2304, %s15080_s2, [#allocation8], %s14779_s5, %s14779_s5, %s14780_s10  }
 0x10b   :  { %s14796_s7 = smov [#allocation12]   ;;  %s14797_s6 = smov [#allocation15]  }
 0x10c   :  { %s118_s9 = sshll.u32 %s14796_s7, 4  ;;  %s139_s16 = sshll.u32 %s14797_s6, 4  ;;  %s119_s9 = int_to_ptr.vmem [resolvable:$true] %s118_s9  ;;  %s15114_s16 = int_to_ptr.vmem [resolvable:$true] %s139_s16 }
 0x10d   :  { %s16451_s3 = sld [smem:[#allocation51_spill]] }
 0x113   :  { %s14580_s26 = scalar_lea.hbm %s16451_s3, 16 }
 0x114   :  { %p14581_p12 = scmp.ne.s32.totalorder %s16451_s3, %s14580_s26  ;;  %p14584_p13 = scmp.lt.u32.totalorder %s14580_s26, %s16451_s3 }
 0x116   :  { %p14586_p0 = pnand %p14584_p13, %p14581_p12 }
 0x118   :  { %14589 = shalt.err (!%p14586_p0)
}
 0x119   :  { %s14590_s2 = scalar_lea.vmem %s119_s9, 16  ;;  %s14594_s27 = scalar_lea.vmem %s119_s9, 32 }
 0x11a   :  { %p14591_p1 = scmp.ne.s32.totalorder %s119_s9, %s14590_s2  ;;  %p14595_p2 = scmp.lt.s32.totalorder %s119_s9, %s119_s9 }
 0x11b   :  { %p14596_p3 = scmp.lt.s32.totalorder %s14594_s27, %s14590_s2 }
 0x11d   :  { %p14597_p4 = por %p14596_p3, %p14595_p2 }
 0x11f   :  { %p14598_p5 = pnand %p14597_p4, %p14591_p1 }
 0x121   :  { %14601 = shalt.err (!%p14598_p5)
}
 0x122   :  { %121 = dma.hbm_to_vmem [thread:$0]  %s16451_s3, 16, %s119_s9, [#allocation11]  }
 0x123   :  { %s16452_s4 = sld [smem:[#allocation54_spill]] }
 0x129   :  { %s14602_s0 = scalar_lea.hbm %s16452_s4, 4608 }
 0x12a   :  { %p14603_p6 = scmp.ne.s32.totalorder %s16452_s4, %s14602_s0  ;;  %p14606_p7 = scmp.lt.u32.totalorder %s14602_s0, %s16452_s4 }
 0x12c   :  { %p14608_p8 = pnand %p14606_p7, %p14603_p6 }
 0x12e   :  { %14611 = shalt.err (!%p14608_p8)
}
 0x12f   :  { %s14612_s14 = scalar_lea.vmem %s15114_s16, 4608  ;;  %p14617_p10 = scmp.lt.s32.totalorder %s15114_s16, %s15114_s16 }
 0x130   :  { %p14613_p9 = scmp.ne.s32.totalorder %s15114_s16, %s14612_s14  ;;  %p14618_p11 = scmp.lt.s32.totalorder %s14612_s14, %s14612_s14 }
 0x132   :  { %p14619_p12 = por %p14618_p11, %p14617_p10 }
 0x134   :  { %p14620_p13 = pnand %p14619_p12, %p14613_p9 }
 0x136   :  { %14623 = shalt.err (!%p14620_p13)
}
 0x137   :  { %145 = dma.hbm_to_vmem [thread:$0]  %s16452_s4, 4608, %s15114_s16, [#allocation14], %s14779_s5, %s14779_s5, %s14780_s10  }
 0x138   :  { %s14798_s26 = smov [#allocation18]   ;;  %s14799_s28 = smov [#allocation21]  }
 0x139   :  { %s162_s22 = sshll.u32 %s14798_s26, 4  ;;  %s186_s23 = sshll.u32 %s14799_s28, 4  ;;  %s163_s22 = int_to_ptr.vmem [resolvable:$true] %s162_s22  ;;  %s187_s23 = int_to_ptr.vmem [resolvable:$true] %s186_s23 }
 0x13a   :  { %s14624_s27 = scalar_lea.hbm %s16401_s12, 16 }
 0x13b   :  { %p14625_p0 = scmp.ne.s32.totalorder %s16401_s12, %s14624_s27  ;;  %p14628_p1 = scmp.lt.u32.totalorder %s14624_s27, %s16401_s12 }
 0x13d   :  { %p14630_p2 = pnand %p14628_p1, %p14625_p0 }
 0x13f   :  { %14633 = shalt.err (!%p14630_p2)
}
 0x140   :  { %s14634_s16 = scalar_lea.vmem %s163_s22, 16  ;;  %s14638_s4 = scalar_lea.vmem %s163_s22, 32 }
 0x141   :  { %p14635_p3 = scmp.ne.s32.totalorder %s163_s22, %s14634_s16  ;;  %p14639_p4 = scmp.lt.s32.totalorder %s163_s22, %s163_s22 }
 0x142   :  { %p14640_p5 = scmp.lt.s32.totalorder %s14638_s4, %s14634_s16 }
 0x144   :  { %p14641_p6 = por %p14640_p5, %p14639_p4 }
 0x146   :  { %p14642_p7 = pnand %p14641_p6, %p14635_p3 }
 0x148   :  { %14645 = shalt.err (!%p14642_p7)
}
 0x149   :  { %165 = dma.hbm_to_vmem [thread:$0]  %s16401_s12, 16, %s163_s22, [#allocation17]  }
 0x14a   :  { %s14646_s8 = scalar_lea.hbm %s16404_s15, 16 }
 0x14b   :  { %p14647_p8 = scmp.ne.s32.totalorder %s16404_s15, %s14646_s8  ;;  %p14650_p9 = scmp.lt.u32.totalorder %s14646_s8, %s16404_s15 }
 0x14d   :  { %p14652_p10 = pnand %p14650_p9, %p14647_p8 }
 0x14f   :  { %14655 = shalt.err (!%p14652_p10)
}
 0x150   :  { %s14656_s28 = scalar_lea.vmem %s187_s23, 16  ;;  %s14660_s29 = scalar_lea.vmem %s187_s23, 32 }
 0x151   :  { %p14657_p11 = scmp.ne.s32.totalorder %s187_s23, %s14656_s28  ;;  %p14661_p12 = scmp.lt.s32.totalorder %s187_s23, %s187_s23 }
 0x152   :  { %p14662_p13 = scmp.lt.s32.totalorder %s14660_s29, %s14656_s28 }
 0x154   :  { %p14663_p0 = por %p14662_p13, %p14661_p12 }
 0x156   :  { %p14664_p1 = pnand %p14663_p0, %p14657_p11 }
 0x158   :  { %14667 = shalt.err (!%p14664_p1)
}
 0x159   :  { %189 = dma.hbm_to_vmem [thread:$0]  %s16404_s15, 16, %s187_s23, [#allocation20]  }
 0x15a   :  { %s14800_s2 = smov [#allocation24]   ;;  %s14801_s11 = smov [#allocation27]  }
 0x15b   :  { %s209_s27 = sshll.u32 %s14800_s2, 4  ;;  %s232_s1 = sshll.u32 %s14801_s11, 4  ;;  %s210_s27 = int_to_ptr.vmem [resolvable:$true] %s209_s27  ;;  %s233_s1 = int_to_ptr.vmem [resolvable:$true] %s232_s1 }
 0x15c   :  { %s14668_s16 = scalar_lea.hbm %s16408_s19, 2048 }
 0x15d   :  { %p14669_p2 = scmp.ne.s32.totalorder %s16408_s19, %s14668_s16  ;;  %p14672_p3 = scmp.lt.u32.totalorder %s14668_s16, %s16408_s19 }
 0x15f   :  { %p14674_p4 = pnand %p14672_p3, %p14669_p2 }
 0x161   :  { %14677 = shalt.err (!%p14674_p4)
}
 0x162   :  { %s14678_s15 = scalar_lea.vmem %s210_s27, 2048  ;;  %p14683_p6 = scmp.lt.s32.totalorder %s210_s27, %s210_s27 }
 0x163   :  { %p14679_p5 = scmp.ne.s32.totalorder %s210_s27, %s14678_s15  ;;  %p14684_p7 = scmp.lt.s32.totalorder %s14678_s15, %s14678_s15 }
 0x165   :  { %p14685_p8 = por %p14684_p7, %p14683_p6 }
 0x167   :  { %p14686_p9 = pnand %p14685_p8, %p14679_p5 }
 0x169   :  { %14689 = shalt.err (!%p14686_p9)
}
 0x16a   :  { %215 = dma.hbm_to_vmem [thread:$0]  %s16408_s19, 2048, %s210_s27, [#allocation23], %s14779_s5, %s14779_s5, %s14780_s10  }
 0x16b   :  { %s14690_s9 = scalar_lea.hbm %s16410_s21, 16 }
 0x16c   :  { %p14691_p10 = scmp.ne.s32.totalorder %s16410_s21, %s14690_s9  ;;  %p14694_p11 = scmp.lt.u32.totalorder %s14690_s9, %s16410_s21 }
 0x16e   :  { %p14696_p12 = pnand %p14694_p11, %p14691_p10 }
 0x170   :  { %14699 = shalt.err (!%p14696_p12)
}
 0x171   :  { %s14700_s12 = scalar_lea.vmem %s233_s1, 16  ;;  %s14704_s22 = scalar_lea.vmem %s233_s1, 32 }
 0x172   :  { %p14701_p13 = scmp.ne.s32.totalorder %s233_s1, %s14700_s12  ;;  %p14705_p0 = scmp.lt.s32.totalorder %s233_s1, %s233_s1 }
 0x173   :  { %p14706_p1 = scmp.lt.s32.totalorder %s14704_s22, %s14700_s12 }
 0x175   :  { %p14707_p2 = por %p14706_p1, %p14705_p0 }
 0x177   :  { %p14708_p3 = pnand %p14707_p2, %p14701_p13 }
 0x179   :  { %14711 = shalt.err (!%p14708_p3)
}
 0x17a   :  { %235 = dma.hbm_to_vmem [thread:$0]  %s16410_s21, 16, %s233_s1, [#allocation26]  }
 0x17b   :  { %s14802_s27 = smov [#allocation30]   ;;  %s14803_s30 = smov [#allocation31]  }
 0x17c   :  { %s255_s11 = sshll.u32 %s14802_s27, 4  ;;  %s268_s20 = sshll.u32 %s14803_s30, 4  ;;  %s256_s11 = int_to_ptr.vmem [resolvable:$true] %s255_s11  ;;  %s269_s20 = int_to_ptr.vmem [resolvable:$true] %s268_s20 }
 0x17d   :  { %s14712_s0 = scalar_lea.hbm %s16413_s24, 1024 }
 0x17e   :  { %p14713_p4 = scmp.ne.s32.totalorder %s16413_s24, %s14712_s0  ;;  %p14716_p5 = scmp.lt.u32.totalorder %s14712_s0, %s16413_s24 }
 0x180   :  { %p14718_p6 = pnand %p14716_p5, %p14713_p4 }
 0x182   :  { %14721 = shalt.err (!%p14718_p6)
}
 0x183   :  { %s14722_s21 = scalar_lea.vmem %s256_s11, 1024  ;;  %p14727_p8 = scmp.lt.s32.totalorder %s256_s11, %s256_s11 }
 0x184   :  { %p14723_p7 = scmp.ne.s32.totalorder %s256_s11, %s14722_s21  ;;  %p14728_p9 = scmp.lt.s32.totalorder %s14722_s21, %s14722_s21 }
 0x186   :  { %p14729_p10 = por %p14728_p9, %p14727_p8 }
 0x188   :  { %p14730_p11 = pnand %p14729_p10, %p14723_p7 }
 0x18a   :  { %14733 = shalt.err (!%p14730_p11)
}
 0x18b   :  { %261 = dma.hbm_to_vmem [thread:$0]  %s16413_s24, 1024, %s256_s11, [#allocation29], %s14779_s5, %s14779_s5, %s14780_s10  }
 0x18c   :  { %s14734_s9 = scalar_lea.hbm %s16414_s25, 16 }
 0x18d   :  { %p14735_p12 = scmp.ne.s32.totalorder %s16414_s25, %s14734_s9  ;;  %p14738_p13 = scmp.lt.u32.totalorder %s14734_s9, %s16414_s25 }
 0x18f   :  { %p14740_p0 = pnand %p14738_p13, %p14735_p12 }
 0x191   :  { %14743 = shalt.err (!%p14740_p0)
}
 0x192   :  { %s14744_s12 = scalar_lea.vmem %s269_s20, 16  ;;  %s14748_s22 = scalar_lea.vmem %s269_s20, 32 }
 0x193   :  { %p14745_p1 = scmp.ne.s32.totalorder %s269_s20, %s14744_s12  ;;  %p14749_p2 = scmp.lt.s32.totalorder %s269_s20, %s269_s20 }
 0x194   :  { %p14750_p3 = scmp.lt.s32.totalorder %s14748_s22, %s14744_s12 }
 0x196   :  { %p14751_p4 = por %p14750_p3, %p14749_p2 }
 0x198   :  { %p14752_p5 = pnand %p14751_p4, %p14745_p1 }
 0x19a   :  { %14755 = shalt.err (!%p14752_p5)
}
 0x19b   :  { %271 = dma.hbm_to_vmem [thread:$0]  %s16414_s25, 16, %s269_s20, [#allocation32]  }
 0x19c   :  { %14756 = dma.done.wait [#allocation3], 36864  }
 0x19d   :  { %14757 = vsyncadd [#allocation3], 4294930432 }
 0x19e   :  { %14758 = dma.done.wait [#allocation5], 592  }
 0x19f   :  { %14759 = vsyncadd [#allocation5], 4294966704 }
 0x1a0   :  { %14760 = dma.done.wait [#allocation8], 2320  }
 0x1a1   :  { %14761 = vsyncadd [#allocation8], 4294964976 }
 0x1a2   :  { %14762 = dma.done.wait [#allocation11], 2320  }
 0x1a3   :  { %14763 = vsyncadd [#allocation11], 4294964976 }
 0x1a4   :  { %14764 = dma.done.wait [#allocation14], 4624  }
 0x1a5   :  { %14765 = vsyncadd [#allocation14], 4294962672 }
 0x1a6   :  { %14766 = dma.done.wait [#allocation17], 32  }
 0x1a7   :  { %14767 = vsyncadd [#allocation17], 4294967264 }
 0x1a8   :  { %14768 = dma.done.wait [#allocation20], 8208  }
 0x1a9   :  { %14769 = vsyncadd [#allocation20], 4294959088 }
 0x1aa   :  { %14770 = dma.done.wait [#allocation23], 2064  }
 0x1ab   :  { %14771 = vsyncadd [#allocation23], 4294965232 }
 0x1ac   :  { %14772 = dma.done.wait [#allocation26], 32  }
 0x1ad   :  { %14773 = vsyncadd [#allocation26], 4294967264 }
 0x1ae   :  { %14774 = dma.done.wait [#allocation29], 5120  }
 0x1af   :  { %14775 = vsyncadd [#allocation29], 4294962176 }
 0x1b0   :  { %14776 = dma.done.wait [#allocation32], 16  }
 0x1b1   :  { %14777 = vsyncadd [#allocation32], 4294967280  ;;  %v14804_v0 = vmov 0   ;;  %s16453_s2 = sld [smem:[#allocation44_spill]]  ;;  %v13517_v6 = vld [vmem:[#allocation2 + $0x4] ss:$16 sps:$4 sm:$0xff]  }
 0x1b2   :  { %2317 = vmatprep.subr.bf16.mxu0 %v14804_v0  ;;  %2349 = vmatprep.mubr.bf16.mxu0 %v13517_v6  ;;  %v13515_v18 = vld [vmem:[#allocation2] ss:$16 sps:$4 sm:$0xff]   ;;  %v13518_v19 = vld [vmem:[#allocation2 + $0x24] ss:$16 sps:$4 sm:$0xff]   ;;  %vm3579_vm0 = vcmask 1043456   ;;  %vm3554_vm1 = vcmask 64512  }
 0x1b3   :  { %v13520_v22 = vld [vmem:[#allocation2 + $0x20] ss:$16 sps:$4 sm:$0xff]   ;;  %v13521_v23 = vld [vmem:[#allocation2 + $0x44] ss:$16 sps:$4 sm:$0xff]   ;;  %vm4854_vm2 = vcmask 261120   ;;  %vm14806_vm3 = vmmov 0  }
 0x1b4   :  { %v13523_v26 = vld [vmem:[#allocation2 + $0x40] ss:$16 sps:$4 sm:$0xff]   ;;  %v13524_v27 = vld [vmem:[#allocation2 + $0x64] ss:$16 sps:$4 sm:$0xff]   ;;  %vm6066_vm4 = vcmask 523264   ;;  %s16454_s15 = sld [smem:[#allocation53_spill]] }
 0x1b5   :  { %v13526_v28 = vld [vmem:[#allocation2 + $0x60] ss:$16 sps:$4 sm:$0xff]   ;;  %v13528_v29 = vld [vmem:[#allocation2 + $0x84] ss:$16 sps:$4 sm:$0xff]   ;;  %s16455_s21 = sld [smem:[#allocation55_spill]]  ;;  %s14807_s10 = smov 96  }
 0x1b6   :  { %v13530_v30 = vld [vmem:[#allocation2 + $0x80] ss:$16 sps:$4 sm:$0xff]   ;;  %v13531_v31 = vld [vmem:[#allocation2 + $0xa4] ss:$16 sps:$4 sm:$0xff]   ;;  %s14808_s25 = smov 32   ;;  %s16456_s11 = sld [smem:[#allocation56_spill]] }
 0x1b7   :  { %v13499_v1 = vld [vmem:[%s16453_s2] sm:$0xff]   ;;  %v13500_v2 = vld [vmem:[%s16453_s2 + $0x8] sm:$0xff]   ;;  %v13501_v3 = vld [vmem:[%s16453_s2 + $0x10] sm:$0xff]   ;;  %s16457_s16 = sld [smem:[#allocation57_spill]] }
 0x1b8   :  { %2318 = vmatpush1.bf16.msra.mxu0 %v13499_v1  ;;  %v13502_v4 = vld [vmem:[%s16453_s2 + $0x18] sm:$0xff]   ;;  %v13503_v5 = vld [vmem:[%s16453_s2 + $0x20] sm:$0xff]   ;;  %v13504_v7 = vld [vmem:[%s16453_s2 + $0x28] sm:$0xff]  }
 0x1b9   :  { %2319 = vmatprep.subr.bf16.mxu0 %v14804_v0  ;;  %v13505_v8 = vld [vmem:[%s16453_s2 + $0x30] sm:$0xff]   ;;  %v13506_v9 = vld [vmem:[%s16453_s2 + $0x38] sm:$0xff]   ;;  %v13507_v10 = vld [vmem:[%s16453_s2 + $0x40] sm:$0xff]  }
 0x1ba   :  { %v13508_v11 = vld [vmem:[%s16453_s2 + $0x48] sm:$0xff]   ;;  %v13509_v12 = vld [vmem:[%s16453_s2 + $0x50] sm:$0xff]   ;;  %v13510_v13 = vld [vmem:[%s16453_s2 + $0x58] sm:$0xff]  }
 0x1bb   :  { %v13511_v14 = vld [vmem:[%s16453_s2 + $0x60] sm:$0xff]   ;;  %v13512_v15 = vld [vmem:[%s16453_s2 + $0x68] sm:$0xff]   ;;  %v13513_v16 = vld [vmem:[%s16453_s2 + $0x70] sm:$0xff]  }
 0x1bc   :  { %2320 = vmatpush1.bf16.msra.mxu0 %v13500_v2  ;;  %v13514_v17 = vld [vmem:[%s16453_s2 + $0x78] sm:$0xff]   ;;  %v13527_v20 = vld [vmem:[%s16453_s2 + $0x80] sm:$0xff]   ;;  %v13540_v21 = vld [vmem:[%s16453_s2 + $0x88] sm:$0xff]  }
 0x1bd   :  { %2321 = vmatprep.subr.bf16.mxu0 %v14804_v0  ;;  %v13556_v24 = vld [vmem:[%s16453_s2 + $0x90] sm:$0xff]   ;;  %v13569_v25 = vld [vmem:[%s16453_s2 + $0x98] sm:$0xff]   ;;  %v13585_v34 = vld [vmem:[%s16453_s2 + $0xa0] sm:$0xff]  }
 0x1be   :  { %v13533_v32 = vld [vmem:[#allocation2 + $0xa0] ss:$16 sps:$4 sm:$0xff]   ;;  %v13534_v33 = vld [vmem:[#allocation2 + $0xc4] ss:$16 sps:$4 sm:$0xff]   ;;  %v13598_v43 = vld [vmem:[%s16453_s2 + $0xa8] sm:$0xff]  }
 0x1bf   :  { %v13536_v35 = vld [vmem:[#allocation2 + $0xc0] ss:$16 sps:$4 sm:$0xff]   ;;  %v13537_v36 = vld [vmem:[#allocation2 + $0xe4] ss:$16 sps:$4 sm:$0xff]   ;;  %v13627_v63 = vld [vmem:[%s16453_s2 + $0xb8] sm:$0xff]  }
 0x1c0   :  { %2322 = vmatpush1.bf16.msra.mxu0 %v13501_v3  ;;  %v13539_v37 = vld [vmem:[#allocation2 + $0xe0] ss:$16 sps:$4 sm:$0xff]   ;;  %v13541_v38 = vld [vmem:[#allocation2 + $0x104] ss:$16 sps:$4 sm:$0xff]  }
 0x1c1   :  { %2323 = vmatprep.subr.bf16.mxu0 %v14804_v0  ;;  %v13543_v39 = vld [vmem:[#allocation2 + $0x100] ss:$16 sps:$4 sm:$0xff]   ;;  %v13544_v40 = vld [vmem:[#allocation2 + $0x124] ss:$16 sps:$4 sm:$0xff]  }
 0x1c2   :  { %v13546_v41 = vld [vmem:[#allocation2 + $0x120] ss:$16 sps:$4 sm:$0xff]   ;;  %v13547_v42 = vld [vmem:[#allocation2 + $0x144] ss:$16 sps:$4 sm:$0xff]  }
 0x1c3   :  { %v13549_v44 = vld [vmem:[#allocation2 + $0x140] ss:$16 sps:$4 sm:$0xff]   ;;  %v13550_v45 = vld [vmem:[#allocation2 + $0x164] ss:$16 sps:$4 sm:$0xff]  }
 0x1c4   :  { %2324 = vmatpush1.bf16.msra.mxu0 %v13502_v4  ;;  %v13552_v46 = vld [vmem:[#allocation2 + $0x160] ss:$16 sps:$4 sm:$0xff]   ;;  %v13553_v47 = vld [vmem:[#allocation2 + $0x184] ss:$16 sps:$4 sm:$0xff]  }
 0x1c5   :  { %2325 = vmatprep.subr.bf16.mxu0 %v14804_v0  ;;  %v13555_v48 = vld [vmem:[#allocation2 + $0x180] ss:$16 sps:$4 sm:$0xff]   ;;  %v13557_v49 = vld [vmem:[#allocation2 + $0x1a4] ss:$16 sps:$4 sm:$0xff]  }
 0x1c6   :  { %v13559_v50 = vld [vmem:[#allocation2 + $0x1a0] ss:$16 sps:$4 sm:$0xff]   ;;  %v13560_v51 = vld [vmem:[#allocation2 + $0x1c4] ss:$16 sps:$4 sm:$0xff]  }
 0x1c7   :  { %v13562_v52 = vld [vmem:[#allocation2 + $0x1c0] ss:$16 sps:$4 sm:$0xff]   ;;  %v13563_v53 = vld [vmem:[#allocation2 + $0x1e4] ss:$16 sps:$4 sm:$0xff]  }
 0x1c8   :  { %2326 = vmatpush1.bf16.msra.mxu0 %v13503_v5  ;;  %v13614_v54 = vld [vmem:[%s16453_s2 + $0xb0] sm:$0xff]  }
 0x1c9   :  { %2327 = vmatprep.subr.bf16.mxu0 %v14804_v0  ;;  %v13565_v55 = vld [vmem:[#allocation2 + $0x1e0] ss:$16 sps:$4 sm:$0xff]   ;;  %v13566_v56 = vld [vmem:[#allocation2 + $0x204] ss:$16 sps:$4 sm:$0xff]  }
 0x1ca   :  { %v13568_v57 = vld [vmem:[#allocation2 + $0x200] ss:$16 sps:$4 sm:$0xff]   ;;  %v13570_v58 = vld [vmem:[#allocation2 + $0x224] ss:$16 sps:$4 sm:$0xff]  }
 0x1cb   :  { %v13572_v59 = vld [vmem:[#allocation2 + $0x220] ss:$16 sps:$4 sm:$0xff]   ;;  %v13573_v60 = vld [vmem:[#allocation2 + $0x244] ss:$16 sps:$4 sm:$0xff]  }
 0x1cc   :  { %2328 = vmatpush1.bf16.msra.mxu0 %v13504_v7  ;;  %v13575_v61 = vld [vmem:[#allocation2 + $0x240] ss:$16 sps:$4 sm:$0xff]   ;;  %v13576_v62 = vld [vmem:[#allocation2 + $0x264] ss:$16 sps:$4 sm:$0xff]  }
 0x1cd   :  { %2329 = vmatprep.subr.bf16.mxu0 %v14804_v0  ;;  %v13578_v1 = vld [vmem:[#allocation2 + $0x260] ss:$16 sps:$4 sm:$0xff]   ;;  %v13579_v2 = vld [vmem:[#allocation2 + $0x284] ss:$16 sps:$4 sm:$0xff]  }
 0x1ce   :  { %v13581_v3 = vld [vmem:[#allocation2 + $0x280] ss:$16 sps:$4 sm:$0xff]   ;;  %v13582_v4 = vld [vmem:[#allocation2 + $0x2a4] ss:$16 sps:$4 sm:$0xff]  }
 0x1cf   :  { %v13584_v5 = vld [vmem:[#allocation2 + $0x2a0] ss:$16 sps:$4 sm:$0xff]   ;;  %v13586_v6 = vld [vmem:[#allocation2 + $0x2c4] ss:$16 sps:$4 sm:$0xff]  }
 0x1d0   :  { %2330 = vmatpush1.bf16.msra.mxu0 %v13505_v8  ;;  %v13588_v7 = vld [vmem:[#allocation2 + $0x2c0] ss:$16 sps:$4 sm:$0xff]   ;;  %v13589_v8 = vld [vmem:[#allocation2 + $0x2e4] ss:$16 sps:$4 sm:$0xff]  }
 0x1d1   :  { %2331 = vmatprep.subr.bf16.mxu0 %v14804_v0 }
 0x1d4   :  { %2332 = vmatpush1.bf16.msra.mxu0 %v13506_v9  ;;  %v13591_v9 = vld [vmem:[#allocation2 + $0x2e0] ss:$16 sps:$4 sm:$0xff]  }
 0x1d5   :  { %2333 = vmatprep.subr.bf16.mxu0 %v14804_v0 }
 0x1d8   :  { %2334 = vmatpush1.bf16.msra.mxu0 %v13507_v10  ;;  %v13592_v10 = vld [vmem:[#allocation2 + $0x304] ss:$16 sps:$4 sm:$0xff]  }
 0x1d9   :  { %2335 = vmatprep.subr.bf16.mxu0 %v14804_v0 }
 0x1dc   :  { %2336 = vmatpush1.bf16.msra.mxu0 %v13508_v11  ;;  %v13643_v11 = vld [vmem:[%s16453_s2 + $0xc0] sm:$0xff]  }
 0x1dd   :  { %2337 = vmatprep.subr.bf16.mxu0 %v14804_v0 }
 0x1e0   :  { %2338 = vmatpush1.bf16.msra.mxu0 %v13509_v12  ;;  %v13594_v12 = vld [vmem:[#allocation2 + $0x300] ss:$16 sps:$4 sm:$0xff]  }
 0x1e1   :  { %2339 = vmatprep.subr.bf16.mxu0 %v14804_v0 }
 0x1e4   :  { %2340 = vmatpush1.bf16.msra.mxu0 %v13510_v13  ;;  %v13595_v13 = vld [vmem:[#allocation2 + $0x324] ss:$16 sps:$4 sm:$0xff]  }
 0x1e5   :  { %2341 = vmatprep.subr.bf16.mxu0 %v14804_v0 }
 0x1e8   :  { %2342 = vmatpush1.bf16.msra.mxu0 %v13511_v14  ;;  %v13597_v14 = vld [vmem:[#allocation2 + $0x320] ss:$16 sps:$4 sm:$0xff]  }
 0x1e9   :  { %2343 = vmatprep.subr.bf16.mxu0 %v14804_v0 }
 0x1ec   :  { %2344 = vmatpush1.bf16.msra.mxu0 %v13512_v15  ;;  %v13599_v15 = vld [vmem:[#allocation2 + $0x344] ss:$16 sps:$4 sm:$0xff]  }
 0x1ed   :  { %2345 = vmatprep.subr.bf16.mxu0 %v14804_v0 }
 0x1f0   :  { %2346 = vmatpush1.bf16.msra.mxu0 %v13513_v16  ;;  %v13601_v16 = vld [vmem:[#allocation2 + $0x340] ss:$16 sps:$4 sm:$0xff]  }
 0x1f1   :  { %2347 = vmatprep.subr.bf16.mxu0 %v14804_v0 }
 0x1f4   :  { %2348 = vmatpush1.bf16.msra.mxu0 %v13514_v17  ;;  %v13602_v17 = vld [vmem:[#allocation2 + $0x364] ss:$16 sps:$4 sm:$0xff]  }
 0x1f5   :  { %2926 = vmatprep.subr.bf16.mxu0 %v14804_v0 }
 0x1f7   :  { %2350 = vmatmul.mubr.bf16.vlgmr.msra.gmra.mrb[0].mxu0 %v13515_v18  ;;  %v13604_v18 = vld [vmem:[#allocation2 + $0x360] ss:$16 sps:$4 sm:$0xff]  }
 0x1f8   :  { %2357 = vmatprep.mubr.bf16.mxu0 %v13518_v19  ;;  %2927 = vmatpush1.bf16.msra.mxu0 %v13527_v20  ;;  %v13605_v19 = vld [vmem:[#allocation2 + $0x384] ss:$16 sps:$4 sm:$0xff]   ;;  %v13656_v20 = vld [vmem:[%s16453_s2 + $0xc8] sm:$0xff]  }
 0x1f9   :  { %2928 = vmatprep.subr.bf16.mxu0 %v14804_v0 }
 0x1fc   :  { %2929 = vmatpush1.bf16.msra.mxu0 %v13540_v21  ;;  %v13607_v21 = vld [vmem:[#allocation2 + $0x380] ss:$16 sps:$4 sm:$0xff]  }
 0x1fd   :  { %2930 = vmatprep.subr.bf16.mxu0 %v14804_v0 }
 0x1ff   :  { %2358 = vmatmul.mubr.bf16.gmra.mrb[4].mxu0 %v13520_v22  ;;  %v13608_v22 = vld [vmem:[#allocation2 + $0x3a4] ss:$16 sps:$4 sm:$0xff]  }
 0x200   :  { %2365 = vmatprep.mubr.bf16.mxu0 %v13521_v23  ;;  %2931 = vmatpush1.bf16.msra.mxu0 %v13556_v24  ;;  %v13610_v23 = vld [vmem:[#allocation2 + $0x3a0] ss:$16 sps:$4 sm:$0xff]   ;;  %v13611_v24 = vld [vmem:[#allocation2 + $0x3c4] ss:$16 sps:$4 sm:$0xff]  }
 0x201   :  { %2932 = vmatprep.subr.bf16.mxu0 %v14804_v0 }
 0x204   :  { %2933 = vmatpush1.bf16.msra.mxu0 %v13569_v25  ;;  %v13613_v25 = vld [vmem:[#allocation2 + $0x3c0] ss:$16 sps:$4 sm:$0xff]  }
 0x205   :  { %2934 = vmatprep.subr.bf16.mxu0 %v14804_v0 }
 0x207   :  { %2366 = vmatmul.mubr.bf16.gmra.mrb[8].mxu0 %v13523_v26  ;;  %v13615_v26 = vld [vmem:[#allocation2 + $0x3e4] ss:$16 sps:$4 sm:$0xff]  }
 0x208   :  { %2373 = vmatprep.mubr.bf16.mxu0 %v13524_v27  ;;  %2935 = vmatpush1.bf16.msra.mxu0 %v13585_v34  ;;  %v13617_v27 = vld [vmem:[#allocation2 + $0x3e0] ss:$16 sps:$4 sm:$0xff]  }
 0x209   :  { %2936 = vmatprep.subr.bf16.mxu0 %v14804_v0  ;;  %v13626_v34 = vld [vmem:[#allocation2 + $0x440] ss:$16 sps:$4 sm:$0xff]  }
 0x20c   :  { %2937 = vmatpush1.bf16.msra.mxu0 %v13598_v43  ;;  %v13639_v43 = vld [vmem:[#allocation2 + $0x4c0] ss:$16 sps:$4 sm:$0xff]  }
 0x20d   :  { %2938 = vmatprep.subr.bf16.mxu0 %v14804_v0 }
 0x20f   :  { %2374 = vmatmul.mubr.bf16.gmra.mrb[12].mxu0 %v13526_v28  ;;  %v13618_v28 = vld [vmem:[#allocation2 + $0x404] ss:$16 sps:$4 sm:$0xff]  }
 0x210   :  { %2381 = vmatprep.mubr.bf16.mxu0 %v13528_v29  ;;  %2939 = vmatpush1.bf16.msra.mxu0 %v13614_v54  ;;  %v13620_v29 = vld [vmem:[#allocation2 + $0x400] ss:$16 sps:$4 sm:$0xff]  }
 0x211   :  { %2940 = vmatprep.subr.bf16.mxu0 %v14804_v0  ;;  %v13655_v54 = vld [vmem:[#allocation2 + $0x560] ss:$16 sps:$4 sm:$0xff]  }
 0x214   :  { %2941 = vmatpush1.bf16.msra.mxu0 %v13627_v63  ;;  %v13668_v63 = vld [vmem:[#allocation2 + $0x5e0] ss:$16 sps:$4 sm:$0xff]  }
 0x215   :  { %2942 = vmatprep.subr.bf16.mxu0 %v14804_v0 }
 0x217   :  { %2382 = vmatmul.mubr.bf16.gmra.mrb[16].mxu0 %v13530_v30  ;;  %v13621_v30 = vld [vmem:[#allocation2 + $0x424] ss:$16 sps:$4 sm:$0xff]  }
 0x218   :  { %2389 = vmatprep.mubr.bf16.mxu0 %v13531_v31  ;;  %2943 = vmatpush1.bf16.msra.mxu0 %v13643_v11  ;;  %v13672_v31 = vld [vmem:[%s16453_s2 + $0xd0] sm:$0xff]  }
 0x219   :  { %2944 = vmatprep.subr.bf16.mxu0 %v14804_v0  ;;  %v13684_v11 = vld [vmem:[#allocation2 + $0x680] ss:$16 sps:$4 sm:$0xff]  }
 0x21c   :  { %2945 = vmatpush1.bf16.msra.mxu0 %v13656_v20  ;;  %v13697_v20 = vld [vmem:[#allocation2 + $0x700] ss:$16 sps:$4 sm:$0xff]  }
 0x21d   :  { %2946 = vmatprep.subr.bf16.mxu0 %v14804_v0 }
 0x21f   :  { %2390 = vmatmul.mubr.bf16.gmra.mrb[20].mxu0 %v13533_v32  ;;  %v13623_v32 = vld [vmem:[#allocation2 + $0x420] ss:$16 sps:$4 sm:$0xff]  }
 0x220   :  { %2397 = vmatprep.mubr.bf16.mxu0 %v13534_v33  ;;  %2947 = vmatpush1.bf16.msra.mxu0 %v13672_v31  ;;  %v13624_v33 = vld [vmem:[#allocation2 + $0x444] ss:$16 sps:$4 sm:$0xff]  }
 0x221   :  { %2948 = vmatprep.subr.bf16.mxu0 %v14804_v0  ;;  %v13715_v31 = vld [vmem:[#allocation2 + $0x7c4] ss:$16 sps:$4 sm:$0xff]  }
 0x227   :  { %2398 = vmatmul.mubr.bf16.gmra.mrb[24].mxu0 %v13536_v35  ;;  %v13628_v35 = vld [vmem:[#allocation2 + $0x464] ss:$16 sps:$4 sm:$0xff]  }
 0x228   :  { %2405 = vmatprep.mubr.bf16.mxu0 %v13537_v36  ;;  %v13630_v36 = vld [vmem:[#allocation2 + $0x460] ss:$16 sps:$4 sm:$0xff]  }
 0x22f   :  { %2406 = vmatmul.mubr.bf16.gmra.mrb[28].mxu0 %v13539_v37  ;;  %v13631_v37 = vld [vmem:[#allocation2 + $0x484] ss:$16 sps:$4 sm:$0xff]  }
 0x230   :  { %2413 = vmatprep.mubr.bf16.mxu0 %v13541_v38  ;;  %v13633_v38 = vld [vmem:[#allocation2 + $0x480] ss:$16 sps:$4 sm:$0xff]  }
 0x237   :  { %2414 = vmatmul.mubr.bf16.gmra.mrb[32].mxu0 %v13543_v39  ;;  %v13634_v39 = vld [vmem:[#allocation2 + $0x4a4] ss:$16 sps:$4 sm:$0xff]  }
 0x238   :  { %2421 = vmatprep.mubr.bf16.mxu0 %v13544_v40  ;;  %v13685_v40 = vld [vmem:[%s16453_s2 + $0xd8] sm:$0xff]  }
 0x239   :  { %2949 = vmatpush1.bf16.msra.mxu0 %v13685_v40  ;;  %v13726_v40 = vld [vmem:[#allocation2 + $0x824] ss:$16 sps:$4 sm:$0xff]  }
 0x23a   :  { %2950 = vmatprep.subr.bf16.mxu0 %v14804_v0 }
 0x23f   :  { %2422 = vmatmul.mubr.bf16.gmra.mrb[36].mxu0 %v13546_v41  ;;  %v13636_v41 = vld [vmem:[#allocation2 + $0x4a0] ss:$16 sps:$4 sm:$0xff]  }
 0x240   :  { %2429 = vmatprep.mubr.bf16.mxu0 %v13547_v42  ;;  %v13637_v42 = vld [vmem:[#allocation2 + $0x4c4] ss:$16 sps:$4 sm:$0xff]  }
 0x247   :  { %2430 = vmatmul.mubr.bf16.gmra.mrb[40].mxu0 %v13549_v44  ;;  %v13640_v44 = vld [vmem:[#allocation2 + $0x4e4] ss:$16 sps:$4 sm:$0xff]  }
 0x248   :  { %2437 = vmatprep.mubr.bf16.mxu0 %v13550_v45  ;;  %v13642_v45 = vld [vmem:[#allocation2 + $0x4e0] ss:$16 sps:$4 sm:$0xff]  }
 0x24f   :  { %2438 = vmatmul.mubr.bf16.gmra.mrb[44].mxu0 %v13552_v46  ;;  %v13644_v46 = vld [vmem:[#allocation2 + $0x504] ss:$16 sps:$4 sm:$0xff]  }
 0x250   :  { %2445 = vmatprep.mubr.bf16.mxu0 %v13553_v47  ;;  %v13646_v47 = vld [vmem:[#allocation2 + $0x500] ss:$16 sps:$4 sm:$0xff]  }
 0x257   :  { %2446 = vmatmul.mubr.bf16.gmra.mrb[48].mxu0 %v13555_v48  ;;  %v13647_v48 = vld [vmem:[#allocation2 + $0x524] ss:$16 sps:$4 sm:$0xff]  }
 0x258   :  { %2453 = vmatprep.mubr.bf16.mxu0 %v13557_v49  ;;  %v13649_v49 = vld [vmem:[#allocation2 + $0x520] ss:$16 sps:$4 sm:$0xff]  }
 0x25f   :  { %2454 = vmatmul.mubr.bf16.gmra.mrb[52].mxu0 %v13559_v50  ;;  %v13650_v50 = vld [vmem:[#allocation2 + $0x544] ss:$16 sps:$4 sm:$0xff]  }
 0x260   :  { %2461 = vmatprep.mubr.bf16.mxu0 %v13560_v51  ;;  %v13701_v51 = vld [vmem:[%s16453_s2 + $0xe0] sm:$0xff]  }
 0x261   :  { %2951 = vmatpush1.bf16.msra.mxu0 %v13701_v51 }
 0x262   :  { %2952 = vmatprep.subr.bf16.mxu0 %v14804_v0 }
 0x267   :  { %2462 = vmatmul.mubr.bf16.gmra.mrb[56].mxu0 %v13562_v52  ;;  %v13652_v52 = vld [vmem:[#allocation2 + $0x540] ss:$16 sps:$4 sm:$0xff]  }
 0x268   :  { %2469 = vmatprep.mubr.bf16.mxu0 %v13563_v53  ;;  %v13653_v53 = vld [vmem:[#allocation2 + $0x564] ss:$16 sps:$4 sm:$0xff]  }
 0x26f   :  { %2470 = vmatmul.mubr.bf16.gmra.mrb[60].mxu0 %v13565_v55  ;;  %v13657_v55 = vld [vmem:[#allocation2 + $0x584] ss:$16 sps:$4 sm:$0xff]  }
 0x270   :  { %2477 = vmatprep.mubr.bf16.mxu0 %v13566_v56  ;;  %v13659_v56 = vld [vmem:[#allocation2 + $0x580] ss:$16 sps:$4 sm:$0xff]  }
 0x277   :  { %2478 = vmatmul.mubr.bf16.gmra.mrb[64].mxu0 %v13568_v57  ;;  %v13660_v57 = vld [vmem:[#allocation2 + $0x5a4] ss:$16 sps:$4 sm:$0xff]  }
 0x278   :  { %2485 = vmatprep.mubr.bf16.mxu0 %v13570_v58  ;;  %v13662_v58 = vld [vmem:[#allocation2 + $0x5a0] ss:$16 sps:$4 sm:$0xff]  }
 0x27f   :  { %2486 = vmatmul.mubr.bf16.gmra.mrb[68].mxu0 %v13572_v59  ;;  %v13663_v59 = vld [vmem:[#allocation2 + $0x5c4] ss:$16 sps:$4 sm:$0xff]  }
 0x280   :  { %2493 = vmatprep.mubr.bf16.mxu0 %v13573_v60  ;;  %v13714_v60 = vld [vmem:[%s16453_s2 + $0xe8] sm:$0xff]  }
 0x281   :  { %2953 = vmatpush1.bf16.msra.mxu0 %v13714_v60 }
 0x282   :  { %2954 = vmatprep.subr.bf16.mxu0 %v14804_v0 }
 0x287   :  { %2494 = vmatmul.mubr.bf16.gmra.mrb[72].mxu0 %v13575_v61  ;;  %v13665_v61 = vld [vmem:[#allocation2 + $0x5c0] ss:$16 sps:$4 sm:$0xff]  }
 0x288   :  { %2501 = vmatprep.mubr.bf16.mxu0 %v13576_v62  ;;  %v13666_v62 = vld [vmem:[#allocation2 + $0x5e4] ss:$16 sps:$4 sm:$0xff]  }
 0x28f   :  { %2502 = vmatmul.mubr.bf16.gmra.mrb[76].mxu0 %v13578_v1  ;;  %v13669_v1 = vld [vmem:[#allocation2 + $0x604] ss:$16 sps:$4 sm:$0xff]  }
 0x290   :  { %2509 = vmatprep.mubr.bf16.mxu0 %v13579_v2  ;;  %v13671_v2 = vld [vmem:[#allocation2 + $0x600] ss:$16 sps:$4 sm:$0xff]  }
 0x297   :  { %2510 = vmatmul.mubr.bf16.gmra.mrb[80].mxu0 %v13581_v3  ;;  %v13673_v3 = vld [vmem:[#allocation2 + $0x624] ss:$16 sps:$4 sm:$0xff]  }
 0x298   :  { %2517 = vmatprep.mubr.bf16.mxu0 %v13582_v4  ;;  %v13675_v4 = vld [vmem:[#allocation2 + $0x620] ss:$16 sps:$4 sm:$0xff]  }
 0x29f   :  { %2518 = vmatmul.mubr.bf16.gmra.mrb[84].mxu0 %v13584_v5  ;;  %v13676_v5 = vld [vmem:[#allocation2 + $0x644] ss:$16 sps:$4 sm:$0xff]  }
 0x2a0   :  { %2525 = vmatprep.mubr.bf16.mxu0 %v13586_v6  ;;  %v13678_v6 = vld [vmem:[#allocation2 + $0x640] ss:$16 sps:$4 sm:$0xff]  }
 0x2a7   :  { %2526 = vmatmul.mubr.bf16.gmra.mrb[88].mxu0 %v13588_v7  ;;  %v13679_v7 = vld [vmem:[#allocation2 + $0x664] ss:$16 sps:$4 sm:$0xff]  }
 0x2a8   :  { %2533 = vmatprep.mubr.bf16.mxu0 %v13589_v8  ;;  %v13730_v8 = vld [vmem:[%s16453_s2 + $0xf0] sm:$0xff]  }
 0x2a9   :  { %2955 = vmatpush1.bf16.msra.mxu0 %v13730_v8 }
 0x2aa   :  { %2956 = vmatprep.subr.bf16.mxu0 %v14804_v0 }
 0x2af   :  { %2534 = vmatmul.mubr.bf16.gmra.mrb[92].mxu0 %v13591_v9  ;;  %v13681_v9 = vld [vmem:[#allocation2 + $0x660] ss:$16 sps:$4 sm:$0xff]  }
 0x2b0   :  { %2541 = vmatprep.mubr.bf16.mxu0 %v13592_v10  ;;  %v13682_v10 = vld [vmem:[#allocation2 + $0x684] ss:$16 sps:$4 sm:$0xff]  }
 0x2b7   :  { %2542 = vmatmul.mubr.bf16.gmra.mrb[96].mxu0 %v13594_v12  ;;  %v13686_v12 = vld [vmem:[#allocation2 + $0x6a4] ss:$16 sps:$4 sm:$0xff]  }
 0x2b8   :  { %2549 = vmatprep.mubr.bf16.mxu0 %v13595_v13  ;;  %v13688_v13 = vld [vmem:[#allocation2 + $0x6a0] ss:$16 sps:$4 sm:$0xff]  }
 0x2bf   :  { %2550 = vmatmul.mubr.bf16.gmra.mrb[100].mxu0 %v13597_v14  ;;  %v13689_v14 = vld [vmem:[#allocation2 + $0x6c4] ss:$16 sps:$4 sm:$0xff]  }
 0x2c0   :  { %2557 = vmatprep.mubr.bf16.mxu0 %v13599_v15  ;;  %v13691_v15 = vld [vmem:[#allocation2 + $0x6c0] ss:$16 sps:$4 sm:$0xff]  }
 0x2c7   :  { %2558 = vmatmul.mubr.bf16.gmra.mrb[104].mxu0 %v13601_v16  ;;  %v13692_v16 = vld [vmem:[#allocation2 + $0x6e4] ss:$16 sps:$4 sm:$0xff]  }
 0x2c8   :  { %2565 = vmatprep.mubr.bf16.mxu0 %v13602_v17  ;;  %v13694_v17 = vld [vmem:[#allocation2 + $0x6e0] ss:$16 sps:$4 sm:$0xff]  }
 0x2cf   :  { %2566 = vmatmul.mubr.bf16.gmra.mrb[108].mxu0 %v13604_v18  ;;  %v13695_v18 = vld [vmem:[#allocation2 + $0x704] ss:$16 sps:$4 sm:$0xff]  }
 0x2d0   :  { %2573 = vmatprep.mubr.bf16.mxu0 %v13605_v19  ;;  %v13743_v19 = vld [vmem:[%s16453_s2 + $0xf8] sm:$0xff]  }
 0x2d1   :  { %2957 = vmatpush1.bf16.msra.mxu0 %v13743_v19  ;;  %v13749_v19 = vld [vmem:[#allocation2 + $0xc] ss:$16 sps:$4 sm:$0xff]  }
 0x2d7   :  { %2574 = vmatmul.mubr.bf16.gmra.mrb[112].mxu0 %v13607_v21  ;;  %v13698_v21 = vld [vmem:[#allocation2 + $0x724] ss:$16 sps:$4 sm:$0xff]  }
 0x2d8   :  { %2581 = vmatprep.mubr.bf16.mxu0 %v13608_v22  ;;  %v13700_v22 = vld [vmem:[#allocation2 + $0x720] ss:$16 sps:$4 sm:$0xff]  }
 0x2df   :  { %2582 = vmatmul.mubr.bf16.gmra.mrb[116].mxu0 %v13610_v23  ;;  %v13702_v23 = vld [vmem:[#allocation2 + $0x744] ss:$16 sps:$4 sm:$0xff]  }
 0x2e0   :  { %2589 = vmatprep.mubr.bf16.mxu0 %v13611_v24  ;;  %v13704_v24 = vld [vmem:[#allocation2 + $0x740] ss:$16 sps:$4 sm:$0xff]  }
 0x2e7   :  { %2590 = vmatmul.mubr.bf16.gmra.mrb[120].mxu0 %v13613_v25  ;;  %v13705_v25 = vld [vmem:[#allocation2 + $0x764] ss:$16 sps:$4 sm:$0xff]  }
 0x2e8   :  { %2597 = vmatprep.mubr.bf16.mxu0 %v13615_v26  ;;  %v13707_v26 = vld [vmem:[#allocation2 + $0x760] ss:$16 sps:$4 sm:$0xff]  }
 0x2ef   :  { %2598 = vmatmul.mubr.bf16.gmra.mrb[124].mxu0 %v13617_v27  ;;  %v13708_v27 = vld [vmem:[#allocation2 + $0x784] ss:$16 sps:$4 sm:$0xff]  }
 0x2f0   :  { %2605 = vmatprep.mubr.bf16.mxu0 %v13618_v28  ;;  %v13710_v28 = vld [vmem:[#allocation2 + $0x780] ss:$16 sps:$4 sm:$0xff]  }
 0x2f7   :  { %2606 = vmatmul.mubr.bf16.gmra.mrb[128].mxu0 %v13620_v29  ;;  %v13711_v29 = vld [vmem:[#allocation2 + $0x7a4] ss:$16 sps:$4 sm:$0xff]  }
 0x2f8   :  { %2613 = vmatprep.mubr.bf16.mxu0 %v13621_v30  ;;  %v13713_v30 = vld [vmem:[#allocation2 + $0x7a0] ss:$16 sps:$4 sm:$0xff]  }
 0x2ff   :  { %2614 = vmatmul.mubr.bf16.gmra.mrb[132].mxu0 %v13623_v32  ;;  %v13717_v32 = vld [vmem:[#allocation2 + $0x7c0] ss:$16 sps:$4 sm:$0xff]  }
 0x300   :  { %2621 = vmatprep.mubr.bf16.mxu0 %v13624_v33  ;;  %v13718_v33 = vld [vmem:[#allocation2 + $0x7e4] ss:$16 sps:$4 sm:$0xff]  }
 0x307   :  { %2622 = vmatmul.mubr.bf16.gmra.mrb[136].mxu0 %v13626_v34  ;;  %v13720_v34 = vld [vmem:[#allocation2 + $0x7e0] ss:$16 sps:$4 sm:$0xff]  }
 0x308   :  { %2629 = vmatprep.mubr.bf16.mxu0 %v13628_v35  ;;  %v13723_v35 = vld [vmem:[#allocation2 + $0x804] ss:$16 sps:$4 sm:$0xff]  }
 0x30f   :  { %2630 = vmatmul.mubr.bf16.gmra.mrb[140].mxu0 %v13630_v36 }
 0x310   :  { %2637 = vmatprep.mubr.bf16.mxu0 %v13631_v37 }
 0x317   :  { %2638 = vmatmul.mubr.bf16.gmra.mrb[144].mxu0 %v13633_v38  ;;  %v13721_v38 = vld [vmem:[#allocation2 + $0x800] ss:$16 sps:$4 sm:$0xff]  }
 0x318   :  { %2645 = vmatprep.mubr.bf16.mxu0 %v13634_v39 }
 0x31f   :  { %2646 = vmatmul.mubr.bf16.gmra.mrb[148].mxu0 %v13636_v41 }
 0x320   :  { %2653 = vmatprep.mubr.bf16.mxu0 %v13637_v42 }
 0x327   :  { %2654 = vmatmul.mubr.bf16.gmra.mrb[152].mxu0 %v13639_v43 }
 0x328   :  { %2661 = vmatprep.mubr.bf16.mxu0 %v13640_v44  ;;  %v13724_v44 = vld [vmem:[#allocation2 + $0x820] ss:$16 sps:$4 sm:$0xff]  }
 0x32f   :  { %2662 = vmatmul.mubr.bf16.gmra.mrb[156].mxu0 %v13642_v45 }
 0x330   :  { %2669 = vmatprep.mubr.bf16.mxu0 %v13644_v46  ;;  %v13729_v46 = vld [vmem:[#allocation2 + $0x844] ss:$16 sps:$4 sm:$0xff]  }
 0x337   :  { %2670 = vmatmul.mubr.bf16.gmra.mrb[160].mxu0 %v13646_v47 }
 0x338   :  { %2677 = vmatprep.mubr.bf16.mxu0 %v13647_v48 }
 0x33f   :  { %2678 = vmatmul.mubr.bf16.gmra.mrb[164].mxu0 %v13649_v49 }
 0x340   :  { %2685 = vmatprep.mubr.bf16.mxu0 %v13650_v50  ;;  %v13727_v50 = vld [vmem:[#allocation2 + $0x840] ss:$16 sps:$4 sm:$0xff]  }
 0x347   :  { %2686 = vmatmul.mubr.bf16.gmra.mrb[168].mxu0 %v13652_v52  ;;  %v13733_v52 = vld [vmem:[#allocation2 + $0x864] ss:$16 sps:$4 sm:$0xff]  }
 0x348   :  { %2693 = vmatprep.mubr.bf16.mxu0 %v13653_v53 }
 0x34f   :  { %2694 = vmatmul.mubr.bf16.gmra.mrb[172].mxu0 %v13655_v54 }
 0x350   :  { %2701 = vmatprep.mubr.bf16.mxu0 %v13657_v55 }
 0x357   :  { %2702 = vmatmul.mubr.bf16.gmra.mrb[176].mxu0 %v13659_v56  ;;  %v13731_v56 = vld [vmem:[#allocation2 + $0x860] ss:$16 sps:$4 sm:$0xff]  }
 0x358   :  { %2709 = vmatprep.mubr.bf16.mxu0 %v13660_v57 }
 0x35f   :  { %2710 = vmatmul.mubr.bf16.gmra.mrb[180].mxu0 %v13662_v58  ;;  %v13736_v58 = vld [vmem:[#allocation2 + $0x884] ss:$16 sps:$4 sm:$0xff]  }
 0x360   :  { %2717 = vmatprep.mubr.bf16.mxu0 %v13663_v59 }
 0x367   :  { %2718 = vmatmul.mubr.bf16.gmra.mrb[184].mxu0 %v13665_v61 }
 0x368   :  { %2725 = vmatprep.mubr.bf16.mxu0 %v13666_v62  ;;  %v13734_v62 = vld [vmem:[#allocation2 + $0x880] ss:$16 sps:$4 sm:$0xff]  }
 0x36f   :  { %2726 = vmatmul.mubr.bf16.gmra.mrb[188].mxu0 %v13668_v63 }
 0x370   :  { %2733 = vmatprep.mubr.bf16.mxu0 %v13669_v1  ;;  %v13739_v1 = vld [vmem:[#allocation2 + $0x8a4] ss:$16 sps:$4 sm:$0xff]  }
 0x377   :  { %2734 = vmatmul.mubr.bf16.gmra.mrb[192].mxu0 %v13671_v2 }
 0x378   :  { %2741 = vmatprep.mubr.bf16.mxu0 %v13673_v3 }
 0x37f   :  { %2742 = vmatmul.mubr.bf16.gmra.mrb[196].mxu0 %v13675_v4 }
 0x380   :  { %2749 = vmatprep.mubr.bf16.mxu0 %v13676_v5  ;;  %v13737_v5 = vld [vmem:[#allocation2 + $0x8a0] ss:$16 sps:$4 sm:$0xff]  }
 0x387   :  { %2750 = vmatmul.mubr.bf16.gmra.mrb[200].mxu0 %v13678_v6 }
 0x388   :  { %2757 = vmatprep.mubr.bf16.mxu0 %v13679_v7  ;;  %v13742_v7 = vld [vmem:[#allocation2 + $0x8c4] ss:$16 sps:$4 sm:$0xff]  }
 0x38f   :  { %2758 = vmatmul.mubr.bf16.gmra.mrb[204].mxu0 %v13681_v9 }
 0x390   :  { %2765 = vmatprep.mubr.bf16.mxu0 %v13682_v10 }
 0x397   :  { %2766 = vmatmul.mubr.bf16.gmra.mrb[208].mxu0 %v13684_v11  ;;  %v13740_v11 = vld [vmem:[#allocation2 + $0x8c0] ss:$16 sps:$4 sm:$0xff]  }
 0x398   :  { %2773 = vmatprep.mubr.bf16.mxu0 %v13686_v12 }
 0x39f   :  { %2774 = vmatmul.mubr.bf16.gmra.mrb[212].mxu0 %v13688_v13  ;;  %v13746_v13 = vld [vmem:[#allocation2 + $0x8e4] ss:$16 sps:$4 sm:$0xff]  }
 0x3a0   :  { %2781 = vmatprep.mubr.bf16.mxu0 %v13689_v14 }
 0x3a7   :  { %2782 = vmatmul.mubr.bf16.gmra.mrb[216].mxu0 %v13691_v15 }
 0x3a8   :  { %2789 = vmatprep.mubr.bf16.mxu0 %v13692_v16 }
 0x3af   :  { %2790 = vmatmul.mubr.bf16.gmra.mrb[220].mxu0 %v13694_v17  ;;  %v13744_v17 = vld [vmem:[#allocation2 + $0x8e0] ss:$16 sps:$4 sm:$0xff]  }
 0x3b0   :  { %2797 = vmatprep.mubr.bf16.mxu0 %v13695_v18 }
 0x3b7   :  { %2798 = vmatmul.mubr.bf16.gmra.mrb[224].mxu0 %v13697_v20 }
 0x3b8   :  { %2805 = vmatprep.mubr.bf16.mxu0 %v13698_v21  ;;  %v13747_v21 = vld [vmem:[#allocation2 + $0x8] ss:$16 sps:$4 sm:$0xff]  }
 0x3bf   :  { %2806 = vmatmul.mubr.bf16.gmra.mrb[228].mxu0 %v13700_v22  ;;  %v13750_v22 = vld [vmem:[#allocation2 + $0x2c] ss:$16 sps:$4 sm:$0xff]  }
 0x3c0   :  { %2813 = vmatprep.mubr.bf16.mxu0 %v13702_v23  ;;  %v13752_v23 = vld [vmem:[#allocation2 + $0x28] ss:$16 sps:$4 sm:$0xff]  }
 0x3c7   :  { %2814 = vmatmul.mubr.bf16.gmra.mrb[232].mxu0 %v13704_v24  ;;  %v13753_v24 = vld [vmem:[#allocation2 + $0x4c] ss:$16 sps:$4 sm:$0xff]  }
 0x3c8   :  { %2821 = vmatprep.mubr.bf16.mxu0 %v13705_v25  ;;  %v13755_v25 = vld [vmem:[#allocation2 + $0x48] ss:$16 sps:$4 sm:$0xff]  }
 0x3cf   :  { %2822 = vmatmul.mubr.bf16.gmra.mrb[236].mxu0 %v13707_v26  ;;  %v13756_v26 = vld [vmem:[#allocation2 + $0x6c] ss:$16 sps:$4 sm:$0xff]  }
 0x3d0   :  { %2829 = vmatprep.mubr.bf16.mxu0 %v13708_v27  ;;  %v13758_v27 = vld [vmem:[#allocation2 + $0x68] ss:$16 sps:$4 sm:$0xff]  }
 0x3d7   :  { %2830 = vmatmul.mubr.bf16.gmra.mrb[240].mxu0 %v13710_v28  ;;  %v13759_v28 = vld [vmem:[#allocation2 + $0x8c] ss:$16 sps:$4 sm:$0xff]  }
 0x3d8   :  { %2837 = vmatprep.mubr.bf16.mxu0 %v13711_v29  ;;  %v13761_v29 = vld [vmem:[#allocation2 + $0x88] ss:$16 sps:$4 sm:$0xff]  }
 0x3df   :  { %2838 = vmatmul.mubr.bf16.gmra.mrb[244].mxu0 %v13713_v30  ;;  %v13762_v30 = vld [vmem:[#allocation2 + $0xac] ss:$16 sps:$4 sm:$0xff]  }
 0x3e0   :  { %2845 = vmatprep.mubr.bf16.mxu0 %v13715_v31  ;;  %v13764_v31 = vld [vmem:[#allocation2 + $0xa8] ss:$16 sps:$4 sm:$0xff]  }
 0x3e7   :  { %2846 = vmatmul.mubr.bf16.gmra.mrb[248].mxu0 %v13717_v32  ;;  %v13765_v32 = vld [vmem:[#allocation2 + $0xcc] ss:$16 sps:$4 sm:$0xff]  }
 0x3e8   :  { %2853 = vmatprep.mubr.bf16.mxu0 %v13718_v33  ;;  %v13767_v33 = vld [vmem:[#allocation2 + $0xc8] ss:$16 sps:$4 sm:$0xff]  }
 0x3ef   :  { %2854 = vmatmul.mubr.bf16.gmra.mrb[252].mxu0 %v13720_v34  ;;  %v13768_v34 = vld [vmem:[#allocation2 + $0xec] ss:$16 sps:$4 sm:$0xff]  }
 0x3f0   :  { %2861 = vmatprep.mubr.bf16.mxu0 %v13723_v35  ;;  %v13770_v35 = vld [vmem:[#allocation2 + $0xe8] ss:$16 sps:$4 sm:$0xff]  }
 0x3f2   :  { %v15354_v36 = vpop.f32.mrb[148].mxu0 }
 0x3f3   :  { %v2649_v37 = vpop.f32.mrb[149].mxu0 }
 0x3f4   :  { %v15356_v39 = vpop.f32.mrb[150].mxu0  ;;  %v13771_v37 = vld [vmem:[#allocation2 + $0x10c] ss:$16 sps:$4 sm:$0xff]  }
 0x3f5   :  { %v2652_v41 = vpop.f32.mrb[151].mxu0 }
 0x3f6   :  { %v13776_v41 = vld [vmem:[#allocation2 + $0x128] ss:$16 sps:$4 sm:$0xff]  }
 0x3f7   :  { %2862 = vmatmul.mubr.bf16.gmra.mrb[148].mxu0 %v13721_v38  ;;  %v13773_v38 = vld [vmem:[#allocation2 + $0x108] ss:$16 sps:$4 sm:$0xff]  }
 0x3f8   :  { %2869 = vmatprep.mubr.bf16.mxu0 %v13726_v40  ;;  %v13774_v40 = vld [vmem:[#allocation2 + $0x12c] ss:$16 sps:$4 sm:$0xff]  }
 0x3fa   :  { %v15358_v42 = vpop.f32.mrb[152].mxu0 }
 0x3fb   :  { %v2657_v43 = vpop.f32.mrb[153].mxu0 }
 0x3fc   :  { %v15360_v45 = vpop.f32.mrb[154].mxu0  ;;  %v13777_v43 = vld [vmem:[#allocation2 + $0x14c] ss:$16 sps:$4 sm:$0xff]  }
 0x3fd   :  { %v2660_v47 = vpop.f32.mrb[155].mxu0 }
 0x3fe   :  { %v13782_v47 = vld [vmem:[#allocation2 + $0x168] ss:$16 sps:$4 sm:$0xff]  }
 0x3ff   :  { %2870 = vmatmul.mubr.bf16.gmra.mrb[152].mxu0 %v13724_v44  ;;  %v13779_v44 = vld [vmem:[#allocation2 + $0x148] ss:$16 sps:$4 sm:$0xff]  }
 0x400   :  { %2877 = vmatprep.mubr.bf16.mxu0 %v13729_v46  ;;  %v13780_v46 = vld [vmem:[#allocation2 + $0x16c] ss:$16 sps:$4 sm:$0xff]  }
 0x402   :  { %v15362_v48 = vpop.f32.mrb[156].mxu0 }
 0x403   :  { %v2665_v49 = vpop.f32.mrb[157].mxu0 }
 0x404   :  { %v15364_v51 = vpop.f32.mrb[158].mxu0  ;;  %v13783_v49 = vld [vmem:[#allocation2 + $0x18c] ss:$16 sps:$4 sm:$0xff]  }
 0x405   :  { %v2668_v53 = vpop.f32.mrb[159].mxu0 }
 0x406   :  { %v13788_v53 = vld [vmem:[#allocation2 + $0x1a8] ss:$16 sps:$4 sm:$0xff]  }
 0x407   :  { %2878 = vmatmul.mubr.bf16.gmra.mrb[156].mxu0 %v13727_v50  ;;  %v13785_v50 = vld [vmem:[#allocation2 + $0x188] ss:$16 sps:$4 sm:$0xff]  }
 0x408   :  { %2885 = vmatprep.mubr.bf16.mxu0 %v13733_v52  ;;  %v13786_v52 = vld [vmem:[#allocation2 + $0x1ac] ss:$16 sps:$4 sm:$0xff]  }
 0x40a   :  { %v15366_v54 = vpop.f32.mrb[160].mxu0 }
 0x40b   :  { %v2673_v55 = vpop.f32.mrb[161].mxu0 }
 0x40c   :  { %v15368_v57 = vpop.f32.mrb[162].mxu0  ;;  %v13789_v55 = vld [vmem:[#allocation2 + $0x1cc] ss:$16 sps:$4 sm:$0xff]  }
 0x40d   :  { %v2676_v59 = vpop.f32.mrb[163].mxu0 }
 0x40e   :  { %v13794_v59 = vld [vmem:[#allocation2 + $0x1e8] ss:$16 sps:$4 sm:$0xff]  }
 0x40f   :  { %2886 = vmatmul.mubr.bf16.gmra.mrb[160].mxu0 %v13731_v56  ;;  %v13791_v56 = vld [vmem:[#allocation2 + $0x1c8] ss:$16 sps:$4 sm:$0xff]  }
 0x410   :  { %2893 = vmatprep.mubr.bf16.mxu0 %v13736_v58  ;;  %v13792_v58 = vld [vmem:[#allocation2 + $0x1ec] ss:$16 sps:$4 sm:$0xff]  }
 0x412   :  { %v15370_v60 = vpop.f32.mrb[164].mxu0 }
 0x413   :  { %v2681_v61 = vpop.f32.mrb[165].mxu0 }
 0x414   :  { %v15372_v63 = vpop.f32.mrb[166].mxu0  ;;  %v13795_v61 = vld [vmem:[#allocation2 + $0x20c] ss:$16 sps:$4 sm:$0xff]  }
 0x415   :  { %v2684_v2 = vpop.f32.mrb[167].mxu0 }
 0x416   :  { %v13800_v2 = vld [vmem:[#allocation2 + $0x228] ss:$16 sps:$4 sm:$0xff]  }
 0x417   :  { %2894 = vmatmul.mubr.bf16.gmra.mrb[164].mxu0 %v13734_v62  ;;  %v13797_v62 = vld [vmem:[#allocation2 + $0x208] ss:$16 sps:$4 sm:$0xff]  }
 0x418   :  { %2901 = vmatprep.mubr.bf16.mxu0 %v13739_v1  ;;  %v13798_v1 = vld [vmem:[#allocation2 + $0x22c] ss:$16 sps:$4 sm:$0xff]  }
 0x41a   :  { %v15374_v3 = vpop.f32.mrb[168].mxu0 }
 0x41b   :  { %v2689_v4 = vpop.f32.mrb[169].mxu0 }
 0x41c   :  { %v15376_v6 = vpop.f32.mrb[170].mxu0  ;;  %v13801_v4 = vld [vmem:[#allocation2 + $0x24c] ss:$16 sps:$4 sm:$0xff]  }
 0x41d   :  { %v2692_v8 = vpop.f32.mrb[171].mxu0 }
 0x41e   :  { %v13806_v8 = vld [vmem:[#allocation2 + $0x268] ss:$16 sps:$4 sm:$0xff]  }
 0x41f   :  { %2902 = vmatmul.mubr.bf16.gmra.mrb[168].mxu0 %v13737_v5  ;;  %v13803_v5 = vld [vmem:[#allocation2 + $0x248] ss:$16 sps:$4 sm:$0xff]  }
 0x420   :  { %2909 = vmatprep.mubr.bf16.mxu0 %v13742_v7  ;;  %v13804_v7 = vld [vmem:[#allocation2 + $0x26c] ss:$16 sps:$4 sm:$0xff]  }
 0x422   :  { %v15378_v9 = vpop.f32.mrb[172].mxu0 }
 0x423   :  { %v2697_v10 = vpop.f32.mrb[173].mxu0 }
 0x424   :  { %v15380_v12 = vpop.f32.mrb[174].mxu0  ;;  %v13807_v10 = vld [vmem:[#allocation2 + $0x28c] ss:$16 sps:$4 sm:$0xff]  }
 0x425   :  { %v2700_v14 = vpop.f32.mrb[175].mxu0 }
 0x427   :  { %2910 = vmatmul.mubr.bf16.gmra.mrb[172].mxu0 %v13740_v11  ;;  %v3553_v11 = vld [vmem:[#allocation4 + $0x4] sm:$0xf] }
 0x428   :  { %2917 = vmatprep.mubr.bf16.mxu0 %v13746_v13  ;;  %v13809_v13 = vld [vmem:[#allocation2 + $0x288] ss:$16 sps:$4 sm:$0xff]   ;;  %13454 = vmatprep.subr.msk.bf16.mxu1 %vm3579_vm0, %v3553_v11  ;;  %v3581_v14 = vsel %vm3579_vm0, %v3553_v11, 0 }
 0x429   :  { %12105 = vmatpush3.bf16.msra.mxu1 %v3581_v14  ;;  %v13842_v11 = vld [vmem:[#allocation2 + $0x3e8] ss:$16 sps:$4 sm:$0xff]   ;;  %v13843_v14 = vld [vmem:[#allocation2 + $0x40c] ss:$16 sps:$4 sm:$0xff]  }
 0x42a   :  { %v15382_v15 = vpop.f32.mrb[176].mxu0 }
 0x42b   :  { %v2705_v16 = vpop.f32.mrb[177].mxu0 }
 0x42c   :  { %v15384_v18 = vpop.f32.mrb[178].mxu0  ;;  %v13810_v16 = vld [vmem:[#allocation2 + $0x2ac] ss:$16 sps:$4 sm:$0xff]  }
 0x42d   :  { %v2708_v20 = vpop.f32.mrb[179].mxu0 }
 0x42e   :  { %v13815_v20 = vld [vmem:[#allocation2 + $0x2c8] ss:$16 sps:$4 sm:$0xff]  }
 0x42f   :  { %2918 = vmatmul.mubr.bf16.gmra.mrb[176].mxu0 %v13744_v17  ;;  %v13812_v17 = vld [vmem:[#allocation2 + $0x2a8] ss:$16 sps:$4 sm:$0xff]  }
 0x430   :  { %2958 = vmatprep.mubr.bf16.mxu0 %v13749_v19  ;;  %v13813_v19 = vld [vmem:[#allocation2 + $0x2cc] ss:$16 sps:$4 sm:$0xff]  }
 0x437   :  { %2959 = vmatmul.mubr.bf16.vlgmr.msra.gmra.mrb[0].mxu0 %v13747_v21  ;;  %v13816_v21 = vld [vmem:[#allocation2 + $0x2ec] ss:$16 sps:$4 sm:$0xff]  }
 0x438   :  { %2966 = vmatprep.mubr.bf16.mxu0 %v13750_v22  ;;  %v13818_v22 = vld [vmem:[#allocation2 + $0x2e8] ss:$16 sps:$4 sm:$0xff]  }
 0x43f   :  { %2967 = vmatmul.mubr.bf16.gmra.mrb[4].mxu0 %v13752_v23  ;;  %v13819_v23 = vld [vmem:[#allocation2 + $0x30c] ss:$16 sps:$4 sm:$0xff]  }
 0x440   :  { %2974 = vmatprep.mubr.bf16.mxu0 %v13753_v24  ;;  %v13821_v24 = vld [vmem:[#allocation2 + $0x308] ss:$16 sps:$4 sm:$0xff]  }
 0x447   :  { %2975 = vmatmul.mubr.bf16.gmra.mrb[8].mxu0 %v13755_v25  ;;  %v13822_v25 = vld [vmem:[#allocation2 + $0x32c] ss:$16 sps:$4 sm:$0xff]  }
 0x448   :  { %2982 = vmatprep.mubr.bf16.mxu0 %v13756_v26  ;;  %v13824_v26 = vld [vmem:[#allocation2 + $0x328] ss:$16 sps:$4 sm:$0xff]  }
 0x44f   :  { %2983 = vmatmul.mubr.bf16.gmra.mrb[12].mxu0 %v13758_v27  ;;  %v13825_v27 = vld [vmem:[#allocation2 + $0x34c] ss:$16 sps:$4 sm:$0xff]  }
 0x450   :  { %2990 = vmatprep.mubr.bf16.mxu0 %v13759_v28  ;;  %v13827_v28 = vld [vmem:[#allocation2 + $0x348] ss:$16 sps:$4 sm:$0xff]  }
 0x457   :  { %2991 = vmatmul.mubr.bf16.gmra.mrb[16].mxu0 %v13761_v29  ;;  %v13828_v29 = vld [vmem:[#allocation2 + $0x36c] ss:$16 sps:$4 sm:$0xff]  }
 0x458   :  { %2998 = vmatprep.mubr.bf16.mxu0 %v13762_v30 }
 0x45f   :  { %2999 = vmatmul.mubr.bf16.gmra.mrb[20].mxu0 %v13764_v31  ;;  %v15390_v31 = vld [vmem:[#allocation4] sm:$0xf] }
 0x460   :  { %3006 = vmatprep.mubr.bf16.mxu0 %v13765_v32  ;;  %13455 = vmatprep.subr.msk.bf16.mxu1 %vm3579_vm0, %v15390_v31 }
 0x467   :  { %3007 = vmatmul.mubr.bf16.gmra.mrb[24].mxu0 %v13767_v33  ;;  %v13830_v33 = vld [vmem:[#allocation2 + $0x368] ss:$16 sps:$4 sm:$0xff]  }
 0x468   :  { %3014 = vmatprep.mubr.bf16.mxu0 %v13768_v34 }
 0x46f   :  { %3015 = vmatmul.mubr.bf16.gmra.mrb[28].mxu0 %v13770_v35  ;;  %v13831_v35 = vld [vmem:[#allocation2 + $0x38c] ss:$16 sps:$4 sm:$0xff]  }
 0x470   :  { %3022 = vmatprep.mubr.bf16.mxu0 %v13771_v37 }
 0x477   :  { %3023 = vmatmul.mubr.bf16.gmra.mrb[32].mxu0 %v13773_v38 }
 0x478   :  { %3030 = vmatprep.mubr.bf16.mxu0 %v13774_v40 }
 0x47f   :  { %3031 = vmatmul.mubr.bf16.gmra.mrb[36].mxu0 %v13776_v41 }
 0x480   :  { %3038 = vmatprep.mubr.bf16.mxu0 %v13777_v43  ;;  %v13833_v43 = vld [vmem:[#allocation2 + $0x388] ss:$16 sps:$4 sm:$0xff]  }
 0x487   :  { %3039 = vmatmul.mubr.bf16.gmra.mrb[40].mxu0 %v13779_v44 }
 0x488   :  { %3046 = vmatprep.mubr.bf16.mxu0 %v13780_v46  ;;  %v13834_v46 = vld [vmem:[#allocation2 + $0x3ac] ss:$16 sps:$4 sm:$0xff]  }
 0x48f   :  { %3047 = vmatmul.mubr.bf16.gmra.mrb[44].mxu0 %v13782_v47 }
 0x490   :  { %3054 = vmatprep.mubr.bf16.mxu0 %v13783_v49 }
 0x497   :  { %3055 = vmatmul.mubr.bf16.gmra.mrb[48].mxu0 %v13785_v50 }
 0x498   :  { %3062 = vmatprep.mubr.bf16.mxu0 %v13786_v52 }
 0x49f   :  { %3063 = vmatmul.mubr.bf16.gmra.mrb[52].mxu0 %v13788_v53  ;;  %v13836_v53 = vld [vmem:[#allocation2 + $0x3a8] ss:$16 sps:$4 sm:$0xff]  }
 0x4a0   :  { %3070 = vmatprep.mubr.bf16.mxu0 %v13789_v55 }
 0x4a7   :  { %3071 = vmatmul.mubr.bf16.gmra.mrb[56].mxu0 %v13791_v56  ;;  %v13837_v56 = vld [vmem:[#allocation2 + $0x3cc] ss:$16 sps:$4 sm:$0xff]  }
 0x4a8   :  { %3078 = vmatprep.mubr.bf16.mxu0 %v13792_v58 }
 0x4af   :  { %3079 = vmatmul.mubr.bf16.gmra.mrb[60].mxu0 %v13794_v59 }
 0x4b0   :  { %3086 = vmatprep.mubr.bf16.mxu0 %v13795_v61 }
 0x4b7   :  { %3087 = vmatmul.mubr.bf16.gmra.mrb[64].mxu0 %v13797_v62 }
 0x4b8   :  { %3094 = vmatprep.mubr.bf16.mxu0 %v13798_v1  ;;  %v13839_v1 = vld [vmem:[#allocation2 + $0x3c8] ss:$16 sps:$4 sm:$0xff]  }
 0x4bf   :  { %3095 = vmatmul.mubr.bf16.gmra.mrb[68].mxu0 %v13800_v2 }
 0x4c0   :  { %3102 = vmatprep.mubr.bf16.mxu0 %v13801_v4  ;;  %v13840_v4 = vld [vmem:[#allocation2 + $0x3ec] ss:$16 sps:$4 sm:$0xff]  }
 0x4c7   :  { %3103 = vmatmul.mubr.bf16.gmra.mrb[72].mxu0 %v13803_v5 }
 0x4c8   :  { %3110 = vmatprep.mubr.bf16.mxu0 %v13804_v7 }
 0x4cf   :  { %3111 = vmatmul.mubr.bf16.gmra.mrb[76].mxu0 %v13806_v8 }
 0x4d0   :  { %3118 = vmatprep.mubr.bf16.mxu0 %v13807_v10 }
 0x4d7   :  { %3119 = vmatmul.mubr.bf16.gmra.mrb[80].mxu0 %v13809_v13 }
 0x4d8   :  { %3126 = vmatprep.mubr.bf16.mxu0 %v13810_v16 }
 0x4df   :  { %3127 = vmatmul.mubr.bf16.gmra.mrb[84].mxu0 %v13812_v17 }
 0x4e0   :  { %3134 = vmatprep.mubr.bf16.mxu0 %v13813_v19 }
 0x4e7   :  { %3135 = vmatmul.mubr.bf16.gmra.mrb[88].mxu0 %v13815_v20 }
 0x4e8   :  { %3142 = vmatprep.mubr.bf16.mxu0 %v13816_v21  ;;  %v13845_v21 = vld [vmem:[#allocation2 + $0x408] ss:$16 sps:$4 sm:$0xff]  }
 0x4ef   :  { %3143 = vmatmul.mubr.bf16.gmra.mrb[92].mxu0 %v13818_v22 }
 0x4f0   :  { %3150 = vmatprep.mubr.bf16.mxu0 %v13819_v23  ;;  %v13846_v23 = vld [vmem:[#allocation2 + $0x42c] ss:$16 sps:$4 sm:$0xff]  }
 0x4f7   :  { %3151 = vmatmul.mubr.bf16.gmra.mrb[96].mxu0 %v13821_v24 }
 0x4f8   :  { %3158 = vmatprep.mubr.bf16.mxu0 %v13822_v25 }
 0x4ff   :  { %3159 = vmatmul.mubr.bf16.gmra.mrb[100].mxu0 %v13824_v26 }
 0x500   :  { %3166 = vmatprep.mubr.bf16.mxu0 %v13825_v27 }
 0x507   :  { %3167 = vmatmul.mubr.bf16.gmra.mrb[104].mxu0 %v13827_v28  ;;  %v13848_v28 = vld [vmem:[#allocation2 + $0x428] ss:$16 sps:$4 sm:$0xff]  }
 0x508   :  { %3174 = vmatprep.mubr.bf16.mxu0 %v13828_v29 }
 0x50a   :  { %v15388_v30 = vpop.f32.mrb[0].mxu0 }
 0x50b   :  { %v2962_v32 = vpop.f32.mrb[1].mxu0 }
 0x50c   :  { %v15394_v34 = vpop.f32.mrb[2].mxu0  ;;  %v13849_v32 = vld [vmem:[#allocation2 + $0x44c] ss:$16 sps:$4 sm:$0xff]  }
 0x50d   :  { %v3535_v37 = vpack.c.bf16 %v15394_v34, %v15388_v30  ;;  %v2965_v38 = vpop.f32.mrb[3].mxu0  ;;  %v3963_v30 = vld [vmem:[#allocation4 + $0xc] sm:$0xf] }
 0x50f   :  { %3175 = vmatmul.mubr.bf16.gmra.mrb[108].mxu0 %v13830_v33 }
 0x510   :  { %3182 = vmatprep.mubr.bf16.mxu0 %v13831_v35 }
 0x512   :  { %v15398_v40 = vpop.f32.mrb[4].mxu0 }
 0x513   :  { %v2970_v41 = vpop.f32.mrb[5].mxu0 }
 0x514   :  { %v15400_v44 = vpop.f32.mrb[6].mxu0 }
 0x515   :  { %v3536_v47 = vpack.c.bf16 %v15400_v44, %v15398_v40  ;;  %v2973_v49 = vpop.f32.mrb[7].mxu0 }
 0x516   :  { %v13852_v49 = vld [vmem:[#allocation2 + $0x46c] ss:$16 sps:$4 sm:$0xff]  }
 0x517   :  { %3183 = vmatmul.mubr.bf16.gmra.mrb[112].mxu0 %v13833_v43  ;;  %v13851_v43 = vld [vmem:[#allocation2 + $0x448] ss:$16 sps:$4 sm:$0xff]  }
 0x518   :  { %3190 = vmatprep.mubr.bf16.mxu0 %v13834_v46 }
 0x51a   :  { %v15404_v50 = vpop.f32.mrb[8].mxu0 }
 0x51b   :  { %v2978_v52 = vpop.f32.mrb[9].mxu0 }
 0x51c   :  { %v15406_v55 = vpop.f32.mrb[10].mxu0 }
 0x51d   :  { %v3537_v58 = vpack.c.bf16 %v15406_v55, %v15404_v50  ;;  %v2981_v59 = vpop.f32.mrb[11].mxu0  ;;  %v13885_v55 = vld [vmem:[#allocation2 + $0x5cc] ss:$16 sps:$4 sm:$0xff]  }
 0x51f   :  { %3191 = vmatmul.mubr.bf16.gmra.mrb[116].mxu0 %v13836_v53 }
 0x520   :  { %3198 = vmatprep.mubr.bf16.mxu0 %v13837_v56 }
 0x522   :  { %v15410_v61 = vpop.f32.mrb[12].mxu0 }
 0x523   :  { %v2986_v62 = vpop.f32.mrb[13].mxu0 }
 0x524   :  { %v15412_v2 = vpop.f32.mrb[14].mxu0  ;;  %v13854_v62 = vld [vmem:[#allocation2 + $0x468] ss:$16 sps:$4 sm:$0xff]  }
 0x525   :  { %v3538_v5 = vpack.c.bf16 %v15412_v2, %v15410_v61  ;;  %v2989_v7 = vpop.f32.mrb[15].mxu0 }
 0x527   :  { %3199 = vmatmul.mubr.bf16.gmra.mrb[120].mxu0 %v13839_v1 }
 0x528   :  { %3206 = vmatprep.mubr.bf16.mxu0 %v13840_v4  ;;  %v13855_v4 = vld [vmem:[#allocation2 + $0x48c] ss:$16 sps:$4 sm:$0xff]  }
 0x52a   :  { %v15416_v8 = vpop.f32.mrb[16].mxu0 }
 0x52b   :  { %v2994_v10 = vpop.f32.mrb[17].mxu0 }
 0x52c   :  { %v15418_v13 = vpop.f32.mrb[18].mxu0 }
 0x52d   :  { %v3539_v16 = vpack.c.bf16 %v15418_v13, %v15416_v8  ;;  %v2997_v17 = vpop.f32.mrb[19].mxu0  ;;  %v13888_v13 = vld [vmem:[#allocation2 + $0x5ec] ss:$16 sps:$4 sm:$0xff]  }
 0x52e   :  { %v13857_v17 = vld [vmem:[#allocation2 + $0x488] ss:$16 sps:$4 sm:$0xff]  }
 0x52f   :  { %3207 = vmatmul.mubr.bf16.gmra.mrb[124].mxu0 %v13842_v11 }
 0x530   :  { %3214 = vmatprep.mubr.bf16.mxu0 %v13843_v14 }
 0x532   :  { %v15422_v19 = vpop.f32.mrb[20].mxu0 }
 0x533   :  { %v3002_v20 = vpop.f32.mrb[21].mxu0 }
 0x534   :  { %v15424_v22 = vpop.f32.mrb[22].mxu0 }
 0x535   :  { %v3540_v24 = vpack.c.bf16 %v15424_v22, %v15422_v19  ;;  %v3005_v25 = vpop.f32.mrb[23].mxu0 }
 0x537   :  { %3215 = vmatmul.mubr.bf16.gmra.mrb[128].mxu0 %v13845_v21  ;;  %v13860_v21 = vld [vmem:[#allocation2 + $0x4ac] ss:$16 sps:$4 sm:$0xff]  }
 0x538   :  { %3222 = vmatprep.mubr.bf16.mxu0 %v13846_v23 }
 0x53a   :  { %v15428_v26 = vpop.f32.mrb[24].mxu0 }
 0x53b   :  { %v3010_v27 = vpop.f32.mrb[25].mxu0 }
 0x53c   :  { %v15430_v29 = vpop.f32.mrb[26].mxu0  ;;  %v3705_v27 = vsel %vm3579_vm0, %v15390_v31, 0 }
 0x53d   :  { %v3541_v33 = vpack.c.bf16 %v15430_v29, %v15428_v26  ;;  %v3013_v35 = vpop.f32.mrb[27].mxu0  ;;  %v13891_v29 = vld [vmem:[#allocation2 + $0x60c] ss:$16 sps:$4 sm:$0xff]  }
 0x53f   :  { %3223 = vmatmul.mubr.bf16.gmra.mrb[132].mxu0 %v13848_v28  ;;  %v15443_v28 = vld [vmem:[#allocation4 + $0x8] sm:$0xf] }
 0x540   :  { %3230 = vmatprep.mubr.bf16.mxu0 %v13849_v32 }
 0x542   :  { %v15434_v38 = vpop.f32.mrb[28].mxu0 }
 0x543   :  { %v3018_v41 = vpop.f32.mrb[29].mxu0 }
 0x544   :  { %v15436_v46 = vpop.f32.mrb[30].mxu0  ;;  %v13858_v41 = vld [vmem:[#allocation2 + $0x4a8] ss:$16 sps:$4 sm:$0xff]  }
 0x545   :  { %v3542_v52 = vpack.c.bf16 %v15436_v46, %v15434_v38  ;;  %v3021_v53 = vpop.f32.mrb[31].mxu0 }
 0x547   :  { %3231 = vmatmul.mubr.bf16.gmra.mrb[136].mxu0 %v13851_v43 }
 0x548   :  { %3238 = vmatprep.mubr.bf16.mxu0 %v13852_v49  ;;  %v13863_v49 = vld [vmem:[#allocation2 + $0x4cc] ss:$16 sps:$4 sm:$0xff]  }
 0x54a   :  { %v3024_v56 = vpop.f32.mrb[32].mxu0 }
 0x54b   :  { %v3026_v59 = vpop.f32.mrb[33].mxu0 }
 0x54c   :  { %v3027_v1 = vpop.f32.mrb[34].mxu0 }
 0x54d   :  { %v3029_v7 = vpop.f32.mrb[35].mxu0  ;;  %v3544_v10 = vpack.c.bf16 %v3027_v1, %v3024_v56 }
 0x54f   :  { %3239 = vmatmul.mubr.bf16.gmra.mrb[140].mxu0 %v13854_v62  ;;  %12106 = vmatprep.mubr.msk.bf16.mxu1 %vm3554_vm1, %v3544_v10  ;;  %v13861_v62 = vld [vmem:[#allocation2 + $0x4c8] ss:$16 sps:$4 sm:$0xff]  }
 0x550   :  { %3246 = vmatprep.mubr.bf16.mxu0 %v13855_v4  ;;  %v13866_v4 = vld [vmem:[#allocation2 + $0x4ec] ss:$16 sps:$4 sm:$0xff]  }
 0x552   :  { %v3032_v11 = vpop.f32.mrb[36].mxu0 }
 0x553   :  { %v3034_v14 = vpop.f32.mrb[37].mxu0 }
 0x554   :  { %v3035_v20 = vpop.f32.mrb[38].mxu0 }
 0x555   :  { %v3545_v23 = vpack.c.bf16 %v3035_v20, %v3032_v11  ;;  %v3037_v25 = vpop.f32.mrb[39].mxu0 }
 0x557   :  { %3247 = vmatmul.mubr.bf16.gmra.mrb[144].mxu0 %v13857_v17  ;;  %12107 = vmatmul.mubr.msk.bf16.vlgmr.msra.gmra.mrb[0].mxu1 %vm3554_vm1, %v3545_v23  ;;  %v13864_v17 = vld [vmem:[#allocation2 + $0x4e8] ss:$16 sps:$4 sm:$0xff]  }
 0x558   :  { %3254 = vmatprep.mubr.bf16.mxu0 %v13860_v21  ;;  %12123 = vmatpush3.bf16.msra.mxu1 %v3705_v27  ;;  %v13869_v21 = vld [vmem:[#allocation2 + $0x50c] ss:$16 sps:$4 sm:$0xff]  }
 0x559   :  { %13456 = vmatprep.subr.msk.bf16.mxu1 %vm3579_vm0, %v15443_v28 }
 0x55a   :  { %v3040_v32 = vpop.f32.mrb[40].mxu0 }
 0x55b   :  { %v3042_v35 = vpop.f32.mrb[41].mxu0 }
 0x55c   :  { %v3043_v43 = vpop.f32.mrb[42].mxu0  ;;  %v13867_v35 = vld [vmem:[#allocation2 + $0x508] ss:$16 sps:$4 sm:$0xff]  }
 0x55d   :  { %v3546_v53 = vpack.c.bf16 %v3043_v43, %v3040_v32  ;;  %v3045_v56 = vpop.f32.mrb[43].mxu0  ;;  %v13872_v43 = vld [vmem:[#allocation2 + $0x52c] ss:$16 sps:$4 sm:$0xff]  }
 0x55f   :  { %3255 = vmatmul.mubr.bf16.gmra.mrb[0].mxu0 %v13858_v41  ;;  %12110 = vmatprep.mubr.msk.bf16.mxu1 %vm3554_vm1, %v3546_v53 }
 0x560   :  { %3262 = vmatprep.mubr.bf16.mxu0 %v13863_v49 }
 0x562   :  { %v3048_v31 = vpop.f32.mrb[44].mxu0 }
 0x563   :  { %v3050_v59 = vpop.f32.mrb[45].mxu0 }
 0x564   :  { %v3051_v1 = vpop.f32.mrb[46].mxu0  ;;  %v13870_v59 = vld [vmem:[#allocation2 + $0x528] ss:$16 sps:$4 sm:$0xff]  }
 0x565   :  { %v3547_v7 = vpack.c.bf16 %v3051_v1, %v3048_v31  ;;  %v3053_v10 = vpop.f32.mrb[47].mxu0  ;;  %v13875_v1 = vld [vmem:[#allocation2 + $0x54c] ss:$16 sps:$4 sm:$0xff]  }
 0x567   :  { %3263 = vmatmul.mubr.bf16.gmra.mrb[4].mxu0 %v13861_v62  ;;  %12111 = vmatmul.mubr.msk.bf16.gmra.mrb[4].mxu1 %vm3554_vm1, %v3547_v7 }
 0x568   :  { %3270 = vmatprep.mubr.bf16.mxu0 %v13866_v4 }
 0x56a   :  { %v3056_v11 = vpop.f32.mrb[48].mxu0 }
 0x56b   :  { %v3058_v14 = vpop.f32.mrb[49].mxu0 }
 0x56c   :  { %v3059_v20 = vpop.f32.mrb[50].mxu0  ;;  %v13873_v14 = vld [vmem:[#allocation2 + $0x548] ss:$16 sps:$4 sm:$0xff]  }
 0x56d   :  { %v3548_v23 = vpack.c.bf16 %v3059_v20, %v3056_v11  ;;  %v3061_v25 = vpop.f32.mrb[51].mxu0  ;;  %v13878_v20 = vld [vmem:[#allocation2 + $0x56c] ss:$16 sps:$4 sm:$0xff]  }
 0x56f   :  { %3271 = vmatmul.mubr.bf16.gmra.mrb[8].mxu0 %v13864_v17  ;;  %12114 = vmatprep.mubr.msk.bf16.mxu1 %vm3554_vm1, %v3548_v23 }
 0x570   :  { %3278 = vmatprep.mubr.bf16.mxu0 %v13869_v21 }
 0x572   :  { %v3064_v27 = vpop.f32.mrb[52].mxu0 }
 0x573   :  { %v3066_v32 = vpop.f32.mrb[53].mxu0 }
 0x574   :  { %v3067_v41 = vpop.f32.mrb[54].mxu0  ;;  %v13876_v32 = vld [vmem:[#allocation2 + $0x568] ss:$16 sps:$4 sm:$0xff]  }
 0x575   :  { %v3549_v49 = vpack.c.bf16 %v3067_v41, %v3064_v27  ;;  %v3069_v53 = vpop.f32.mrb[55].mxu0  ;;  %v13881_v41 = vld [vmem:[#allocation2 + $0x58c] ss:$16 sps:$4 sm:$0xff]  }
 0x576   :  { %v3839_v53 = vsel %vm3579_vm0, %v15443_v28, 0 }
 0x577   :  { %3279 = vmatmul.mubr.bf16.gmra.mrb[12].mxu0 %v13867_v35  ;;  %12115 = vmatmul.mubr.msk.bf16.gmra.mrb[8].mxu1 %vm3554_vm1, %v3549_v49 }
 0x578   :  { %3286 = vmatprep.mubr.bf16.mxu0 %v13872_v43 }
 0x57a   :  { %v3072_v56 = vpop.f32.mrb[56].mxu0 }
 0x57b   :  { %v3074_v31 = vpop.f32.mrb[57].mxu0 }
 0x57c   :  { %v3075_v62 = vpop.f32.mrb[58].mxu0  ;;  %v13882_v31 = vld [vmem:[#allocation2 + $0x5ac] ss:$16 sps:$4 sm:$0xff]  }
 0x57d   :  { %v3550_v4 = vpack.c.bf16 %v3075_v62, %v3072_v56  ;;  %v3077_v7 = vpop.f32.mrb[59].mxu0  ;;  %v13879_v56 = vld [vmem:[#allocation2 + $0x588] ss:$16 sps:$4 sm:$0xff]  }
 0x57f   :  { %3287 = vmatmul.mubr.bf16.gmra.mrb[16].mxu0 %v13870_v59  ;;  %12118 = vmatprep.mubr.msk.bf16.mxu1 %vm3554_vm1, %v3550_v4 }
 0x580   :  { %3294 = vmatprep.mubr.bf16.mxu0 %v13875_v1 }
 0x582   :  { %v3080_v10 = vpop.f32.mrb[60].mxu0 }
 0x583   :  { %v3082_v11 = vpop.f32.mrb[61].mxu0 }
 0x584   :  { %v3083_v17 = vpop.f32.mrb[62].mxu0  ;;  %v4113_v11 = vld [vmem:[#allocation4 + $0x10] sm:$0xf] }
 0x585   :  { %v3551_v21 = vpack.c.bf16 %v3083_v17, %v3080_v10  ;;  %v3085_v23 = vpop.f32.mrb[63].mxu0  ;;  %v3989_v10 = vsel %vm3579_vm0, %v3963_v30, 0  ;;  %v13894_v17 = vld [vmem:[#allocation2 + $0x62c] ss:$16 sps:$4 sm:$0xff]  }
 0x587   :  { %3295 = vmatmul.mubr.bf16.gmra.mrb[20].mxu0 %v13873_v14  ;;  %12119 = vmatmul.mubr.msk.bf16.gmra.mrb[12].mxu1 %vm3554_vm1, %v3551_v21 }
 0x588   :  { %12124 = vmatprep.mubr.msk.bf16.mxu1 %vm3554_vm1, %v3535_v37  ;;  %3302 = vmatprep.mubr.bf16.mxu0 %v13878_v20 }
 0x58a   :  { %v3088_v25 = vpop.f32.mrb[64].mxu0 }
 0x58b   :  { %v3090_v27 = vpop.f32.mrb[65].mxu0 }
 0x58c   :  { %v3091_v35 = vpop.f32.mrb[66].mxu0  ;;  %v13896_v27 = vld [vmem:[#allocation2 + $0x628] ss:$16 sps:$4 sm:$0xff]  }
 0x58d   :  { %v3804_v43 = vpack.c.bf16 %v3091_v35, %v3088_v25  ;;  %v3093_v49 = vpop.f32.mrb[67].mxu0  ;;  %v13897_v35 = vld [vmem:[#allocation2 + $0x64c] ss:$16 sps:$4 sm:$0xff]  }
 0x58f   :  { %3303 = vmatmul.mubr.bf16.gmra.mrb[24].mxu0 %v13876_v32  ;;  %12125 = vmatmul.mubr.msk.bf16.vlgmr.msra.gmra.mrb[0].mxu1 %vm3554_vm1, %v3536_v47  ;;  %v13884_v47 = vld [vmem:[#allocation2 + $0x5a8] ss:$16 sps:$4 sm:$0xff]  }
 0x590   :  { %12128 = vmatprep.mubr.msk.bf16.mxu1 %vm3554_vm1, %v3537_v58  ;;  %3310 = vmatprep.mubr.bf16.mxu0 %v13881_v41 }
 0x591   :  { %12141 = vmatpush3.bf16.msra.mxu1 %v3839_v53 }
 0x592   :  { %v3096_v34 = vpop.f32.mrb[68].mxu0  ;;  %13457 = vmatprep.subr.msk.bf16.mxu1 %vm3579_vm0, %v3963_v30  ;;  %v13899_v30 = vld [vmem:[#allocation2 + $0x648] ss:$16 sps:$4 sm:$0xff]  }
 0x593   :  { %v3098_v37 = vpop.f32.mrb[69].mxu0 }
 0x594   :  { %v3099_v28 = vpop.f32.mrb[70].mxu0  ;;  %v13900_v37 = vld [vmem:[#allocation2 + $0x66c] ss:$16 sps:$4 sm:$0xff]  }
 0x595   :  { %v3805_v59 = vpack.c.bf16 %v3099_v28, %v3096_v34  ;;  %v3101_v62 = vpop.f32.mrb[71].mxu0 }
 0x596   :  { %v13902_v62 = vld [vmem:[#allocation2 + $0x668] ss:$16 sps:$4 sm:$0xff]  }
 0x597   :  { %3311 = vmatmul.mubr.bf16.gmra.mrb[28].mxu0 %v13879_v56  ;;  %12129 = vmatmul.mubr.msk.bf16.gmra.mrb[4].mxu1 %vm3554_vm1, %v3538_v5  ;;  %v13887_v5 = vld [vmem:[#allocation2 + $0x5c8] ss:$16 sps:$4 sm:$0xff]  }
 0x598   :  { %12132 = vmatprep.mubr.msk.bf16.mxu1 %vm3554_vm1, %v3539_v16  ;;  %3318 = vmatprep.mubr.bf16.mxu0 %v13882_v31 }
 0x59a   :  { %v3104_v40 = vpop.f32.mrb[72].mxu0 }
 0x59b   :  { %v3106_v44 = vpop.f32.mrb[73].mxu0 }
 0x59c   :  { %v3107_v50 = vpop.f32.mrb[74].mxu0  ;;  %v13903_v44 = vld [vmem:[#allocation2 + $0x68c] ss:$16 sps:$4 sm:$0xff]  }
 0x59d   :  { %v3806_v58 = vpack.c.bf16 %v3107_v50, %v3104_v40  ;;  %v3109_v1 = vpop.f32.mrb[75].mxu0 }
 0x59e   :  { %v13905_v1 = vld [vmem:[#allocation2 + $0x688] ss:$16 sps:$4 sm:$0xff]  }
 0x59f   :  { %3319 = vmatmul.mubr.bf16.gmra.mrb[180].mxu0 %v13884_v47  ;;  %12133 = vmatmul.mubr.msk.bf16.gmra.mrb[8].mxu1 %vm3554_vm1, %v3540_v24  ;;  %v13890_v24 = vld [vmem:[#allocation2 + $0x5e8] ss:$16 sps:$4 sm:$0xff]  }
 0x5a0   :  { %12136 = vmatprep.mubr.msk.bf16.mxu1 %vm3554_vm1, %v3541_v33  ;;  %3326 = vmatprep.mubr.bf16.mxu0 %v13885_v55 }
 0x5a2   :  { %v3112_v61 = vpop.f32.mrb[76].mxu0 }
 0x5a3   :  { %v3114_v2 = vpop.f32.mrb[77].mxu0 }
 0x5a4   :  { %v3115_v8 = vpop.f32.mrb[78].mxu0  ;;  %v13906_v2 = vld [vmem:[#allocation2 + $0x6ac] ss:$16 sps:$4 sm:$0xff]  }
 0x5a5   :  { %v3807_v16 = vpack.c.bf16 %v3115_v8, %v3112_v61  ;;  %v3117_v4 = vpop.f32.mrb[79].mxu0 }
 0x5a7   :  { %3327 = vmatmul.mubr.bf16.gmra.mrb[184].mxu0 %v13887_v5  ;;  %12137 = vmatmul.mubr.msk.bf16.gmra.mrb[12].mxu1 %vm3554_vm1, %v3542_v52  ;;  %v13893_v52 = vld [vmem:[#allocation2 + $0x608] ss:$16 sps:$4 sm:$0xff]  }
 0x5a8   :  { %12142 = vmatprep.mubr.msk.bf16.mxu1 %vm3554_vm1, %v3804_v43  ;;  %3334 = vmatprep.mubr.bf16.mxu0 %v13888_v13  ;;  %v4139_v13 = vsel %vm3579_vm0, %v4113_v11, 0 }
 0x5aa   :  { %v3120_v19 = vpop.f32.mrb[80].mxu0 }
 0x5ab   :  { %v3122_v22 = vpop.f32.mrb[81].mxu0 }
 0x5ac   :  { %v3123_v26 = vpop.f32.mrb[82].mxu0  ;;  %v13908_v22 = vld [vmem:[#allocation2 + $0x6a8] ss:$16 sps:$4 sm:$0xff]  }
 0x5ad   :  { %v3808_v33 = vpack.c.bf16 %v3123_v26, %v3120_v19  ;;  %v3125_v7 = vpop.f32.mrb[83].mxu0  ;;  %v13909_v26 = vld [vmem:[#allocation2 + $0x6cc] ss:$16 sps:$4 sm:$0xff]  }
 0x5af   :  { %3335 = vmatmul.mubr.bf16.gmra.mrb[188].mxu0 %v13890_v24  ;;  %12143 = vmatmul.mubr.msk.bf16.vlgmr.msra.gmra.mrb[0].mxu1 %vm3554_vm1, %v3805_v59 }
 0x5b0   :  { %12146 = vmatprep.mubr.msk.bf16.mxu1 %vm3554_vm1, %v3806_v58  ;;  %3342 = vmatprep.mubr.bf16.mxu0 %v13891_v29 }
 0x5b1   :  { %12159 = vmatpush3.bf16.msra.mxu1 %v3989_v10 }
 0x5b2   :  { %v3128_v38 = vpop.f32.mrb[84].mxu0  ;;  %13458 = vmatprep.subr.msk.bf16.mxu1 %vm3579_vm0, %v4113_v11  ;;  %v13911_v11 = vld [vmem:[#allocation2 + $0x6c8] ss:$16 sps:$4 sm:$0xff]  }
 0x5b3   :  { %v3130_v46 = vpop.f32.mrb[85].mxu0 }
 0x5b4   :  { %v3131_v14 = vpop.f32.mrb[86].mxu0  ;;  %v13912_v46 = vld [vmem:[#allocation2 + $0x6ec] ss:$16 sps:$4 sm:$0xff]  }
 0x5b5   :  { %v3809_v20 = vpack.c.bf16 %v3131_v14, %v3128_v38  ;;  %v3133_v21 = vpop.f32.mrb[87].mxu0 }
 0x5b6   :  { %v13914_v21 = vld [vmem:[#allocation2 + $0x6e8] ss:$16 sps:$4 sm:$0xff]  }
 0x5b7   :  { %3343 = vmatmul.mubr.bf16.gmra.mrb[192].mxu0 %v13893_v52  ;;  %12147 = vmatmul.mubr.msk.bf16.gmra.mrb[4].mxu1 %vm3554_vm1, %v3807_v16  ;;  %v15501_v16 = vld [vmem:[#allocation4 + $0x14] sm:$0xf] }
 0x5b8   :  { %12150 = vmatprep.mubr.msk.bf16.mxu1 %vm3554_vm1, %v3808_v33  ;;  %3350 = vmatprep.mubr.bf16.mxu0 %v13894_v17 }
 0x5ba   :  { %v3136_v23 = vpop.f32.mrb[88].mxu0 }
 0x5bb   :  { %v3138_v25 = vpop.f32.mrb[89].mxu0 }
 0x5bc   :  { %v3139_v32 = vpop.f32.mrb[90].mxu0  ;;  %v13915_v25 = vld [vmem:[#allocation2 + $0x70c] ss:$16 sps:$4 sm:$0xff]  }
 0x5bd   :  { %v3810_v41 = vpack.c.bf16 %v3139_v32, %v3136_v23  ;;  %v3141_v43 = vpop.f32.mrb[91].mxu0 }
 0x5be   :  { %v13917_v43 = vld [vmem:[#allocation2 + $0x708] ss:$16 sps:$4 sm:$0xff]  }
 0x5bf   :  { %3351 = vmatmul.mubr.bf16.gmra.mrb[196].mxu0 %v13896_v27  ;;  %12151 = vmatmul.mubr.msk.bf16.gmra.mrb[8].mxu1 %vm3554_vm1, %v3809_v20 }
 0x5c0   :  { %12154 = vmatprep.mubr.msk.bf16.mxu1 %vm3554_vm1, %v3810_v41  ;;  %3358 = vmatprep.mubr.bf16.mxu0 %v13897_v35 }
 0x5c2   :  { %v3144_v49 = vpop.f32.mrb[92].mxu0 }
 0x5c3   :  { %v3146_v53 = vpop.f32.mrb[93].mxu0 }
 0x5c4   :  { %v3147_v34 = vpop.f32.mrb[94].mxu0  ;;  %v13918_v53 = vld [vmem:[#allocation2 + $0x72c] ss:$16 sps:$4 sm:$0xff]  }
 0x5c5   :  { %v3811_v56 = vpack.c.bf16 %v3147_v34, %v3144_v49  ;;  %v3149_v28 = vpop.f32.mrb[95].mxu0 }
 0x5c6   :  { %v13920_v28 = vld [vmem:[#allocation2 + $0x728] ss:$16 sps:$4 sm:$0xff]  }
 0x5c7   :  { %3359 = vmatmul.mubr.bf16.gmra.mrb[200].mxu0 %v13899_v30  ;;  %12155 = vmatmul.mubr.msk.bf16.gmra.mrb[12].mxu1 %vm3554_vm1, %v3811_v56 }
 0x5c8   :  { %3366 = vmatprep.mubr.bf16.mxu0 %v13900_v37 }
 0x5ca   :  { %v3152_v31 = vpop.f32.mrb[96].mxu0 }
 0x5cb   :  { %v3154_v59 = vpop.f32.mrb[97].mxu0 }
 0x5cc   :  { %v3155_v40 = vpop.f32.mrb[98].mxu0  ;;  %v13921_v59 = vld [vmem:[#allocation2 + $0x74c] ss:$16 sps:$4 sm:$0xff]  }
 0x5cd   :  { %v3954_v47 = vpack.c.bf16 %v3155_v40, %v3152_v31  ;;  %v3157_v50 = vpop.f32.mrb[99].mxu0 }
 0x5ce   :  { %v13923_v50 = vld [vmem:[#allocation2 + $0x748] ss:$16 sps:$4 sm:$0xff]  }
 0x5cf   :  { %3367 = vmatmul.mubr.bf16.gmra.mrb[204].mxu0 %v13902_v62  ;;  %12160 = vmatprep.mubr.msk.bf16.mxu1 %vm3554_vm1, %v3954_v47 }
 0x5d0   :  { %3374 = vmatprep.mubr.bf16.mxu0 %v13903_v44 }
 0x5d2   :  { %v3160_v55 = vpop.f32.mrb[100].mxu0 }
 0x5d3   :  { %v3162_v58 = vpop.f32.mrb[101].mxu0 }
 0x5d4   :  { %v3163_v61 = vpop.f32.mrb[102].mxu0  ;;  %v13924_v58 = vld [vmem:[#allocation2 + $0x76c] ss:$16 sps:$4 sm:$0xff]  }
 0x5d5   :  { %v3955_v5 = vpack.c.bf16 %v3163_v61, %v3160_v55  ;;  %v3165_v8 = vpop.f32.mrb[103].mxu0 }
 0x5d6   :  { %v13926_v8 = vld [vmem:[#allocation2 + $0x768] ss:$16 sps:$4 sm:$0xff]  }
 0x5d7   :  { %3375 = vmatmul.mubr.bf16.gmra.mrb[208].mxu0 %v13905_v1  ;;  %12161 = vmatmul.mubr.msk.bf16.vlgmr.msra.gmra.mrb[0].mxu1 %vm3554_vm1, %v3955_v5 }
 0x5d8   :  { %3382 = vmatprep.mubr.bf16.mxu0 %v13906_v2  ;;  %12177 = vmatpush3.bf16.msra.mxu1 %v4139_v13 }
 0x5d9   :  { %13459 = vmatprep.subr.msk.bf16.mxu1 %vm3579_vm0, %v15501_v16 }
 0x5da   :  { %v3168_v4 = vpop.f32.mrb[104].mxu0 }
 0x5db   :  { %v3170_v19 = vpop.f32.mrb[105].mxu0 }
 0x5dc   :  { %v3171_v24 = vpop.f32.mrb[106].mxu0 }
 0x5dd   :  { %v3956_v29 = vpack.c.bf16 %v3171_v24, %v3168_v4  ;;  %v3173_v33 = vpop.f32.mrb[107].mxu0  ;;  %v13927_v4 = vld [vmem:[#allocation2 + $0x78c] ss:$16 sps:$4 sm:$0xff]  }
 0x5df   :  { %3383 = vmatmul.mubr.bf16.gmra.mrb[212].mxu0 %v13908_v22  ;;  %12164 = vmatprep.mubr.msk.bf16.mxu1 %vm3554_vm1, %v3956_v29  ;;  %v13929_v29 = vld [vmem:[#allocation2 + $0x788] ss:$16 sps:$4 sm:$0xff]  }
 0x5e0   :  { %3390 = vmatprep.mubr.bf16.mxu0 %v13909_v26 }
 0x5e2   :  { %v3176_v7 = vpop.f32.mrb[108].mxu0 }
 0x5e3   :  { %v3178_v10 = vpop.f32.mrb[109].mxu0 }
 0x5e4   :  { %v3179_v38 = vpop.f32.mrb[110].mxu0 }
 0x5e5   :  { %v3957_v52 = vpack.c.bf16 %v3179_v38, %v3176_v7  ;;  %v3181_v14 = vpop.f32.mrb[111].mxu0  ;;  %v13930_v7 = vld [vmem:[#allocation2 + $0x7ac] ss:$16 sps:$4 sm:$0xff]   ;;  %v4289_v38 = vsel %vm3579_vm0, %v15501_v16, 0 }
 0x5e7   :  { %3391 = vmatmul.mubr.bf16.gmra.mrb[216].mxu0 %v13911_v11  ;;  %12165 = vmatmul.mubr.msk.bf16.gmra.mrb[4].mxu1 %vm3554_vm1, %v3957_v52 }
 0x5e8   :  { %3398 = vmatprep.mubr.bf16.mxu0 %v13912_v46  ;;  %v15515_v46 = vld [vmem:[#allocation4 + $0x18] sm:$0xf] }
 0x5ea   :  { %v3184_v17 = vpop.f32.mrb[112].mxu0 }
 0x5eb   :  { %v3186_v20 = vpop.f32.mrb[113].mxu0 }
 0x5ec   :  { %v3187_v23 = vpop.f32.mrb[114].mxu0 }
 0x5ed   :  { %v3958_v27 = vpack.c.bf16 %v3187_v23, %v3184_v17  ;;  %v3189_v32 = vpop.f32.mrb[115].mxu0  ;;  %v13932_v17 = vld [vmem:[#allocation2 + $0x7a8] ss:$16 sps:$4 sm:$0xff]  }
 0x5ee   :  { %v13935_v32 = vld [vmem:[#allocation2 + $0x7c8] ss:$16 sps:$4 sm:$0xff]  }
 0x5ef   :  { %3399 = vmatmul.mubr.bf16.gmra.mrb[220].mxu0 %v13914_v21  ;;  %12168 = vmatprep.mubr.msk.bf16.mxu1 %vm3554_vm1, %v3958_v27  ;;  %v13933_v21 = vld [vmem:[#allocation2 + $0x7cc] ss:$16 sps:$4 sm:$0xff]  }
 0x5f0   :  { %3406 = vmatprep.mubr.bf16.mxu0 %v13915_v25 }
 0x5f2   :  { %v3192_v35 = vpop.f32.mrb[116].mxu0 }
 0x5f3   :  { %v3194_v41 = vpop.f32.mrb[117].mxu0 }
 0x5f4   :  { %v3195_v49 = vpop.f32.mrb[118].mxu0  ;;  %v13936_v41 = vld [vmem:[#allocation2 + $0x7ec] ss:$16 sps:$4 sm:$0xff]  }
 0x5f5   :  { %v3959_v30 = vpack.c.bf16 %v3195_v49, %v3192_v35  ;;  %v3197_v34 = vpop.f32.mrb[119].mxu0 }
 0x5f6   :  { %v13938_v34 = vld [vmem:[#allocation2 + $0x7e8] ss:$16 sps:$4 sm:$0xff]  }
 0x5f7   :  { %3407 = vmatmul.mubr.bf16.gmra.mrb[224].mxu0 %v13917_v43  ;;  %12169 = vmatmul.mubr.msk.bf16.gmra.mrb[8].mxu1 %vm3554_vm1, %v3959_v30 }
 0x5f8   :  { %3414 = vmatprep.mubr.bf16.mxu0 %v13918_v53 }
 0x5fa   :  { %v3200_v37 = vpop.f32.mrb[120].mxu0 }
 0x5fb   :  { %v3202_v56 = vpop.f32.mrb[121].mxu0 }
 0x5fc   :  { %v3203_v31 = vpop.f32.mrb[122].mxu0  ;;  %v13941_v56 = vld [vmem:[#allocation2 + $0x80c] ss:$16 sps:$4 sm:$0xff]  }
 0x5fd   :  { %v3960_v62 = vpack.c.bf16 %v3203_v31, %v3200_v37  ;;  %v3205_v40 = vpop.f32.mrb[123].mxu0 }
 0x5ff   :  { %3415 = vmatmul.mubr.bf16.gmra.mrb[228].mxu0 %v13920_v28  ;;  %12172 = vmatprep.mubr.msk.bf16.mxu1 %vm3554_vm1, %v3960_v62 }
 0x600   :  { %3422 = vmatprep.mubr.bf16.mxu0 %v13921_v59 }
 0x602   :  { %v3208_v44 = vpop.f32.mrb[124].mxu0 }
 0x603   :  { %v3210_v47 = vpop.f32.mrb[125].mxu0 }
 0x604   :  { %v3211_v55 = vpop.f32.mrb[126].mxu0 }
 0x605   :  { %v3961_v1 = vpack.c.bf16 %v3211_v55, %v3208_v44  ;;  %v3213_v61 = vpop.f32.mrb[127].mxu0  ;;  %v13939_v44 = vld [vmem:[#allocation2 + $0x808] ss:$16 sps:$4 sm:$0xff]  }
 0x607   :  { %3423 = vmatmul.mubr.bf16.gmra.mrb[232].mxu0 %v13923_v50  ;;  %12173 = vmatmul.mubr.msk.bf16.gmra.mrb[12].mxu1 %vm3554_vm1, %v3961_v1  ;;  %v13944_v50 = vld [vmem:[#allocation2 + $0x82c] ss:$16 sps:$4 sm:$0xff]  }
 0x608   :  { %3430 = vmatprep.mubr.bf16.mxu0 %v13924_v58 }
 0x60a   :  { %v3216_v2 = vpop.f32.mrb[128].mxu0 }
 0x60b   :  { %v3218_v5 = vpop.f32.mrb[129].mxu0 }
 0x60c   :  { %v3219_v13 = vpop.f32.mrb[130].mxu0 }
 0x60d   :  { %v4104_v19 = vpack.c.bf16 %v3219_v13, %v3216_v2  ;;  %v3221_v22 = vpop.f32.mrb[131].mxu0 }
 0x60f   :  { %3431 = vmatmul.mubr.bf16.gmra.mrb[236].mxu0 %v13926_v8  ;;  %12178 = vmatprep.mubr.msk.bf16.mxu1 %vm3554_vm1, %v4104_v19  ;;  %v13942_v8 = vld [vmem:[#allocation2 + $0x828] ss:$16 sps:$4 sm:$0xff]  }
 0x610   :  { %3438 = vmatprep.mubr.bf16.mxu0 %v13927_v4  ;;  %v13947_v4 = vld [vmem:[#allocation2 + $0x84c] ss:$16 sps:$4 sm:$0xff]  }
 0x612   :  { %v3224_v24 = vpop.f32.mrb[132].mxu0 }
 0x613   :  { %v3226_v26 = vpop.f32.mrb[133].mxu0 }
 0x614   :  { %v3227_v33 = vpop.f32.mrb[134].mxu0 }
 0x615   :  { %v4105_v10 = vpack.c.bf16 %v3227_v33, %v3224_v24  ;;  %v3229_v11 = vpop.f32.mrb[135].mxu0 }
 0x617   :  { %3439 = vmatmul.mubr.bf16.gmra.mrb[240].mxu0 %v13929_v29  ;;  %12179 = vmatmul.mubr.msk.bf16.vlgmr.msra.gmra.mrb[0].mxu1 %vm3554_vm1, %v4105_v10  ;;  %v13945_v29 = vld [vmem:[#allocation2 + $0x848] ss:$16 sps:$4 sm:$0xff]  }
 0x618   :  { %3446 = vmatprep.mubr.bf16.mxu0 %v13930_v7  ;;  %12195 = vmatpush3.bf16.msra.mxu1 %v4289_v38  ;;  %v13950_v7 = vld [vmem:[#allocation2 + $0x86c] ss:$16 sps:$4 sm:$0xff]  }
 0x619   :  { %13460 = vmatprep.subr.msk.bf16.mxu1 %vm3579_vm0, %v15515_v46 }
 0x61a   :  { %v3232_v52 = vpop.f32.mrb[136].mxu0 }
 0x61b   :  { %v3234_v14 = vpop.f32.mrb[137].mxu0 }
 0x61c   :  { %v3235_v20 = vpop.f32.mrb[138].mxu0  ;;  %v13948_v14 = vld [vmem:[#allocation2 + $0x868] ss:$16 sps:$4 sm:$0xff]  }
 0x61d   :  { %v4106_v23 = vpack.c.bf16 %v3235_v20, %v3232_v52  ;;  %v3237_v25 = vpop.f32.mrb[139].mxu0  ;;  %v13953_v20 = vld [vmem:[#allocation2 + $0x88c] ss:$16 sps:$4 sm:$0xff]  }
 0x61f   :  { %3447 = vmatmul.mubr.bf16.gmra.mrb[244].mxu0 %v13932_v17  ;;  %12182 = vmatprep.mubr.msk.bf16.mxu1 %vm3554_vm1, %v4106_v23 }
 0x620   :  { %3454 = vmatprep.mubr.bf16.mxu0 %v13933_v21 }
 0x622   :  { %v3240_v16 = vpop.f32.mrb[140].mxu0 }
 0x623   :  { %v3242_v27 = vpop.f32.mrb[141].mxu0 }
 0x624   :  { %v3243_v35 = vpop.f32.mrb[142].mxu0  ;;  %v13951_v27 = vld [vmem:[#allocation2 + $0x888] ss:$16 sps:$4 sm:$0xff]  }
 0x625   :  { %v4107_v43 = vpack.c.bf16 %v3243_v35, %v3240_v16  ;;  %v3245_v49 = vpop.f32.mrb[143].mxu0  ;;  %v13956_v35 = vld [vmem:[#allocation2 + $0x8ac] ss:$16 sps:$4 sm:$0xff]  }
 0x626   :  { %v15539_v49 = vld [vmem:[#allocation4 + $0x1c] sm:$0xf] }
 0x627   :  { %3455 = vmatmul.mubr.bf16.gmra.mrb[248].mxu0 %v13935_v32  ;;  %12183 = vmatmul.mubr.msk.bf16.gmra.mrb[4].mxu1 %vm3554_vm1, %v4107_v43 }
 0x628   :  { %3462 = vmatprep.mubr.bf16.mxu0 %v13936_v41 }
 0x62a   :  { %v3248_v53 = vpop.f32.mrb[144].mxu0 }
 0x62b   :  { %v3250_v30 = vpop.f32.mrb[145].mxu0 }
 0x62c   :  { %v3251_v37 = vpop.f32.mrb[146].mxu0 }
 0x62d   :  { %v4108_v28 = vpack.c.bf16 %v3251_v37, %v3248_v53  ;;  %v3253_v31 = vpop.f32.mrb[147].mxu0  ;;  %v13959_v37 = vld [vmem:[#allocation2 + $0x8cc] ss:$16 sps:$4 sm:$0xff]  }
 0x62f   :  { %3463 = vmatmul.mubr.bf16.gmra.mrb[252].mxu0 %v13938_v34  ;;  %12186 = vmatprep.mubr.msk.bf16.mxu1 %vm3554_vm1, %v4108_v28  ;;  %v13954_v34 = vld [vmem:[#allocation2 + $0x8a8] ss:$16 sps:$4 sm:$0xff]  }
 0x630   :  { %3470 = vmatprep.mubr.bf16.mxu0 %v13941_v56 }
 0x632   :  { %v3256_v59 = vpop.f32.mrb[0].mxu0 }
 0x633   :  { %v3257_v62 = vadd.f32 %v3256_v59, %v15354_v36  ;;  %v3258_v40 = vpop.f32.mrb[1].mxu0 }
 0x634   :  { %v3259_v47 = vpop.f32.mrb[2].mxu0 }
 0x635   :  { %v3260_v55 = vadd.f32 %v3259_v47, %v15356_v39  ;;  %v3261_v58 = vpop.f32.mrb[3].mxu0 }
 0x637   :  { %v4109_v1 = vpack.c.bf16 %v3260_v55, %v3257_v62  ;;  %3471 = vmatmul.mubr.bf16.gmra.mrb[148].mxu0 %v13939_v44  ;;  %v13962_v44 = vld [vmem:[#allocation2 + $0x8ec] ss:$16 sps:$4 sm:$0xff]  }
 0x638   :  { %3478 = vmatprep.mubr.bf16.mxu0 %v13944_v50 }
 0x639   :  { %12187 = vmatmul.mubr.msk.bf16.gmra.mrb[8].mxu1 %vm3554_vm1, %v4109_v1 }
 0x63a   :  { %v3264_v61 = vpop.f32.mrb[4].mxu0 }
 0x63b   :  { %v3265_v2 = vadd.f32 %v3264_v61, %v15358_v42  ;;  %v3266_v5 = vpop.f32.mrb[5].mxu0  ;;  %v13960_v61 = vld [vmem:[#allocation2 + $0x8e8] ss:$16 sps:$4 sm:$0xff]  }
 0x63c   :  { %v3267_v13 = vpop.f32.mrb[6].mxu0 }
 0x63d   :  { %v3268_v36 = vadd.f32 %v3267_v13, %v15360_v45  ;;  %v3269_v19 = vpop.f32.mrb[7].mxu0 }
 0x63f   :  { %v4110_v22 = vpack.c.bf16 %v3268_v36, %v3265_v2  ;;  %3479 = vmatmul.mubr.bf16.gmra.mrb[152].mxu0 %v13942_v8 }
 0x640   :  { %3486 = vmatprep.mubr.bf16.mxu0 %v13947_v4 }
 0x641   :  { %12190 = vmatprep.mubr.msk.bf16.mxu1 %vm3554_vm1, %v4110_v22 }
 0x642   :  { %v3272_v39 = vpop.f32.mrb[8].mxu0 }
 0x643   :  { %v3273_v24 = vadd.f32 %v3272_v39, %v15362_v48  ;;  %v3274_v26 = vpop.f32.mrb[9].mxu0 }
 0x644   :  { %v3275_v33 = vpop.f32.mrb[10].mxu0 }
 0x645   :  { %v3276_v42 = vadd.f32 %v3275_v33, %v15364_v51  ;;  %v3277_v10 = vpop.f32.mrb[11].mxu0 }
 0x647   :  { %v4111_v11 = vpack.c.bf16 %v3276_v42, %v3273_v24  ;;  %3487 = vmatmul.mubr.bf16.gmra.mrb[156].mxu0 %v13945_v29 }
 0x648   :  { %3494 = vmatprep.mubr.bf16.mxu0 %v13950_v7 }
 0x649   :  { %12191 = vmatmul.mubr.msk.bf16.gmra.mrb[12].mxu1 %vm3554_vm1, %v4111_v11 }
 0x64a   :  { %v3280_v45 = vpop.f32.mrb[12].mxu0 }
 0x64b   :  { %v3281_v38 = vadd.f32 %v3280_v45, %v15366_v54  ;;  %v3282_v52 = vpop.f32.mrb[13].mxu0 }
 0x64c   :  { %v3283_v17 = vpop.f32.mrb[14].mxu0 }
 0x64d   :  { %v3284_v48 = vadd.f32 %v3283_v17, %v15368_v57  ;;  %v3285_v21 = vpop.f32.mrb[15].mxu0  ;;  %v4439_v57 = vsel %vm3579_vm0, %v15515_v46, 0 }
 0x64f   :  { %v4254_v23 = vpack.c.bf16 %v3284_v48, %v3281_v38  ;;  %3495 = vmatmul.mubr.bf16.gmra.mrb[160].mxu0 %v13948_v14 }
 0x650   :  { %3502 = vmatprep.mubr.bf16.mxu0 %v13953_v20 }
 0x651   :  { %12196 = vmatprep.mubr.msk.bf16.mxu1 %vm3554_vm1, %v4254_v23  ;;  %v4589_v23 = vsel %vm3579_vm0, %v15539_v49, 0 }
 0x652   :  { %v3288_v51 = vpop.f32.mrb[16].mxu0 }
 0x653   :  { %v3289_v25 = vadd.f32 %v3288_v51, %v15370_v60  ;;  %v3290_v16 = vpop.f32.mrb[17].mxu0  ;;  %v4713_v51 = vld [vmem:[#allocation4 + $0x20] sm:$0xf] }
 0x654   :  { %v3291_v32 = vpop.f32.mrb[18].mxu0 }
 0x655   :  { %v3292_v54 = vadd.f32 %v3291_v32, %v15372_v63  ;;  %v3293_v41 = vpop.f32.mrb[19].mxu0 }
 0x657   :  { %v4255_v43 = vpack.c.bf16 %v3292_v54, %v3289_v25  ;;  %3503 = vmatmul.mubr.bf16.gmra.mrb[164].mxu0 %v13951_v27 }
 0x658   :  { %3510 = vmatprep.mubr.bf16.mxu0 %v13956_v35 }
 0x659   :  { %12197 = vmatmul.mubr.msk.bf16.vlgmr.msra.gmra.mrb[0].mxu1 %vm3554_vm1, %v4255_v43 }
 0x65a   :  { %v3296_v53 = vpop.f32.mrb[20].mxu0  ;;  %12213 = vmatpush3.bf16.msra.mxu1 %v4439_v57 }
 0x65b   :  { %v3297_v60 = vadd.f32 %v3296_v53, %v15374_v3  ;;  %v3298_v30 = vpop.f32.mrb[21].mxu0  ;;  %13461 = vmatprep.subr.msk.bf16.mxu1 %vm3579_vm0, %v15539_v49  ;;  %v13957_v3 = vld [vmem:[#allocation2 + $0x8c8] ss:$16 sps:$4 sm:$0xff]  }
 0x65c   :  { %v3299_v63 = vpop.f32.mrb[22].mxu0 }
 0x65d   :  { %v3300_v56 = vadd.f32 %v3299_v63, %v15376_v6  ;;  %v3301_v28 = vpop.f32.mrb[23].mxu0 }
 0x65f   :  { %v4256_v46 = vpack.c.bf16 %v3300_v56, %v3297_v60  ;;  %3511 = vmatmul.mubr.bf16.gmra.mrb[168].mxu0 %v13954_v34 }
 0x660   :  { %3518 = vmatprep.mubr.bf16.mxu0 %v13959_v37 }
 0x661   :  { %12200 = vmatprep.mubr.msk.bf16.mxu1 %vm3554_vm1, %v4256_v46 }
 0x662   :  { %v3304_v31 = vpop.f32.mrb[24].mxu0 }
 0x663   :  { %v3305_v59 = vadd.f32 %v3304_v31, %v15378_v9  ;;  %v3306_v62 = vpop.f32.mrb[25].mxu0 }
 0x664   :  { %v3307_v40 = vpop.f32.mrb[26].mxu0 }
 0x665   :  { %v3308_v47 = vadd.f32 %v3307_v40, %v15380_v12  ;;  %v3309_v50 = vpop.f32.mrb[27].mxu0 }
 0x667   :  { %v4257_v55 = vpack.c.bf16 %v3308_v47, %v3305_v59  ;;  %3519 = vmatmul.mubr.bf16.gmra.mrb[172].mxu0 %v13957_v3 }
 0x668   :  { %3526 = vmatprep.mubr.bf16.mxu0 %v13962_v44 }
 0x669   :  { %12201 = vmatmul.mubr.msk.bf16.gmra.mrb[4].mxu1 %vm3554_vm1, %v4257_v55 }
 0x66a   :  { %v3312_v6 = vpop.f32.mrb[28].mxu0 }
 0x66b   :  { %v3313_v58 = vadd.f32 %v3312_v6, %v15382_v15  ;;  %v3314_v1 = vpop.f32.mrb[29].mxu0 }
 0x66c   :  { %v3315_v2 = vpop.f32.mrb[30].mxu0 }
 0x66d   :  { %v3316_v9 = vadd.f32 %v3315_v2, %v15384_v18  ;;  %v3317_v5 = vpop.f32.mrb[31].mxu0 }
 0x66f   :  { %v4258_v8 = vpack.c.bf16 %v3316_v9, %v3313_v58  ;;  %3527 = vmatmul.mubr.bf16.gmra.mrb[176].mxu0 %v13960_v61 }
 0x670   :  { %7213 = vmatprep.mubr.bf16.mxu0 %v14804_v0 }
 0x671   :  { %12204 = vmatprep.mubr.msk.bf16.mxu1 %vm3554_vm1, %v4258_v8 }
 0x672   :  { %v3320_v12 = vpop.f32.mrb[180].mxu0 }
 0x673   :  { %v3322_v13 = vpop.f32.mrb[181].mxu0 }
 0x674   :  { %v3323_v4 = vpop.f32.mrb[182].mxu0 }
 0x675   :  { %v4259_v36 = vpack.c.bf16 %v3323_v4, %v3320_v12  ;;  %v3325_v19 = vpop.f32.mrb[183].mxu0 }
 0x676   :  { %v4739_v19 = vsel %vm3579_vm0, %v4713_v51, 0 }
 0x677   :  { %12205 = vmatmul.mubr.msk.bf16.gmra.mrb[8].mxu1 %vm3554_vm1, %v4259_v36 }
 0x67a   :  { %v3328_v15 = vpop.f32.mrb[184].mxu0 }
 0x67b   :  { %v3330_v22 = vpop.f32.mrb[185].mxu0 }
 0x67c   :  { %v3331_v39 = vpop.f32.mrb[186].mxu0 }
 0x67d   :  { %v4260_v24 = vpack.c.bf16 %v3331_v39, %v3328_v15  ;;  %v3333_v26 = vpop.f32.mrb[187].mxu0 }
 0x67f   :  { %12208 = vmatprep.mubr.msk.bf16.mxu1 %vm3554_vm1, %v4260_v24 }
 0x682   :  { %v3336_v18 = vpop.f32.mrb[188].mxu0 }
 0x683   :  { %v3338_v29 = vpop.f32.mrb[189].mxu0 }
 0x684   :  { %v3339_v33 = vpop.f32.mrb[190].mxu0 }
 0x685   :  { %v4261_v7 = vpack.c.bf16 %v3339_v33, %v3336_v18  ;;  %v3341_v42 = vpop.f32.mrb[191].mxu0 }
 0x687   :  { %12209 = vmatmul.mubr.msk.bf16.gmra.mrb[12].mxu1 %vm3554_vm1, %v4261_v7 }
 0x68a   :  { %v3344_v10 = vpop.f32.mrb[192].mxu0 }
 0x68b   :  { %v3346_v11 = vpop.f32.mrb[193].mxu0 }
 0x68c   :  { %v3347_v45 = vpop.f32.mrb[194].mxu0 }
 0x68d   :  { %v4404_v38 = vpack.c.bf16 %v3347_v45, %v3344_v10  ;;  %v3349_v52 = vpop.f32.mrb[195].mxu0 }
 0x68f   :  { %12214 = vmatprep.mubr.msk.bf16.mxu1 %vm3554_vm1, %v4404_v38 }
 0x692   :  { %v3352_v14 = vpop.f32.mrb[196].mxu0 }
 0x693   :  { %v3354_v17 = vpop.f32.mrb[197].mxu0 }
 0x694   :  { %v3355_v20 = vpop.f32.mrb[198].mxu0 }
 0x695   :  { %v4405_v48 = vpack.c.bf16 %v3355_v20, %v3352_v14  ;;  %v3357_v21 = vpop.f32.mrb[199].mxu0 }
 0x697   :  { %12215 = vmatmul.mubr.msk.bf16.vlgmr.msra.gmra.mrb[0].mxu1 %vm3554_vm1, %v4405_v48 }
 0x698   :  { %12231 = vmatpush3.bf16.msra.mxu1 %v4589_v23 }
 0x699   :  { %13462 = vmatprep.subr.msk.bf16.mxu1 %vm3579_vm0, %v4713_v51 }
 0x69a   :  { %v3360_v25 = vpop.f32.mrb[200].mxu0 }
 0x69b   :  { %v3362_v16 = vpop.f32.mrb[201].mxu0 }
 0x69c   :  { %v3363_v27 = vpop.f32.mrb[202].mxu0 }
 0x69d   :  { %v4406_v32 = vpack.c.bf16 %v3363_v27, %v3360_v25  ;;  %v3365_v35 = vpop.f32.mrb[203].mxu0 }
 0x69f   :  { %12218 = vmatprep.mubr.msk.bf16.mxu1 %vm3554_vm1, %v4406_v32 }
 0x6a2   :  { %v3368_v54 = vpop.f32.mrb[204].mxu0 }
 0x6a3   :  { %v3370_v41 = vpop.f32.mrb[205].mxu0 }
 0x6a4   :  { %v3371_v43 = vpop.f32.mrb[206].mxu0 }
 0x6a5   :  { %v4407_v57 = vpack.c.bf16 %v3371_v43, %v3368_v54  ;;  %v3373_v53 = vpop.f32.mrb[207].mxu0 }
 0x6a7   :  { %12219 = vmatmul.mubr.msk.bf16.gmra.mrb[4].mxu1 %vm3554_vm1, %v4407_v57 }
 0x6aa   :  { %v3376_v49 = vpop.f32.mrb[208].mxu0 }
 0x6ab   :  { %v3378_v60 = vpop.f32.mrb[209].mxu0 }
 0x6ac   :  { %v3379_v30 = vpop.f32.mrb[210].mxu0 }
 0x6ad   :  { %v4408_v34 = vpack.c.bf16 %v3379_v30, %v3376_v49  ;;  %v3381_v63 = vpop.f32.mrb[211].mxu0 }
 0x6af   :  { %12222 = vmatprep.mubr.msk.bf16.mxu1 %vm3554_vm1, %v4408_v34 }
 0x6b2   :  { %v3384_v37 = vpop.f32.mrb[212].mxu0 }
 0x6b3   :  { %v3386_v56 = vpop.f32.mrb[213].mxu0 }
 0x6b4   :  { %v3387_v28 = vpop.f32.mrb[214].mxu0 }
 0x6b5   :  { %v4409_v46 = vpack.c.bf16 %v3387_v28, %v3384_v37  ;;  %v3389_v31 = vpop.f32.mrb[215].mxu0 }
 0x6b7   :  { %12223 = vmatmul.mubr.msk.bf16.gmra.mrb[8].mxu1 %vm3554_vm1, %v4409_v46 }
 0x6ba   :  { %v3392_v59 = vpop.f32.mrb[216].mxu0 }
 0x6bb   :  { %v3394_v62 = vpop.f32.mrb[217].mxu0 }
 0x6bc   :  { %v3395_v3 = vpop.f32.mrb[218].mxu0 }
 0x6bd   :  { %v4410_v40 = vpack.c.bf16 %v3395_v3, %v3392_v59  ;;  %v3397_v44 = vpop.f32.mrb[219].mxu0 }
 0x6bf   :  { %12226 = vmatprep.mubr.msk.bf16.mxu1 %vm3554_vm1, %v4410_v40 }
 0x6c2   :  { %v3400_v47 = vpop.f32.mrb[220].mxu0 }
 0x6c3   :  { %v3402_v50 = vpop.f32.mrb[221].mxu0 }
 0x6c4   :  { %v3403_v55 = vpop.f32.mrb[222].mxu0 }
 0x6c5   :  { %v4411_v6 = vpack.c.bf16 %v3403_v55, %v3400_v47  ;;  %v3405_v58 = vpop.f32.mrb[223].mxu0 }
 0x6c7   :  { %12227 = vmatmul.mubr.msk.bf16.gmra.mrb[12].mxu1 %vm3554_vm1, %v4411_v6 }
 0x6ca   :  { %v3408_v1 = vpop.f32.mrb[224].mxu0 }
 0x6cb   :  { %v3410_v61 = vpop.f32.mrb[225].mxu0 }
 0x6cc   :  { %v3411_v2 = vpop.f32.mrb[226].mxu0 }
 0x6cd   :  { %v4554_v9 = vpack.c.bf16 %v3411_v2, %v3408_v1  ;;  %v3413_v5 = vpop.f32.mrb[227].mxu0 }
 0x6cf   :  { %12232 = vmatprep.mubr.msk.bf16.mxu1 %vm3554_vm1, %v4554_v9 }
 0x6d2   :  { %v3416_v8 = vpop.f32.mrb[228].mxu0 }
 0x6d3   :  { %v3418_v12 = vpop.f32.mrb[229].mxu0 }
 0x6d4   :  { %v3419_v13 = vpop.f32.mrb[230].mxu0 }
 0x6d5   :  { %v4555_v4 = vpack.c.bf16 %v3419_v13, %v3416_v8  ;;  %v3421_v36 = vpop.f32.mrb[231].mxu0 }
 0x6d7   :  { %12233 = vmatmul.mubr.msk.bf16.vlgmr.msra.gmra.mrb[0].mxu1 %vm3554_vm1, %v4555_v4 }
 0x6d8   :  { %12249 = vmatpush3.bf16.msra.mxu1 %v4739_v19 }
 0x6da   :  { %v3424_v15 = vpop.f32.mrb[232].mxu0 }
 0x6db   :  { %v3426_v22 = vpop.f32.mrb[233].mxu0 }
 0x6dc   :  { %v3427_v39 = vpop.f32.mrb[234].mxu0 }
 0x6dd   :  { %v4556_v24 = vpack.c.bf16 %v3427_v39, %v3424_v15  ;;  %v3429_v26 = vpop.f32.mrb[235].mxu0 }
 0x6df   :  { %12236 = vmatprep.mubr.msk.bf16.mxu1 %vm3554_vm1, %v4556_v24 }
 0x6e2   :  { %v3432_v18 = vpop.f32.mrb[236].mxu0 }
 0x6e3   :  { %v3434_v29 = vpop.f32.mrb[237].mxu0 }
 0x6e4   :  { %v3435_v33 = vpop.f32.mrb[238].mxu0 }
 0x6e5   :  { %v4557_v7 = vpack.c.bf16 %v3435_v33, %v3432_v18  ;;  %v3437_v42 = vpop.f32.mrb[239].mxu0 }
 0x6e7   :  { %12237 = vmatmul.mubr.msk.bf16.gmra.mrb[4].mxu1 %vm3554_vm1, %v4557_v7 }
 0x6ea   :  { %v3440_v10 = vpop.f32.mrb[240].mxu0 }
 0x6eb   :  { %v3442_v11 = vpop.f32.mrb[241].mxu0 }
 0x6ec   :  { %v3443_v45 = vpop.f32.mrb[242].mxu0 }
 0x6ed   :  { %v4558_v38 = vpack.c.bf16 %v3443_v45, %v3440_v10  ;;  %v3445_v52 = vpop.f32.mrb[243].mxu0 }
 0x6ef   :  { %12240 = vmatprep.mubr.msk.bf16.mxu1 %vm3554_vm1, %v4558_v38 }
 0x6f2   :  { %v3448_v14 = vpop.f32.mrb[244].mxu0 }
 0x6f3   :  { %v3450_v17 = vpop.f32.mrb[245].mxu0 }
 0x6f4   :  { %v3451_v20 = vpop.f32.mrb[246].mxu0 }
 0x6f5   :  { %v4559_v48 = vpack.c.bf16 %v3451_v20, %v3448_v14  ;;  %v3453_v21 = vpop.f32.mrb[247].mxu0 }
 0x6f7   :  { %12241 = vmatmul.mubr.msk.bf16.gmra.mrb[8].mxu1 %vm3554_vm1, %v4559_v48 }
 0x6fa   :  { %v3456_v23 = vpop.f32.mrb[248].mxu0 }
 0x6fb   :  { %v3458_v51 = vpop.f32.mrb[249].mxu0 }
 0x6fc   :  { %v3459_v25 = vpop.f32.mrb[250].mxu0 }
 0x6fd   :  { %v4560_v16 = vpack.c.bf16 %v3459_v25, %v3456_v23  ;;  %v3461_v27 = vpop.f32.mrb[251].mxu0 }
 0x6ff   :  { %12244 = vmatprep.mubr.msk.bf16.mxu1 %vm3554_vm1, %v4560_v16 }
 0x702   :  { %v3464_v32 = vpop.f32.mrb[252].mxu0 }
 0x703   :  { %v3466_v35 = vpop.f32.mrb[253].mxu0 }
 0x704   :  { %v3467_v54 = vpop.f32.mrb[254].mxu0 }
 0x705   :  { %v4561_v41 = vpack.c.bf16 %v3467_v54, %v3464_v32  ;;  %v3469_v43 = vpop.f32.mrb[255].mxu0 }
 0x707   :  { %12245 = vmatmul.mubr.msk.bf16.gmra.mrb[12].mxu1 %vm3554_vm1, %v4561_v41 }
 0x70a   :  { %v3472_v57 = vpop.f32.mrb[148].mxu0 }
 0x70b   :  { %v3474_v53 = vpop.f32.mrb[149].mxu0 }
 0x70c   :  { %v3475_v49 = vpop.f32.mrb[150].mxu0 }
 0x70d   :  { %v4704_v60 = vpack.c.bf16 %v3475_v49, %v3472_v57  ;;  %v3477_v30 = vpop.f32.mrb[151].mxu0 }
 0x70f   :  { %12250 = vmatprep.mubr.msk.bf16.mxu1 %vm3554_vm1, %v4704_v60 }
 0x712   :  { %v3480_v34 = vpop.f32.mrb[152].mxu0 }
 0x713   :  { %v3482_v63 = vpop.f32.mrb[153].mxu0 }
 0x714   :  { %v3483_v37 = vpop.f32.mrb[154].mxu0 }
 0x715   :  { %v4705_v56 = vpack.c.bf16 %v3483_v37, %v3480_v34  ;;  %v3485_v28 = vpop.f32.mrb[155].mxu0 }
 0x717   :  { %12251 = vmatmul.mubr.msk.bf16.vlgmr.msra.gmra.mrb[0].mxu1 %vm3554_vm1, %v4705_v56 }
 0x71a   :  { %v3488_v46 = vpop.f32.mrb[156].mxu0 }
 0x71b   :  { %v3490_v31 = vpop.f32.mrb[157].mxu0 }
 0x71c   :  { %v3491_v59 = vpop.f32.mrb[158].mxu0 }
 0x71d   :  { %v4706_v62 = vpack.c.bf16 %v3491_v59, %v3488_v46  ;;  %v3493_v3 = vpop.f32.mrb[159].mxu0 }
 0x71f   :  { %12254 = vmatprep.mubr.msk.bf16.mxu1 %vm3554_vm1, %v4706_v62 }
 0x722   :  { %v3496_v40 = vpop.f32.mrb[160].mxu0 }
 0x723   :  { %v3498_v44 = vpop.f32.mrb[161].mxu0 }
 0x724   :  { %v3499_v47 = vpop.f32.mrb[162].mxu0 }
 0x725   :  { %v4707_v50 = vpack.c.bf16 %v3499_v47, %v3496_v40  ;;  %v3501_v55 = vpop.f32.mrb[163].mxu0 }
 0x727   :  { %12255 = vmatmul.mubr.msk.bf16.gmra.mrb[4].mxu1 %vm3554_vm1, %v4707_v50 }
 0x72a   :  { %v3504_v6 = vpop.f32.mrb[164].mxu0 }
 0x72b   :  { %v3506_v58 = vpop.f32.mrb[165].mxu0 }
 0x72c   :  { %v3507_v1 = vpop.f32.mrb[166].mxu0  ;;  %v13963_v58 = vld [vmem:[#allocation9] sm:$0xff]  }
 0x72d   :  { %v4708_v61 = vpack.c.bf16 %v3507_v1, %v3504_v6  ;;  %v3509_v2 = vpop.f32.mrb[167].mxu0 }
 0x72f   :  { %12258 = vmatprep.mubr.msk.bf16.mxu1 %vm3554_vm1, %v4708_v61 }
 0x732   :  { %v3512_v9 = vpop.f32.mrb[168].mxu0 }
 0x733   :  { %v3514_v5 = vpop.f32.mrb[169].mxu0 }
 0x734   :  { %v3515_v8 = vpop.f32.mrb[170].mxu0 }
 0x735   :  { %v4709_v12 = vpack.c.bf16 %v3515_v8, %v3512_v9  ;;  %v3517_v13 = vpop.f32.mrb[171].mxu0 }
 0x737   :  { %12259 = vmatmul.mubr.msk.bf16.gmra.mrb[8].mxu1 %vm3554_vm1, %v4709_v12 }
 0x73a   :  { %v3520_v4 = vpop.f32.mrb[172].mxu0 }
 0x73b   :  { %v3522_v36 = vpop.f32.mrb[173].mxu0 }
 0x73c   :  { %v3523_v19 = vpop.f32.mrb[174].mxu0 }
 0x73d   :  { %v4710_v15 = vpack.c.bf16 %v3523_v19, %v3520_v4  ;;  %v3525_v22 = vpop.f32.mrb[175].mxu0 }
 0x73f   :  { %12262 = vmatprep.mubr.msk.bf16.mxu1 %vm3554_vm1, %v4710_v15 }
 0x742   :  { %v3528_v39 = vpop.f32.mrb[176].mxu0 }
 0x743   :  { %v3530_v24 = vpop.f32.mrb[177].mxu0 }
 0x744   :  { %v3531_v26 = vpop.f32.mrb[178].mxu0 }
 0x745   :  { %v4711_v18 = vpack.c.bf16 %v3531_v26, %v3528_v39  ;;  %v3533_v29 = vpop.f32.mrb[179].mxu0 }
 0x747   :  { %12263 = vmatmul.mubr.msk.bf16.gmra.mrb[12].mxu1 %vm3554_vm1, %v4711_v18 }
 0x748   :  { %12282 = vmatprep.mubr.bf16.mxu1 %v13963_v58 }
 0x7ea   :  { %v12252_v33 = vpop.f32.mrb[0].mxu1 }
 0x7eb   :  { %v4775_v7 = vpop.f32.mrb[1].mxu1  ;;  %v4858_v52 = vsel %vm4854_vm2, %v12252_v33, 0.0 }
 0x7ec   :  { %v12253_v42 = vpop.f32.mrb[2].mxu1  ;;  %v4855_v11 = vsel %vm4854_vm2, %v4775_v7, 0.0 }
 0x7ed   :  { %v4778_v10 = vpop.f32.mrb[3].mxu1  ;;  %v4860_v17 = vsel %vm4854_vm2, %v12253_v42, 0.0 }
 0x7ee   :  { %v4856_v45 = vsel %vm4854_vm2, %v4778_v10, 0.0 }
 0x7ef   :  { %v4857_v38 = vadd.f32 %v4856_v45, %v4855_v11 }
 0x7f1   :  { %v4859_v14 = vadd.f32 %v4858_v52, %v4857_v38 }
 0x7f3   :  { %v4861_v20 = vadd.f32 %v4860_v17, %v4859_v14 }
 0x7fa   :  { %v12256_v48 = vpop.f32.mrb[4].mxu1 }
 0x7fb   :  { %v4791_v21 = vpop.f32.mrb[5].mxu1  ;;  %v4866_v35 = vsel %vm4854_vm2, %v12256_v48, 0.0 }
 0x7fc   :  { %v4862_v23 = vsel %vm4854_vm2, %v4791_v21, 0.0  ;;  %v12257_v51 = vpop.f32.mrb[6].mxu1 }
 0x7fd   :  { %v4863_v25 = vadd.f32 %v4862_v23, %v4861_v20  ;;  %v4794_v16 = vpop.f32.mrb[7].mxu1  ;;  %v4868_v41 = vsel %vm4854_vm2, %v12257_v51, 0.0 }
 0x7fe   :  { %v4864_v27 = vsel %vm4854_vm2, %v4794_v16, 0.0 }
 0x7ff   :  { %v4865_v32 = vadd.f32 %v4864_v27, %v4863_v25 }
 0x801   :  { %v4867_v54 = vadd.f32 %v4866_v35, %v4865_v32 }
 0x803   :  { %v4869_v43 = vadd.f32 %v4868_v41, %v4867_v54 }
 0x80a   :  { %v12260_v57 = vpop.f32.mrb[8].mxu1 }
 0x80b   :  { %v4807_v53 = vpop.f32.mrb[9].mxu1  ;;  %v4874_v56 = vsel %vm4854_vm2, %v12260_v57, 0.0 }
 0x80c   :  { %v4870_v49 = vsel %vm4854_vm2, %v4807_v53, 0.0  ;;  %v12261_v60 = vpop.f32.mrb[10].mxu1 }
 0x80d   :  { %v4871_v30 = vadd.f32 %v4870_v49, %v4869_v43  ;;  %v4810_v34 = vpop.f32.mrb[11].mxu1  ;;  %v4876_v46 = vsel %vm4854_vm2, %v12261_v60, 0.0 }
 0x80e   :  { %v4872_v63 = vsel %vm4854_vm2, %v4810_v34, 0.0 }
 0x80f   :  { %v4873_v37 = vadd.f32 %v4872_v63, %v4871_v30 }
 0x811   :  { %v4875_v28 = vadd.f32 %v4874_v56, %v4873_v37 }
 0x813   :  { %v4877_v31 = vadd.f32 %v4876_v46, %v4875_v28 }
 0x81a   :  { %v12264_v59 = vpop.f32.mrb[12].mxu1 }
 0x81b   :  { %v4823_v62 = vpop.f32.mrb[13].mxu1  ;;  %v4882_v6 = vsel %vm4854_vm2, %v12264_v59, 0.0 }
 0x81c   :  { %v4878_v3 = vsel %vm4854_vm2, %v4823_v62, 0.0  ;;  %v12265_v40 = vpop.f32.mrb[14].mxu1 }
 0x81d   :  { %v4879_v44 = vadd.f32 %v4878_v3, %v4877_v31  ;;  %v4826_v47 = vpop.f32.mrb[15].mxu1  ;;  %v4884_v61 = vsel %vm4854_vm2, %v12265_v40, 0.0 }
 0x81e   :  { %v4880_v50 = vsel %vm4854_vm2, %v4826_v47, 0.0 }
 0x81f   :  { %v4881_v55 = vadd.f32 %v4880_v50, %v4879_v44 }
 0x821   :  { %v4883_v1 = vadd.f32 %v4882_v6, %v4881_v55 }
 0x823   :  { %v4885_v2 = vadd.f32 %v4884_v61, %v4883_v1 }
 0x825   :  { %v4886_v9 = vrot.slane %v4885_v2, 4 }
 0x827   :  { %v4887_v5 = vadd.f32 %v4886_v9, %v4885_v2 }
 0x829   :  { %v4888_v8 = vrot.slane %v4887_v5, 2 }
 0x82b   :  { %v4889_v12 = vadd.f32 %v4888_v8, %v4887_v5 }
 0x82d   :  { %v4890_v13 = vrot.slane %v4889_v12, 1 }
 0x82f   :  { %v4891_v4 = vadd.f32 %v4890_v13, %v4889_v12 }
 0x831   :  { %v4892_v36 = vmul.f32 0.0078125, %v4891_v4 }
 0x833   :  { %v15601_v19 = vsub.f32 %v4775_v7, %v4892_v36  ;;  %v15603_v15 = vsub.f32 %v4778_v10, %v4892_v36  ;;  %v15605_v22 = vsub.f32 %v12252_v33, %v4892_v36  ;;  %v15607_v39 = vsub.f32 %v12253_v42, %v4892_v36 }
 0x834   :  { %v15609_v24 = vsub.f32 %v4791_v21, %v4892_v36  ;;  %v15611_v26 = vsub.f32 %v4794_v16, %v4892_v36  ;;  %v15613_v18 = vsub.f32 %v12256_v48, %v4892_v36  ;;  %v15615_v29 = vsub.f32 %v12257_v51, %v4892_v36 }
 0x835   :  { %v15617_v11 = vsub.f32 %v4807_v53, %v4892_v36  ;;  %v15619_v45 = vsub.f32 %v4810_v34, %v4892_v36  ;;  %v15621_v7 = vsub.f32 %v12260_v57, %v4892_v36  ;;  %v15623_v10 = vsub.f32 %v12261_v60, %v4892_v36 }
 0x836   :  { %v15625_v33 = vsub.f32 %v4823_v62, %v4892_v36  ;;  %v15627_v42 = vsub.f32 %v4826_v47, %v4892_v36  ;;  %v15629_v38 = vsub.f32 %v12264_v59, %v4892_v36  ;;  %v15631_v52 = vsub.f32 %v12265_v40, %v4892_v36 }
 0x837   :  { %v4909_v14 = vmul.f32 %v15601_v19, %v15601_v19  ;;  %v4910_v17 = vmul.f32 %v15603_v15, %v15603_v15  ;;  %v4911_v20 = vmul.f32 %v15605_v22, %v15605_v22  ;;  %v4912_v48 = vmul.f32 %v15607_v39, %v15607_v39 }
 0x838   :  { %v4913_v25 = vmul.f32 %v15609_v24, %v15609_v24  ;;  %v4914_v32 = vmul.f32 %v15611_v26, %v15611_v26  ;;  %v4915_v41 = vmul.f32 %v15613_v18, %v15613_v18  ;;  %v4916_v53 = vmul.f32 %v15615_v29, %v15615_v29 }
 0x839   :  { %v4925_v21 = vsel %vm4854_vm2, %v4909_v14, 0.0  ;;  %v4926_v23 = vsel %vm4854_vm2, %v4910_v17, 0.0  ;;  %v4928_v16 = vsel %vm4854_vm2, %v4911_v20, 0.0  ;;  %v4930_v35 = vsel %vm4854_vm2, %v4912_v48, 0.0 }
 0x83a   :  { %v4927_v51 = vadd.f32 %v4926_v23, %v4925_v21  ;;  %v4932_v43 = vsel %vm4854_vm2, %v4913_v25, 0.0  ;;  %v4934_v49 = vsel %vm4854_vm2, %v4914_v32, 0.0  ;;  %v4917_v30 = vmul.f32 %v15617_v11, %v15617_v11  ;;  %v4963_v32 = vld [vmem:[#allocation6] sm:$0x1] }
 0x83b   :  { %v4936_v34 = vsel %vm4854_vm2, %v4915_v41, 0.0  ;;  %v4918_v37 = vmul.f32 %v15619_v45, %v15619_v45  ;;  %v4938_v56 = vsel %vm4854_vm2, %v4916_v53, 0.0  ;;  %v4919_v46 = vmul.f32 %v15621_v7, %v15621_v7 }
 0x83c   :  { %v4929_v27 = vadd.f32 %v4928_v16, %v4927_v51  ;;  %v4940_v31 = vsel %vm4854_vm2, %v4917_v30, 0.0  ;;  %v4920_v62 = vmul.f32 %v15623_v10, %v15623_v10  ;;  %v4921_v44 = vmul.f32 %v15625_v33, %v15625_v33 }
 0x83d   :  { %v4942_v3 = vsel %vm4854_vm2, %v4918_v37, 0.0  ;;  %v4944_v47 = vsel %vm4854_vm2, %v4919_v46, 0.0  ;;  %v4922_v55 = vmul.f32 %v15627_v42, %v15627_v42  ;;  %v4923_v1 = vmul.f32 %v15629_v38, %v15629_v38 }
 0x83e   :  { %v4931_v54 = vadd.f32 %v4930_v35, %v4929_v27  ;;  %v4946_v6 = vsel %vm4854_vm2, %v4920_v62, 0.0  ;;  %v4948_v61 = vsel %vm4854_vm2, %v4921_v44, 0.0  ;;  %v4924_v9 = vmul.f32 %v15631_v52, %v15631_v52 }
 0x83f   :  { %v4950_v5 = vsel %vm4854_vm2, %v4922_v55, 0.0  ;;  %v4952_v12 = vsel %vm4854_vm2, %v4923_v1, 0.0  ;;  %v4968_v16 = vlaneseq }
 0x840   :  { %v4933_v57 = vadd.f32 %v4932_v43, %v4931_v54  ;;  %v4954_v4 = vsel %vm4854_vm2, %v4924_v9, 0.0 }
 0x841   :  { %v4969_v27 = vshrl.u32 %v4968_v16, 7 }
 0x842   :  { %v4935_v60 = vadd.f32 %v4934_v49, %v4933_v57  ;;  %v15684_v57 = vld [vmem:[#allocation7] ss:$0 sm:$0xff] }
 0x843   :  { %v15681_v35 = vsub.s32 0, %v4969_v27 }
 0x844   :  { %v4937_v63 = vadd.f32 %v4936_v34, %v4935_v60 }
 0x846   :  { %v4939_v28 = vadd.f32 %v4938_v56, %v4937_v63 }
 0x848   :  { %v4941_v59 = vadd.f32 %v4940_v31, %v4939_v28 }
 0x84a   :  { %v4943_v40 = vadd.f32 %v4942_v3, %v4941_v59 }
 0x84c   :  { %v4945_v50 = vadd.f32 %v4944_v47, %v4943_v40 }
 0x84e   :  { %v4947_v58 = vadd.f32 %v4946_v6, %v4945_v50 }
 0x850   :  { %v4949_v2 = vadd.f32 %v4948_v61, %v4947_v58 }
 0x852   :  { %v4951_v8 = vadd.f32 %v4950_v5, %v4949_v2 }
 0x854   :  { %v4953_v13 = vadd.f32 %v4952_v12, %v4951_v8 }
 0x856   :  { %v4955_v36 = vadd.f32 %v4954_v4, %v4953_v13 }
 0x858   :  { %v4956_v14 = vrot.slane %v4955_v36, 4 }
 0x85a   :  { %v4957_v17 = vadd.f32 %v4956_v14, %v4955_v36 }
 0x85c   :  { %v4958_v20 = vrot.slane %v4957_v17, 2 }
 0x85e   :  { %v4959_v48 = vadd.f32 %v4958_v20, %v4957_v17 }
 0x860   :  { %v4960_v21 = vrot.slane %v4959_v48, 1 }
 0x862   :  { %v4961_v23 = vadd.f32 %v4960_v21, %v4959_v48 }
 0x864   :  { %v4962_v51 = vmul.f32 0.0078125, %v4961_v23 }
 0x866   :  { %v4964_v25 = vadd.f32 1e-05, %v4962_v51 }
 0x868   :  { %14242 = vrsqrt.f32 %v4964_v25 }
 0x872   :  { %v14243_v54 = vpop.eup %14242 }
 0x873   :  { %v4966_v41 = vmul.f32 %v14243_v54, %v4963_v32 }
 0x875   :  { %v4971_v43 = vrot.slane %v4966_v41, %v15681_v35 }
 0x877   :  { %v4986_v53 = vmul.f32 %v4971_v43, %v15627_v42  ;;  %v4973_v49 = vmul.f32 %v4971_v43, %v15601_v19  ;;  %v4974_v60 = vmul.f32 %v4971_v43, %v15603_v15  ;;  %v4975_v30 = vmul.f32 %v4971_v43, %v15605_v22 }
 0x878   :  { %v4976_v34 = vmul.f32 %v4971_v43, %v15607_v39  ;;  %v4977_v63 = vmul.f32 %v4971_v43, %v15609_v24  ;;  %v4978_v37 = vmul.f32 %v4971_v43, %v15611_v26  ;;  %v4979_v56 = vmul.f32 %v4971_v43, %v15613_v18 }
 0x879   :  { %v15695_v28 = vadd.f32 %v15684_v57, %v4986_v53  ;;  %v4996_v46 = vadd.f32 %v15684_v57, %v4973_v49  ;;  %v4997_v42 = vadd.f32 %v15684_v57, %v4974_v60  ;;  %v4998_v19 = vadd.f32 %v15684_v57, %v4975_v30 }
 0x87a   :  { %v4999_v15 = vadd.f32 %v15684_v57, %v4976_v34  ;;  %v5000_v22 = vadd.f32 %v15684_v57, %v4977_v63  ;;  %v5001_v39 = vadd.f32 %v15684_v57, %v4978_v37  ;;  %v4980_v24 = vmul.f32 %v4971_v43, %v15615_v29 }
 0x87b   :  { %v5025_v26 = vmul.f32 0.01, %v15695_v28  ;;  %v5012_v18 = vmul.f32 0.01, %v4996_v46  ;;  %v5013_v31 = vmul.f32 0.01, %v4997_v42  ;;  %v5002_v59 = vadd.f32 %v15684_v57, %v4979_v56 }
 0x87c   :  { %v5014_v62 = vmul.f32 0.01, %v4998_v19  ;;  %v5015_v3 = vmul.f32 0.01, %v4999_v15  ;;  %v5016_v40 = vmul.f32 0.01, %v5000_v22  ;;  %v5003_v44 = vadd.f32 %v15684_v57, %v4980_v24 }
 0x87d   :  { %v5028_v47 = vmax.f32 %v4996_v46, %v5012_v18  ;;  %v5029_v50 = vmax.f32 %v4997_v42, %v5013_v31  ;;  %v5017_v55 = vmul.f32 0.01, %v5001_v39  ;;  %v5018_v6 = vmul.f32 0.01, %v5002_v59  ;;  %v13968_v24 = vld [vmem:[#allocation9 + $0x28] sm:$0xff]   ;;  %v13970_v18 = vld [vmem:[#allocation9 + $0x38] sm:$0xff]  }
 0x87e   :  { %v5030_v58 = vmax.f32 %v4998_v19, %v5014_v62  ;;  %v5031_v1 = vmax.f32 %v4999_v15, %v5015_v3  ;;  %v5032_v61 = vmax.f32 %v5000_v22, %v5016_v40  ;;  %v5019_v2 = vmul.f32 0.01, %v5003_v44  ;;  %v13964_v19 = vld [vmem:[#allocation9 + $0x8] sm:$0xff]   ;;  %v13965_v15 = vld [vmem:[#allocation9 + $0x10] sm:$0xff]   ;;  %v13966_v22 = vld [vmem:[#allocation9 + $0x18] sm:$0xff]  }
 0x87f   :  { %v5044_v29 = vpack.c.bf16 %v5029_v50, %v5028_v47  ;;  %v5033_v9 = vmax.f32 %v5001_v39, %v5017_v55  ;;  %v5034_v5 = vmax.f32 %v5002_v59, %v5018_v6  ;;  %v4981_v8 = vmul.f32 %v4971_v43, %v15617_v11  ;;  %v13967_v39 = vld [vmem:[#allocation9 + $0x20] sm:$0xff]   ;;  %v13972_v59 = vld [vmem:[#allocation9 + $0x48] sm:$0xff]   ;;  %v13973_v62 = vld [vmem:[#allocation9 + $0x50] sm:$0xff]  }
 0x880   :  { %v5045_v12 = vpack.c.bf16 %v5031_v1, %v5030_v58  ;;  %v5035_v13 = vmax.f32 %v5003_v44, %v5019_v2  ;;  %v4982_v4 = vmul.f32 %v4971_v43, %v15619_v45  ;;  %v4983_v36 = vmul.f32 %v4971_v43, %v15621_v7  ;;  %v13971_v31 = vld [vmem:[#allocation9 + $0x40] sm:$0xff]   ;;  %v13974_v3 = vld [vmem:[#allocation9 + $0x58] sm:$0xff]   ;;  %v13976_v44 = vld [vmem:[#allocation9 + $0x68] sm:$0xff]  }
 0x881   :  { %12266 = vmatprep.subr.bf16.mxu1 %v5044_v29  ;;  %v5046_v14 = vpack.c.bf16 %v5033_v9, %v5032_v61  ;;  %v5004_v17 = vadd.f32 %v15684_v57, %v4981_v8  ;;  %v4984_v20 = vmul.f32 %v4971_v43, %v15623_v10  ;;  %v4985_v48 = vmul.f32 %v4971_v43, %v15625_v33  ;;  %v13975_v40 = vld [vmem:[#allocation9 + $0x60] sm:$0xff]   ;;  %v13977_v47 = vld [vmem:[#allocation9 + $0x70] sm:$0xff]   ;;  %v13978_v50 = vld [vmem:[#allocation9 + $0x78] sm:$0xff]  }
 0x882   :  { %12267 = vmatpush3.bf16.msra.mxu1 %v5044_v29  ;;  %v5047_v21 = vpack.c.bf16 %v5035_v13, %v5034_v5  ;;  %v5005_v23 = vadd.f32 %v15684_v57, %v4982_v4  ;;  %v5006_v11 = vadd.f32 %v15684_v57, %v4983_v36  ;;  %v4987_v25 = vmul.f32 %v4971_v43, %v15629_v38  ;;  %v13979_v55 = vld [vmem:[#allocation9 + $0x80] sm:$0xff]   ;;  %v13980_v6 = vld [vmem:[#allocation9 + $0x88] sm:$0xff]   ;;  %v13983_v1 = vld [vmem:[#allocation10] sm:$0xff]  }
 0x883   :  { %12268 = vmatprep.subr.bf16.mxu1 %v5045_v12  ;;  %v5020_v51 = vmul.f32 0.01, %v5004_v17  ;;  %v5007_v45 = vadd.f32 %v15684_v57, %v4984_v20  ;;  %v5008_v7 = vadd.f32 %v15684_v57, %v4985_v48  ;;  %v5041_v10 = vmax.f32 %v15695_v28, %v5025_v26  ;;  %v13969_v26 = vld [vmem:[#allocation9 + $0x30] sm:$0xff]   ;;  %v13982_v58 = vld [vmem:[#allocation10 + $0x18] sm:$0xff]   ;;  %v13984_v20 = vld [vmem:[#allocation10 + $0x8] sm:$0xff]  }
 0x884   :  { %v5021_v16 = vmul.f32 0.01, %v5005_v23  ;;  %v5022_v27 = vmul.f32 0.01, %v5006_v11  ;;  %v4988_v33 = vmul.f32 %v4971_v43, %v15631_v52  ;;  %v5010_v53 = vadd.f32 %v15684_v57, %v4987_v25 }
 0x885   :  { %v5036_v32 = vmax.f32 %v5004_v17, %v5020_v51  ;;  %v5023_v54 = vmul.f32 0.01, %v5007_v45  ;;  %v5024_v41 = vmul.f32 0.01, %v5008_v7 }
 0x886   :  { %12269 = vmatpush3.bf16.msra.mxu1 %v5045_v12  ;;  %v5037_v49 = vmax.f32 %v5005_v23, %v5021_v16  ;;  %v5038_v60 = vmax.f32 %v5006_v11, %v5022_v27  ;;  %v5011_v30 = vadd.f32 %v15684_v57, %v4988_v33  ;;  %v5026_v38 = vmul.f32 0.01, %v5010_v53  ;;  %v13981_v57 = vld [vmem:[#allocation10 + $0x10] sm:$0xff]   ;;  %v13985_v23 = vld [vmem:[#allocation10 + $0x20] sm:$0xff]   ;;  %v13986_v16 = vld [vmem:[#allocation10 + $0x28] sm:$0xff]  }
 0x887   :  { %12270 = vmatprep.subr.bf16.mxu1 %v5046_v14  ;;  %v5039_v34 = vmax.f32 %v5007_v45, %v5023_v54  ;;  %v5040_v63 = vmax.f32 %v5008_v7, %v5024_v41  ;;  %v13987_v41 = vld [vmem:[#allocation10 + $0x30] sm:$0xff]  }
 0x888   :  { %v5048_v37 = vpack.c.bf16 %v5037_v49, %v5036_v32  ;;  %v5027_v56 = vmul.f32 0.01, %v5011_v30  ;;  %v5042_v42 = vmax.f32 %v5010_v53, %v5026_v38  ;;  %v13988_v38 = vld [vmem:[#allocation10 + $0x38] sm:$0xff]  }
 0x889   :  { %v5049_v46 = vpack.c.bf16 %v5039_v34, %v5038_v60  ;;  %v5050_v28 = vpack.c.bf16 %v5041_v10, %v5040_v63 }
 0x88a   :  { %12271 = vmatpush3.bf16.msra.mxu1 %v5046_v14  ;;  %v5043_v52 = vmax.f32 %v5011_v30, %v5027_v56  ;;  %v13989_v56 = vld [vmem:[#allocation10 + $0x40] sm:$0xff]  }
 0x88b   :  { %12272 = vmatprep.subr.bf16.mxu1 %v5047_v21 }
 0x88c   :  { %v5051_v43 = vpack.c.bf16 %v5043_v52, %v5042_v42 }
 0x88e   :  { %12273 = vmatpush3.bf16.msra.mxu1 %v5047_v21 }
 0x88f   :  { %12274 = vmatprep.subr.bf16.mxu1 %v5048_v37 }
 0x892   :  { %12275 = vmatpush3.bf16.msra.mxu1 %v5048_v37 }
 0x893   :  { %12276 = vmatprep.subr.bf16.mxu1 %v5049_v46 }
 0x896   :  { %12277 = vmatpush3.bf16.msra.mxu1 %v5049_v46 }
 0x897   :  { %12278 = vmatprep.subr.bf16.mxu1 %v5050_v28 }
 0x89a   :  { %12279 = vmatpush3.bf16.msra.mxu1 %v5050_v28 }
 0x89b   :  { %12280 = vmatprep.subr.bf16.mxu1 %v5051_v43 }
 0x89e   :  { %12281 = vmatpush3.bf16.msra.mxu1 %v5051_v43 }
 0x89f   :  { %12318 = vmatprep.subr.bf16.mxu1 %v13981_v57 }
 0x8a1   :  { %12283 = vmatmul.mubr.bf16.vlgmr.msra.gmra.mrb[16].mxu1 %v13964_v19  ;;  %v13990_v19 = vld [vmem:[#allocation10 + $0x48] sm:$0xff]  }
 0x8a2   :  { %12286 = vmatprep.mubr.bf16.mxu1 %v13965_v15  ;;  %12319 = vmatpush3.bf16.msra.mxu1 %v13981_v57 }
 0x8a3   :  { %12320 = vmatprep.subr.bf16.mxu1 %v13982_v58 }
 0x8a6   :  { %12321 = vmatpush3.bf16.msra.mxu1 %v13982_v58 }
 0x8a7   :  { %12326 = vmatprep.subr.bf16.mxu1 %v13983_v1 }
 0x8a9   :  { %12287 = vmatmul.mubr.bf16.gmra.mrb[20].mxu1 %v13966_v22 }
 0x8aa   :  { %12290 = vmatprep.mubr.bf16.mxu1 %v13967_v39 }
 0x8b1   :  { %12291 = vmatmul.mubr.bf16.gmra.mrb[24].mxu1 %v13968_v24 }
 0x8b2   :  { %12294 = vmatprep.mubr.bf16.mxu1 %v13969_v26 }
 0x8b9   :  { %12295 = vmatmul.mubr.bf16.gmra.mrb[28].mxu1 %v13970_v18  ;;  %v13991_v18 = vld [vmem:[#allocation10 + $0x50] sm:$0xff]  }
 0x8ba   :  { %12298 = vmatprep.mubr.bf16.mxu1 %v13971_v31 }
 0x8c1   :  { %12299 = vmatmul.mubr.bf16.gmra.mrb[32].mxu1 %v13972_v59 }
 0x8c2   :  { %12302 = vmatprep.mubr.bf16.mxu1 %v13973_v62 }
 0x8c9   :  { %12303 = vmatmul.mubr.bf16.gmra.mrb[36].mxu1 %v13974_v3 }
 0x8ca   :  { %12306 = vmatprep.mubr.bf16.mxu1 %v13975_v40 }
 0x8d1   :  { %12307 = vmatmul.mubr.bf16.gmra.mrb[40].mxu1 %v13976_v44 }
 0x8d2   :  { %12310 = vmatprep.mubr.bf16.mxu1 %v13977_v47  ;;  %v13992_v47 = vld [vmem:[#allocation10 + $0x58] sm:$0xff]  }
 0x8d9   :  { %12311 = vmatmul.mubr.bf16.gmra.mrb[44].mxu1 %v13978_v50 }
 0x8da   :  { %12314 = vmatprep.mubr.bf16.mxu1 %v13979_v55  ;;  %v13993_v55 = vld [vmem:[#allocation10 + $0x60] sm:$0xff]  }
 0x8e1   :  { %12315 = vmatmul.mubr.bf16.gmra.mrb[48].mxu1 %v13980_v6 }
 0x974   :  { %v12284_v61 = vpop.f32.mrb[16].mxu1 }
 0x975   :  { %v5230_v2 = vpop.f32.mrb[17].mxu1 }
 0x976   :  { %v12285_v29 = vpop.f32.mrb[18].mxu1 }
 0x977   :  { %v5374_v9 = vpack.c.bf16 %v12285_v29, %v12284_v61  ;;  %v5233_v5 = vpop.f32.mrb[19].mxu1  ;;  %v13994_v29 = vld [vmem:[#allocation10 + $0x68] sm:$0xff]  }
 0x978   :  { %v5373_v8 = vpack.c.bf16 %v5233_v5, %v5230_v2  ;;  %v13996_v5 = vld [vmem:[#allocation10 + $0x78] sm:$0xff]  }
 0x97c   :  { %v12288_v12 = vpop.f32.mrb[20].mxu1 }
 0x97d   :  { %v5246_v13 = vpop.f32.mrb[21].mxu1 }
 0x97e   :  { %v12289_v4 = vpop.f32.mrb[22].mxu1 }
 0x97f   :  { %v5380_v36 = vpack.c.bf16 %v12289_v4, %v12288_v12  ;;  %v5249_v14 = vpop.f32.mrb[23].mxu1  ;;  %v13998_v12 = vld [vmem:[#allocation10 + $0x88] sm:$0xff]  }
 0x980   :  { %v5379_v17 = vpack.c.bf16 %v5249_v14, %v5246_v13  ;;  %v14805_v13 = vmov 0.0  }
 0x982   :  { %12322 = vmatprep.mubr.msk.bf16.mxu1 %vm4854_vm2, %v5379_v17 }
 0x983   :  { %12323 = vmatmul.mubr.msk.bf16.vlgmr.msra.gmra.mrb[52].mxu1 %vm4854_vm2, %v5380_v36 }
 0x984   :  { %12330 = vmatprep.mubr.msk.bf16.mxu1 %vm4854_vm2, %v5373_v8  ;;  %12327 = vmatpush3.bf16.msra.mxu1 %v13983_v1  ;;  %v12292_v48 = vpop.f32.mrb[24].mxu1  ;;  %v13997_v8 = vld [vmem:[#allocation10 + $0x80] sm:$0xff]  }
 0x985   :  { %12328 = vmatprep.subr.bf16.mxu1 %v13984_v20  ;;  %v5262_v21 = vpop.f32.mrb[25].mxu1 }
 0x986   :  { %v12293_v11 = vpop.f32.mrb[26].mxu1 }
 0x987   :  { %v5521_v51 = vpack.c.bf16 %v12293_v11, %v12292_v48  ;;  %v5265_v45 = vpop.f32.mrb[27].mxu1 }
 0x988   :  { %12329 = vmatpush3.bf16.msra.mxu1 %v13984_v20  ;;  %v5520_v7 = vpack.c.bf16 %v5265_v45, %v5262_v21 }
 0x989   :  { %12334 = vmatprep.subr.bf16.mxu1 %v13985_v23 }
 0x98c   :  { %v12296_v25 = vpop.f32.mrb[28].mxu1 }
 0x98d   :  { %v5278_v27 = vpop.f32.mrb[29].mxu1 }
 0x98e   :  { %v12297_v10 = vpop.f32.mrb[30].mxu1 }
 0x98f   :  { %12331 = vmatmul.mubr.msk.bf16.vlgmr.msra.gmra.mrb[52].mxu1 %vm4854_vm2, %v5374_v9  ;;  %v5599_v33 = vpack.c.bf16 %v12297_v10, %v12296_v25  ;;  %v5281_v32 = vpop.f32.mrb[31].mxu1  ;;  %v13995_v9 = vld [vmem:[#allocation10 + $0x70] sm:$0xff]  }
 0x990   :  { %12335 = vmatpush3.bf16.msra.mxu1 %v13985_v23  ;;  %12338 = vmatprep.mubr.msk.bf16.mxu1 %vm4854_vm2, %v5520_v7  ;;  %v5598_v54 = vpack.c.bf16 %v5281_v32, %v5278_v27 }
 0x991   :  { %12336 = vmatprep.subr.bf16.mxu1 %v13986_v16 }
 0x994   :  { %12337 = vmatpush3.bf16.msra.mxu1 %v13986_v16  ;;  %v12300_v53 = vpop.f32.mrb[32].mxu1 }
 0x995   :  { %12342 = vmatprep.subr.bf16.mxu1 %v13987_v41  ;;  %v5294_v49 = vpop.f32.mrb[33].mxu1 }
 0x996   :  { %v12301_v60 = vpop.f32.mrb[34].mxu1 }
 0x997   :  { %v5677_v30 = vpack.c.bf16 %v12301_v60, %v12300_v53  ;;  %v5297_v34 = vpop.f32.mrb[35].mxu1 }
 0x998   :  { %v5676_v63 = vpack.c.bf16 %v5297_v34, %v5294_v49 }
 0x99b   :  { %12339 = vmatmul.mubr.msk.bf16.vlgmr.msra.gmra.mrb[52].mxu1 %vm4854_vm2, %v5521_v51 }
 0x99c   :  { %12343 = vmatpush3.bf16.msra.mxu1 %v13987_v41  ;;  %12346 = vmatprep.mubr.msk.bf16.mxu1 %vm4854_vm2, %v5598_v54  ;;  %v12304_v37 = vpop.f32.mrb[36].mxu1 }
 0x99d   :  { %12344 = vmatprep.subr.bf16.mxu1 %v13988_v38  ;;  %v5310_v46 = vpop.f32.mrb[37].mxu1 }
 0x99e   :  { %v12305_v28 = vpop.f32.mrb[38].mxu1 }
 0x99f   :  { %v5755_v42 = vpack.c.bf16 %v12305_v28, %v12304_v37  ;;  %v5313_v52 = vpop.f32.mrb[39].mxu1 }
 0x9a0   :  { %12345 = vmatpush3.bf16.msra.mxu1 %v13988_v38  ;;  %v5754_v43 = vpack.c.bf16 %v5313_v52, %v5310_v46 }
 0x9a1   :  { %12350 = vmatprep.subr.bf16.mxu1 %v13989_v56 }
 0x9a4   :  { %v12308_v57 = vpop.f32.mrb[40].mxu1 }
 0x9a5   :  { %v5326_v15 = vpop.f32.mrb[41].mxu1 }
 0x9a6   :  { %v12309_v22 = vpop.f32.mrb[42].mxu1 }
 0x9a7   :  { %12347 = vmatmul.mubr.msk.bf16.vlgmr.msra.gmra.mrb[52].mxu1 %vm4854_vm2, %v5599_v33  ;;  %v5833_v39 = vpack.c.bf16 %v12309_v22, %v12308_v57  ;;  %v5329_v24 = vpop.f32.mrb[43].mxu1 }
 0x9a8   :  { %12351 = vmatpush3.bf16.msra.mxu1 %v13989_v56  ;;  %12354 = vmatprep.mubr.msk.bf16.mxu1 %vm4854_vm2, %v5676_v63  ;;  %v5832_v26 = vpack.c.bf16 %v5329_v24, %v5326_v15 }
 0x9a9   :  { %12352 = vmatprep.subr.bf16.mxu1 %v13990_v19 }
 0x9ac   :  { %12353 = vmatpush3.bf16.msra.mxu1 %v13990_v19  ;;  %v12312_v31 = vpop.f32.mrb[44].mxu1 }
 0x9ad   :  { %12358 = vmatprep.subr.bf16.mxu1 %v13991_v18  ;;  %v5342_v59 = vpop.f32.mrb[45].mxu1 }
 0x9ae   :  { %v12313_v62 = vpop.f32.mrb[46].mxu1 }
 0x9af   :  { %v5911_v3 = vpack.c.bf16 %v12313_v62, %v12312_v31  ;;  %v5345_v40 = vpop.f32.mrb[47].mxu1 }
 0x9b0   :  { %v5910_v44 = vpack.c.bf16 %v5345_v40, %v5342_v59 }
 0x9b3   :  { %12355 = vmatmul.mubr.msk.bf16.vlgmr.msra.gmra.mrb[52].mxu1 %vm4854_vm2, %v5677_v30 }
 0x9b4   :  { %12359 = vmatpush3.bf16.msra.mxu1 %v13991_v18  ;;  %12362 = vmatprep.mubr.msk.bf16.mxu1 %vm4854_vm2, %v5754_v43  ;;  %v12316_v50 = vpop.f32.mrb[48].mxu1  ;;  %v6103_v18 = vld [vmem:[#allocation12] sm:$0x1] }
 0x9b5   :  { %12360 = vmatprep.subr.bf16.mxu1 %v13992_v47  ;;  %v5358_v6 = vpop.f32.mrb[49].mxu1 }
 0x9b6   :  { %v12317_v58 = vpop.f32.mrb[50].mxu1 }
 0x9b7   :  { %v5989_v1 = vpack.c.bf16 %v12317_v58, %v12316_v50  ;;  %v5361_v61 = vpop.f32.mrb[51].mxu1 }
 0x9b8   :  { %12361 = vmatpush3.bf16.msra.mxu1 %v13992_v47  ;;  %v5988_v2 = vpack.c.bf16 %v5361_v61, %v5358_v6 }
 0x9b9   :  { %12366 = vmatprep.subr.bf16.mxu1 %v13993_v55 }
 0x9bf   :  { %12363 = vmatmul.mubr.msk.bf16.vlgmr.msra.gmra.mrb[52].mxu1 %vm4854_vm2, %v5755_v42 }
 0x9c0   :  { %12367 = vmatpush3.bf16.msra.mxu1 %v13993_v55  ;;  %12370 = vmatprep.mubr.msk.bf16.mxu1 %vm4854_vm2, %v5832_v26 }
 0x9c1   :  { %12368 = vmatprep.subr.bf16.mxu1 %v13994_v29 }
 0x9c4   :  { %12369 = vmatpush3.bf16.msra.mxu1 %v13994_v29 }
 0x9c5   :  { %12374 = vmatprep.subr.bf16.mxu1 %v13995_v9 }
 0x9cb   :  { %12371 = vmatmul.mubr.msk.bf16.vlgmr.msra.gmra.mrb[52].mxu1 %vm4854_vm2, %v5833_v39 }
 0x9cc   :  { %12375 = vmatpush3.bf16.msra.mxu1 %v13995_v9  ;;  %12378 = vmatprep.mubr.msk.bf16.mxu1 %vm4854_vm2, %v5910_v44 }
 0x9cd   :  { %12376 = vmatprep.subr.bf16.mxu1 %v13996_v5 }
 0x9d0   :  { %12377 = vmatpush3.bf16.msra.mxu1 %v13996_v5 }
 0x9d1   :  { %12382 = vmatprep.subr.bf16.mxu1 %v13997_v8 }
 0x9d7   :  { %12379 = vmatmul.mubr.msk.bf16.vlgmr.msra.gmra.mrb[52].mxu1 %vm4854_vm2, %v5911_v3  ;;  %v11360_v3 = vld [vmem:[#allocation13] ss:$0 sm:$0xff] }
 0x9d8   :  { %12383 = vmatpush3.bf16.msra.mxu1 %v13997_v8  ;;  %12386 = vmatprep.mubr.msk.bf16.mxu1 %vm4854_vm2, %v5988_v2 }
 0x9d9   :  { %12384 = vmatprep.subr.bf16.mxu1 %v13998_v12 }
 0x9dc   :  { %12385 = vmatpush3.bf16.msra.mxu1 %v13998_v12 }
 0x9dd   :  { %12390 = vmatprep.subr.bf16.mxu1 %v14805_v13 }
 0x9e3   :  { %12387 = vmatmul.mubr.msk.bf16.vlgmr.msra.gmra.mrb[52].mxu1 %vm4854_vm2, %v5989_v1 }
 0x9e4   :  { %12394 = vmatprep.mubr.msk.bf16.mxu1 %vm14806_vm3, %v14805_v13 }
 0xab6   :  { %v12388_v4 = vpop.f32.mrb[52].mxu1 }
 0xab7   :  { %v6047_v36 = vpop.f32.mrb[53].mxu1  ;;  %v6070_v23 = vsel %vm6066_vm4, %v12388_v4, 0.0 }
 0xab8   :  { %v12389_v14 = vpop.f32.mrb[54].mxu1  ;;  %v6067_v20 = vsel %vm6066_vm4, %v6047_v36, 0.0 }
 0xab9   :  { %v6050_v17 = vpop.f32.mrb[55].mxu1  ;;  %v6072_v51 = vsel %vm6066_vm4, %v12389_v14, 0.0 }
 0xaba   :  { %v6068_v48 = vsel %vm6066_vm4, %v6050_v17, 0.0 }
 0xabb   :  { %v6069_v21 = vadd.f32 %v6068_v48, %v6067_v20  ;;  %v14004_v20 = vld [vmem:[#allocation15 + $0x20] sm:$0xff]   ;;  %v14005_v48 = vld [vmem:[#allocation15 + $0x28] sm:$0xff]  }
 0xabd   :  { %v6071_v11 = vadd.f32 %v6070_v23, %v6069_v21  ;;  %v14000_v21 = vld [vmem:[%s16454_s15 + $0x8] sm:$0xff]   ;;  %v14006_v23 = vld [vmem:[#allocation15 + $0x30] sm:$0xff]  }
 0xabf   :  { %v6073_v45 = vadd.f32 %v6072_v51, %v6071_v11  ;;  %v14001_v11 = vld [vmem:[%s16454_s15 + $0x10] sm:$0xff]   ;;  %v14002_v51 = vld [vmem:[%s16454_s15 + $0x18] sm:$0xff]  }
 0xac1   :  { %v6074_v7 = vrot.slane %v6073_v45, 4 }
 0xac3   :  { %v6075_v25 = vadd.f32 %v6074_v7, %v6073_v45  ;;  %v14003_v45 = vld [vmem:[%s16454_s15 + $0x20] ss:$0 sps:$4 sm:$0xff]   ;;  %v14007_v7 = vld [vmem:[#allocation15 + $0x38] sm:$0xff]  }
 0xac5   :  { %v6076_v16 = vrot.slane %v6075_v25, 2 }
 0xac7   :  { %v6077_v27 = vadd.f32 %v6076_v16, %v6075_v25 }
 0xac9   :  { %v6078_v10 = vrot.slane %v6077_v27, 1 }
 0xacb   :  { %v6079_v33 = vadd.f32 %v6078_v10, %v6077_v27  ;;  %v14008_v10 = vld [vmem:[#allocation15] sm:$0xff]  }
 0xacd   :  { %v6080_v32 = vmul.f32 0.03125, %v6079_v33 }
 0xacf   :  { %v6081_v54 = vsub.f32 %v6047_v36, %v6080_v32  ;;  %v6082_v41 = vsub.f32 %v6050_v17, %v6080_v32  ;;  %v6083_v53 = vsub.f32 %v12388_v4, %v6080_v32  ;;  %v6084_v49 = vsub.f32 %v12389_v14, %v6080_v32  ;;  %v13999_v17 = vld [vmem:[%s16454_s15] sm:$0xff]  }
 0xad1   :  { %v6085_v60 = vmul.f32 %v6081_v54, %v6081_v54  ;;  %v6086_v30 = vmul.f32 %v6082_v41, %v6082_v41  ;;  %v6087_v34 = vmul.f32 %v6083_v53, %v6083_v53  ;;  %v6088_v63 = vmul.f32 %v6084_v49, %v6084_v49 }
 0xad3   :  { %v6089_v38 = vsel %vm6066_vm4, %v6085_v60, 0.0  ;;  %v6090_v37 = vsel %vm6066_vm4, %v6086_v30, 0.0  ;;  %v6092_v46 = vsel %vm6066_vm4, %v6087_v34, 0.0  ;;  %v6094_v42 = vsel %vm6066_vm4, %v6088_v63, 0.0  ;;  %v14043_v30 = vld [vmem:[#allocation19 + $0x90] ss:$8 sps:$4 sm:$0xff]  }
 0xad4   :  { %v6091_v56 = vadd.f32 %v6090_v37, %v6089_v38  ;;  %v14048_v63 = vld [vmem:[#allocation19 + $0xa4] ss:$8 sps:$4 sm:$0xff]  }
 0xad5   :  { %v14010_v38 = vld [vmem:[#allocation15 + $0x10] sm:$0xff]  }
 0xad6   :  { %v6093_v28 = vadd.f32 %v6092_v46, %v6091_v56  ;;  %v14046_v46 = vld [vmem:[#allocation19 + $0xa0] ss:$8 sps:$4 sm:$0xff]  }
 0xad8   :  { %v6095_v52 = vadd.f32 %v6094_v42, %v6093_v28  ;;  %v14011_v28 = vld [vmem:[#allocation15 + $0x18] sm:$0xff]  }
 0xada   :  { %v6096_v43 = vrot.slane %v6095_v52, 4 }
 0xadc   :  { %v6097_v57 = vadd.f32 %v6096_v43, %v6095_v52  ;;  %v14012_v43 = vld [vmem:[#allocation15 + $0x40] sm:$0xff]  }
 0xade   :  { %v6098_v19 = vrot.slane %v6097_v57, 2 }
 0xae0   :  { %v6099_v15 = vadd.f32 %v6098_v19, %v6097_v57 }
 0xae2   :  { %v6100_v22 = vrot.slane %v6099_v15, 1 }
 0xae4   :  { %v6101_v39 = vadd.f32 %v6100_v22, %v6099_v15  ;;  %v14013_v22 = vld [vmem:[#allocation15 + $0x48] sm:$0xff]  }
 0xae6   :  { %v6102_v24 = vmul.f32 0.03125, %v6101_v39 }
 0xae8   :  { %v6104_v26 = vadd.f32 1e-05, %v6102_v24 }
 0xaea   :  { %14244 = vrsqrt.f32 %v6104_v26  ;;  %v14014_v26 = vld [vmem:[#allocation15 + $0x50] sm:$0xff]  }
 0xaf4   :  { %v14245_v31 = vpop.eup %14244 }
 0xaf5   :  { %v6106_v59 = vmul.f32 %v14245_v31, %v6103_v18 }
 0xaf7   :  { %v6111_v62 = vrot.slane %v6106_v59, %v15681_v35  ;;  %v14015_v59 = vld [vmem:[#allocation15 + $0x58] sm:$0xff]  }
 0xaf9   :  { %v6114_v40 = vmul.f32 %v6111_v62, %v6082_v41  ;;  %v6113_v44 = vmul.f32 %v6111_v62, %v6081_v54  ;;  %v6115_v47 = vmul.f32 %v6111_v62, %v6083_v53  ;;  %v6116_v50 = vmul.f32 %v6111_v62, %v6084_v49  ;;  %v14040_v54 = vld [vmem:[#allocation19 + $0x80] ss:$8 sps:$4 sm:$0xff]   ;;  %v14042_v41 = vld [vmem:[#allocation19 + $0x84] ss:$8 sps:$4 sm:$0xff]   ;;  %v14045_v49 = vld [vmem:[#allocation19 + $0x94] ss:$8 sps:$4 sm:$0xff]  }
 0xafa   :  { %v14009_v53 = vld [vmem:[#allocation15 + $0x8] sm:$0xff]   ;;  %7181 = vmatprep.subr.bf16.mxu0 %v14042_v41  ;;  %v14051_v41 = vld [vmem:[#allocation19 + $0xb4] ss:$8 sps:$4 sm:$0xff]  }
 0xafb   :  { %v6125_v55 = vadd.f32 %v11360_v3, %v6114_v40  ;;  %v6124_v6 = vadd.f32 %v11360_v3, %v6113_v44  ;;  %v6126_v58 = vadd.f32 %v11360_v3, %v6115_v47  ;;  %v6127_v1 = vadd.f32 %v11360_v3, %v6116_v50  ;;  %7182 = vmatpush1.bf16.msra.mxu0 %v14040_v54  ;;  %v14016_v44 = vld [vmem:[#allocation15 + $0x60] sm:$0xff]   ;;  %v14049_v54 = vld [vmem:[#allocation19 + $0xb0] ss:$8 sps:$4 sm:$0xff]  }
 0xafc   :  { %7183 = vmatprep.subr.bf16.mxu0 %v14045_v49  ;;  %v14054_v49 = vld [vmem:[#allocation19 + $0xc0] ss:$8 sps:$4 sm:$0xff]  }
 0xafd   :  { %v6129_v61 = vmul.f32 0.01, %v6125_v55  ;;  %v6128_v2 = vmul.f32 0.01, %v6124_v6  ;;  %v6130_v29 = vmul.f32 0.01, %v6126_v58 }
 0xafe   :  { %v6131_v9 = vmul.f32 0.01, %v6127_v1 }
 0xaff   :  { %v6133_v5 = vmax.f32 %v6125_v55, %v6129_v61  ;;  %v6132_v8 = vmax.f32 %v6124_v6, %v6128_v2  ;;  %v6134_v12 = vmax.f32 %v6126_v58, %v6130_v29  ;;  %7184 = vmatpush1.bf16.msra.mxu0 %v14043_v30  ;;  %v14017_v55 = vld [vmem:[#allocation15 + $0x68] sm:$0xff]   ;;  %v14018_v6 = vld [vmem:[#allocation15 + $0x70] sm:$0xff]   ;;  %v14019_v58 = vld [vmem:[#allocation15 + $0x78] sm:$0xff]  }
 0xb00   :  { %v6135_v4 = vmax.f32 %v6127_v1, %v6131_v9  ;;  %7185 = vmatprep.subr.bf16.mxu0 %v14048_v63  ;;  %v14020_v1 = vld [vmem:[#allocation15 + $0x80] sm:$0xff]   ;;  %v14021_v2 = vld [vmem:[#allocation15 + $0x88] sm:$0xff]   ;;  %v14022_v29 = vld [vmem:[#allocation15 + $0x90] sm:$0xff]  }
 0xb01   :  { %v6136_v36 = vpack.c.bf16 %v6133_v5, %v6132_v8  ;;  %v14023_v9 = vld [vmem:[#allocation15 + $0x98] sm:$0xff]   ;;  %v14024_v8 = vld [vmem:[#allocation15 + $0xa0] sm:$0xff]  }
 0xb02   :  { %v6137_v14 = vpack.c.bf16 %v6135_v4, %v6134_v12  ;;  %v14025_v12 = vld [vmem:[#allocation15 + $0xa8] sm:$0xff]   ;;  %v14026_v4 = vld [vmem:[#allocation15 + $0xb0] sm:$0xff]   ;;  %v14059_v30 = vld [vmem:[#allocation19 + $0xd4] ss:$8 sps:$4 sm:$0xff]  }
 0xb03   :  { %12391 = vmatpush3.bf16.msra.mxu1 %v6136_v36  ;;  %7186 = vmatpush1.bf16.msra.mxu0 %v14046_v46  ;;  %v14027_v36 = vld [vmem:[#allocation15 + $0xb8] sm:$0xff]   ;;  %v14060_v63 = vld [vmem:[#allocation19 + $0xe0] ss:$8 sps:$4 sm:$0xff]  }
 0xb04   :  { %12392 = vmatprep.subr.bf16.mxu1 %v14805_v13  ;;  %7187 = vmatprep.subr.bf16.mxu0 %v14051_v41  ;;  %v14090_v41 = vld [vmem:[#allocation19 + $0x100] ss:$8 sps:$4 sm:$0xff]  }
 0xb07   :  { %12393 = vmatpush3.bf16.msra.mxu1 %v6137_v14  ;;  %v14028_v14 = vld [vmem:[#allocation15 + $0xc0] sm:$0xff]   ;;  %7188 = vmatpush1.bf16.msra.mxu0 %v14049_v54 }
 0xb08   :  { %12414 = vmatprep.subr.bf16.mxu1 %v14805_v13 }
 0xb0a   :  { %12395 = vmatmul.mubr.msk.bf16.vlgmr.msra.gmra.mrb[56].mxu1 %vm4854_vm2, %v13999_v17 }
 0xb0b   :  { %12398 = vmatprep.mubr.msk.bf16.mxu1 %vm14806_vm3, %v14805_v13  ;;  %12415 = vmatpush3.bf16.msra.mxu1 %v14004_v20  ;;  %v14029_v20 = vld [vmem:[#allocation15 + $0xc8] sm:$0xff]  }
 0xb0c   :  { %12416 = vmatprep.subr.bf16.mxu1 %v14805_v13 }
 0xb0f   :  { %12417 = vmatpush3.bf16.msra.mxu1 %v14005_v48  ;;  %v14030_v48 = vld [vmem:[#allocation15 + $0xd0] sm:$0xff]  }
 0xb10   :  { %12418 = vmatprep.subr.bf16.mxu1 %v14805_v13 }
 0xb12   :  { %12399 = vmatmul.mubr.msk.bf16.gmra.mrb[60].mxu1 %vm4854_vm2, %v14000_v21  ;;  %v14031_v21 = vld [vmem:[#allocation15 + $0xd8] sm:$0xff]  }
 0xb13   :  { %12402 = vmatprep.mubr.msk.bf16.mxu1 %vm14806_vm3, %v14805_v13  ;;  %12419 = vmatpush3.bf16.msra.mxu1 %v14006_v23 }
 0xb14   :  { %12420 = vmatprep.subr.bf16.mxu1 %v14805_v13 }
 0xb17   :  { %12421 = vmatpush3.bf16.msra.mxu1 %v14007_v7  ;;  %v14035_v7 = vld [vmem:[#allocation15 + $0xf8] sm:$0xff]  }
 0xb18   :  { %12426 = vmatprep.subr.bf16.mxu1 %v14805_v13 }
 0xb1a   :  { %12403 = vmatmul.mubr.msk.bf16.gmra.mrb[64].mxu1 %vm4854_vm2, %v14001_v11  ;;  %v14032_v11 = vld [vmem:[#allocation15 + $0xe0] sm:$0xff]  }
 0xb1b   :  { %12406 = vmatprep.mubr.msk.bf16.mxu1 %vm14806_vm3, %v14805_v13 }
 0xb22   :  { %12407 = vmatmul.mubr.msk.bf16.gmra.mrb[68].mxu1 %vm4854_vm2, %v14002_v51  ;;  %v14033_v51 = vld [vmem:[#allocation15 + $0xe8] sm:$0xff]  }
 0xb23   :  { %12410 = vmatprep.mubr.msk.bf16.mxu1 %vm14806_vm3, %v14805_v13 }
 0xb2a   :  { %12411 = vmatmul.mubr.msk.bf16.gmra.mrb[72].mxu1 %vm4854_vm2, %v14003_v45  ;;  %v14034_v45 = vld [vmem:[#allocation15 + $0xf0] sm:$0xff]  }
 0xb2b   :  { %12422 = vmatprep.mubr.msk.bf16.mxu1 %vm14806_vm3, %v14805_v13 }
 0xbdd   :  { %v6219_v25 = vpop.f32.mrb[56].mxu1 }
 0xbde   :  { %v12396_v16 = vpop.f32.mrb[57].mxu1  ;;  %v6257_v19 = vpack.c.bf16 %v6219_v25, %v6219_v25  ;;  %v14036_v25 = vld [vmem:[#allocation15 + $0x100] sm:$0xff]  }
 0xbdf   :  { %v6222_v27 = vpop.f32.mrb[58].mxu1 }
 0xbe0   :  { %v6266_v33 = vpack.c.bf16 %v6222_v27, %v6222_v27  ;;  %v12397_v32 = vpop.f32.mrb[59].mxu1  ;;  %v14037_v27 = vld [vmem:[#allocation15 + $0x108] sm:$0xff]  }
 0xbe2   :  { %12423 = vmatmul.mubr.msk.bf16.vlgmr.msra.gmra.mrb[76].mxu1 %vm6066_vm4, %v6266_v33  ;;  %v14039_v33 = vld [vmem:[#allocation15 + $0x118] sm:$0xff]  }
 0xbe3   :  { %12427 = vmatpush3.bf16.msra.mxu1 %v14008_v10  ;;  %12434 = vmatprep.mubr.msk.bf16.mxu1 %vm14806_vm3, %v14805_v13  ;;  %v14038_v10 = vld [vmem:[#allocation15 + $0x110] sm:$0xff]  }
 0xbe4   :  { %12428 = vmatprep.subr.bf16.mxu1 %v14805_v13 }
 0xbe5   :  { %v6227_v60 = vpop.f32.mrb[60].mxu1 }
 0xbe6   :  { %v12400_v34 = vpop.f32.mrb[61].mxu1  ;;  %v6410_v3 = vpack.c.bf16 %v6227_v60, %v6227_v60  ;;  %v14056_v60 = vld [vmem:[#allocation19 + $0xc4] ss:$8 sps:$4 sm:$0xff]  }
 0xbe7   :  { %12429 = vmatpush3.bf16.msra.mxu1 %v14009_v53  ;;  %v6230_v37 = vpop.f32.mrb[62].mxu1  ;;  %v14052_v53 = vld [vmem:[%s16402_s13] sm:$0xff]   ;;  %7189 = vmatprep.subr.bf16.mxu0 %v14056_v60  ;;  %v14062_v34 = vld [vmem:[#allocation19 + $0xe4] ss:$8 sps:$4 sm:$0xff]  }
 0xbe8   :  { %12430 = vmatprep.subr.bf16.mxu1 %v14805_v13  ;;  %v12401_v56 = vpop.f32.mrb[63].mxu1  ;;  %v6488_v61 = vpack.c.bf16 %v6230_v37, %v6230_v37  ;;  %7190 = vmatpush1.bf16.msra.mxu0 %v14054_v49  ;;  %v14095_v60 = vld [vmem:[#allocation19 + $0x114] ss:$8 sps:$4 sm:$0xff]  }
 0xbe9   :  { %7191 = vmatprep.subr.bf16.mxu0 %v14059_v30 }
 0xbeb   :  { %12431 = vmatpush3.bf16.msra.mxu1 %v14010_v38 }
 0xbec   :  { %12432 = vmatprep.subr.bf16.mxu1 %v14805_v13 }
 0xbed   :  { %v15794_v42 = vpop.f32.mrb[64].mxu1 }
 0xbee   :  { %v12404_v52 = vpop.f32.mrb[65].mxu1  ;;  %v6566_v5 = vpack.c.bf16 %v15794_v42, %v15794_v42 }
 0xbef   :  { %12433 = vmatpush3.bf16.msra.mxu1 %v14011_v28  ;;  %v15796_v57 = vpop.f32.mrb[66].mxu1 }
 0xbf0   :  { %12438 = vmatprep.subr.bf16.mxu1 %v14805_v13  ;;  %v12405_v15 = vpop.f32.mrb[67].mxu1  ;;  %v6644_v17 = vpack.c.bf16 %v15796_v57, %v15796_v57 }
 0xbf2   :  { %12435 = vmatmul.mubr.msk.bf16.vlgmr.msra.gmra.mrb[76].mxu1 %vm6066_vm4, %v6257_v19 }
 0xbf3   :  { %12439 = vmatpush3.bf16.msra.mxu1 %v14012_v43  ;;  %12446 = vmatprep.mubr.msk.bf16.mxu1 %vm14806_vm3, %v14805_v13 }
 0xbf4   :  { %12440 = vmatprep.subr.bf16.mxu1 %v14805_v13 }
 0xbf5   :  { %v15803_v39 = vpop.f32.mrb[68].mxu1 }
 0xbf6   :  { %v12408_v24 = vpop.f32.mrb[69].mxu1  ;;  %v6722_v23 = vpack.c.bf16 %v15803_v39, %v15803_v39 }
 0xbf7   :  { %12441 = vmatpush3.bf16.msra.mxu1 %v14013_v22  ;;  %v15805_v18 = vpop.f32.mrb[70].mxu1 }
 0xbf8   :  { %12442 = vmatprep.subr.bf16.mxu1 %v14805_v13  ;;  %v12409_v31 = vpop.f32.mrb[71].mxu1  ;;  %v6800_v16 = vpack.c.bf16 %v15805_v18, %v15805_v18 }
 0xbfb   :  { %12443 = vmatpush3.bf16.msra.mxu1 %v14014_v26 }
 0xbfc   :  { %12444 = vmatprep.subr.bf16.mxu1 %v14805_v13 }
 0xbfd   :  { %v15809_v62 = vpop.f32.mrb[72].mxu1 }
 0xbfe   :  { %v12412_v40 = vpop.f32.mrb[73].mxu1  ;;  %v6878_v32 = vpack.c.bf16 %v15809_v62, %v15809_v62 }
 0xbff   :  { %12445 = vmatpush3.bf16.msra.mxu1 %v14015_v59  ;;  %v6254_v47 = vpop.f32.mrb[74].mxu1 }
 0xc00   :  { %12450 = vmatprep.subr.bf16.mxu1 %v14805_v13  ;;  %v12413_v50 = vpop.f32.mrb[75].mxu1 }
 0xc02   :  { %12447 = vmatmul.mubr.msk.bf16.vlgmr.msra.gmra.mrb[76].mxu1 %vm6066_vm4, %v6410_v3 }
 0xc03   :  { %12451 = vmatpush3.bf16.msra.mxu1 %v14016_v44  ;;  %12458 = vmatprep.mubr.msk.bf16.mxu1 %vm14806_vm3, %v14805_v13  ;;  %v6972_v44 = vld [vmem:[#allocation16] sm:$0x1] }
 0xc04   :  { %12452 = vmatprep.subr.bf16.mxu1 %v14805_v13 }
 0xc07   :  { %12453 = vmatpush3.bf16.msra.mxu1 %v14017_v55 }
 0xc08   :  { %12454 = vmatprep.subr.bf16.mxu1 %v14805_v13 }
 0xc0b   :  { %12455 = vmatpush3.bf16.msra.mxu1 %v14018_v6  ;;  %v11416_v6 = vld [vmem:[#allocation18] ss:$0 sm:$0xff] }
 0xc0c   :  { %12456 = vmatprep.subr.bf16.mxu1 %v14805_v13 }
 0xc0f   :  { %12457 = vmatpush3.bf16.msra.mxu1 %v14019_v58 }
 0xc10   :  { %12462 = vmatprep.subr.bf16.mxu1 %v14805_v13 }
 0xc12   :  { %12459 = vmatmul.mubr.msk.bf16.vlgmr.msra.gmra.mrb[76].mxu1 %vm6066_vm4, %v6488_v61 }
 0xc13   :  { %12463 = vmatpush3.bf16.msra.mxu1 %v14020_v1  ;;  %12470 = vmatprep.mubr.msk.bf16.mxu1 %vm14806_vm3, %v14805_v13 }
 0xc14   :  { %12464 = vmatprep.subr.bf16.mxu1 %v14805_v13 }
 0xc17   :  { %12465 = vmatpush3.bf16.msra.mxu1 %v14021_v2 }
 0xc18   :  { %12466 = vmatprep.subr.bf16.mxu1 %v14805_v13 }
 0xc1b   :  { %12467 = vmatpush3.bf16.msra.mxu1 %v14022_v29 }
 0xc1c   :  { %12468 = vmatprep.subr.bf16.mxu1 %v14805_v13 }
 0xc1f   :  { %12469 = vmatpush3.bf16.msra.mxu1 %v14023_v9  ;;  %v14065_v9 = vld [vmem:[#allocation19 + $0x4] ss:$8 sps:$4 sm:$0xff]  }
 0xc20   :  { %12474 = vmatprep.subr.bf16.mxu1 %v14805_v13 }
 0xc22   :  { %12471 = vmatmul.mubr.msk.bf16.vlgmr.msra.gmra.mrb[76].mxu1 %vm6066_vm4, %v6566_v5 }
 0xc23   :  { %12475 = vmatpush3.bf16.msra.mxu1 %v14024_v8  ;;  %12482 = vmatprep.mubr.msk.bf16.mxu1 %vm14806_vm3, %v14805_v13  ;;  %v14053_v8 = vld [vmem:[%s16402_s13 + $0x8] sm:$0xff]  }
 0xc24   :  { %12476 = vmatprep.subr.bf16.mxu1 %v14805_v13 }
 0xc27   :  { %12477 = vmatpush3.bf16.msra.mxu1 %v14025_v12  ;;  %v14063_v12 = vld [vmem:[#allocation19] ss:$8 sps:$4 sm:$0xff]  }
 0xc28   :  { %12478 = vmatprep.subr.bf16.mxu1 %v14805_v13 }
 0xc2b   :  { %12479 = vmatpush3.bf16.msra.mxu1 %v14026_v4  ;;  %v14068_v4 = vld [vmem:[#allocation19 + $0x14] ss:$8 sps:$4 sm:$0xff]  }
 0xc2c   :  { %12480 = vmatprep.subr.bf16.mxu1 %v14805_v13 }
 0xc2f   :  { %12481 = vmatpush3.bf16.msra.mxu1 %v14027_v36  ;;  %v14066_v36 = vld [vmem:[#allocation19 + $0x10] ss:$8 sps:$4 sm:$0xff]  }
 0xc30   :  { %12486 = vmatprep.subr.bf16.mxu1 %v14805_v13 }
 0xc32   :  { %12483 = vmatmul.mubr.msk.bf16.vlgmr.msra.gmra.mrb[76].mxu1 %vm6066_vm4, %v6644_v17  ;;  %v14069_v17 = vld [vmem:[#allocation19 + $0x20] ss:$8 sps:$4 sm:$0xff]  }
 0xc33   :  { %12487 = vmatpush3.bf16.msra.mxu1 %v14028_v14  ;;  %12494 = vmatprep.mubr.msk.bf16.mxu1 %vm14806_vm3, %v14805_v13  ;;  %v14071_v14 = vld [vmem:[#allocation19 + $0x24] ss:$8 sps:$4 sm:$0xff]  }
 0xc34   :  { %12488 = vmatprep.subr.bf16.mxu1 %v14805_v13 }
 0xc37   :  { %12489 = vmatpush3.bf16.msra.mxu1 %v14029_v20  ;;  %v14074_v20 = vld [vmem:[#allocation19 + $0x34] ss:$8 sps:$4 sm:$0xff]  }
 0xc38   :  { %12490 = vmatprep.subr.bf16.mxu1 %v14805_v13 }
 0xc3b   :  { %12491 = vmatpush3.bf16.msra.mxu1 %v14030_v48  ;;  %v14072_v48 = vld [vmem:[#allocation19 + $0x30] ss:$8 sps:$4 sm:$0xff]  }
 0xc3c   :  { %12492 = vmatprep.subr.bf16.mxu1 %v14805_v13 }
 0xc3f   :  { %12493 = vmatpush3.bf16.msra.mxu1 %v14031_v21  ;;  %v14077_v21 = vld [vmem:[#allocation19 + $0x44] ss:$8 sps:$4 sm:$0xff]  }
 0xc40   :  { %12498 = vmatprep.subr.bf16.mxu1 %v14805_v13 }
 0xc42   :  { %12495 = vmatmul.mubr.msk.bf16.vlgmr.msra.gmra.mrb[76].mxu1 %vm6066_vm4, %v6722_v23  ;;  %v14075_v23 = vld [vmem:[#allocation19 + $0x40] ss:$8 sps:$4 sm:$0xff]  }
 0xc43   :  { %12499 = vmatpush3.bf16.msra.mxu1 %v14032_v11  ;;  %12506 = vmatprep.mubr.msk.bf16.mxu1 %vm14806_vm3, %v14805_v13  ;;  %v14080_v11 = vld [vmem:[#allocation19 + $0x54] ss:$8 sps:$4 sm:$0xff]  }
 0xc44   :  { %12500 = vmatprep.subr.bf16.mxu1 %v14805_v13 }
 0xc47   :  { %12501 = vmatpush3.bf16.msra.mxu1 %v14033_v51  ;;  %v14078_v51 = vld [vmem:[#allocation19 + $0x50] ss:$8 sps:$4 sm:$0xff]  }
 0xc48   :  { %12502 = vmatprep.subr.bf16.mxu1 %v14805_v13 }
 0xc4b   :  { %12503 = vmatpush3.bf16.msra.mxu1 %v14034_v45  ;;  %v14083_v45 = vld [vmem:[#allocation19 + $0x64] ss:$8 sps:$4 sm:$0xff]  }
 0xc4c   :  { %12504 = vmatprep.subr.bf16.mxu1 %v14805_v13 }
 0xc4f   :  { %12505 = vmatpush3.bf16.msra.mxu1 %v14035_v7  ;;  %v14081_v7 = vld [vmem:[#allocation19 + $0x60] ss:$8 sps:$4 sm:$0xff]  }
 0xc50   :  { %12510 = vmatprep.subr.bf16.mxu1 %v14805_v13 }
 0xc52   :  { %12507 = vmatmul.mubr.msk.bf16.vlgmr.msra.gmra.mrb[76].mxu1 %vm6066_vm4, %v6800_v16  ;;  %v14084_v16 = vld [vmem:[#allocation19 + $0x70] ss:$8 sps:$4 sm:$0xff]  }
 0xc53   :  { %12511 = vmatpush3.bf16.msra.mxu1 %v14036_v25  ;;  %12518 = vmatprep.mubr.msk.bf16.mxu1 %vm14806_vm3, %v14805_v13  ;;  %v14086_v25 = vld [vmem:[#allocation19 + $0x74] ss:$8 sps:$4 sm:$0xff]  }
 0xc54   :  { %12512 = vmatprep.subr.bf16.mxu1 %v14805_v13 }
 0xc57   :  { %12513 = vmatpush3.bf16.msra.mxu1 %v14037_v27  ;;  %v14087_v27 = vld [vmem:[#allocation19 + $0xf0] ss:$8 sps:$4 sm:$0xff]  }
 0xc58   :  { %12514 = vmatprep.subr.bf16.mxu1 %v14805_v13 }
 0xc5b   :  { %12515 = vmatpush3.bf16.msra.mxu1 %v14038_v10  ;;  %v14089_v10 = vld [vmem:[#allocation19 + $0xf4] ss:$8 sps:$4 sm:$0xff]  }
 0xc5c   :  { %12516 = vmatprep.subr.bf16.mxu1 %v14805_v13  ;;  %v14057_v13 = vld [vmem:[#allocation19 + $0xd0] ss:$8 sps:$4 sm:$0xff]  }
 0xc5d   :  { %7192 = vmatpush1.bf16.msra.mxu0 %v14057_v13 }
 0xc5e   :  { %7193 = vmatprep.subr.bf16.mxu0 %v14062_v34  ;;  %v14093_v34 = vld [vmem:[#allocation19 + $0x110] ss:$8 sps:$4 sm:$0xff]  }
 0xc5f   :  { %12517 = vmatpush3.bf16.msra.mxu1 %v14039_v33  ;;  %v14092_v33 = vld [vmem:[#allocation19 + $0x104] ss:$8 sps:$4 sm:$0xff]  }
 0xc61   :  { %7194 = vmatpush1.bf16.msra.mxu0 %v14060_v63  ;;  %v14098_v63 = vld [vmem:[#allocation19 + $0x124] ss:$8 sps:$4 sm:$0xff]  }
 0xc62   :  { %12519 = vmatmul.mubr.msk.bf16.vlgmr.msra.gmra.mrb[76].mxu1 %vm6066_vm4, %v6878_v32  ;;  %7195 = vmatprep.subr.bf16.mxu0 %v14089_v10 }
 0xc63   :  { %12524 = vmatprep.mubr.msk.bf16.mxu1 %vm3554_vm1, %v14052_v53 }
 0xc65   :  { %7196 = vmatpush1.bf16.msra.mxu0 %v14087_v27 }
 0xd35   :  { %v6949_v38 = vpop.f32.mrb[76].mxu1 }
 0xd36   :  { %v6956_v37 = vrot.slane %v6949_v38, 4  ;;  %v12520_v56 = vpop.f32.mrb[77].mxu1 }
 0xd37   :  { %v6952_v46 = vpop.f32.mrb[78].mxu1  ;;  %v14099_v56 = vld [vmem:[#allocation19 + $0x130] ss:$8 sps:$4 sm:$0xff]  }
 0xd38   :  { %v6957_v28 = vadd.f32 %v6956_v37, %v6949_v38  ;;  %v12521_v42 = vpop.f32.mrb[79].mxu1  ;;  %v14101_v37 = vld [vmem:[#allocation19 + $0x134] ss:$8 sps:$4 sm:$0xff]   ;;  %v14104_v46 = vld [vmem:[#allocation19 + $0x144] ss:$8 sps:$4 sm:$0xff]  }
 0xd39   :  { %v14107_v42 = vld [vmem:[#allocation19 + $0x154] ss:$8 sps:$4 sm:$0xff]  }
 0xd3a   :  { %v6958_v52 = vrot.slane %v6957_v28, 2 }
 0xd3c   :  { %v6959_v43 = vadd.f32 %v6958_v52, %v6957_v28  ;;  %v14102_v28 = vld [vmem:[#allocation19 + $0x140] ss:$8 sps:$4 sm:$0xff]   ;;  %v14105_v52 = vld [vmem:[#allocation19 + $0x150] ss:$8 sps:$4 sm:$0xff]  }
 0xd3e   :  { %v6960_v57 = vrot.slane %v6959_v43, 1 }
 0xd40   :  { %v6961_v19 = vadd.f32 %v6960_v57, %v6959_v43  ;;  %v14110_v43 = vld [vmem:[#allocation19 + $0x164] ss:$8 sps:$4 sm:$0xff]   ;;  %v14108_v57 = vld [vmem:[#allocation19 + $0x160] ss:$8 sps:$4 sm:$0xff]  }
 0xd42   :  { %v6962_v15 = vmul.f32 0.125, %v6961_v19  ;;  %v14113_v19 = vld [vmem:[#allocation19 + $0x174] ss:$8 sps:$4 sm:$0xff]  }
 0xd44   :  { %v6963_v22 = vsub.f32 %v6949_v38, %v6962_v15  ;;  %v14096_v38 = vld [vmem:[#allocation19 + $0x120] ss:$8 sps:$4 sm:$0xff]   ;;  %v14111_v15 = vld [vmem:[#allocation19 + $0x170] ss:$8 sps:$4 sm:$0xff]  }
 0xd46   :  { %v6964_v39 = vmul.f32 %v6963_v22, %v6963_v22 }
 0xd48   :  { %v6965_v24 = vrot.slane %v6964_v39, 4 }
 0xd4a   :  { %v6966_v26 = vadd.f32 %v6965_v24, %v6964_v39  ;;  %v14114_v39 = vld [vmem:[#allocation19 + $0x180] ss:$8 sps:$4 sm:$0xff]  }
 0xd4c   :  { %v6967_v18 = vrot.slane %v6966_v26, 2 }
 0xd4e   :  { %v6968_v31 = vadd.f32 %v6967_v18, %v6966_v26  ;;  %v14119_v26 = vld [vmem:[#allocation19 + $0x194] ss:$8 sps:$4 sm:$0xff]   ;;  %v14117_v18 = vld [vmem:[#allocation19 + $0x190] ss:$8 sps:$4 sm:$0xff]  }
 0xd50   :  { %v6969_v59 = vrot.slane %v6968_v31, 1 }
 0xd52   :  { %v6970_v62 = vadd.f32 %v6969_v59, %v6968_v31  ;;  %v14122_v31 = vld [vmem:[#allocation19 + $0x1a4] ss:$8 sps:$4 sm:$0xff]   ;;  %v14120_v59 = vld [vmem:[#allocation19 + $0x1a0] ss:$8 sps:$4 sm:$0xff]  }
 0xd54   :  { %v6971_v3 = vmul.f32 0.125, %v6970_v62  ;;  %v14125_v62 = vld [vmem:[#allocation19 + $0x1b4] ss:$8 sps:$4 sm:$0xff]  }
 0xd56   :  { %v6973_v40 = vadd.f32 1e-05, %v6971_v3  ;;  %v14123_v3 = vld [vmem:[#allocation19 + $0x1b0] ss:$8 sps:$4 sm:$0xff]  }
 0xd58   :  { %14246 = vrsqrt.f32 %v6973_v40  ;;  %v14128_v40 = vld [vmem:[#allocation19 + $0x1c4] ss:$8 sps:$4 sm:$0xff]  }
 0xd62   :  { %v14247_v47 = vpop.eup %14246 }
 0xd63   :  { %v6975_v50 = vmul.f32 %v14247_v47, %v6972_v44  ;;  %v14126_v44 = vld [vmem:[#allocation19 + $0x1c0] ss:$8 sps:$4 sm:$0xff]   ;;  %v14131_v47 = vld [vmem:[#allocation19 + $0x1d4] ss:$8 sps:$4 sm:$0xff]  }
 0xd65   :  { %v6980_v55 = vrot.slane %v6975_v50, %v15681_v35  ;;  %v14129_v50 = vld [vmem:[#allocation19 + $0x1d0] ss:$8 sps:$4 sm:$0xff]  }
 0xd67   :  { %v6982_v58 = vmul.f32 %v6980_v55, %v6963_v22  ;;  %v14116_v22 = vld [vmem:[#allocation19 + $0x184] ss:$8 sps:$4 sm:$0xff]  }
 0xd68   :  { %v14134_v55 = vld [vmem:[#allocation19 + $0x1e4] ss:$8 sps:$4 sm:$0xff]  }
 0xd69   :  { %v6990_v1 = vadd.f32 %v11416_v6, %v6982_v58  ;;  %v14137_v6 = vld [vmem:[#allocation19 + $0x1f4] ss:$8 sps:$4 sm:$0xff]   ;;  %v14135_v58 = vld [vmem:[#allocation19 + $0x1f0] ss:$8 sps:$4 sm:$0xff]  }
 0xd6b   :  { %v6991_v61 = vmul.f32 0.01, %v6990_v1 }
 0xd6d   :  { %v6992_v2 = vmax.f32 %v6990_v1, %v6991_v61 }
 0xd6f   :  { %v6993_v29 = vpack.c.bf16 %v6992_v2, %v6992_v2 }
 0xd71   :  { %13463 = vmatprep.subr.msk.bf16.mxu1 %vm3579_vm0, %v6993_v29  ;;  %v7015_v5 = vsel %vm3579_vm0, %v6993_v29, 0 }
 0xd72   :  { %12523 = vmatpush3.bf16.msra.mxu1 %v7015_v5 }
 0xd73   :  { %7302 = vmatprep.subr.bf16.mxu1 %v14065_v9 }
 0xd75   :  { %12525 = vmatmul.mubr.msk.bf16.vlgmr.msra.gmra.mrb[80].mxu1 %vm3554_vm1, %v14053_v8 }
 0xd76   :  { %7303 = vmatpush1.bf16.msra.mxu1 %v14063_v12  ;;  %7334 = vmatprep.mubr.bf16.mxu1 %v14804_v0 }
 0xd77   :  { %7304 = vmatprep.subr.bf16.mxu1 %v14068_v4 }
 0xd7a   :  { %7305 = vmatpush1.bf16.msra.mxu1 %v14066_v36 }
 0xd7b   :  { %7306 = vmatprep.subr.bf16.mxu1 %v14071_v14 }
 0xd7e   :  { %7307 = vmatpush1.bf16.msra.mxu1 %v14069_v17 }
 0xd7f   :  { %7308 = vmatprep.subr.bf16.mxu1 %v14074_v20 }
 0xd82   :  { %7309 = vmatpush1.bf16.msra.mxu1 %v14072_v48 }
 0xd83   :  { %7310 = vmatprep.subr.bf16.mxu1 %v14077_v21 }
 0xd86   :  { %7311 = vmatpush1.bf16.msra.mxu1 %v14075_v23 }
 0xd87   :  { %7312 = vmatprep.subr.bf16.mxu1 %v14080_v11 }
 0xd8a   :  { %7313 = vmatpush1.bf16.msra.mxu1 %v14078_v51 }
 0xd8b   :  { %7314 = vmatprep.subr.bf16.mxu1 %v14083_v45 }
 0xd8e   :  { %7315 = vmatpush1.bf16.msra.mxu1 %v14081_v7 }
 0xd8f   :  { %7316 = vmatprep.subr.bf16.mxu1 %v14086_v25 }
 0xd92   :  { %7317 = vmatpush1.bf16.msra.mxu1 %v14084_v16 }
 0xd93   :  { %7441 = vmatprep.subr.bf16.mxu1 %v14092_v33 }
 0xe48   :  { %v12526_v32 = vpop.f32.mrb[80].mxu1 }
 0xe49   :  { %v7051_v54 = vpop.f32.mrb[81].mxu1  ;;  %v7343_v24 = vpack.c.bf16 %v12526_v32, %v12526_v32 }
 0xe4a   :  { %v7066_v53 = vpack.c.bf16 %v7051_v54, %v7051_v54  ;;  %v15876_v49 = vpop.f32.mrb[82].mxu1 }
 0xe4b   :  { %v7054_v30 = vpop.f32.mrb[83].mxu1  ;;  %v7484_v1 = vpack.c.bf16 %v15876_v49, %v15876_v49 }
 0xe4c   :  { %v7083_v13 = vpack.c.bf16 %v7054_v30, %v7054_v30  ;;  %7335 = vmatmul.mubr.bf16.vlgmr.msra.gmra.mrb[84].mxu1 %v7066_v53 }
 0xe4d   :  { %7442 = vmatpush1.bf16.msra.mxu1 %v14090_v41  ;;  %7473 = vmatprep.mubr.bf16.mxu1 %v14804_v0 }
 0xe4e   :  { %7214 = vmatmul.mubr.bf16.vlgmr.msra.gmra.mrb[32].mxu0 %v7083_v13  ;;  %7443 = vmatprep.subr.bf16.mxu1 %v14095_v60 }
 0xe51   :  { %7444 = vmatpush1.bf16.msra.mxu1 %v14093_v34 }
 0xe52   :  { %7445 = vmatprep.subr.bf16.mxu1 %v14098_v63 }
 0xe55   :  { %7446 = vmatpush1.bf16.msra.mxu1 %v14096_v38  ;;  %v11485_v38 = vld [vmem:[#allocation22] ss:$0 sm:$0xff] }
 0xe56   :  { %7447 = vmatprep.subr.bf16.mxu1 %v14101_v37 }
 0xe59   :  { %7448 = vmatpush1.bf16.msra.mxu1 %v14099_v56 }
 0xe5a   :  { %7449 = vmatprep.subr.bf16.mxu1 %v14104_v46 }
 0xe5d   :  { %7450 = vmatpush1.bf16.msra.mxu1 %v14102_v28 }
 0xe5e   :  { %7451 = vmatprep.subr.bf16.mxu1 %v14107_v42 }
 0xe61   :  { %7452 = vmatpush1.bf16.msra.mxu1 %v14105_v52 }
 0xe62   :  { %7453 = vmatprep.subr.bf16.mxu1 %v14110_v43 }
 0xe65   :  { %7454 = vmatpush1.bf16.msra.mxu1 %v14108_v57 }
 0xe66   :  { %7455 = vmatprep.subr.bf16.mxu1 %v14113_v19 }
 0xe69   :  { %7456 = vmatpush1.bf16.msra.mxu1 %v14111_v15 }
 0xe6a   :  { %7582 = vmatprep.subr.bf16.mxu1 %v14116_v22 }
 0xe6c   :  { %7474 = vmatmul.mubr.bf16.vlgmr.msra.gmra.mrb[84].mxu1 %v7343_v24 }
 0xe6d   :  { %7583 = vmatpush1.bf16.msra.mxu1 %v14114_v39  ;;  %7614 = vmatprep.mubr.bf16.mxu1 %v14804_v0  ;;  %v14132_v0 = vld [vmem:[#allocation19 + $0x1e0] ss:$8 sps:$4 sm:$0xff]  }
 0xe6e   :  { %7584 = vmatprep.subr.bf16.mxu1 %v14119_v26 }
 0xe71   :  { %7585 = vmatpush1.bf16.msra.mxu1 %v14117_v18 }
 0xe72   :  { %7586 = vmatprep.subr.bf16.mxu1 %v14122_v31 }
 0xe75   :  { %7587 = vmatpush1.bf16.msra.mxu1 %v14120_v59 }
 0xe76   :  { %7588 = vmatprep.subr.bf16.mxu1 %v14125_v62 }
 0xe79   :  { %7589 = vmatpush1.bf16.msra.mxu1 %v14123_v3  ;;  %v7684_v3 = vld [vmem:[#allocation21] sm:$0x1] }
 0xe7a   :  { %7590 = vmatprep.subr.bf16.mxu1 %v14128_v40 }
 0xe7d   :  { %7591 = vmatpush1.bf16.msra.mxu1 %v14126_v44 }
 0xe7e   :  { %7592 = vmatprep.subr.bf16.mxu1 %v14131_v47 }
 0xe81   :  { %7593 = vmatpush1.bf16.msra.mxu1 %v14129_v50 }
 0xe82   :  { %7594 = vmatprep.subr.bf16.mxu1 %v14134_v55 }
 0xe85   :  { %7595 = vmatpush1.bf16.msra.mxu1 %v14132_v0  ;;  %v14138_v0 = vld [vmem:[%s16406_s17 + $0x10] sm:$0xff]  }
 0xe86   :  { %7596 = vmatprep.subr.bf16.mxu1 %v14137_v6 }
 0xe89   :  { %7597 = vmatpush1.bf16.msra.mxu1 %v14135_v58 }
 0xe8c   :  { %7615 = vmatmul.mubr.bf16.vlgmr.msra.gmra.mrb[84].mxu1 %v7484_v1 }
 0xe8d   :  { %12530 = vmatprep.mubr.msk.bf16.mxu1 %vm3554_vm1, %v14138_v0 }
 0xf21   :  { %v7215_v61 = vpop.f32.mrb[32].mxu0 }
 0xf22   :  { %v7217_v2 = vpop.f32.mrb[33].mxu0 }
 0xf23   :  { %v7219_v29 = vpop.f32.mrb[34].mxu0 }
 0xf24   :  { %v7220_v9 = vpop.f32.mrb[35].mxu0 }
 0xf5f   :  { %v7616_v5 = vpop.f32.mrb[84].mxu1 }
 0xf60   :  { %v12876_v8 = vadd.f32 %v7616_v5, %v7215_v61  ;;  %v7618_v12 = vpop.f32.mrb[85].mxu1 }
 0xf61   :  { %v12877_v4 = vadd.f32 %v7618_v12, %v7217_v2  ;;  %v7620_v36 = vpop.f32.mrb[86].mxu1 }
 0xf62   :  { %v7621_v14 = vpop.f32.mrb[87].mxu1  ;;  %v7625_v17 = vrot.slane %v12876_v8, 4 }
 0xf63   :  { %v7631_v20 = vrot.slane %v12877_v4, 4 }
 0xf64   :  { %v7626_v48 = vadd.f32 %v12876_v8, %v7625_v17 }
 0xf65   :  { %v7632_v21 = vadd.f32 %v12877_v4, %v7631_v20 }
 0xf66   :  { %v7627_v23 = vrot.slane %v7626_v48, 2 }
 0xf67   :  { %v7633_v11 = vrot.slane %v7632_v21, 2 }
 0xf68   :  { %v7628_v51 = vadd.f32 %v7627_v23, %v7626_v48 }
 0xf69   :  { %v7634_v45 = vadd.f32 %v7633_v11, %v7632_v21 }
 0xf6a   :  { %v7629_v7 = vrot.slane %v7628_v51, 1 }
 0xf6b   :  { %v7635_v16 = vrot.slane %v7634_v45, 1 }
 0xf6c   :  { %v7630_v25 = vadd.f32 %v7629_v7, %v7628_v51  ;;  %v14139_v7 = vld [vmem:[%s16406_s17 + $0x18] sm:$0xff]  }
 0xf6d   :  { %v7636_v27 = vadd.f32 %v7635_v16, %v7634_v45 }
 0xf6e   :  { %7638 = vrot.lane.b32.xlu0 %v7630_v25, %s14779_s5 }
 0xf72   :  { %7644 = vrot.lane.b32.xlu0 %v7636_v27, %s14779_s5 }
 0xfe0   :  { %v7639_v10 = vpop.permute.xlu0 %7638 }
 0xfe1   :  { %v7641_v33 = vadd.f32 %v7639_v10, %v7630_v25  ;;  %v14140_v25 = vld [vmem:[%s16406_s17] sm:$0xff]   ;;  %v14141_v10 = vld [vmem:[%s16406_s17 + $0x8] sm:$0xff]  }
 0xfe3   :  { %v7642_v32 = vadd.f32 %v7641_v33, %v7636_v27  ;;  %v14142_v33 = vld [vmem:[%s16406_s17 + $0x20] sm:$0xff]  }
 0xfe4   :  { %v7645_v54 = vpop.permute.xlu0 %7644 }
 0xfe5   :  { %v7647_v41 = vadd.f32 %v7645_v54, %v7642_v32 }
 0xfe7   :  { %v7648_v53 = vmul.f32 0.03125, %v7647_v41  ;;  %v14143_v41 = vld [vmem:[%s16406_s17 + $0x28] sm:$0xff]  }
 0xfe9   :  { %v7652_v49 = vrot.slane %v7648_v53, %v15681_v35  ;;  %v14144_v53 = vld [vmem:[%s16406_s17 + $0x30] sm:$0xff]  }
 0xfeb   :  { %7655 = vrot.lane.b32.xlu1 %v7652_v49, %s14779_s5  ;;  %v7653_v37 = vsub.f32 %v12876_v8, %v7652_v49  ;;  %v7659_v56 = vsub.f32 %v12877_v4, %v7652_v49 }
 0xfed   :  { %v7661_v46 = vmul.f32 %v7653_v37, %v7653_v37  ;;  %v7668_v52 = vmul.f32 %v7659_v56, %v7659_v56 }
0x105d   :  { %v7656_v60 = vpop.permute.xlu1 %7655 }
0x105e   :  { %v7658_v30 = vsub.f32 %v12876_v8, %v7656_v60  ;;  %v7660_v13 = vsub.f32 %v12877_v4, %v7656_v60  ;;  %v14145_v60 = vld [vmem:[%s16406_s17 + $0x38] sm:$0xff]  }
0x1060   :  { %v7670_v34 = vmul.f32 %v7660_v13, %v7660_v13  ;;  %v7662_v63 = vmul.f32 %v7658_v30, %v7658_v30 }
0x1062   :  { %7672 = vrot.lane.b32.xlu0 %v7670_v34, %s14779_s5  ;;  %7664 = vrot.lane.b32.xlu1 %v7662_v63, %s14779_s5 }
0x1066   :  { %7714 = vrot.lane.b32.xlu0 %v11485_v38, %s14779_s5 }
0x10d4   :  { %v7665_v28 = vpop.permute.xlu1 %7664  ;;  %v7673_v57 = vpop.permute.xlu0 %7672 }
0x10d5   :  { %v7667_v42 = vadd.f32 %v7665_v28, %v7661_v46  ;;  %v14154_v46 = vld [vmem:[#allocation24 + $0x20] sm:$0xff]   ;;  %v14147_v28 = vld [vmem:[%s16455_s21 + $0x8] sm:$0xff]  }
0x10d7   :  { %v7669_v43 = vadd.f32 %v7668_v52, %v7667_v42  ;;  %v14148_v42 = vld [vmem:[%s16455_s21 + $0x10] sm:$0xff]   ;;  %v14149_v52 = vld [vmem:[%s16455_s21 + $0x18] sm:$0xff]  }
0x10d8   :  { %v7715_v55 = vpop.permute.xlu0 %7714 }
0x10d9   :  { %v7675_v19 = vadd.f32 %v7673_v57, %v7669_v43  ;;  %v14150_v43 = vld [vmem:[%s16455_s21 + $0x20] sm:$0xff]   ;;  %v14151_v57 = vld [vmem:[%s16455_s21 + $0x28] sm:$0xff]  }
0x10db   :  { %v7676_v15 = vsel %vm6066_vm4, %v7675_v19, 0.0  ;;  %v14152_v19 = vld [vmem:[%s16455_s21 + $0x30] sm:$0xff]  }
0x10dc   :  { %v7677_v22 = vrot.slane %v7676_v15, 4 }
0x10de   :  { %v7678_v39 = vadd.f32 %v7677_v22, %v7676_v15  ;;  %v14153_v15 = vld [vmem:[%s16455_s21 + $0x38] sm:$0xff]  }
0x10df   :  { %v14155_v22 = vld [vmem:[#allocation24 + $0x28] sm:$0xff]  }
0x10e0   :  { %v7679_v24 = vrot.slane %v7678_v39, 2 }
0x10e2   :  { %v7680_v26 = vadd.f32 %v7679_v24, %v7678_v39  ;;  %v14156_v39 = vld [vmem:[#allocation24 + $0x30] sm:$0xff]   ;;  %v14157_v24 = vld [vmem:[#allocation24 + $0x38] sm:$0xff]  }
0x10e4   :  { %v7681_v18 = vrot.slane %v7680_v26, 1 }
0x10e6   :  { %v7682_v31 = vadd.f32 %v7681_v18, %v7680_v26  ;;  %v14158_v26 = vld [vmem:[#allocation24] sm:$0xff]  }
0x10e8   :  { %v7683_v59 = vmul.f32 0.03125, %v7682_v31 }
0x10ea   :  { %v7685_v62 = vadd.f32 1e-05, %v7683_v59 }
0x10ec   :  { %14248 = vrsqrt.f32 %v7685_v62 }
0x10f6   :  { %v14249_v40 = vpop.eup %14248 }
0x10f7   :  { %v7687_v44 = vmul.f32 %v14249_v40, %v7684_v3 }
0x10f9   :  { %v7693_v47 = vrot.slane %v7687_v44, %v15681_v35 }
0x10fb   :  { %7710 = vrot.lane.b32.xlu1 %v7693_v47, %s14779_s5  ;;  %v7695_v4 = vmul.f32 %v7693_v47, %v7653_v37  ;;  %v7865_v14 = vmul.f32 %v7693_v47, %v7659_v56 }
0x10fd   :  { %v7702_v36 = vadd.f32 %v11485_v38, %v7695_v4  ;;  %v7866_v20 = vadd.f32 %v11485_v38, %v7865_v14 }
0x10ff   :  { %v7703_v17 = vmul.f32 0.01, %v7702_v36  ;;  %v7867_v21 = vmul.f32 0.01, %v7866_v20 }
0x1101   :  { %v7704_v48 = vmax.f32 %v7702_v36, %v7703_v17  ;;  %v7868_v51 = vmax.f32 %v7866_v20, %v7867_v21  ;;  %v14162_v36 = vld [vmem:[#allocation24 + $0x40] sm:$0xff]  }
0x1103   :  { %v7705_v11 = vpack.c.bf16 %v7704_v48, %v7704_v48  ;;  %v7869_v16 = vpack.c.bf16 %v7868_v51, %v7868_v51  ;;  %v14165_v51 = vld [vmem:[#allocation24 + $0x58] sm:$0xff]  }
0x1105   :  { %v7814_v27 = vsel %vm3579_vm0, %v7705_v11, 0  ;;  %v7892_v32 = vsel %vm3579_vm0, %v7869_v16, 0 }
0x116d   :  { %v7711_v50 = vpop.permute.xlu1 %7710 }
0x116e   :  { %v7713_v6 = vmul.f32 %v7711_v50, %v7658_v30  ;;  %v7947_v58 = vmul.f32 %v7711_v50, %v7660_v13  ;;  %v14146_v30 = vld [vmem:[%s16455_s21] sm:$0xff]  }
0x1170   :  { %v7717_v1 = vadd.f32 %v7715_v55, %v7713_v6  ;;  %v7948_v61 = vadd.f32 %v7947_v58, %v7715_v55  ;;  %v14159_v58 = vld [vmem:[#allocation24 + $0x8] sm:$0xff]  }
0x1172   :  { %v7718_v2 = vmul.f32 0.01, %v7717_v1  ;;  %v7949_v29 = vmul.f32 0.01, %v7948_v61 }
0x1174   :  { %v7950_v9 = vmax.f32 %v7948_v61, %v7949_v29  ;;  %v7719_v5 = vmax.f32 %v7717_v1, %v7718_v2  ;;  %v14160_v61 = vld [vmem:[#allocation24 + $0x10] sm:$0xff]  }
0x1176   :  { %v7951_v8 = vpack.c.bf16 %v7950_v9, %v7950_v9  ;;  %v7720_v12 = vpack.c.bf16 %v7719_v5, %v7719_v5 }
0x1178   :  { %7968 = vrot.lane.b32.xlu0 %v7951_v8, %s14779_s5  ;;  %7737 = vrot.lane.b32.xlu1 %v7720_v12, %s14779_s5  ;;  %v14161_v12 = vld [vmem:[#allocation24 + $0x18] sm:$0xff]  }
0x11ea   :  { %v7738_v23 = vpop.permute.xlu1 %7737  ;;  %v7969_v54 = vpop.permute.xlu0 %7968 }
0x11eb   :  { %v7746_v45 = vsel %vm3579_vm0, %v7738_v23, 0  ;;  %13464 = vmatprep.subr.msk.bf16.mxu1 %vm3579_vm0, %v7738_v23  ;;  %v7977_v49 = vsel %vm3579_vm0, %v7969_v54, 0  ;;  %v14163_v23 = vld [vmem:[#allocation24 + $0x48] sm:$0xff]  }
0x11ec   :  { %12529 = vmatpush3.bf16.msra.mxu1 %v7746_v45  ;;  %v14166_v45 = vld [vmem:[#allocation24 + $0x60] sm:$0xff]  }
0x11ed   :  { %13465 = vmatprep.subr.msk.bf16.mxu1 %vm3579_vm0, %v7705_v11  ;;  %v14164_v11 = vld [vmem:[#allocation24 + $0x50] sm:$0xff]  }
0x11ef   :  { %12531 = vmatmul.mubr.msk.bf16.vlgmr.msra.gmra.mrb[88].mxu1 %vm3554_vm1, %v14139_v7  ;;  %v14167_v7 = vld [vmem:[#allocation24 + $0x68] sm:$0xff]  }
0x11f0   :  { %12535 = vmatpush3.bf16.msra.mxu1 %v7814_v27  ;;  %12536 = vmatprep.mubr.msk.bf16.mxu1 %vm3554_vm1, %v14140_v25  ;;  %v14168_v25 = vld [vmem:[#allocation24 + $0x70] sm:$0xff]  }
0x11f1   :  { %13466 = vmatprep.subr.msk.bf16.mxu1 %vm3579_vm0, %v7869_v16  ;;  %v14169_v16 = vld [vmem:[#allocation24 + $0x78] sm:$0xff]  }
0x11fb   :  { %12537 = vmatmul.mubr.msk.bf16.vlgmr.msra.gmra.mrb[88].mxu1 %vm3554_vm1, %v14141_v10 }
0x11fc   :  { %12541 = vmatpush3.bf16.msra.mxu1 %v7892_v32  ;;  %12542 = vmatprep.mubr.msk.bf16.mxu1 %vm3554_vm1, %v14142_v33 }
0x11fd   :  { %13467 = vmatprep.subr.msk.bf16.mxu1 %vm3579_vm0, %v7969_v54 }
0x1207   :  { %12543 = vmatmul.mubr.msk.bf16.vlgmr.msra.gmra.mrb[88].mxu1 %vm3554_vm1, %v14143_v41 }
0x1208   :  { %12547 = vmatpush3.bf16.msra.mxu1 %v7977_v49  ;;  %12548 = vmatprep.mubr.msk.bf16.mxu1 %vm3554_vm1, %v14144_v53 }
0x1213   :  { %12549 = vmatmul.mubr.msk.bf16.vlgmr.msra.gmra.mrb[88].mxu1 %vm3554_vm1, %v14145_v60 }
0x1214   :  { %12556 = vmatprep.mubr.msk.bf16.mxu1 %vm4854_vm2, %v14146_v30 }
0x12e6   :  { %v12550_v13 = vpop.f32.mrb[88].mxu1 }
0x12e7   :  { %v8013_v34 = vpop.f32.mrb[89].mxu1 }
0x12e8   :  { %v12551_v63 = vpop.f32.mrb[90].mxu1 }
0x12e9   :  { %v8033_v38 = vpack.c.bf16 %v12551_v63, %v12550_v13  ;;  %v8016_v37 = vpop.f32.mrb[91].mxu1 }
0x12ea   :  { %v8032_v56 = vpack.c.bf16 %v8016_v37, %v8013_v34 }
0x12ec   :  { %12552 = vmatprep.subr.bf16.mxu1 %v8032_v56 }
0x12ed   :  { %12553 = vmatpush3.bf16.msra.mxu1 %v8032_v56 }
0x12ee   :  { %12554 = vmatprep.subr.bf16.mxu1 %v8033_v38 }
0x12f1   :  { %12555 = vmatpush3.bf16.msra.mxu1 %v8033_v38 }
0x12f2   :  { %12572 = vmatprep.subr.bf16.mxu1 %v14154_v46 }
0x12f4   :  { %12557 = vmatmul.mubr.msk.bf16.vlgmr.msra.gmra.mrb[92].mxu1 %vm4854_vm2, %v14147_v28 }
0x12f5   :  { %12560 = vmatprep.mubr.msk.bf16.mxu1 %vm4854_vm2, %v14148_v42  ;;  %12573 = vmatpush3.bf16.msra.mxu1 %v14154_v46 }
0x12f6   :  { %12574 = vmatprep.subr.bf16.mxu1 %v14155_v22 }
0x12f9   :  { %12575 = vmatpush3.bf16.msra.mxu1 %v14155_v22 }
0x12fa   :  { %12576 = vmatprep.subr.bf16.mxu1 %v14156_v39 }
0x12fc   :  { %12561 = vmatmul.mubr.msk.bf16.gmra.mrb[96].mxu1 %vm4854_vm2, %v14149_v52 }
0x12fd   :  { %12564 = vmatprep.mubr.msk.bf16.mxu1 %vm4854_vm2, %v14150_v43  ;;  %12577 = vmatpush3.bf16.msra.mxu1 %v14156_v39 }
0x12fe   :  { %12578 = vmatprep.subr.bf16.mxu1 %v14157_v24 }
0x1301   :  { %12579 = vmatpush3.bf16.msra.mxu1 %v14157_v24 }
0x1302   :  { %12584 = vmatprep.subr.bf16.mxu1 %v14158_v26 }
0x1304   :  { %12565 = vmatmul.mubr.msk.bf16.gmra.mrb[100].mxu1 %vm4854_vm2, %v14151_v57 }
0x1305   :  { %12568 = vmatprep.mubr.msk.bf16.mxu1 %vm4854_vm2, %v14152_v19 }
0x130c   :  { %12569 = vmatmul.mubr.msk.bf16.gmra.mrb[104].mxu1 %vm4854_vm2, %v14153_v15 }
0x13c7   :  { %v12558_v18 = vpop.f32.mrb[92].mxu1 }
0x13c8   :  { %v8148_v31 = vpop.f32.mrb[93].mxu1 }
0x13c9   :  { %v12559_v59 = vpop.f32.mrb[94].mxu1 }
0x13ca   :  { %v8212_v62 = vpack.c.bf16 %v12559_v59, %v12558_v18  ;;  %v8151_v3 = vpop.f32.mrb[95].mxu1 }
0x13cb   :  { %v8211_v40 = vpack.c.bf16 %v8151_v3, %v8148_v31 }
0x13cf   :  { %v12562_v44 = vpop.f32.mrb[96].mxu1 }
0x13d0   :  { %v8164_v47 = vpop.f32.mrb[97].mxu1 }
0x13d1   :  { %v12563_v50 = vpop.f32.mrb[98].mxu1 }
0x13d2   :  { %v8222_v55 = vpack.c.bf16 %v12563_v50, %v12562_v44  ;;  %v8167_v0 = vpop.f32.mrb[99].mxu1 }
0x13d3   :  { %v8221_v6 = vpack.c.bf16 %v8167_v0, %v8164_v47 }
0x13d5   :  { %12580 = vmatprep.mubr.msk.bf16.mxu1 %vm6066_vm4, %v8221_v6 }
0x13d6   :  { %12581 = vmatmul.mubr.msk.bf16.vlgmr.msra.gmra.mrb[108].mxu1 %vm6066_vm4, %v8222_v55 }
0x13d7   :  { %12585 = vmatpush3.bf16.msra.mxu1 %v14158_v26  ;;  %12592 = vmatprep.mubr.msk.bf16.mxu1 %vm6066_vm4, %v8211_v40  ;;  %v12566_v1 = vpop.f32.mrb[100].mxu1 }
0x13d8   :  { %12586 = vmatprep.subr.bf16.mxu1 %v14159_v58  ;;  %v8180_v2 = vpop.f32.mrb[101].mxu1 }
0x13d9   :  { %v12567_v29 = vpop.f32.mrb[102].mxu1 }
0x13da   :  { %v8391_v9 = vpack.c.bf16 %v12567_v29, %v12566_v1  ;;  %v8183_v5 = vpop.f32.mrb[103].mxu1 }
0x13db   :  { %12587 = vmatpush3.bf16.msra.mxu1 %v14159_v58  ;;  %v8390_v8 = vpack.c.bf16 %v8183_v5, %v8180_v2 }
0x13dc   :  { %12588 = vmatprep.subr.bf16.mxu1 %v14160_v61 }
0x13df   :  { %12589 = vmatpush3.bf16.msra.mxu1 %v14160_v61  ;;  %v12570_v4 = vpop.f32.mrb[104].mxu1 }
0x13e0   :  { %12590 = vmatprep.subr.bf16.mxu1 %v14161_v12  ;;  %v8196_v14 = vpop.f32.mrb[105].mxu1 }
0x13e1   :  { %v12571_v17 = vpop.f32.mrb[106].mxu1 }
0x13e2   :  { %v8485_v20 = vpack.c.bf16 %v12571_v17, %v12570_v4  ;;  %v8199_v48 = vpop.f32.mrb[107].mxu1  ;;  %v16056_v17 = vld [vmem:[#allocation27] ss:$0 sm:$0xff] }
0x13e3   :  { %12591 = vmatpush3.bf16.msra.mxu1 %v14161_v12  ;;  %v8484_v21 = vpack.c.bf16 %v8199_v48, %v8196_v14 }
0x13e4   :  { %12596 = vmatprep.subr.bf16.mxu1 %v14162_v36 }
0x13e6   :  { %12593 = vmatmul.mubr.msk.bf16.vlgmr.msra.gmra.mrb[108].mxu1 %vm6066_vm4, %v8212_v62 }
0x13e7   :  { %12597 = vmatpush3.bf16.msra.mxu1 %v14162_v36  ;;  %12604 = vmatprep.mubr.msk.bf16.mxu1 %vm6066_vm4, %v8390_v8 }
0x13e8   :  { %12598 = vmatprep.subr.bf16.mxu1 %v14163_v23 }
0x13eb   :  { %12599 = vmatpush3.bf16.msra.mxu1 %v14163_v23 }
0x13ec   :  { %12600 = vmatprep.subr.bf16.mxu1 %v14164_v11 }
0x13ef   :  { %12601 = vmatpush3.bf16.msra.mxu1 %v14164_v11 }
0x13f0   :  { %12602 = vmatprep.subr.bf16.mxu1 %v14165_v51 }
0x13f3   :  { %12603 = vmatpush3.bf16.msra.mxu1 %v14165_v51 }
0x13f4   :  { %12608 = vmatprep.subr.bf16.mxu1 %v14166_v45 }
0x13f6   :  { %12605 = vmatmul.mubr.msk.bf16.vlgmr.msra.gmra.mrb[108].mxu1 %vm6066_vm4, %v8391_v9 }
0x13f7   :  { %12609 = vmatpush3.bf16.msra.mxu1 %v14166_v45  ;;  %12616 = vmatprep.mubr.msk.bf16.mxu1 %vm6066_vm4, %v8484_v21 }
0x13f8   :  { %12610 = vmatprep.subr.bf16.mxu1 %v14167_v7 }
0x13fb   :  { %12611 = vmatpush3.bf16.msra.mxu1 %v14167_v7 }
0x13fc   :  { %12612 = vmatprep.subr.bf16.mxu1 %v14168_v25 }
0x13ff   :  { %12613 = vmatpush3.bf16.msra.mxu1 %v14168_v25 }
0x1400   :  { %12614 = vmatprep.subr.bf16.mxu1 %v14169_v16 }
0x1403   :  { %12615 = vmatpush3.bf16.msra.mxu1 %v14169_v16 }
0x1406   :  { %12617 = vmatmul.mubr.msk.bf16.vlgmr.msra.gmra.mrb[108].mxu1 %vm6066_vm4, %v8485_v20 }
0x14d9   :  { %v15974_v27 = vpop.f32.mrb[108].mxu1 }
0x14da   :  { %v8559_v10 = vpop.f32.mrb[109].mxu1 }
0x14db   :  { %v12619_v33 = vpop.f32.mrb[110].mxu1 }
0x14dc   :  { %v8562_v32 = vpop.f32.mrb[111].mxu1 }
0x14dd   :  { %v8578_v54 = vadd.f32 %v8562_v32, %v8559_v10 }
0x14df   :  { %v8579_v41 = vadd.f32 %v15974_v27, %v8578_v54 }
0x14e1   :  { %v8580_v53 = vadd.f32 %v12619_v33, %v8579_v41 }
0x14e3   :  { %v8581_v49 = vrot.slane %v8580_v53, 4 }
0x14e5   :  { %v8582_v60 = vadd.f32 %v8581_v49, %v8580_v53 }
0x14e7   :  { %v8583_v30 = vrot.slane %v8582_v60, 2 }
0x14e9   :  { %v8584_v13 = vadd.f32 %v8583_v30, %v8582_v60 }
0x14eb   :  { %v8585_v34 = vrot.slane %v8584_v13, 1 }
0x14ed   :  { %v8586_v63 = vadd.f32 %v8585_v34, %v8584_v13 }
0x14ef   :  { %8592 = vrot.lane.b32.xlu0 %v8586_v63, %s14779_s5  ;;  %8588 = vrot.lane.b32.xlu1 %v8586_v63, %s14807_s10 }
0x14f3   :  { %8596 = vrot.lane.b32.xlu1 %v8586_v63, %s14808_s25 }
0x1561   :  { %v8589_v38 = vpop.permute.xlu1 %8588  ;;  %v8593_v56 = vpop.permute.xlu0 %8592 }
0x1562   :  { %v8591_v37 = vadd.f32 %v8589_v38, %v8586_v63 }
0x1564   :  { %v8595_v46 = vadd.f32 %v8593_v56, %v8591_v37 }
0x1565   :  { %v8597_v28 = vpop.permute.xlu1 %8596 }
0x1566   :  { %v8599_v42 = vadd.f32 %v8597_v28, %v8595_v46 }
0x1568   :  { %v8600_v52 = vmul.f32 0.0078125, %v8599_v42 }
0x156a   :  { %v8604_v43 = vrot.slane %v8600_v52, %v15681_v35 }
0x156c   :  { %8617 = vrot.lane.b32.xlu1 %v8604_v43, %s14779_s5  ;;  %8610 = vrot.lane.b32.xlu0 %v8604_v43, %s14808_s25  ;;  %v15983_v57 = vsub.f32 %v8559_v10, %v8604_v43  ;;  %v15985_v19 = vsub.f32 %v8562_v32, %v8604_v43  ;;  %v15988_v15 = vsub.f32 %v15974_v27, %v8604_v43 }
0x156d   :  { %v15990_v22 = vsub.f32 %v12619_v33, %v8604_v43 }
0x156e   :  { %v8631_v45 = vmul.f32 %v15983_v57, %v15983_v57  ;;  %v8632_v7 = vmul.f32 %v15985_v19, %v15985_v19 }
0x156f   :  { %v8634_v41 = vmul.f32 %v15990_v22, %v15990_v22 }
0x1570   :  { %8624 = vrot.lane.b32.xlu0 %v8604_v43, %s14807_s10 }
0x15de   :  { %v8618_v39 = vpop.permute.xlu1 %8617  ;;  %v8611_v24 = vpop.permute.xlu0 %8610 }
0x15df   :  { %v15993_v26 = vsub.f32 %v8559_v10, %v8611_v24  ;;  %v15995_v18 = vsub.f32 %v8562_v32, %v8611_v24  ;;  %v16001_v62 = vsub.f32 %v8559_v10, %v8618_v39  ;;  %v16004_v3 = vsub.f32 %v15974_v27, %v8611_v24 }
0x15e0   :  { %v16008_v40 = vsub.f32 %v12619_v33, %v8611_v24  ;;  %v16014_v55 = vsub.f32 %v8562_v32, %v8618_v39  ;;  %v16025_v1 = vsub.f32 %v15974_v27, %v8618_v39  ;;  %v16031_v2 = vsub.f32 %v12619_v33, %v8618_v39 }
0x15e1   :  { %v8636_v31 = vmul.f32 %v15995_v18, %v15995_v18  ;;  %v8635_v59 = vmul.f32 %v15993_v26, %v15993_v26  ;;  %v8659_v44 = vmul.f32 %v16001_v62, %v16001_v62  ;;  %v8637_v50 = vmul.f32 %v16004_v3, %v16004_v3 }
0x15e2   :  { %v8625_v47 = vpop.permute.xlu0 %8624  ;;  %v8638_v6 = vmul.f32 %v16008_v40, %v16008_v40  ;;  %v8660_v58 = vmul.f32 %v16014_v55, %v16014_v55  ;;  %v8661_v9 = vmul.f32 %v16025_v1, %v16025_v1  ;;  %v8662_v8 = vmul.f32 %v16031_v2, %v16031_v2 }
0x15e3   :  { %8645 = vrot.lane.b32.xlu0 %v8636_v31, %s14807_s10  ;;  %8643 = vrot.lane.b32.xlu1 %v8635_v59, %s14807_s10  ;;  %v16018_v0 = vsub.f32 %v8559_v10, %v8625_v47  ;;  %v16033_v29 = vsub.f32 %v8562_v32, %v8625_v47  ;;  %v16039_v5 = vsub.f32 %v12619_v33, %v8625_v47 }
0x15e4   :  { %v16044_v12 = vsub.f32 %v15974_v27, %v8625_v47  ;;  %v8633_v33 = vmul.f32 %v15988_v15, %v15988_v15 }
0x15e5   :  { %v8683_v61 = vmul.f32 %v16018_v0, %v16018_v0  ;;  %v8684_v4 = vmul.f32 %v16033_v29, %v16033_v29  ;;  %v8686_v36 = vmul.f32 %v16039_v5, %v16039_v5 }
0x15e6   :  { %v8685_v14 = vmul.f32 %v16044_v12, %v16044_v12 }
0x15e7   :  { %8667 = vrot.lane.b32.xlu0 %v8659_v44, %s14779_s5  ;;  %8647 = vrot.lane.b32.xlu1 %v8637_v50, %s14807_s10 }
0x15eb   :  { %8649 = vrot.lane.b32.xlu0 %v8638_v6, %s14807_s10  ;;  %8669 = vrot.lane.b32.xlu1 %v8660_v58, %s14779_s5 }
0x15ef   :  { %8691 = vrot.lane.b32.xlu0 %v8683_v61, %s14808_s25  ;;  %8671 = vrot.lane.b32.xlu1 %v8661_v9, %s14779_s5 }
0x15f3   :  { %8673 = vrot.lane.b32.xlu0 %v8662_v8, %s14779_s5  ;;  %8693 = vrot.lane.b32.xlu1 %v8684_v4, %s14808_s25  ;;  %v8721_v4 = vld [vmem:[#allocation25] sm:$0x1] }
0x15f7   :  { %8697 = vrot.lane.b32.xlu0 %v8686_v36, %s14808_s25  ;;  %8695 = vrot.lane.b32.xlu1 %v8685_v14, %s14808_s25 }
0x15fb   :  { %8779 = vrot.lane.b32.xlu0 %v16056_v17, %s14808_s25 }
0x15ff   :  { %9150 = vrot.lane.b32.xlu0 %v16056_v17, %s14779_s5 }
0x1655   :  { %v8646_v20 = vpop.permute.xlu0 %8645  ;;  %v8644_v48 = vpop.permute.xlu1 %8643 }
0x1656   :  { %v8655_v27 = vadd.f32 %v8644_v48, %v8631_v45  ;;  %v8656_v10 = vadd.f32 %v8646_v20, %v8632_v7 }
0x1659   :  { %v8668_v21 = vpop.permute.xlu0 %8667  ;;  %v8648_v23 = vpop.permute.xlu1 %8647 }
0x165a   :  { %v8679_v32 = vadd.f32 %v8668_v21, %v8655_v27  ;;  %v8657_v60 = vadd.f32 %v8648_v23, %v8633_v33  ;;  %v14170_v33 = vld [vmem:[%s16456_s11 + $0x40] sm:$0xff]  }
0x165b   :  { %12624 = vmatprep.mubr.msk.bf16.mxu1 %vm4854_vm2, %v14170_v33 }
0x165d   :  { %v8650_v11 = vpop.permute.xlu0 %8649  ;;  %v8670_v51 = vpop.permute.xlu1 %8669 }
0x165e   :  { %v8680_v54 = vadd.f32 %v8670_v51, %v8656_v10  ;;  %v8658_v30 = vadd.f32 %v8650_v11, %v8634_v41 }
0x1661   :  { %v8692_v25 = vpop.permute.xlu0 %8691  ;;  %v8672_v16 = vpop.permute.xlu1 %8671 }
0x1662   :  { %v8703_v13 = vadd.f32 %v8692_v25, %v8679_v32  ;;  %v8681_v63 = vadd.f32 %v8672_v16, %v8657_v60 }
0x1664   :  { %v8707_v28 = vsel %vm4854_vm2, %v8703_v13, 0.0 }
0x1665   :  { %v8674_v53 = vpop.permute.xlu0 %8673  ;;  %v8694_v49 = vpop.permute.xlu1 %8693 }
0x1666   :  { %v8704_v34 = vadd.f32 %v8694_v49, %v8680_v54  ;;  %v8682_v37 = vadd.f32 %v8674_v53, %v8658_v30 }
0x1668   :  { %v8708_v38 = vsel %vm4854_vm2, %v8704_v34, 0.0 }
0x1669   :  { %v8698_v56 = vpop.permute.xlu0 %8697  ;;  %v8696_v46 = vpop.permute.xlu1 %8695  ;;  %v8709_v43 = vadd.f32 %v8708_v38, %v8707_v28 }
0x166a   :  { %v8705_v42 = vadd.f32 %v8696_v46, %v8681_v63  ;;  %v8706_v52 = vadd.f32 %v8698_v56, %v8682_v37 }
0x166c   :  { %v8710_v39 = vsel %vm4854_vm2, %v8705_v42, 0.0  ;;  %v8712_v31 = vsel %vm4854_vm2, %v8706_v52, 0.0 }
0x166d   :  { %v8711_v24 = vadd.f32 %v8710_v39, %v8709_v43  ;;  %v8780_v48 = vpop.permute.xlu0 %8779 }
0x166f   :  { %v8713_v59 = vadd.f32 %v8712_v31, %v8711_v24 }
0x1671   :  { %v8714_v44 = vrot.slane %v8713_v59, 4 }
0x1673   :  { %v8715_v47 = vadd.f32 %v8714_v44, %v8713_v59 }
0x1675   :  { %v8716_v50 = vrot.slane %v8715_v47, 2 }
0x1677   :  { %v8717_v6 = vadd.f32 %v8716_v50, %v8715_v47 }
0x1679   :  { %v8718_v58 = vrot.slane %v8717_v6, 1 }
0x167b   :  { %v8719_v61 = vadd.f32 %v8718_v58, %v8717_v6 }
0x167d   :  { %v8720_v9 = vmul.f32 0.0078125, %v8719_v61 }
0x167f   :  { %v8722_v8 = vadd.f32 1e-05, %v8720_v9 }
0x1681   :  { %14250 = vrsqrt.f32 %v8722_v8 }
0x168b   :  { %v14251_v36 = vpop.eup %14250 }
0x168c   :  { %v8724_v14 = vmul.f32 %v14251_v36, %v8721_v4 }
0x168e   :  { %v8730_v20 = vrot.slane %v8724_v14, %v15681_v35  ;;  %v9151_v35 = vpop.permute.xlu0 %9150 }
0x1690   :  { %8772 = vrot.lane.b32.xlu1 %v8730_v20, %s14808_s25  ;;  %v8732_v31 = vmul.f32 %v8730_v20, %v15983_v57  ;;  %v8733_v59 = vmul.f32 %v8730_v20, %v15985_v19  ;;  %v8734_v50 = vmul.f32 %v8730_v20, %v15988_v15  ;;  %v8735_v6 = vmul.f32 %v8730_v20, %v15990_v22 }
0x1692   :  { %v8742_v44 = vadd.f32 %v16056_v17, %v8732_v31  ;;  %v8743_v47 = vadd.f32 %v16056_v17, %v8733_v59  ;;  %v8744_v9 = vadd.f32 %v16056_v17, %v8734_v50  ;;  %v8745_v8 = vadd.f32 %v16056_v17, %v8735_v6  ;;  %v14193_v31 = vld [vmem:[%s16456_s11 + $0xb8] sm:$0xff]   ;;  %v14194_v59 = vld [vmem:[%s16456_s11 + $0xc0] sm:$0xff]   ;;  %v14195_v50 = vld [vmem:[%s16456_s11 + $0xc8] sm:$0xff]  }
0x1693   :  { %v14196_v6 = vld [vmem:[%s16456_s11 + $0xd0] sm:$0xff]  }
0x1694   :  { %9143 = vrot.lane.b32.xlu1 %v8730_v20, %s14779_s5  ;;  %v8746_v58 = vmul.f32 0.01, %v8742_v44  ;;  %v8747_v61 = vmul.f32 0.01, %v8743_v47  ;;  %v8748_v57 = vmul.f32 0.01, %v8744_v9 }
0x1696   :  { %v8750_v36 = vmax.f32 %v8742_v44, %v8746_v58  ;;  %v8751_v14 = vmax.f32 %v8743_v47, %v8747_v61  ;;  %v8752_v15 = vmax.f32 %v8744_v9, %v8748_v57  ;;  %v14197_v58 = vld [vmem:[%s16456_s11 + $0xd8] sm:$0xff]   ;;  %v14198_v61 = vld [vmem:[%s16456_s11 + $0xe0] sm:$0xff]   ;;  %v14199_v9 = vld [vmem:[%s16456_s11 + $0xe8] sm:$0xff]  }
0x1702   :  { %v8773_v21 = vpop.permute.xlu1 %8772 }
0x1703   :  { %v8775_v23 = vmul.f32 %v8773_v21, %v15993_v26  ;;  %v8776_v11 = vmul.f32 %v8773_v21, %v15995_v18  ;;  %v8777_v51 = vmul.f32 %v8773_v21, %v16004_v3  ;;  %v8778_v45 = vmul.f32 %v8773_v21, %v16008_v40 }
0x1705   :  { %v8782_v7 = vadd.f32 %v8780_v48, %v8775_v23  ;;  %v8783_v25 = vadd.f32 %v8780_v48, %v8776_v11  ;;  %v8784_v16 = vadd.f32 %v8780_v48, %v8777_v51  ;;  %v8785_v27 = vadd.f32 %v8780_v48, %v8778_v45  ;;  %v14171_v45 = vld [vmem:[%s16456_s11 + $0x48] sm:$0xff]  }
0x1706   :  { %v9144_v10 = vpop.permute.xlu1 %9143  ;;  %v8749_v48 = vmul.f32 0.01, %v8745_v8  ;;  %v8754_v23 = vpack.c.bf16 %v8751_v14, %v8750_v36  ;;  %v14202_v36 = vld [vmem:[#allocation28] sm:$0xff]  }
0x1707   :  { %v8786_v32 = vmul.f32 0.01, %v8782_v7  ;;  %v8787_v54 = vmul.f32 0.01, %v8783_v25  ;;  %v8788_v41 = vmul.f32 0.01, %v8784_v16  ;;  %v9146_v26 = vmul.f32 %v9144_v10, %v16001_v62 }
0x1708   :  { %v8789_v18 = vmul.f32 0.01, %v8785_v27  ;;  %v9147_v3 = vmul.f32 %v9144_v10, %v16014_v55  ;;  %v9148_v40 = vmul.f32 %v9144_v10, %v16025_v1  ;;  %v9149_v53 = vmul.f32 %v9144_v10, %v16031_v2 }
0x1709   :  { %v8792_v49 = vmax.f32 %v8784_v16, %v8788_v41  ;;  %v8790_v60 = vmax.f32 %v8782_v7, %v8786_v32  ;;  %v8791_v30 = vmax.f32 %v8783_v25, %v8787_v54  ;;  %v9153_v13 = vadd.f32 %v9151_v35, %v9146_v26  ;;  %v14172_v25 = vld [vmem:[%s16456_s11 + $0x50] sm:$0xff]  }
0x170a   :  { %v8793_v34 = vmax.f32 %v8785_v27, %v8789_v18  ;;  %v9155_v63 = vadd.f32 %v9151_v35, %v9148_v40  ;;  %v9156_v38 = vadd.f32 %v9151_v35, %v9149_v53  ;;  %v9154_v37 = vadd.f32 %v9151_v35, %v9147_v3  ;;  %v14173_v3 = vld [vmem:[%s16456_s11 + $0x58] sm:$0xff]  }
0x170b   :  { %v8794_v56 = vpack.c.bf16 %v8791_v30, %v8790_v60  ;;  %v9157_v46 = vmul.f32 0.01, %v9153_v13  ;;  %v8753_v11 = vmax.f32 %v8745_v8, %v8749_v48  ;;  %v14175_v60 = vld [vmem:[%s16456_s11 + $0x68] sm:$0xff]   ;;  %v14176_v30 = vld [vmem:[%s16456_s11 + $0x70] sm:$0xff]  }
0x170c   :  { %v8795_v62 = vpack.c.bf16 %v8793_v34, %v8792_v49  ;;  %v9159_v28 = vmul.f32 0.01, %v9155_v63  ;;  %v9160_v42 = vmul.f32 0.01, %v9156_v38  ;;  %v9158_v55 = vmul.f32 0.01, %v9154_v37 }
0x170d   :  { %8855 = vrot.lane.b32.xlu1 %v8794_v56, %s14807_s10  ;;  %v9161_v1 = vmax.f32 %v9153_v13, %v9157_v46  ;;  %v14174_v49 = vld [vmem:[%s16456_s11 + $0x60] sm:$0xff]   ;;  %v14177_v13 = vld [vmem:[%s16456_s11 + $0x78] sm:$0xff]   ;;  %v14200_v8 = vld [vmem:[%s16456_s11 + $0xf0] sm:$0xff]  }
0x170e   :  { %8857 = vrot.lane.b32.xlu0 %v8795_v62, %s14807_s10  ;;  %v9162_v2 = vmax.f32 %v9154_v37, %v9158_v55  ;;  %v9163_v52 = vmax.f32 %v9155_v63, %v9159_v28  ;;  %v9164_v43 = vmax.f32 %v9156_v38, %v9160_v42  ;;  %v14178_v34 = vld [vmem:[%s16456_s11] sm:$0xff]   ;;  %v14179_v63 = vld [vmem:[%s16456_s11 + $0x8] sm:$0xff]   ;;  %v14180_v38 = vld [vmem:[%s16456_s11 + $0x10] sm:$0xff]  }
0x170f   :  { %v14181_v56 = vld [vmem:[%s16456_s11 + $0x18] sm:$0xff]   ;;  %v14182_v46 = vld [vmem:[%s16456_s11 + $0x20] sm:$0xff]   ;;  %v14183_v62 = vld [vmem:[%s16456_s11 + $0x28] sm:$0xff]  }
0x1710   :  { %v9165_v39 = vpack.c.bf16 %v9162_v2, %v9161_v1  ;;  %v9166_v24 = vpack.c.bf16 %v9164_v43, %v9163_v52  ;;  %v14184_v28 = vld [vmem:[%s16456_s11 + $0x30] sm:$0xff]   ;;  %v14185_v42 = vld [vmem:[%s16456_s11 + $0x38] sm:$0xff]   ;;  %v14186_v55 = vld [vmem:[%s16456_s11 + $0x80] sm:$0xff]  }
0x1711   :  { %9369 = vrot.lane.b32.xlu1 %v8730_v20, %s14807_s10  ;;  %v14187_v1 = vld [vmem:[%s16456_s11 + $0x88] sm:$0xff]   ;;  %v14188_v2 = vld [vmem:[%s16456_s11 + $0x90] sm:$0xff]   ;;  %v14189_v52 = vld [vmem:[%s16456_s11 + $0x98] sm:$0xff]  }
0x1712   :  { %9376 = vrot.lane.b32.xlu0 %v16056_v17, %s14807_s10  ;;  %v14190_v43 = vld [vmem:[%s16456_s11 + $0xa0] sm:$0xff]  }
0x1715   :  { %9226 = vrot.lane.b32.xlu1 %v9165_v39, %s14779_s5  ;;  %v14191_v39 = vld [vmem:[%s16456_s11 + $0xa8] sm:$0xff]  }
0x1716   :  { %9228 = vrot.lane.b32.xlu0 %v9166_v24, %s14779_s5  ;;  %v14192_v24 = vld [vmem:[%s16456_s11 + $0xb0] sm:$0xff]  }
0x177f   :  { %v8856_v4 = vpop.permute.xlu1 %8855 }
0x1780   :  { %v8858_v19 = vpop.permute.xlu0 %8857  ;;  %12620 = vmatprep.subr.bf16.mxu1 %v8856_v4 }
0x1781   :  { %12621 = vmatpush3.bf16.msra.mxu1 %v8856_v4  ;;  %v14201_v4 = vld [vmem:[%s16456_s11 + $0xf8] sm:$0xff]  }
0x1782   :  { %12622 = vmatprep.subr.bf16.mxu1 %v8858_v19 }
0x1783   :  { %v9370_v21 = vpop.permute.xlu1 %9369 }
0x1784   :  { %v9372_v22 = vmul.f32 %v9370_v21, %v16018_v0  ;;  %v9373_v20 = vmul.f32 %v9370_v21, %v16033_v29  ;;  %v9374_v51 = vmul.f32 %v9370_v21, %v16044_v12  ;;  %v9375_v17 = vmul.f32 %v9370_v21, %v16039_v5  ;;  %v9377_v7 = vpop.permute.xlu0 %9376 }
0x1785   :  { %12623 = vmatpush3.bf16.msra.mxu1 %v8858_v19  ;;  %v8755_v29 = vpack.c.bf16 %v8753_v11, %v8752_v15 }
0x1786   :  { %v9379_v16 = vadd.f32 %v9377_v7, %v9372_v22  ;;  %v9380_v27 = vadd.f32 %v9377_v7, %v9373_v20  ;;  %v9381_v10 = vadd.f32 %v9377_v7, %v9374_v51  ;;  %v9382_v0 = vadd.f32 %v9377_v7, %v9375_v17  ;;  %12640 = vmatprep.subr.bf16.mxu1 %v8754_v23 }
0x1787   :  { %v9227_v40 = vpop.permute.xlu1 %9226 }
0x1788   :  { %12625 = vmatmul.mubr.msk.bf16.vlgmr.msra.gmra.mrb[112].mxu1 %vm4854_vm2, %v14171_v45  ;;  %v9385_v12 = vmul.f32 0.01, %v9381_v10  ;;  %v9386_v5 = vmul.f32 0.01, %v9382_v0  ;;  %v9383_v35 = vmul.f32 0.01, %v9379_v16  ;;  %v9229_v37 = vpop.permute.xlu0 %9228 }
0x1789   :  { %12641 = vmatpush3.bf16.msra.mxu1 %v8754_v23  ;;  %v9384_v33 = vmul.f32 0.01, %v9380_v27  ;;  %12628 = vmatprep.mubr.msk.bf16.mxu1 %vm4854_vm2, %v14172_v25 }
0x178a   :  { %12642 = vmatprep.subr.bf16.mxu1 %v8755_v29  ;;  %v9389_v32 = vmax.f32 %v9381_v10, %v9385_v12  ;;  %v9390_v54 = vmax.f32 %v9382_v0, %v9386_v5  ;;  %v9387_v41 = vmax.f32 %v9379_v16, %v9383_v35 }
0x178b   :  { %v9388_v26 = vmax.f32 %v9380_v27, %v9384_v33 }
0x178c   :  { %v9392_v18 = vpack.c.bf16 %v9390_v54, %v9389_v32  ;;  %v14232_v32 = vld [vmem:[#allocation30 + $0x10] sm:$0xff]   ;;  %v14203_v54 = vld [vmem:[#allocation28 + $0x8] sm:$0xff]  }
0x178d   :  { %12643 = vmatpush3.bf16.msra.mxu1 %v8755_v29  ;;  %v9391_v53 = vpack.c.bf16 %v9388_v26, %v9387_v41  ;;  %v14204_v41 = vld [vmem:[#allocation28 + $0x10] sm:$0xff]   ;;  %v14235_v26 = vld [vmem:[#allocation30 + $0x18] sm:$0xff]  }
0x178e   :  { %9454 = vrot.lane.b32.xlu0 %v9392_v18, %s14808_s25  ;;  %12660 = vmatprep.subr.bf16.mxu1 %v9227_v40  ;;  %v14205_v18 = vld [vmem:[#allocation28 + $0x18] sm:$0xff]  }
0x178f   :  { %9452 = vrot.lane.b32.xlu1 %v9391_v53, %s14808_s25  ;;  %v14208_v53 = vld [vmem:[#allocation28 + $0x30] sm:$0xff]  }
0x1790   :  { %12629 = vmatmul.mubr.msk.bf16.gmra.mrb[116].mxu1 %vm4854_vm2, %v14173_v3  ;;  %v14206_v3 = vld [vmem:[#allocation28 + $0x20] sm:$0xff]  }
0x1791   :  { %12632 = vmatprep.mubr.msk.bf16.mxu1 %vm4854_vm2, %v14174_v49  ;;  %v14209_v49 = vld [vmem:[#allocation28 + $0x38] sm:$0xff]  }
0x1798   :  { %12633 = vmatmul.mubr.msk.bf16.gmra.mrb[120].mxu1 %vm4854_vm2, %v14175_v60  ;;  %v14210_v60 = vld [vmem:[#allocation28 + $0x40] sm:$0xff]  }
0x1799   :  { %12636 = vmatprep.mubr.msk.bf16.mxu1 %vm4854_vm2, %v14176_v30  ;;  %v14211_v30 = vld [vmem:[#allocation28 + $0x48] sm:$0xff]  }
0x17a0   :  { %12637 = vmatmul.mubr.msk.bf16.gmra.mrb[124].mxu1 %vm4854_vm2, %v14177_v13  ;;  %v14212_v13 = vld [vmem:[#allocation28 + $0x50] sm:$0xff]  }
0x17a1   :  { %12644 = vmatprep.mubr.msk.bf16.mxu1 %vm4854_vm2, %v14178_v34  ;;  %v14213_v34 = vld [vmem:[#allocation28 + $0x58] sm:$0xff]  }
0x17a8   :  { %12645 = vmatmul.mubr.msk.bf16.vlgmr.msra.gmra.mrb[112].mxu1 %vm4854_vm2, %v14179_v63  ;;  %v14214_v63 = vld [vmem:[#allocation28 + $0x60] sm:$0xff]  }
0x17a9   :  { %12661 = vmatpush3.bf16.msra.mxu1 %v9227_v40  ;;  %12648 = vmatprep.mubr.msk.bf16.mxu1 %vm4854_vm2, %v14180_v38  ;;  %v14207_v40 = vld [vmem:[#allocation28 + $0x28] sm:$0xff]  }
0x17aa   :  { %12662 = vmatprep.subr.bf16.mxu1 %v9229_v37  ;;  %v14215_v38 = vld [vmem:[#allocation28 + $0x68] sm:$0xff]  }
0x17ad   :  { %12663 = vmatpush3.bf16.msra.mxu1 %v9229_v37  ;;  %v14216_v37 = vld [vmem:[#allocation28 + $0x70] sm:$0xff]  }
0x17b0   :  { %12649 = vmatmul.mubr.msk.bf16.gmra.mrb[116].mxu1 %vm4854_vm2, %v14181_v56  ;;  %v14217_v56 = vld [vmem:[#allocation28 + $0x78] sm:$0xff]  }
0x17b1   :  { %12652 = vmatprep.mubr.msk.bf16.mxu1 %vm4854_vm2, %v14182_v46  ;;  %v14218_v46 = vld [vmem:[#allocation28 + $0x80] sm:$0xff]  }
0x17b8   :  { %12653 = vmatmul.mubr.msk.bf16.gmra.mrb[120].mxu1 %vm4854_vm2, %v14183_v62  ;;  %v14219_v62 = vld [vmem:[#allocation28 + $0x88] sm:$0xff]  }
0x17b9   :  { %12656 = vmatprep.mubr.msk.bf16.mxu1 %vm4854_vm2, %v14184_v28  ;;  %v14220_v28 = vld [vmem:[#allocation28 + $0x90] sm:$0xff]  }
0x17c0   :  { %12657 = vmatmul.mubr.msk.bf16.gmra.mrb[124].mxu1 %vm4854_vm2, %v14185_v42  ;;  %v14221_v42 = vld [vmem:[#allocation28 + $0x98] sm:$0xff]  }
0x17c1   :  { %12664 = vmatprep.mubr.msk.bf16.mxu1 %vm4854_vm2, %v14186_v55  ;;  %v14222_v55 = vld [vmem:[#allocation28 + $0xa0] sm:$0xff]  }
0x17c8   :  { %12665 = vmatmul.mubr.msk.bf16.vlgmr.msra.gmra.mrb[112].mxu1 %vm4854_vm2, %v14187_v1  ;;  %v14223_v1 = vld [vmem:[#allocation28 + $0xa8] sm:$0xff]  }
0x17c9   :  { %12668 = vmatprep.mubr.msk.bf16.mxu1 %vm4854_vm2, %v14188_v2  ;;  %v14224_v2 = vld [vmem:[#allocation28 + $0xb0] sm:$0xff]  }
0x17d0   :  { %12669 = vmatmul.mubr.msk.bf16.gmra.mrb[116].mxu1 %vm4854_vm2, %v14189_v52  ;;  %v14225_v52 = vld [vmem:[#allocation28 + $0xb8] sm:$0xff]  }
0x17d1   :  { %12672 = vmatprep.mubr.msk.bf16.mxu1 %vm4854_vm2, %v14190_v43  ;;  %v14226_v43 = vld [vmem:[#allocation28 + $0xc0] sm:$0xff]  }
0x17d8   :  { %12673 = vmatmul.mubr.msk.bf16.gmra.mrb[120].mxu1 %vm4854_vm2, %v14191_v39  ;;  %v14227_v39 = vld [vmem:[#allocation28 + $0xc8] sm:$0xff]  }
0x17d9   :  { %12676 = vmatprep.mubr.msk.bf16.mxu1 %vm4854_vm2, %v14192_v24  ;;  %v14228_v24 = vld [vmem:[#allocation28 + $0xd0] sm:$0xff]  }
0x17e0   :  { %12677 = vmatmul.mubr.msk.bf16.gmra.mrb[124].mxu1 %vm4854_vm2, %v14193_v31  ;;  %v14229_v31 = vld [vmem:[#allocation28 + $0xd8] sm:$0xff]  }
0x17e1   :  { %12684 = vmatprep.mubr.msk.bf16.mxu1 %vm4854_vm2, %v14194_v59  ;;  %v14230_v59 = vld [vmem:[#allocation28 + $0xe0] sm:$0xff]  }
0x1800   :  { %v9455_v47 = vpop.permute.xlu0 %9454 }
0x1801   :  { %v9453_v44 = vpop.permute.xlu1 %9452 }
0x1802   :  { %12680 = vmatprep.subr.bf16.mxu1 %v9453_v44 }
0x1803   :  { %12681 = vmatpush3.bf16.msra.mxu1 %v9453_v44  ;;  %v14231_v44 = vld [vmem:[#allocation28 + $0xe8] sm:$0xff]  }
0x1804   :  { %12682 = vmatprep.subr.bf16.mxu1 %v9455_v47 }
0x1807   :  { %12683 = vmatpush3.bf16.msra.mxu1 %v9455_v47  ;;  %v14233_v47 = vld [vmem:[#allocation28 + $0xf0] sm:$0xff]  }
0x180a   :  { %12685 = vmatmul.mubr.msk.bf16.vlgmr.msra.gmra.mrb[112].mxu1 %vm4854_vm2, %v14195_v50  ;;  %v14234_v50 = vld [vmem:[#allocation28 + $0xf8] sm:$0xff]  }
0x180b   :  { %12688 = vmatprep.mubr.msk.bf16.mxu1 %vm4854_vm2, %v14196_v6  ;;  %v14236_v6 = vld [vmem:[#allocation30] sm:$0xff]  }
0x1812   :  { %12689 = vmatmul.mubr.msk.bf16.gmra.mrb[116].mxu1 %vm4854_vm2, %v14197_v58 }
0x1813   :  { %12692 = vmatprep.mubr.msk.bf16.mxu1 %vm4854_vm2, %v14198_v61 }
0x181a   :  { %12693 = vmatmul.mubr.msk.bf16.gmra.mrb[120].mxu1 %vm4854_vm2, %v14199_v9 }
0x181b   :  { %12696 = vmatprep.mubr.msk.bf16.mxu1 %vm4854_vm2, %v14200_v8 }
0x1822   :  { %12697 = vmatmul.mubr.msk.bf16.gmra.mrb[124].mxu1 %vm4854_vm2, %v14201_v4 }
0x1823   :  { %12716 = vmatprep.mubr.bf16.mxu1 %v14202_v36 }
0x18dd   :  { %v12686_v14 = vpop.f32.mrb[112].mxu1 }
0x18de   :  { %v9516_v57 = vpop.f32.mrb[113].mxu1 }
0x18df   :  { %v12687_v48 = vpop.f32.mrb[114].mxu1 }
0x18e0   :  { %v9596_v19 = vpack.c.bf16 %v12687_v48, %v12686_v14  ;;  %v9519_v21 = vpop.f32.mrb[115].mxu1 }
0x18e1   :  { %v9595_v23 = vpack.c.bf16 %v9519_v21, %v9516_v57 }
0x18e3   :  { %12700 = vmatprep.subr.bf16.mxu1 %v9595_v23 }
0x18e4   :  { %12701 = vmatpush3.bf16.msra.mxu1 %v9595_v23 }
0x18e5   :  { %v12690_v15 = vpop.f32.mrb[116].mxu1  ;;  %12702 = vmatprep.subr.bf16.mxu1 %v9596_v19 }
0x18e6   :  { %v9532_v11 = vpop.f32.mrb[117].mxu1 }
0x18e7   :  { %v12691_v22 = vpop.f32.mrb[118].mxu1 }
0x18e8   :  { %v9598_v20 = vpack.c.bf16 %v12691_v22, %v12690_v15  ;;  %v9535_v51 = vpop.f32.mrb[119].mxu1  ;;  %12703 = vmatpush3.bf16.msra.mxu1 %v9596_v19 }
0x18e9   :  { %v9597_v17 = vpack.c.bf16 %v9535_v51, %v9532_v11 }
0x18eb   :  { %12704 = vmatprep.subr.bf16.mxu1 %v9597_v17 }
0x18ec   :  { %12705 = vmatpush3.bf16.msra.mxu1 %v9597_v17 }
0x18ed   :  { %v12694_v45 = vpop.f32.mrb[120].mxu1  ;;  %12706 = vmatprep.subr.bf16.mxu1 %v9598_v20 }
0x18ee   :  { %v9548_v7 = vpop.f32.mrb[121].mxu1 }
0x18ef   :  { %v12695_v25 = vpop.f32.mrb[122].mxu1 }
0x18f0   :  { %v9600_v16 = vpack.c.bf16 %v12695_v25, %v12694_v45  ;;  %v9551_v27 = vpop.f32.mrb[123].mxu1  ;;  %12707 = vmatpush3.bf16.msra.mxu1 %v9598_v20 }
0x18f1   :  { %v9599_v10 = vpack.c.bf16 %v9551_v27, %v9548_v7 }
0x18f3   :  { %12708 = vmatprep.subr.bf16.mxu1 %v9599_v10 }
0x18f4   :  { %12709 = vmatpush3.bf16.msra.mxu1 %v9599_v10 }
0x18f5   :  { %v12698_v0 = vpop.f32.mrb[124].mxu1  ;;  %12710 = vmatprep.subr.bf16.mxu1 %v9600_v16 }
0x18f6   :  { %v9564_v29 = vpop.f32.mrb[125].mxu1 }
0x18f7   :  { %v12699_v12 = vpop.f32.mrb[126].mxu1 }
0x18f8   :  { %v9602_v5 = vpack.c.bf16 %v12699_v12, %v12698_v0  ;;  %v9567_v35 = vpop.f32.mrb[127].mxu1  ;;  %12711 = vmatpush3.bf16.msra.mxu1 %v9600_v16 }
0x18f9   :  { %v9601_v33 = vpack.c.bf16 %v9567_v35, %v9564_v29 }
0x18fb   :  { %12712 = vmatprep.subr.bf16.mxu1 %v9601_v33 }
0x18fc   :  { %12713 = vmatpush3.bf16.msra.mxu1 %v9601_v33 }
0x18fd   :  { %12714 = vmatprep.subr.bf16.mxu1 %v9602_v5 }
0x1900   :  { %12715 = vmatpush3.bf16.msra.mxu1 %v9602_v5 }
0x1901   :  { %12780 = vmatprep.subr.bf16.mxu1 %v14232_v32 }
0x1903   :  { %12717 = vmatmul.mubr.bf16.vlgmr.msra.gmra.mrb[128].mxu1 %v14203_v54 }
0x1904   :  { %12720 = vmatprep.mubr.bf16.mxu1 %v14204_v41  ;;  %12781 = vmatpush3.bf16.msra.mxu1 %v14232_v32  ;;  %v14237_v32 = vld [vmem:[#allocation30 + $0x8] sm:$0xff]  }
0x1905   :  { %12782 = vmatprep.subr.bf16.mxu1 %v14235_v26 }
0x1908   :  { %12783 = vmatpush3.bf16.msra.mxu1 %v14235_v26  ;;  %v14238_v26 = vld [vmem:[#allocation30 + $0x20] sm:$0xff]  }
0x1909   :  { %12800 = vmatprep.subr.bf16.mxu1 %v14236_v6 }
0x190b   :  { %12721 = vmatmul.mubr.bf16.gmra.mrb[132].mxu1 %v14205_v18 }
0x190c   :  { %12724 = vmatprep.mubr.bf16.mxu1 %v14206_v3 }
0x1913   :  { %12725 = vmatmul.mubr.bf16.gmra.mrb[136].mxu1 %v14207_v40 }
0x1914   :  { %12728 = vmatprep.mubr.bf16.mxu1 %v14208_v53 }
0x191b   :  { %12729 = vmatmul.mubr.bf16.gmra.mrb[140].mxu1 %v14209_v49 }
0x191c   :  { %12732 = vmatprep.mubr.bf16.mxu1 %v14210_v60 }
0x1923   :  { %12733 = vmatmul.mubr.bf16.gmra.mrb[144].mxu1 %v14211_v30 }
0x1924   :  { %12736 = vmatprep.mubr.bf16.mxu1 %v14212_v13 }
0x192b   :  { %12737 = vmatmul.mubr.bf16.gmra.mrb[148].mxu1 %v14213_v34 }
0x192c   :  { %12740 = vmatprep.mubr.bf16.mxu1 %v14214_v63 }
0x1933   :  { %12741 = vmatmul.mubr.bf16.gmra.mrb[152].mxu1 %v14215_v38 }
0x1934   :  { %12744 = vmatprep.mubr.bf16.mxu1 %v14216_v37 }
0x193b   :  { %12745 = vmatmul.mubr.bf16.gmra.mrb[156].mxu1 %v14217_v56 }
0x193c   :  { %12748 = vmatprep.mubr.bf16.mxu1 %v14218_v46 }
0x1943   :  { %12749 = vmatmul.mubr.bf16.gmra.mrb[160].mxu1 %v14219_v62 }
0x1944   :  { %12752 = vmatprep.mubr.bf16.mxu1 %v14220_v28 }
0x194b   :  { %12753 = vmatmul.mubr.bf16.gmra.mrb[164].mxu1 %v14221_v42 }
0x194c   :  { %12756 = vmatprep.mubr.bf16.mxu1 %v14222_v55 }
0x1953   :  { %12757 = vmatmul.mubr.bf16.gmra.mrb[168].mxu1 %v14223_v1 }
0x1954   :  { %12760 = vmatprep.mubr.bf16.mxu1 %v14224_v2 }
0x195b   :  { %12761 = vmatmul.mubr.bf16.gmra.mrb[172].mxu1 %v14225_v52 }
0x195c   :  { %12764 = vmatprep.mubr.bf16.mxu1 %v14226_v43 }
0x1963   :  { %12765 = vmatmul.mubr.bf16.gmra.mrb[176].mxu1 %v14227_v39  ;;  %v14239_v39 = vld [vmem:[#allocation30 + $0x28] sm:$0xff]  }
0x1964   :  { %12768 = vmatprep.mubr.bf16.mxu1 %v14228_v24 }
0x196b   :  { %12769 = vmatmul.mubr.bf16.gmra.mrb[180].mxu1 %v14229_v31 }
0x196c   :  { %12772 = vmatprep.mubr.bf16.mxu1 %v14230_v59  ;;  %v14240_v59 = vld [vmem:[#allocation30 + $0x30] sm:$0xff]  }
0x1973   :  { %12773 = vmatmul.mubr.bf16.gmra.mrb[184].mxu1 %v14231_v44 }
0x1974   :  { %12776 = vmatprep.mubr.bf16.mxu1 %v14233_v47 }
0x197b   :  { %12777 = vmatmul.mubr.bf16.gmra.mrb[188].mxu1 %v14234_v50 }
0x19d6   :  { %v16234_v58 = vpop.f32.mrb[128].mxu1 }
0x19d7   :  { %v9893_v61 = vpop.f32.mrb[129].mxu1 }
0x19d8   :  { %v16236_v9 = vpop.f32.mrb[130].mxu1 }
0x19d9   :  { %v10149_v8 = vpack.c.bf16 %v16236_v9, %v16234_v58  ;;  %v9896_v4 = vpop.f32.mrb[131].mxu1 }
0x19da   :  { %v10148_v36 = vpack.c.bf16 %v9896_v4, %v9893_v61 }
0x19de   :  { %v16240_v14 = vpop.f32.mrb[132].mxu1 }
0x19df   :  { %v16242_v57 = vpop.f32.mrb[133].mxu1 }
0x19e0   :  { %v16244_v48 = vpop.f32.mrb[134].mxu1 }
0x19e1   :  { %v10151_v19 = vpack.c.bf16 %v16244_v48, %v16240_v14  ;;  %v9912_v21 = vpop.f32.mrb[135].mxu1 }
0x19e2   :  { %v10150_v23 = vpack.c.bf16 %v9912_v21, %v16242_v57 }
0x19e6   :  { %v16249_v15 = vpop.f32.mrb[136].mxu1 }
0x19e7   :  { %v16251_v11 = vpop.f32.mrb[137].mxu1 }
0x19e8   :  { %v16253_v22 = vpop.f32.mrb[138].mxu1 }
0x19e9   :  { %v10153_v20 = vpack.c.bf16 %v16253_v22, %v16249_v15  ;;  %v16257_v51 = vpop.f32.mrb[139].mxu1 }
0x19ea   :  { %v10152_v17 = vpack.c.bf16 %v16257_v51, %v16251_v11 }
0x19ee   :  { %v16261_v45 = vpop.f32.mrb[140].mxu1 }
0x19ef   :  { %v16263_v7 = vpop.f32.mrb[141].mxu1 }
0x19f0   :  { %v16265_v25 = vpop.f32.mrb[142].mxu1 }
0x19f1   :  { %v10155_v16 = vpack.c.bf16 %v16265_v25, %v16261_v45  ;;  %v16269_v27 = vpop.f32.mrb[143].mxu1 }
0x19f2   :  { %v10154_v10 = vpack.c.bf16 %v16269_v27, %v16263_v7  ;;  %v14241_v7 = vld [vmem:[#allocation30 + $0x38] sm:$0xff]  }
0x19f6   :  { %v12734_v0 = vpop.f32.mrb[144].mxu1 }
0x19f7   :  { %v9957_v29 = vpop.f32.mrb[145].mxu1 }
0x19f8   :  { %v12735_v12 = vpop.f32.mrb[146].mxu1 }
0x19f9   :  { %v10161_v5 = vpack.c.bf16 %v12735_v12, %v12734_v0  ;;  %v9960_v35 = vpop.f32.mrb[147].mxu1 }
0x19fa   :  { %v10160_v33 = vpack.c.bf16 %v9960_v35, %v9957_v29 }
0x19fc   :  { %12784 = vmatprep.mubr.msk.bf16.mxu1 %vm4854_vm2, %v10160_v33 }
0x19fd   :  { %12785 = vmatmul.mubr.msk.bf16.vlgmr.msra.gmra.mrb[192].mxu1 %vm4854_vm2, %v10161_v5 }
0x19fe   :  { %v12738_v54 = vpop.f32.mrb[148].mxu1  ;;  %12801 = vmatpush3.bf16.msra.mxu1 %v14236_v6 }
0x19ff   :  { %v9973_v41 = vpop.f32.mrb[149].mxu1  ;;  %12802 = vmatprep.subr.bf16.mxu1 %v14237_v32 }
0x1a00   :  { %v12739_v18 = vpop.f32.mrb[150].mxu1 }
0x1a01   :  { %v10163_v3 = vpack.c.bf16 %v12739_v18, %v12738_v54  ;;  %v9976_v40 = vpop.f32.mrb[151].mxu1 }
0x1a02   :  { %v10162_v53 = vpack.c.bf16 %v9976_v40, %v9973_v41  ;;  %12803 = vmatpush3.bf16.msra.mxu1 %v14237_v32 }
0x1a03   :  { %12820 = vmatprep.subr.bf16.mxu1 %v14238_v26 }
0x1a04   :  { %12788 = vmatprep.mubr.msk.bf16.mxu1 %vm4854_vm2, %v10162_v53  ;;  %v16323_v53 = vld [vmem:[#allocation31] ss:$0 sm:$0xff] }
0x1a05   :  { %12789 = vmatmul.mubr.msk.bf16.gmra.mrb[196].mxu1 %vm4854_vm2, %v10163_v3 }
0x1a06   :  { %v12742_v49 = vpop.f32.mrb[152].mxu1 }
0x1a07   :  { %v9989_v60 = vpop.f32.mrb[153].mxu1 }
0x1a08   :  { %v12743_v30 = vpop.f32.mrb[154].mxu1 }
0x1a09   :  { %v10165_v13 = vpack.c.bf16 %v12743_v30, %v12742_v49  ;;  %v9992_v34 = vpop.f32.mrb[155].mxu1 }
0x1a0a   :  { %v10164_v63 = vpack.c.bf16 %v9992_v34, %v9989_v60 }
0x1a0c   :  { %12792 = vmatprep.mubr.msk.bf16.mxu1 %vm4854_vm2, %v10164_v63 }
0x1a0d   :  { %12793 = vmatmul.mubr.msk.bf16.gmra.mrb[200].mxu1 %vm4854_vm2, %v10165_v13 }
0x1a0e   :  { %v12746_v38 = vpop.f32.mrb[156].mxu1 }
0x1a0f   :  { %v10005_v37 = vpop.f32.mrb[157].mxu1 }
0x1a10   :  { %v12747_v56 = vpop.f32.mrb[158].mxu1 }
0x1a11   :  { %v10167_v46 = vpack.c.bf16 %v12747_v56, %v12746_v38  ;;  %v10008_v62 = vpop.f32.mrb[159].mxu1 }
0x1a12   :  { %v10166_v28 = vpack.c.bf16 %v10008_v62, %v10005_v37 }
0x1a14   :  { %12796 = vmatprep.mubr.msk.bf16.mxu1 %vm4854_vm2, %v10166_v28 }
0x1a15   :  { %12797 = vmatmul.mubr.msk.bf16.gmra.mrb[204].mxu1 %vm4854_vm2, %v10167_v46 }
0x1a16   :  { %12804 = vmatprep.mubr.msk.bf16.mxu1 %vm4854_vm2, %v10148_v36  ;;  %v12750_v42 = vpop.f32.mrb[160].mxu1 }
0x1a17   :  { %v10021_v55 = vpop.f32.mrb[161].mxu1 }
0x1a18   :  { %v12751_v1 = vpop.f32.mrb[162].mxu1 }
0x1a19   :  { %v10440_v2 = vpack.c.bf16 %v12751_v1, %v12750_v42  ;;  %v10024_v52 = vpop.f32.mrb[163].mxu1 }
0x1a1a   :  { %v10439_v43 = vpack.c.bf16 %v10024_v52, %v10021_v55 }
0x1a1d   :  { %12805 = vmatmul.mubr.msk.bf16.vlgmr.msra.gmra.mrb[192].mxu1 %vm4854_vm2, %v10149_v8 }
0x1a1e   :  { %12808 = vmatprep.mubr.msk.bf16.mxu1 %vm4854_vm2, %v10150_v23  ;;  %12821 = vmatpush3.bf16.msra.mxu1 %v14238_v26  ;;  %v12754_v24 = vpop.f32.mrb[164].mxu1 }
0x1a1f   :  { %12822 = vmatprep.subr.bf16.mxu1 %v14239_v39  ;;  %v10037_v31 = vpop.f32.mrb[165].mxu1 }
0x1a20   :  { %v12755_v44 = vpop.f32.mrb[166].mxu1 }
0x1a21   :  { %v10442_v47 = vpack.c.bf16 %v12755_v44, %v12754_v24  ;;  %v10040_v50 = vpop.f32.mrb[167].mxu1 }
0x1a22   :  { %12823 = vmatpush3.bf16.msra.mxu1 %v14239_v39  ;;  %v10441_v6 = vpack.c.bf16 %v10040_v50, %v10037_v31 }
0x1a23   :  { %12840 = vmatprep.subr.bf16.mxu1 %v14240_v59 }
0x1a25   :  { %12809 = vmatmul.mubr.msk.bf16.gmra.mrb[196].mxu1 %vm4854_vm2, %v10151_v19 }
0x1a26   :  { %12812 = vmatprep.mubr.msk.bf16.mxu1 %vm4854_vm2, %v10152_v17  ;;  %v12758_v58 = vpop.f32.mrb[168].mxu1 }
0x1a27   :  { %v10053_v61 = vpop.f32.mrb[169].mxu1 }
0x1a28   :  { %v12759_v9 = vpop.f32.mrb[170].mxu1 }
0x1a29   :  { %v10444_v8 = vpack.c.bf16 %v12759_v9, %v12758_v58  ;;  %v10056_v4 = vpop.f32.mrb[171].mxu1 }
0x1a2a   :  { %v10443_v36 = vpack.c.bf16 %v10056_v4, %v10053_v61 }
0x1a2d   :  { %12813 = vmatmul.mubr.msk.bf16.gmra.mrb[200].mxu1 %vm4854_vm2, %v10153_v20 }
0x1a2e   :  { %12816 = vmatprep.mubr.msk.bf16.mxu1 %vm4854_vm2, %v10154_v10  ;;  %v12762_v14 = vpop.f32.mrb[172].mxu1 }
0x1a2f   :  { %v10069_v57 = vpop.f32.mrb[173].mxu1 }
0x1a30   :  { %v12763_v48 = vpop.f32.mrb[174].mxu1 }
0x1a31   :  { %v10446_v19 = vpack.c.bf16 %v12763_v48, %v12762_v14  ;;  %v10072_v21 = vpop.f32.mrb[175].mxu1 }
0x1a32   :  { %v10445_v23 = vpack.c.bf16 %v10072_v21, %v10069_v57 }
0x1a35   :  { %12817 = vmatmul.mubr.msk.bf16.gmra.mrb[204].mxu1 %vm4854_vm2, %v10155_v16 }
0x1a36   :  { %12824 = vmatprep.mubr.msk.bf16.mxu1 %vm4854_vm2, %v10439_v43  ;;  %v12766_v15 = vpop.f32.mrb[176].mxu1 }
0x1a37   :  { %v10085_v11 = vpop.f32.mrb[177].mxu1 }
0x1a38   :  { %v12767_v22 = vpop.f32.mrb[178].mxu1 }
0x1a39   :  { %v10602_v20 = vpack.c.bf16 %v12767_v22, %v12766_v15  ;;  %v10088_v51 = vpop.f32.mrb[179].mxu1 }
0x1a3a   :  { %v10601_v17 = vpack.c.bf16 %v10088_v51, %v10085_v11 }
0x1a3d   :  { %12825 = vmatmul.mubr.msk.bf16.vlgmr.msra.gmra.mrb[192].mxu1 %vm4854_vm2, %v10440_v2 }
0x1a3e   :  { %12828 = vmatprep.mubr.msk.bf16.mxu1 %vm4854_vm2, %v10441_v6  ;;  %12841 = vmatpush3.bf16.msra.mxu1 %v14240_v59  ;;  %v12770_v27 = vpop.f32.mrb[180].mxu1 }
0x1a3f   :  { %12842 = vmatprep.subr.bf16.mxu1 %v14241_v7  ;;  %v10101_v10 = vpop.f32.mrb[181].mxu1 }
0x1a40   :  { %v12771_v45 = vpop.f32.mrb[182].mxu1 }
0x1a41   :  { %v10604_v25 = vpack.c.bf16 %v12771_v45, %v12770_v27  ;;  %v10104_v16 = vpop.f32.mrb[183].mxu1 }
0x1a42   :  { %12843 = vmatpush3.bf16.msra.mxu1 %v14241_v7  ;;  %v10603_v0 = vpack.c.bf16 %v10104_v16, %v10101_v10 }
0x1a45   :  { %12829 = vmatmul.mubr.msk.bf16.gmra.mrb[196].mxu1 %vm4854_vm2, %v10442_v47 }
0x1a46   :  { %12832 = vmatprep.mubr.msk.bf16.mxu1 %vm4854_vm2, %v10443_v36  ;;  %v12774_v29 = vpop.f32.mrb[184].mxu1 }
0x1a47   :  { %v10117_v12 = vpop.f32.mrb[185].mxu1 }
0x1a48   :  { %v12775_v5 = vpop.f32.mrb[186].mxu1 }
0x1a49   :  { %v10606_v35 = vpack.c.bf16 %v12775_v5, %v12774_v29  ;;  %v10120_v33 = vpop.f32.mrb[187].mxu1 }
0x1a4a   :  { %v10605_v32 = vpack.c.bf16 %v10120_v33, %v10117_v12 }
0x1a4d   :  { %12833 = vmatmul.mubr.msk.bf16.gmra.mrb[200].mxu1 %vm4854_vm2, %v10444_v8 }
0x1a4e   :  { %12836 = vmatprep.mubr.msk.bf16.mxu1 %vm4854_vm2, %v10445_v23  ;;  %v12778_v54 = vpop.f32.mrb[188].mxu1 }
0x1a4f   :  { %v10133_v41 = vpop.f32.mrb[189].mxu1 }
0x1a50   :  { %v12779_v26 = vpop.f32.mrb[190].mxu1 }
0x1a51   :  { %v10608_v18 = vpack.c.bf16 %v12779_v26, %v12778_v54  ;;  %v10136_v3 = vpop.f32.mrb[191].mxu1 }
0x1a52   :  { %v10607_v40 = vpack.c.bf16 %v10136_v3, %v10133_v41 }
0x1a55   :  { %12837 = vmatmul.mubr.msk.bf16.gmra.mrb[204].mxu1 %vm4854_vm2, %v10446_v19 }
0x1a56   :  { %12844 = vmatprep.mubr.msk.bf16.mxu1 %vm4854_vm2, %v10601_v17 }
0x1a5d   :  { %12845 = vmatmul.mubr.msk.bf16.vlgmr.msra.gmra.mrb[192].mxu1 %vm4854_vm2, %v10602_v20 }
0x1a5e   :  { %12848 = vmatprep.mubr.msk.bf16.mxu1 %vm4854_vm2, %v10603_v0 }
0x1a65   :  { %12849 = vmatmul.mubr.msk.bf16.gmra.mrb[196].mxu1 %vm4854_vm2, %v10604_v25 }
0x1a66   :  { %12852 = vmatprep.mubr.msk.bf16.mxu1 %vm4854_vm2, %v10605_v32 }
0x1a6d   :  { %12853 = vmatmul.mubr.msk.bf16.gmra.mrb[200].mxu1 %vm4854_vm2, %v10606_v35 }
0x1a6e   :  { %12856 = vmatprep.mubr.msk.bf16.mxu1 %vm4854_vm2, %v10607_v40 }
0x1a75   :  { %12857 = vmatmul.mubr.msk.bf16.gmra.mrb[204].mxu1 %vm4854_vm2, %v10608_v18 }
0x1b30   :  { %v12846_v49 = vpop.f32.mrb[192].mxu1 }
0x1b31   :  { %v10772_v60 = vadd.f32 %v12846_v49, %v16323_v53  ;;  %v10684_v30 = vpop.f32.mrb[193].mxu1 }
0x1b32   :  { %v10770_v13 = vadd.f32 %v16323_v53, %v10684_v30  ;;  %v12847_v34 = vpop.f32.mrb[194].mxu1 }
0x1b33   :  { %v10788_v63 = vsub.f32 0.0, %v10772_v60  ;;  %v10773_v38 = vadd.f32 %v12847_v34, %v16323_v53  ;;  %v10687_v37 = vpop.f32.mrb[195].mxu1 }
0x1b34   :  { %v10786_v56 = vsub.f32 0.0, %v10770_v13  ;;  %v10771_v46 = vadd.f32 %v16323_v53, %v10687_v37 }
0x1b35   :  { %v10806_v62 = vmul.f32 1.442695, %v10788_v63  ;;  %v10789_v28 = vsub.f32 0.0, %v10773_v38 }
0x1b36   :  { %v10802_v42 = vmul.f32 1.442695, %v10786_v56  ;;  %v10787_v55 = vsub.f32 0.0, %v10771_v46 }
0x1b37   :  { %14252 = vpow2.f32 %v10806_v62  ;;  %v10808_v1 = vmul.f32 1.442695, %v10789_v28 }
0x1b38   :  { %14254 = vpow2.f32 %v10802_v42  ;;  %v10804_v2 = vmul.f32 1.442695, %v10787_v55  ;;  %v12850_v52 = vpop.f32.mrb[196].mxu1 }
0x1b39   :  { %14256 = vpow2.f32 %v10808_v1  ;;  %v10776_v43 = vadd.f32 %v12850_v52, %v16323_v53  ;;  %v10700_v39 = vpop.f32.mrb[197].mxu1 }
0x1b3a   :  { %14258 = vpow2.f32 %v10804_v2  ;;  %v10774_v24 = vadd.f32 %v16323_v53, %v10700_v39  ;;  %v12851_v31 = vpop.f32.mrb[198].mxu1 }
0x1b3b   :  { %v10792_v59 = vsub.f32 0.0, %v10776_v43  ;;  %v10777_v44 = vadd.f32 %v12851_v31, %v16323_v53  ;;  %v10703_v47 = vpop.f32.mrb[199].mxu1 }
0x1b3c   :  { %v10790_v50 = vsub.f32 0.0, %v10774_v24  ;;  %v10775_v6 = vadd.f32 %v16323_v53, %v10703_v47 }
0x1b3d   :  { %v10814_v58 = vmul.f32 1.442695, %v10792_v59  ;;  %v10793_v61 = vsub.f32 0.0, %v10777_v44 }
0x1b3e   :  { %v10810_v9 = vmul.f32 1.442695, %v10790_v50  ;;  %v10791_v8 = vsub.f32 0.0, %v10775_v6 }
0x1b3f   :  { %14260 = vpow2.f32 %v10814_v58  ;;  %v10816_v4 = vmul.f32 1.442695, %v10793_v61 }
0x1b40   :  { %14262 = vpow2.f32 %v10810_v9  ;;  %v10812_v36 = vmul.f32 1.442695, %v10791_v8  ;;  %v12854_v14 = vpop.f32.mrb[200].mxu1 }
0x1b41   :  { %v14253_v57 = vpop.eup %14252  ;;  %14264 = vpow2.f32 %v10816_v4  ;;  %v10780_v48 = vadd.f32 %v12854_v14, %v16323_v53  ;;  %v10716_v19 = vpop.f32.mrb[201].mxu1 }
0x1b42   :  { %v14255_v21 = vpop.eup %14254  ;;  %v10836_v23 = vadd.f32 1.0, %v14253_v57  ;;  %14266 = vpow2.f32 %v10812_v36  ;;  %v10778_v15 = vadd.f32 %v16323_v53, %v10716_v19  ;;  %v12855_v11 = vpop.f32.mrb[202].mxu1 }
0x1b43   :  { %v14257_v22 = vpop.eup %14256  ;;  %v10834_v20 = vadd.f32 1.0, %v14255_v21  ;;  %v10796_v51 = vsub.f32 0.0, %v10780_v48  ;;  %v10781_v17 = vadd.f32 %v12855_v11, %v16323_v53  ;;  %v10719_v7 = vpop.f32.mrb[203].mxu1 }
0x1b44   :  { %v14259_v27 = vpop.eup %14258  ;;  %14268 = vrcp.f32 %v10836_v23  ;;  %v10837_v10 = vadd.f32 1.0, %v14257_v22  ;;  %v10794_v45 = vsub.f32 0.0, %v10778_v15  ;;  %v10779_v25 = vadd.f32 %v16323_v53, %v10719_v7 }
0x1b45   :  { %14270 = vrcp.f32 %v10834_v20  ;;  %v10835_v16 = vadd.f32 1.0, %v14259_v27  ;;  %v10822_v0 = vmul.f32 1.442695, %v10796_v51  ;;  %v10797_v29 = vsub.f32 0.0, %v10781_v17 }
0x1b46   :  { %14272 = vrcp.f32 %v10837_v10  ;;  %v10818_v12 = vmul.f32 1.442695, %v10794_v45  ;;  %v10795_v5 = vsub.f32 0.0, %v10779_v25 }
0x1b47   :  { %14274 = vrcp.f32 %v10835_v16  ;;  %v10824_v35 = vmul.f32 1.442695, %v10797_v29 }
0x1b48   :  { %14276 = vpow2.f32 %v10822_v0  ;;  %v10820_v33 = vmul.f32 1.442695, %v10795_v5  ;;  %v12858_v32 = vpop.f32.mrb[204].mxu1 }
0x1b49   :  { %v14261_v54 = vpop.eup %14260  ;;  %14278 = vpow2.f32 %v10818_v12  ;;  %v10784_v41 = vadd.f32 %v12858_v32, %v16323_v53  ;;  %v10732_v26 = vpop.f32.mrb[205].mxu1 }
0x1b4a   :  { %v14263_v18 = vpop.eup %14262  ;;  %v10840_v3 = vadd.f32 1.0, %v14261_v54  ;;  %14280 = vpow2.f32 %v10824_v35  ;;  %v10782_v40 = vadd.f32 %v16323_v53, %v10732_v26  ;;  %v12859_v49 = vpop.f32.mrb[206].mxu1 }
0x1b4b   :  { %v14265_v60 = vpop.eup %14264  ;;  %v10838_v30 = vadd.f32 1.0, %v14263_v18  ;;  %14282 = vpow2.f32 %v10820_v33  ;;  %v10800_v13 = vsub.f32 0.0, %v10784_v41  ;;  %v10785_v34 = vadd.f32 %v12859_v49, %v16323_v53  ;;  %v10735_v63 = vpop.f32.mrb[207].mxu1 }
0x1b4c   :  { %v14267_v38 = vpop.eup %14266  ;;  %14284 = vrcp.f32 %v10840_v3  ;;  %v10841_v37 = vadd.f32 1.0, %v14265_v60  ;;  %v10798_v56 = vsub.f32 0.0, %v10782_v40  ;;  %v10783_v46 = vadd.f32 %v16323_v53, %v10735_v63 }
0x1b4d   :  { %14286 = vrcp.f32 %v10838_v30  ;;  %v10839_v62 = vadd.f32 1.0, %v14267_v38  ;;  %v10830_v28 = vmul.f32 1.442695, %v10800_v13  ;;  %v10801_v42 = vsub.f32 0.0, %v10785_v34 }
0x1b4e   :  { %v14269_v55 = vpop.eup %14268  ;;  %14288 = vrcp.f32 %v10841_v37  ;;  %v10826_v1 = vmul.f32 1.442695, %v10798_v56  ;;  %v10799_v2 = vsub.f32 0.0, %v10783_v46 }
0x1b4f   :  { %v14271_v52 = vpop.eup %14270  ;;  %10884 = vst [vmem:[%s16457_s16 + $0x10] sm:$0xff] %v14269_v55  ;;  %14290 = vrcp.f32 %v10839_v62  ;;  %v10832_v43 = vmul.f32 1.442695, %v10801_v42 }
0x1b50   :  { %v14273_v39 = vpop.eup %14272  ;;  %10882 = vst [vmem:[%s16457_s16] sm:$0xff] %v14271_v52  ;;  %14292 = vpow2.f32 %v10830_v28  ;;  %v10828_v53 = vmul.f32 1.442695, %v10799_v2 }
0x1b51   :  { %v14275_v24 = vpop.eup %14274  ;;  %10885 = vst [vmem:[%s16457_s16 + $0x18] sm:$0xff] %v14273_v39  ;;  %14294 = vpow2.f32 %v10826_v1 }
0x1b52   :  { %v14277_v31 = vpop.eup %14276  ;;  %10883 = vst [vmem:[%s16457_s16 + $0x8] sm:$0xff] %v14275_v24  ;;  %14296 = vpow2.f32 %v10832_v43 }
0x1b53   :  { %v14279_v59 = vpop.eup %14278  ;;  %v10844_v44 = vadd.f32 1.0, %v14277_v31  ;;  %14298 = vpow2.f32 %v10828_v53 }
0x1b54   :  { %v14281_v47 = vpop.eup %14280  ;;  %v10842_v50 = vadd.f32 1.0, %v14279_v59 }
0x1b55   :  { %v14283_v6 = vpop.eup %14282  ;;  %14300 = vrcp.f32 %v10844_v44  ;;  %v10845_v58 = vadd.f32 1.0, %v14281_v47 }
0x1b56   :  { %v14285_v61 = vpop.eup %14284  ;;  %14302 = vrcp.f32 %v10842_v50  ;;  %v10843_v9 = vadd.f32 1.0, %v14283_v6 }
0x1b57   :  { %v14287_v8 = vpop.eup %14286  ;;  %10888 = vst [vmem:[%s16457_s16 + $0x30] sm:$0xff] %v14285_v61  ;;  %14304 = vrcp.f32 %v10845_v58 }
0x1b58   :  { %v14289_v4 = vpop.eup %14288  ;;  %10886 = vst [vmem:[%s16457_s16 + $0x20] sm:$0xff] %v14287_v8  ;;  %14306 = vrcp.f32 %v10843_v9 }
0x1b59   :  { %v14291_v36 = vpop.eup %14290  ;;  %10889 = vst [vmem:[%s16457_s16 + $0x38] sm:$0xff] %v14289_v4 }
0x1b5a   :  { %v14293_v14 = vpop.eup %14292  ;;  %10887 = vst [vmem:[%s16457_s16 + $0x28] sm:$0xff] %v14291_v36 }
0x1b5b   :  { %v14295_v57 = vpop.eup %14294  ;;  %v10848_v48 = vadd.f32 1.0, %v14293_v14 }
0x1b5c   :  { %v14297_v19 = vpop.eup %14296  ;;  %v10846_v21 = vadd.f32 1.0, %v14295_v57 }
0x1b5d   :  { %v14299_v23 = vpop.eup %14298  ;;  %14308 = vrcp.f32 %v10848_v48  ;;  %v10849_v15 = vadd.f32 1.0, %v14297_v19 }
0x1b5e   :  { %14310 = vrcp.f32 %v10846_v21  ;;  %v10847_v11 = vadd.f32 1.0, %v14299_v23 }
0x1b5f   :  { %v14301_v22 = vpop.eup %14300  ;;  %14312 = vrcp.f32 %v10849_v15 }
0x1b60   :  { %v14303_v20 = vpop.eup %14302  ;;  %10892 = vst [vmem:[%s16457_s16 + $0x50] sm:$0xff] %v14301_v22  ;;  %14314 = vrcp.f32 %v10847_v11 }
0x1b61   :  { %v14305_v51 = vpop.eup %14304  ;;  %10890 = vst [vmem:[%s16457_s16 + $0x40] sm:$0xff] %v14303_v20 }
0x1b62   :  { %v14307_v17 = vpop.eup %14306  ;;  %10893 = vst [vmem:[%s16457_s16 + $0x58] sm:$0xff] %v14305_v51 }
0x1b63   :  { %10891 = vst [vmem:[%s16457_s16 + $0x48] sm:$0xff] %v14307_v17 }
0x1b67   :  { %v14309_v7 = vpop.eup %14308 }
0x1b68   :  { %v14311_v27 = vpop.eup %14310  ;;  %10896 = vst [vmem:[%s16457_s16 + $0x70] sm:$0xff] %v14309_v7 }
0x1b69   :  { %v14313_v10 = vpop.eup %14312  ;;  %10894 = vst [vmem:[%s16457_s16 + $0x60] sm:$0xff] %v14311_v27 }
0x1b6a   :  { %v14315_v45 = vpop.eup %14314  ;;  %10897 = vst [vmem:[%s16457_s16 + $0x78] sm:$0xff] %v14313_v10 }
0x1b6b   :  { %10895 = vst [vmem:[%s16457_s16 + $0x68] sm:$0xff] %v14315_v45 }
0x1b6c   :  { %10902 = vsyncpa [#allocation3], 1 }
0x1b6d   :  { %10903 = vsyncpa [#allocation5], 1 }
0x1b6e   :  { %10904 = vsyncpa [#allocation8], 1 }
0x1b6f   :  { %10905 = vsyncpa [#allocation11], 1 }
0x1b70   :  { %10906 = vsyncpa [#allocation14], 1 }
0x1b71   :  { %10907 = vsyncpa [#allocation17], 1 }
0x1b72   :  { %10908 = vsyncpa [#allocation20], 1 }
0x1b73   :  { %10909 = vsyncpa [#allocation23], 1 }
0x1b74   :  { %10910 = vsyncpa [#allocation26], 1 }
0x1b75   :  { %10911 = vsyncpa [#allocation29], 1 }
0x1b76   :  { %10912 = vsyncpa [#allocation32], 1 }

</bundles_post_ra>
